<compile_context>
chip_gen: v7x
topology: tpu7x:2x2x1
jax: 0.10.0
libtpu: 0.0.40
codegen_flags: <defaults>
</compile_context>

<pallas_src>
import functools

import jax
import jax.numpy as jnp
from jax.experimental import pallas as pl
from jax.experimental.pallas import tpu as pltpu


_LAYER_DIMS = [8000, 1024, 512, 256, 128, 64, 32, 16, 3]
_K1_PAD = 8192    # fc1 contraction dim, padded to a multiple of the K tile
_K1_TILE = 4096   # bf16 (4096, 512) weight tile = 4 MB; double-buffered = 8 MB
_N1_TILE = 512    # fc1 output split in 2 -> 'parallel' axis (v7x megacore)


# ---------------------------------------------------------------------------
# Kernel 1: fc1  (x @ W1 + b1, ReLU), K-tiled reduction, N-tiled parallel
# ---------------------------------------------------------------------------
def _fc1_kernel(x_ref, w_ref, b_ref, o_ref, acc_ref):
    k = pl.program_id(1)

    @pl.when(k == 0)
    def _init():
        acc_ref[...] = jnp.zeros_like(acc_ref)

    acc_ref[...] += jnp.dot(
        x_ref[...], w_ref[...], preferred_element_type=jnp.float32
    )

    @pl.when(k == pl.num_programs(1) - 1)
    def _finalize():
        o_ref[...] = jnp.maximum(acc_ref[...] + b_ref[...], 0.0).astype(o_ref.dtype)


def fc1_pallas(x_pad, w1, b1, *, k_tile=_K1_TILE, n_tile=_N1_TILE):
    """h1 = relu(x_pad @ w1 + b1); x_pad (M, Kp) bf16, w1 (Kp, N) bf16."""
    M, K = x_pad.shape
    Kw, N = w1.shape
    assert K == Kw and K % k_tile == 0 and N % n_tile == 0, (K, Kw, N)
    nj, nk = N // n_tile, K // k_tile

    return pl.pallas_call(
        _fc1_kernel,
        out_shape=jax.ShapeDtypeStruct((M, N), jnp.float32),
        grid_spec=pltpu.PrefetchScalarGridSpec(
            num_scalar_prefetch=0,
            grid=(nj, nk),  # N (parallel) first, reduction K (arbitrary) last
            in_specs=[
                pl.BlockSpec((M, k_tile), lambda j, k: (0, k)),       # x
                pl.BlockSpec((k_tile, n_tile), lambda j, k: (k, j)),  # W1
                pl.BlockSpec((1, n_tile), lambda j, k: (0, j)),       # b1
            ],
            out_specs=pl.BlockSpec((M, n_tile), lambda j, k: (0, j)),
            scratch_shapes=[pltpu.VMEM((M, n_tile), jnp.float32)],
        ),
        compiler_params=pltpu.CompilerParams(
            dimension_semantics=("parallel", "arbitrary"),
            vmem_limit_bytes=32 << 20,
        ),
    )(x_pad, w1, b1)


# ---------------------------------------------------------------------------
# Kernel 2: fused fc2..fc8 (+ReLU, final softmax) — all weights VMEM-resident
# ---------------------------------------------------------------------------
def _tail_kernel(*refs):
    # refs = (h_ref, w2, b2, w3, b3, ..., w8, b8, o_ref)
    h_ref = refs[0]
    o_ref = refs[-1]
    wb = refs[1:-1]
    n_layers = len(wb) // 2

    h = h_ref[...]  # f32 activations
    for i in range(n_layers):
        w = wb[2 * i][...].astype(jnp.float32)   # bf16 resident -> f32 compute
        b = wb[2 * i + 1][...]
        h = jnp.dot(h, w, preferred_element_type=jnp.float32) + b
        if i < n_layers - 1:
            h = jnp.maximum(h, 0.0)

    # softmax over the logit (last) dimension
    h = h - jnp.max(h, axis=-1, keepdims=True)
    e = jnp.exp(h)
    o_ref[...] = (e / jnp.sum(e, axis=-1, keepdims=True)).astype(o_ref.dtype)


def tail_pallas(h, tail_params):
    """out = softmax(fc8(relu(fc7(...relu(fc2(h))...)))) in one pallas_call."""
    M = h.shape[0]
    n_out = tail_params[-1][0].shape[1]

    flat = [h]
    in_specs = [pl.BlockSpec(h.shape, lambda i: (0, 0))]
    for w, b in tail_params:
        flat += [w, b]
        in_specs.append(pl.BlockSpec(w.shape, lambda i: (0, 0)))
        in_specs.append(pl.BlockSpec(b.shape, lambda i: (0, 0)))

    return pl.pallas_call(
        _tail_kernel,
        out_shape=jax.ShapeDtypeStruct((M, n_out), jnp.float32),
        grid_spec=pltpu.PrefetchScalarGridSpec(
            num_scalar_prefetch=0,
            grid=(1,),
            in_specs=in_specs,
            out_specs=pl.BlockSpec((M, n_out), lambda i: (0, 0)),
        ),
        compiler_params=pltpu.CompilerParams(
            dimension_semantics=("arbitrary",),
            vmem_limit_bytes=32 << 20,
        ),
    )(*flat)


# ---------------------------------------------------------------------------
# Parameter setup (deterministic, PyTorch nn.Linear-style uniform init)
# ---------------------------------------------------------------------------
def init_params(key):
    """Weights stored (in, out) in bf16; fc1's weight pre-padded to (8192, 1024)
    so the forward path never copies/pads the large matrix."""
    layers = []
    for fan_in, fan_out in zip(_LAYER_DIMS[:-1], _LAYER_DIMS[1:]):
        key, kw, kb = jax.random.split(key, 3)
        bound = 1.0 / (fan_in ** 0.5)
        w = jax.random.uniform(
            kw, (fan_in, fan_out), dtype=jnp.float32, minval=-bound, maxval=bound
        )
        b = jax.random.uniform(
            kb, (fan_out,), dtype=jnp.float32, minval=-bound, maxval=bound
        )
        layers.append((w, b))

    (w1, b1), tail = layers[0], layers[1:]
    w1 = jnp.pad(w1, ((0, _K1_PAD - w1.shape[0]), (0, 0))).astype(jnp.bfloat16)
    b1 = b1.reshape(1, -1)
    tail = [(w.astype(jnp.bfloat16), b.reshape(1, -1)) for w, b in tail]
    return {"w1": w1, "b1": b1, "tail": tail}


@jax.jit
def net_forward(x, params):
    """Full Net.forward: 7x (Linear+ReLU), then Linear + softmax(dim=-1)."""
    M, K = x.shape
    k_pad = params["w1"].shape[0]
    if k_pad != K:  # tiny activation pad only; the weight is pre-padded at init
        x = jnp.pad(x, ((0, 0), (0, k_pad - K)))
    x = x.astype(jnp.bfloat16)
    h1 = fc1_pallas(x, params["w1"], params["b1"])
    return tail_pallas(h1, params["tail"])


def reference_forward(x, params):
    """Pure-JAX reference using the same dtypes as the kernels."""
    k_pad = params["w1"].shape[0]
    xp = jnp.pad(x, ((0, 0), (0, k_pad - x.shape[1]))).astype(jnp.bfloat16)
    h = jnp.dot(xp, params["w1"], preferred_element_type=jnp.float32) + params["b1"]
    h = jnp.maximum(h, 0.0)
    tail = params["tail"]
    for i, (w, b) in enumerate(tail):
        h = jnp.dot(h, w.astype(jnp.float32)) + b
        if i < len(tail) - 1:
            h = jnp.maximum(h, 0.0)
    return jax.nn.softmax(h, axis=-1)


# TODO(synk): only Net.forward is implemented; Net.train/Net.test (CSV I/O,
# Adam optimizer, TensorBoard logging) have no Pallas equivalent here.

if __name__ == "__main__":
    key = jax.random.PRNGKey(0)
    key_p, key_x = jax.random.split(key)

    params = init_params(key_p)

    batch = 8  # batchSize used by Net.train; structure is batch-agnostic and
               # per-sample throughput scales ~linearly up to ~128-256 rows.
    x = jax.random.normal(key_x, (batch, 8000), dtype=jnp.float32)

    out = jax.block_until_ready(net_forward(x, params))

    assert out.shape == (batch, 3), out.shape
    # softmax rows must sum to 1
    assert bool(jnp.allclose(jnp.sum(out, axis=-1), 1.0, atol=1e-5))
    # matches the pure-JAX reference
    ref = reference_forward(x, params)
    assert bool(jnp.allclose(out, ref, atol=1e-3)), float(jnp.max(jnp.abs(out - ref)))

    print("KERNEL_OK")
</pallas_src>

<mosaic_0001>
module attributes {stable_mosaic.version = 11 : i64} {
  func.func @_fc1_kernel(%arg0: i32, %arg1: i32, %arg2: memref<8x4096xbf16, #tpu.memory_space<vmem>>, %arg3: memref<4096x512xbf16, #tpu.memory_space<vmem>>, %arg4: memref<1x512xf32, #tpu.memory_space<vmem>>, %arg5: memref<8x512xf32, #tpu.memory_space<vmem>>, %arg6: memref<8x512xf32, #tpu.memory_space<vmem>>) attributes {dimension_semantics = [#tpu.dimension_semantics<parallel>, #tpu.dimension_semantics<arbitrary>], iteration_bounds = array<i64: 2, 2>, scalar_prefetch = 0 : i64, scratch_operands = 1 : i64, tpu.core_type = #tpu.core_type<tc>, window_params = [{transform_indices = @transform_0, window_bounds = array<i64: 8, 4096>}, {transform_indices = @transform_1, window_bounds = array<i64: 4096, 512>}, {transform_indices = @transform_2, window_bounds = array<i64: 1, 512>}, {transform_indices = @transform_3, window_bounds = array<i64: 8, 512>}]} {
    %c0_i32 = arith.constant 0 : i32
    %0 = arith.cmpi eq, %arg1, %c0_i32 : i32
    %1 = arith.extui %0 : i1 to i32
    %c0_i32_0 = arith.constant 0 : i32
    %2 = arith.cmpi ne, %1, %c0_i32_0 : i32
    scf.if %2 {
      %cst_9 = arith.constant 0.000000e+00 : f32
      %12 = vector.broadcast %cst_9 : f32 to vector<8x512xf32>
      %c0_10 = arith.constant 0 : index
      %c0_11 = arith.constant 0 : index
      %13 = vector.load %arg6[%c0_10, %c0_11] : memref<8x512xf32, #tpu.memory_space<vmem>>, vector<8x512xf32>
      tpu.vector_store %arg6[%c0_10, %c0_11], %12 {strides = array<i32>} : memref<8x512xf32, #tpu.memory_space<vmem>>, vector<8x512xf32>,
    } else {
    }
    %c0 = arith.constant 0 : index
    %c0_1 = arith.constant 0 : index
    %3 = vector.load %arg6[%c0, %c0_1] : memref<8x512xf32, #tpu.memory_space<vmem>>, vector<8x512xf32>
    %c0_2 = arith.constant 0 : index
    %c0_3 = arith.constant 0 : index
    %4 = vector.load %arg2[%c0_2, %c0_3] : memref<8x4096xbf16, #tpu.memory_space<vmem>>, vector<8x4096xbf16>
    %c0_4 = arith.constant 0 : index
    %c0_5 = arith.constant 0 : index
    %5 = vector.load %arg3[%c0_4, %c0_5] : memref<4096x512xbf16, #tpu.memory_space<vmem>>, vector<4096x512xbf16>
    %cst = arith.constant dense<0.000000e+00> : vector<8x512xf32>
    %6 = tpu.matmul %4, %5, %cst {dimension_numbers = #tpu.dot_dimension_numbers<[1], [0], [0], [1], [0, 0, 1, 1], [], []>} : vector<8x4096xbf16>, vector<4096x512xbf16>, vector<8x512xf32> -> vector<8x512xf32>
    %7 = arith.addf %3, %6 : vector<8x512xf32>
    %c0_6 = arith.constant 0 : index
    %c0_7 = arith.constant 0 : index
    %8 = vector.load %arg6[%c0_6, %c0_7] : memref<8x512xf32, #tpu.memory_space<vmem>>, vector<8x512xf32>
    tpu.vector_store %arg6[%c0_6, %c0_7], %7 {strides = array<i32>} : memref<8x512xf32, #tpu.memory_space<vmem>>, vector<8x512xf32>,
    %c1_i32 = arith.constant 1 : i32
    %9 = arith.cmpi eq, %arg1, %c1_i32 : i32
    %10 = arith.extui %9 : i1 to i32
    %c0_i32_8 = arith.constant 0 : i32
    %11 = arith.cmpi ne, %10, %c0_i32_8 : i32
    scf.if %11 {
      %c0_9 = arith.constant 0 : index
      %c0_10 = arith.constant 0 : index
      %12 = vector.load %arg6[%c0_9, %c0_10] : memref<8x512xf32, #tpu.memory_space<vmem>>, vector<8x512xf32>
      %c0_11 = arith.constant 0 : index
      %c0_12 = arith.constant 0 : index
      %13 = vector.load %arg4[%c0_11, %c0_12] : memref<1x512xf32, #tpu.memory_space<vmem>>, vector<1x512xf32>
      %14 = vector.broadcast %13 : vector<1x512xf32> to vector<8x512xf32>
      %15 = arith.addf %12, %14 : vector<8x512xf32>
      %cst_13 = arith.constant 0.000000e+00 : f32
      %16 = vector.broadcast %cst_13 : f32 to vector<8x512xf32>
      %17 = arith.maximumf %15, %16 : vector<8x512xf32>
      %c0_14 = arith.constant 0 : index
      %c0_15 = arith.constant 0 : index
      %18 = vector.load %arg5[%c0_14, %c0_15] : memref<8x512xf32, #tpu.memory_space<vmem>>, vector<8x512xf32>
      tpu.vector_store %arg5[%c0_14, %c0_15], %17 {strides = array<i32>} : memref<8x512xf32, #tpu.memory_space<vmem>>, vector<8x512xf32>,
    } else {
    }
    return
  }
  func.func @transform_0(%arg0: i32, %arg1: i32) -> (i32, i32) {
    %c0_i32 = arith.constant 0 : i32
    %c0_i32_0 = arith.constant 0 : i32
    return %c0_i32, %arg1 : i32, i32
  }
  func.func @transform_1(%arg0: i32, %arg1: i32) -> (i32, i32) {
    %c0_i32 = arith.constant 0 : i32
    return %arg1, %arg0 : i32, i32
  }
  func.func @transform_2(%arg0: i32, %arg1: i32) -> (i32, i32) {
    %c0_i32 = arith.constant 0 : i32
    %c0_i32_0 = arith.constant 0 : i32
    return %c0_i32, %arg0 : i32, i32
  }
  func.func @transform_3(%arg0: i32, %arg1: i32) -> (i32, i32) {
    %c0_i32 = arith.constant 0 : i32
    %c0_i32_0 = arith.constant 0 : i32
    return %c0_i32, %arg0 : i32, i32
  }
}

module attributes {stable_mosaic.version = 11 : i64} {
  func.func @_tail_kernel(%arg0: i32, %arg1: memref<8x1024xf32, #tpu.memory_space<vmem>>, %arg2: memref<1024x512xbf16, #tpu.memory_space<vmem>>, %arg3: memref<1x512xf32, #tpu.memory_space<vmem>>, %arg4: memref<512x256xbf16, #tpu.memory_space<vmem>>, %arg5: memref<1x256xf32, #tpu.memory_space<vmem>>, %arg6: memref<256x128xbf16, #tpu.memory_space<vmem>>, %arg7: memref<1x128xf32, #tpu.memory_space<vmem>>, %arg8: memref<128x64xbf16, #tpu.memory_space<vmem>>, %arg9: memref<1x64xf32, #tpu.memory_space<vmem>>, %arg10: memref<64x32xbf16, #tpu.memory_space<vmem>>, %arg11: memref<1x32xf32, #tpu.memory_space<vmem>>, %arg12: memref<32x16xbf16, #tpu.memory_space<vmem>>, %arg13: memref<1x16xf32, #tpu.memory_space<vmem>>, %arg14: memref<16x3xbf16, #tpu.memory_space<vmem>>, %arg15: memref<1x3xf32, #tpu.memory_space<vmem>>, %arg16: memref<8x3xf32, #tpu.memory_space<vmem>>) attributes {dimension_semantics = [#tpu.dimension_semantics<arbitrary>], iteration_bounds = array<i64: 1>, scalar_prefetch = 0 : i64, scratch_operands = 0 : i64, tpu.core_type = #tpu.core_type<tc>, window_params = [{pipeline_mode = #tpu.pipeline_mode<synchronous>, transform_indices = @transform_0, window_bounds = array<i64: 8, 1024>}, {pipeline_mode = #tpu.pipeline_mode<synchronous>, transform_indices = @transform_1, window_bounds = array<i64: 1024, 512>}, {pipeline_mode = #tpu.pipeline_mode<synchronous>, transform_indices = @transform_2, window_bounds = array<i64: 1, 512>}, {pipeline_mode = #tpu.pipeline_mode<synchronous>, transform_indices = @transform_3, window_bounds = array<i64: 512, 256>}, {pipeline_mode = #tpu.pipeline_mode<synchronous>, transform_indices = @transform_4, window_bounds = array<i64: 1, 256>}, {pipeline_mode = #tpu.pipeline_mode<synchronous>, transform_indices = @transform_5, window_bounds = array<i64: 256, 128>}, {pipeline_mode = #tpu.pipeline_mode<synchronous>, transform_indices = @transform_6, window_bounds = array<i64: 1, 128>}, {pipeline_mode = #tpu.pipeline_mode<synchronous>, transform_indices = @transform_7, window_bounds = array<i64: 128, 64>}, {pipeline_mode = #tpu.pipeline_mode<synchronous>, transform_indices = @transform_8, window_bounds = array<i64: 1, 64>}, {pipeline_mode = #tpu.pipeline_mode<synchronous>, transform_indices = @transform_9, window_bounds = array<i64: 64, 32>}, {pipeline_mode = #tpu.pipeline_mode<synchronous>, transform_indices = @transform_10, window_bounds = array<i64: 1, 32>}, {pipeline_mode = #tpu.pipeline_mode<synchronous>, transform_indices = @transform_11, window_bounds = array<i64: 32, 16>}, {pipeline_mode = #tpu.pipeline_mode<synchronous>, transform_indices = @transform_12, window_bounds = array<i64: 1, 16>}, {pipeline_mode = #tpu.pipeline_mode<synchronous>, transform_indices = @transform_13, window_bounds = array<i64: 16, 3>}, {pipeline_mode = #tpu.pipeline_mode<synchronous>, transform_indices = @transform_14, window_bounds = array<i64: 1, 3>}, {pipeline_mode = #tpu.pipeline_mode<synchronous>, transform_indices = @transform_15, window_bounds = array<i64: 8, 3>}]} {
    %c0 = arith.constant 0 : index
    %c0_0 = arith.constant 0 : index
    %0 = vector.load %arg1[%c0, %c0_0] : memref<8x1024xf32, #tpu.memory_space<vmem>>, vector<8x1024xf32>
    %c0_1 = arith.constant 0 : index
    %c0_2 = arith.constant 0 : index
    %1 = vector.load %arg2[%c0_1, %c0_2] : memref<1024x512xbf16, #tpu.memory_space<vmem>>, vector<1024x512xbf16>
    %2 = arith.extf %1 : vector<1024x512xbf16> to vector<1024x512xf32>
    %c0_3 = arith.constant 0 : index
    %c0_4 = arith.constant 0 : index
    %3 = vector.load %arg3[%c0_3, %c0_4] : memref<1x512xf32, #tpu.memory_space<vmem>>, vector<1x512xf32>
    %cst = arith.constant dense<0.000000e+00> : vector<8x512xf32>
    %4 = tpu.matmul %0, %2, %cst {dimension_numbers = #tpu.dot_dimension_numbers<[1], [0], [0], [1], [0, 0, 1, 1], [], []>} : vector<8x1024xf32>, vector<1024x512xf32>, vector<8x512xf32> -> vector<8x512xf32>
    %5 = vector.broadcast %3 : vector<1x512xf32> to vector<8x512xf32>
    %6 = arith.addf %4, %5 : vector<8x512xf32>
    %cst_5 = arith.constant 0.000000e+00 : f32
    %7 = vector.broadcast %cst_5 : f32 to vector<8x512xf32>
    %8 = arith.maximumf %6, %7 : vector<8x512xf32>
    %c0_6 = arith.constant 0 : index
    %c0_7 = arith.constant 0 : index
    %9 = vector.load %arg4[%c0_6, %c0_7] : memref<512x256xbf16, #tpu.memory_space<vmem>>, vector<512x256xbf16>
    %10 = arith.extf %9 : vector<512x256xbf16> to vector<512x256xf32>
    %c0_8 = arith.constant 0 : index
    %c0_9 = arith.constant 0 : index
    %11 = vector.load %arg5[%c0_8, %c0_9] : memref<1x256xf32, #tpu.memory_space<vmem>>, vector<1x256xf32>
    %cst_10 = arith.constant dense<0.000000e+00> : vector<8x256xf32>
    %12 = tpu.matmul %8, %10, %cst_10 {dimension_numbers = #tpu.dot_dimension_numbers<[1], [0], [0], [1], [0, 0, 1, 1], [], []>} : vector<8x512xf32>, vector<512x256xf32>, vector<8x256xf32> -> vector<8x256xf32>
    %13 = vector.broadcast %11 : vector<1x256xf32> to vector<8x256xf32>
    %14 = arith.addf %12, %13 : vector<8x256xf32>
    %cst_11 = arith.constant 0.000000e+00 : f32
    %15 = vector.broadcast %cst_11 : f32 to vector<8x256xf32>
    %16 = arith.maximumf %14, %15 : vector<8x256xf32>
    %c0_12 = arith.constant 0 : index
    %c0_13 = arith.constant 0 : index
    %17 = vector.load %arg6[%c0_12, %c0_13] : memref<256x128xbf16, #tpu.memory_space<vmem>>, vector<256x128xbf16>
    %18 = arith.extf %17 : vector<256x128xbf16> to vector<256x128xf32>
    %c0_14 = arith.constant 0 : index
    %c0_15 = arith.constant 0 : index
    %19 = vector.load %arg7[%c0_14, %c0_15] : memref<1x128xf32, #tpu.memory_space<vmem>>, vector<1x128xf32>
    %cst_16 = arith.constant dense<0.000000e+00> : vector<8x128xf32>
    %20 = tpu.matmul %16, %18, %cst_16 {dimension_numbers = #tpu.dot_dimension_numbers<[1], [0], [0], [1], [0, 0, 1, 1], [], []>} : vector<8x256xf32>, vector<256x128xf32>, vector<8x128xf32> -> vector<8x128xf32>
    %21 = vector.broadcast %19 : vector<1x128xf32> to vector<8x128xf32>
    %22 = arith.addf %20, %21 : vector<8x128xf32>
    %cst_17 = arith.constant 0.000000e+00 : f32
    %23 = vector.broadcast %cst_17 : f32 to vector<8x128xf32>
    %24 = arith.maximumf %22, %23 : vector<8x128xf32>
    %c0_18 = arith.constant 0 : index
    %c0_19 = arith.constant 0 : index
    %25 = vector.load %arg8[%c0_18, %c0_19] : memref<128x64xbf16, #tpu.memory_space<vmem>>, vector<128x64xbf16>
    %26 = arith.extf %25 : vector<128x64xbf16> to vector<128x64xf32>
    %c0_20 = arith.constant 0 : index
    %c0_21 = arith.constant 0 : index
    %27 = vector.load %arg9[%c0_20, %c0_21] : memref<1x64xf32, #tpu.memory_space<vmem>>, vector<1x64xf32>
    %cst_22 = arith.constant dense<0.000000e+00> : vector<8x64xf32>
    %28 = tpu.matmul %24, %26, %cst_22 {dimension_numbers = #tpu.dot_dimension_numbers<[1], [0], [0], [1], [0, 0, 1, 1], [], []>} : vector<8x128xf32>, vector<128x64xf32>, vector<8x64xf32> -> vector<8x64xf32>
    %29 = vector.broadcast %27 : vector<1x64xf32> to vector<8x64xf32>
    %30 = arith.addf %28, %29 : vector<8x64xf32>
    %cst_23 = arith.constant 0.000000e+00 : f32
    %31 = vector.broadcast %cst_23 : f32 to vector<8x64xf32>
    %32 = arith.maximumf %30, %31 : vector<8x64xf32>
    %c0_24 = arith.constant 0 : index
    %c0_25 = arith.constant 0 : index
    %33 = vector.load %arg10[%c0_24, %c0_25] : memref<64x32xbf16, #tpu.memory_space<vmem>>, vector<64x32xbf16>
    %34 = arith.extf %33 : vector<64x32xbf16> to vector<64x32xf32>
    %c0_26 = arith.constant 0 : index
    %c0_27 = arith.constant 0 : index
    %35 = vector.load %arg11[%c0_26, %c0_27] : memref<1x32xf32, #tpu.memory_space<vmem>>, vector<1x32xf32>
    %cst_28 = arith.constant dense<0.000000e+00> : vector<8x32xf32>
    %36 = tpu.matmul %32, %34, %cst_28 {dimension_numbers = #tpu.dot_dimension_numbers<[1], [0], [0], [1], [0, 0, 1, 1], [], []>} : vector<8x64xf32>, vector<64x32xf32>, vector<8x32xf32> -> vector<8x32xf32>
    %37 = vector.broadcast %35 : vector<1x32xf32> to vector<8x32xf32>
    %38 = arith.addf %36, %37 : vector<8x32xf32>
    %cst_29 = arith.constant 0.000000e+00 : f32
    %39 = vector.broadcast %cst_29 : f32 to vector<8x32xf32>
    %40 = arith.maximumf %38, %39 : vector<8x32xf32>
    %c0_30 = arith.constant 0 : index
    %c0_31 = arith.constant 0 : index
    %41 = vector.load %arg12[%c0_30, %c0_31] : memref<32x16xbf16, #tpu.memory_space<vmem>>, vector<32x16xbf16>
    %42 = arith.extf %41 : vector<32x16xbf16> to vector<32x16xf32>
    %c0_32 = arith.constant 0 : index
    %c0_33 = arith.constant 0 : index
    %43 = vector.load %arg13[%c0_32, %c0_33] : memref<1x16xf32, #tpu.memory_space<vmem>>, vector<1x16xf32>
    %cst_34 = arith.constant dense<0.000000e+00> : vector<8x16xf32>
    %44 = tpu.matmul %40, %42, %cst_34 {dimension_numbers = #tpu.dot_dimension_numbers<[1], [0], [0], [1], [0, 0, 1, 1], [], []>} : vector<8x32xf32>, vector<32x16xf32>, vector<8x16xf32> -> vector<8x16xf32>
    %45 = vector.broadcast %43 : vector<1x16xf32> to vector<8x16xf32>
    %46 = arith.addf %44, %45 : vector<8x16xf32>
    %cst_35 = arith.constant 0.000000e+00 : f32
    %47 = vector.broadcast %cst_35 : f32 to vector<8x16xf32>
    %48 = arith.maximumf %46, %47 : vector<8x16xf32>
    %c0_36 = arith.constant 0 : index
    %c0_37 = arith.constant 0 : index
    %49 = vector.load %arg14[%c0_36, %c0_37] : memref<16x3xbf16, #tpu.memory_space<vmem>>, vector<16x3xbf16>
    %50 = arith.extf %49 : vector<16x3xbf16> to vector<16x3xf32>
    %c0_38 = arith.constant 0 : index
    %c0_39 = arith.constant 0 : index
    %51 = vector.load %arg15[%c0_38, %c0_39] : memref<1x3xf32, #tpu.memory_space<vmem>>, vector<1x3xf32>
    %cst_40 = arith.constant dense<0.000000e+00> : vector<8x3xf32>
    %52 = tpu.matmul %48, %50, %cst_40 {dimension_numbers = #tpu.dot_dimension_numbers<[1], [0], [0], [1], [0, 0, 1, 1], [], []>} : vector<8x16xf32>, vector<16x3xf32>, vector<8x3xf32> -> vector<8x3xf32>
    %53 = vector.broadcast %51 : vector<1x3xf32> to vector<8x3xf32>
    %54 = arith.addf %52, %53 : vector<8x3xf32>
    %cst_41 = arith.constant dense<0xFF800000> : vector<8xf32>
    %55 = vector.multi_reduction <maximumf>, %54, %cst_41 [1] : vector<8x3xf32> to vector<8xf32>
    %56 = vector.shape_cast %55 : vector<8xf32> to vector<8x1xf32>
    %57 = vector.broadcast %56 : vector<8x1xf32> to vector<8x3xf32>
    %58 = arith.subf %54, %57 : vector<8x3xf32>
    %59 = math.exp %58 : vector<8x3xf32>
    %cst_42 = arith.constant dense<0.000000e+00> : vector<8xf32>
    %60 = vector.multi_reduction <add>, %59, %cst_42 [1] : vector<8x3xf32> to vector<8xf32>
    %61 = vector.shape_cast %60 : vector<8xf32> to vector<8x1xf32>
    %62 = vector.broadcast %61 : vector<8x1xf32> to vector<8x3xf32>
    %63 = arith.divf %59, %62 : vector<8x3xf32>
    %c0_43 = arith.constant 0 : index
    %c0_44 = arith.constant 0 : index
    %64 = vector.load %arg16[%c0_43, %c0_44] : memref<8x3xf32, #tpu.memory_space<vmem>>, vector<8x3xf32>
    tpu.vector_store %arg16[%c0_43, %c0_44], %63 {strides = array<i32>} : memref<8x3xf32, #tpu.memory_space<vmem>>, vector<8x3xf32>,
    return
  }
  func.func @transform_0(%arg0: i32) -> (i32, i32) {
    %c0_i32 = arith.constant 0 : i32
    %c0_i32_0 = arith.constant 0 : i32
    %c0_i32_1 = arith.constant 0 : i32
    return %c0_i32, %c0_i32_0 : i32, i32
  }
  func.func @transform_1(%arg0: i32) -> (i32, i32) {
    %c0_i32 = arith.constant 0 : i32
    %c0_i32_0 = arith.constant 0 : i32
    %c0_i32_1 = arith.constant 0 : i32
    return %c0_i32, %c0_i32_0 : i32, i32
  }
  func.func @transform_2(%arg0: i32) -> (i32, i32) {
    %c0_i32 = arith.constant 0 : i32
    %c0_i32_0 = arith.constant 0 : i32
    %c0_i32_1 = arith.constant 0 : i32
    return %c0_i32, %c0_i32_0 : i32, i32
  }
  func.func @transform_3(%arg0: i32) -> (i32, i32) {
    %c0_i32 = arith.constant 0 : i32
    %c0_i32_0 = arith.constant 0 : i32
    %c0_i32_1 = arith.constant 0 : i32
    return %c0_i32, %c0_i32_0 : i32, i32
  }
  func.func @transform_4(%arg0: i32) -> (i32, i32) {
    %c0_i32 = arith.constant 0 : i32
    %c0_i32_0 = arith.constant 0 : i32
    %c0_i32_1 = arith.constant 0 : i32
    return %c0_i32, %c0_i32_0 : i32, i32
  }
  func.func @transform_5(%arg0: i32) -> (i32, i32) {
    %c0_i32 = arith.constant 0 : i32
    %c0_i32_0 = arith.constant 0 : i32
    %c0_i32_1 = arith.constant 0 : i32
    return %c0_i32, %c0_i32_0 : i32, i32
  }
  func.func @transform_6(%arg0: i32) -> (i32, i32) {
    %c0_i32 = arith.constant 0 : i32
    %c0_i32_0 = arith.constant 0 : i32
    %c0_i32_1 = arith.constant 0 : i32
    return %c0_i32, %c0_i32_0 : i32, i32
  }
  func.func @transform_7(%arg0: i32) -> (i32, i32) {
    %c0_i32 = arith.constant 0 : i32
    %c0_i32_0 = arith.constant 0 : i32
    %c0_i32_1 = arith.constant 0 : i32
    return %c0_i32, %c0_i32_0 : i32, i32
  }
  func.func @transform_8(%arg0: i32) -> (i32, i32) {
    %c0_i32 = arith.constant 0 : i32
    %c0_i32_0 = arith.constant 0 : i32
    %c0_i32_1 = arith.constant 0 : i32
    return %c0_i32, %c0_i32_0 : i32, i32
  }
  func.func @transform_9(%arg0: i32) -> (i32, i32) {
    %c0_i32 = arith.constant 0 : i32
    %c0_i32_0 = arith.constant 0 : i32
    %c0_i32_1 = arith.constant 0 : i32
    return %c0_i32, %c0_i32_0 : i32, i32
  }
  func.func @transform_10(%arg0: i32) -> (i32, i32) {
    %c0_i32 = arith.constant 0 : i32
    %c0_i32_0 = arith.constant 0 : i32
    %c0_i32_1 = arith.constant 0 : i32
    return %c0_i32, %c0_i32_0 : i32, i32
  }
  func.func @transform_11(%arg0: i32) -> (i32, i32) {
    %c0_i32 = arith.constant 0 : i32
    %c0_i32_0 = arith.constant 0 : i32
    %c0_i32_1 = arith.constant 0 : i32
    return %c0_i32, %c0_i32_0 : i32, i32
  }
  func.func @transform_12(%arg0: i32) -> (i32, i32) {
    %c0_i32 = arith.constant 0 : i32
    %c0_i32_0 = arith.constant 0 : i32
    %c0_i32_1 = arith.constant 0 : i32
    return %c0_i32, %c0_i32_0 : i32, i32
  }
  func.func @transform_13(%arg0: i32) -> (i32, i32) {
    %c0_i32 = arith.constant 0 : i32
    %c0_i32_0 = arith.constant 0 : i32
    %c0_i32_1 = arith.constant 0 : i32
    return %c0_i32, %c0_i32_0 : i32, i32
  }
  func.func @transform_14(%arg0: i32) -> (i32, i32) {
    %c0_i32 = arith.constant 0 : i32
    %c0_i32_0 = arith.constant 0 : i32
    %c0_i32_1 = arith.constant 0 : i32
    return %c0_i32, %c0_i32_0 : i32, i32
  }
  func.func @transform_15(%arg0: i32) -> (i32, i32) {
    %c0_i32 = arith.constant 0 : i32
    %c0_i32_0 = arith.constant 0 : i32
    %c0_i32_1 = arith.constant 0 : i32
    return %c0_i32, %c0_i32_0 : i32, i32
  }
}

</mosaic_0001>

<bundles_post_ra>
// kernel: net_forward.3
= control target key start
LH: loop header
LB: loop body
LE: loop exit
PB: predicated region body
PF: predicated region fallthrough
CT: control target
= control target key end

     0   :  { %vm4154_vm0 = vmmov 0   ;;  %vm2043_vm1 = vcmask 523264   ;;  %vm2133_vm2 = vcmask 261120   ;;  %vm2219_vm3 = vcmask 130048   ;;  %s5382_s1 = inlined_call_operand.vmem [shape: bf16[1024,512], index: 1, kind: input, shape index: {}]   ;;  %s5383_s0 = inlined_call_operand.vmem [shape: f32[8,1024], index: 0, kind: input, shape index: {}]   ;;  %s5384_s3 = inlined_call_operand.vmem [shape: bf16[512,256], index: 3, kind: input, shape index: {}]   ;;  %s5385_s5 = inlined_call_operand.vmem [shape: bf16[256,128], index: 5, kind: input, shape index: {}]   ;;  %s5386_s2 = inlined_call_operand.vmem [shape: f32[1,512], index: 2, kind: input, shape index: {}]   ;;  %s5387_s4 = inlined_call_operand.vmem [shape: f32[1,256], index: 4, kind: input, shape index: {}]   ;;  %s5388_s7 = inlined_call_operand.vmem [shape: bf16[128,64], index: 7, kind: input, shape index: {}]   ;;  %s5389_s6 = inlined_call_operand.vmem [shape: f32[1,128], index: 6, kind: input, shape index: {}]   ;;  %s5390_s9 = inlined_call_operand.vmem [shape: bf16[64,32], index: 9, kind: input, shape index: {}]   ;;  %s5391_s8 = inlined_call_operand.vmem [shape: f32[1,64], index: 8, kind: input, shape index: {}]   ;;  %s5392_s11 = inlined_call_operand.vmem [shape: bf16[32,16], index: 11, kind: input, shape index: {}]   ;;  %s5393_s10 = inlined_call_operand.vmem [shape: f32[1,32], index: 10, kind: input, shape index: {}]   ;;  %s5394_s13 = inlined_call_operand.vmem [shape: bf16[16,3], index: 13, kind: input, shape index: {}]   ;;  %s5395_s12 = inlined_call_operand.vmem [shape: f32[1,16], index: 12, kind: input, shape index: {}]   ;;  %s5396_s14 = inlined_call_operand.vmem [shape: f32[1,3], index: 14, kind: input, shape index: {}]   ;;  %s5397_s15 = inlined_call_operand.vmem [shape: f32[8,3], index: 15, kind: output, shape index: {}]  }
   0x1   :  { %v3669_v0 = vld [vmem:[%s5382_s1 + $0x4] ss:$16 sps:$4 sm:$0xff]   ;;  %v3671_v1 = vld [vmem:[%s5382_s1 + $0xc] ss:$16 sps:$4 sm:$0xff]   ;;  %v3673_v2 = vld [vmem:[%s5382_s1] ss:$16 sps:$4 sm:$0xff]  }
   0x2   :  { %2610 = vmatprep.subr.bf16.mxu0 %v3669_v0  ;;  %v3674_v3 = vld [vmem:[%s5382_s1 + $0x8] ss:$16 sps:$4 sm:$0xff]   ;;  %2866 = vmatprep.subr.bf16.mxu1 %v3671_v1  ;;  %v3675_v4 = vld [vmem:[%s5382_s1 + $0x24] ss:$16 sps:$4 sm:$0xff]   ;;  %v3677_v5 = vld [vmem:[%s5382_s1 + $0x2c] ss:$16 sps:$4 sm:$0xff]  }
   0x3   :  { %2612 = vmatpush1.bf16.msra.mxu0 %v3673_v2  ;;  %2868 = vmatpush1.bf16.msra.mxu1 %v3674_v3  ;;  %v3679_v6 = vld [vmem:[%s5382_s1 + $0x20] ss:$16 sps:$4 sm:$0xff]   ;;  %v3680_v7 = vld [vmem:[%s5382_s1 + $0x28] ss:$16 sps:$4 sm:$0xff]   ;;  %v3681_v8 = vld [vmem:[%s5382_s1 + $0x44] ss:$16 sps:$4 sm:$0xff]  }
   0x4   :  { %2614 = vmatprep.subr.bf16.mxu0 %v3675_v4  ;;  %2870 = vmatprep.subr.bf16.mxu1 %v3677_v5  ;;  %v3683_v9 = vld [vmem:[%s5382_s1 + $0x4c] ss:$16 sps:$4 sm:$0xff]   ;;  %v3685_v10 = vld [vmem:[%s5382_s1 + $0x40] ss:$16 sps:$4 sm:$0xff]   ;;  %v3686_v11 = vld [vmem:[%s5382_s1 + $0x48] ss:$16 sps:$4 sm:$0xff]  }
   0x5   :  { %v3687_v12 = vld [vmem:[%s5382_s1 + $0x64] ss:$16 sps:$4 sm:$0xff]   ;;  %v3689_v13 = vld [vmem:[%s5382_s1 + $0x6c] ss:$16 sps:$4 sm:$0xff]   ;;  %v3691_v14 = vld [vmem:[%s5382_s1 + $0x60] ss:$16 sps:$4 sm:$0xff]  }
   0x6   :  { %v3692_v15 = vld [vmem:[%s5382_s1 + $0x68] ss:$16 sps:$4 sm:$0xff]   ;;  %v3693_v16 = vld [vmem:[%s5382_s1 + $0x84] ss:$16 sps:$4 sm:$0xff]   ;;  %v3695_v17 = vld [vmem:[%s5382_s1 + $0x8c] ss:$16 sps:$4 sm:$0xff]  }
   0x7   :  { %2616 = vmatpush1.bf16.msra.mxu0 %v3679_v6  ;;  %2872 = vmatpush1.bf16.msra.mxu1 %v3680_v7  ;;  %v3697_v18 = vld [vmem:[%s5382_s1 + $0x80] ss:$16 sps:$4 sm:$0xff]   ;;  %v3698_v19 = vld [vmem:[%s5382_s1 + $0x88] ss:$16 sps:$4 sm:$0xff]   ;;  %v3699_v20 = vld [vmem:[%s5382_s1 + $0xa4] ss:$16 sps:$4 sm:$0xff]  }
   0x8   :  { %2618 = vmatprep.subr.bf16.mxu0 %v3681_v8  ;;  %2874 = vmatprep.subr.bf16.mxu1 %v3683_v9  ;;  %v3701_v21 = vld [vmem:[%s5382_s1 + $0xac] ss:$16 sps:$4 sm:$0xff]   ;;  %v3703_v22 = vld [vmem:[%s5382_s1 + $0xa0] ss:$16 sps:$4 sm:$0xff]   ;;  %v3704_v23 = vld [vmem:[%s5382_s1 + $0xa8] ss:$16 sps:$4 sm:$0xff]  }
   0x9   :  { %v3705_v24 = vld [vmem:[%s5382_s1 + $0xc4] ss:$16 sps:$4 sm:$0xff]   ;;  %v3707_v25 = vld [vmem:[%s5382_s1 + $0xcc] ss:$16 sps:$4 sm:$0xff]   ;;  %v3709_v26 = vld [vmem:[%s5382_s1 + $0xc0] ss:$16 sps:$4 sm:$0xff]  }
   0xa   :  { %v3710_v27 = vld [vmem:[%s5382_s1 + $0xc8] ss:$16 sps:$4 sm:$0xff]   ;;  %v3711_v28 = vld [vmem:[%s5382_s1 + $0xe4] ss:$16 sps:$4 sm:$0xff]   ;;  %v3713_v29 = vld [vmem:[%s5382_s1 + $0xec] ss:$16 sps:$4 sm:$0xff]  }
   0xb   :  { %2620 = vmatpush1.bf16.msra.mxu0 %v3685_v10  ;;  %2876 = vmatpush1.bf16.msra.mxu1 %v3686_v11  ;;  %v3715_v30 = vld [vmem:[%s5382_s1 + $0xe0] ss:$16 sps:$4 sm:$0xff]   ;;  %v3716_v31 = vld [vmem:[%s5382_s1 + $0xe8] ss:$16 sps:$4 sm:$0xff]   ;;  %v3717_v32 = vld [vmem:[%s5382_s1 + $0x104] ss:$16 sps:$4 sm:$0xff]  }
   0xc   :  { %2622 = vmatprep.subr.bf16.mxu0 %v3687_v12  ;;  %2878 = vmatprep.subr.bf16.mxu1 %v3689_v13  ;;  %v3719_v33 = vld [vmem:[%s5382_s1 + $0x10c] ss:$16 sps:$4 sm:$0xff]   ;;  %v3721_v34 = vld [vmem:[%s5382_s1 + $0x100] ss:$16 sps:$4 sm:$0xff]   ;;  %v3722_v35 = vld [vmem:[%s5382_s1 + $0x108] ss:$16 sps:$4 sm:$0xff]  }
   0xd   :  { %v3723_v36 = vld [vmem:[%s5382_s1 + $0x124] ss:$16 sps:$4 sm:$0xff]   ;;  %v3725_v37 = vld [vmem:[%s5382_s1 + $0x12c] ss:$16 sps:$4 sm:$0xff]   ;;  %v3727_v38 = vld [vmem:[%s5382_s1 + $0x120] ss:$16 sps:$4 sm:$0xff]  }
   0xe   :  { %v3728_v39 = vld [vmem:[%s5382_s1 + $0x128] ss:$16 sps:$4 sm:$0xff]   ;;  %v3729_v40 = vld [vmem:[%s5382_s1 + $0x144] ss:$16 sps:$4 sm:$0xff]   ;;  %v3731_v41 = vld [vmem:[%s5382_s1 + $0x14c] ss:$16 sps:$4 sm:$0xff]  }
   0xf   :  { %2624 = vmatpush1.bf16.msra.mxu0 %v3691_v14  ;;  %2880 = vmatpush1.bf16.msra.mxu1 %v3692_v15  ;;  %v3733_v42 = vld [vmem:[%s5382_s1 + $0x140] ss:$16 sps:$4 sm:$0xff]   ;;  %v3734_v43 = vld [vmem:[%s5382_s1 + $0x148] ss:$16 sps:$4 sm:$0xff]   ;;  %v3735_v44 = vld [vmem:[%s5382_s1 + $0x164] ss:$16 sps:$4 sm:$0xff]  }
  0x10   :  { %2626 = vmatprep.subr.bf16.mxu0 %v3693_v16  ;;  %2882 = vmatprep.subr.bf16.mxu1 %v3695_v17  ;;  %v3737_v45 = vld [vmem:[%s5382_s1 + $0x16c] ss:$16 sps:$4 sm:$0xff]   ;;  %v3739_v47 = vld [vmem:[%s5382_s1 + $0x160] ss:$16 sps:$4 sm:$0xff]   ;;  %v3740_v48 = vld [vmem:[%s5382_s1 + $0x168] ss:$16 sps:$4 sm:$0xff]  }
  0x11   :  { %v51_v46 = vld [vmem:[%s5383_s0 + $0x8] sm:$0xff]  ;;  %v3741_v49 = vld [vmem:[%s5382_s1 + $0x184] ss:$16 sps:$4 sm:$0xff]   ;;  %v3745_v51 = vld [vmem:[%s5382_s1 + $0x180] ss:$16 sps:$4 sm:$0xff]   ;;  %vm2293_vm4 = vcmask 23552  }
  0x12   :  { %912 = vmatprep.mubr.f32.mxu0 %v51_v46  ;;  %1196 = vmatprep.mubr.f32.mxu1 %v51_v46  ;;  %v3743_v50 = vld [vmem:[%s5382_s1 + $0x18c] ss:$16 sps:$4 sm:$0xff]   ;;  %v3746_v52 = vld [vmem:[%s5382_s1 + $0x188] ss:$16 sps:$4 sm:$0xff]   ;;  %v3747_v53 = vld [vmem:[%s5382_s1 + $0x1a4] ss:$16 sps:$4 sm:$0xff]  }
  0x13   :  { %2628 = vmatpush1.bf16.msra.mxu0 %v3697_v18  ;;  %2884 = vmatpush1.bf16.msra.mxu1 %v3698_v19  ;;  %v3749_v54 = vld [vmem:[%s5382_s1 + $0x1ac] ss:$16 sps:$4 sm:$0xff]   ;;  %v3751_v55 = vld [vmem:[%s5382_s1 + $0x1a0] ss:$16 sps:$4 sm:$0xff]   ;;  %v3752_v56 = vld [vmem:[%s5382_s1 + $0x1a8] ss:$16 sps:$4 sm:$0xff]  }
  0x14   :  { %2630 = vmatprep.subr.bf16.mxu0 %v3699_v20  ;;  %2886 = vmatprep.subr.bf16.mxu1 %v3701_v21  ;;  %v3753_v57 = vld [vmem:[%s5382_s1 + $0x1c4] ss:$16 sps:$4 sm:$0xff]   ;;  %v3755_v58 = vld [vmem:[%s5382_s1 + $0x1cc] ss:$16 sps:$4 sm:$0xff]   ;;  %v3757_v59 = vld [vmem:[%s5382_s1 + $0x1c0] ss:$16 sps:$4 sm:$0xff]  }
  0x15   :  { %v3758_v60 = vld [vmem:[%s5382_s1 + $0x1c8] ss:$16 sps:$4 sm:$0xff]   ;;  %v3759_v61 = vld [vmem:[%s5382_s1 + $0x1e4] ss:$16 sps:$4 sm:$0xff]   ;;  %v3761_v62 = vld [vmem:[%s5382_s1 + $0x1ec] ss:$16 sps:$4 sm:$0xff]  }
  0x16   :  { %v3763_v63 = vld [vmem:[%s5382_s1 + $0x1e0] ss:$16 sps:$4 sm:$0xff]   ;;  %v3764_v0 = vld [vmem:[%s5382_s1 + $0x1e8] ss:$16 sps:$4 sm:$0xff]   ;;  %v3765_v1 = vld [vmem:[%s5382_s1 + $0x204] ss:$16 sps:$4 sm:$0xff]  }
  0x17   :  { %2632 = vmatpush1.bf16.msra.mxu0 %v3703_v22  ;;  %2888 = vmatpush1.bf16.msra.mxu1 %v3704_v23  ;;  %v3768_v2 = vld [vmem:[%s5382_s1 + $0x20c] ss:$16 sps:$4 sm:$0xff]   ;;  %v3767_v3 = vld [vmem:[%s5382_s1 + $0x200] ss:$16 sps:$4 sm:$0xff]   ;;  %v3770_v4 = vld [vmem:[%s5382_s1 + $0x208] ss:$16 sps:$4 sm:$0xff]  }
  0x18   :  { %2634 = vmatprep.subr.bf16.mxu0 %v3705_v24  ;;  %2890 = vmatprep.subr.bf16.mxu1 %v3707_v25  ;;  %v50_v5 = vld [vmem:[%s5383_s0] sm:$0xff]  ;;  %v3774_v7 = vld [vmem:[%s5382_s1 + $0x22c] ss:$16 sps:$4 sm:$0xff]   ;;  %v3776_v9 = vld [vmem:[%s5382_s1 + $0x228] ss:$16 sps:$4 sm:$0xff]  }
  0x19   :  { %v3771_v6 = vld [vmem:[%s5382_s1 + $0x224] ss:$16 sps:$4 sm:$0xff]   ;;  %v3773_v8 = vld [vmem:[%s5382_s1 + $0x220] ss:$16 sps:$4 sm:$0xff]   ;;  %v3780_v11 = vld [vmem:[%s5382_s1 + $0x24c] ss:$16 sps:$4 sm:$0xff]  }
  0x1a   :  { %v3777_v10 = vld [vmem:[%s5382_s1 + $0x244] ss:$16 sps:$4 sm:$0xff]   ;;  %v3779_v12 = vld [vmem:[%s5382_s1 + $0x240] ss:$16 sps:$4 sm:$0xff]   ;;  %v3782_v13 = vld [vmem:[%s5382_s1 + $0x248] ss:$16 sps:$4 sm:$0xff]  }
  0x1b   :  { %2636 = vmatpush1.bf16.msra.mxu0 %v3709_v26  ;;  %2892 = vmatpush1.bf16.msra.mxu1 %v3710_v27  ;;  %v3783_v14 = vld [vmem:[%s5382_s1 + $0x264] ss:$16 sps:$4 sm:$0xff]   ;;  %v3786_v15 = vld [vmem:[%s5382_s1 + $0x26c] ss:$16 sps:$4 sm:$0xff]   ;;  %v3785_v16 = vld [vmem:[%s5382_s1 + $0x260] ss:$16 sps:$4 sm:$0xff]  }
  0x1c   :  { %2638 = vmatprep.subr.bf16.mxu0 %v3711_v28  ;;  %2894 = vmatprep.subr.bf16.mxu1 %v3713_v29  ;;  %v3788_v17 = vld [vmem:[%s5382_s1 + $0x268] ss:$16 sps:$4 sm:$0xff]   ;;  %v3789_v18 = vld [vmem:[%s5382_s1 + $0x284] ss:$16 sps:$4 sm:$0xff]   ;;  %v3792_v19 = vld [vmem:[%s5382_s1 + $0x28c] ss:$16 sps:$4 sm:$0xff]  }
  0x1d   :  { %v3791_v20 = vld [vmem:[%s5382_s1 + $0x280] ss:$16 sps:$4 sm:$0xff]   ;;  %v3794_v21 = vld [vmem:[%s5382_s1 + $0x288] ss:$16 sps:$4 sm:$0xff]   ;;  %v3795_v22 = vld [vmem:[%s5382_s1 + $0x2a4] ss:$16 sps:$4 sm:$0xff]  }
  0x1e   :  { %v3798_v23 = vld [vmem:[%s5382_s1 + $0x2ac] ss:$16 sps:$4 sm:$0xff]   ;;  %v3797_v24 = vld [vmem:[%s5382_s1 + $0x2a0] ss:$16 sps:$4 sm:$0xff]   ;;  %v3800_v25 = vld [vmem:[%s5382_s1 + $0x2a8] ss:$16 sps:$4 sm:$0xff]  }
  0x1f   :  { %2640 = vmatpush1.bf16.msra.mxu0 %v3715_v30  ;;  %2896 = vmatpush1.bf16.msra.mxu1 %v3716_v31  ;;  %v3801_v26 = vld [vmem:[%s5382_s1 + $0x2c4] ss:$16 sps:$4 sm:$0xff]   ;;  %v3804_v27 = vld [vmem:[%s5382_s1 + $0x2cc] ss:$16 sps:$4 sm:$0xff]   ;;  %v3803_v29 = vld [vmem:[%s5382_s1 + $0x2c0] ss:$16 sps:$4 sm:$0xff]  }
  0x20   :  { %2642 = vmatprep.subr.bf16.mxu0 %v3717_v32  ;;  %2898 = vmatprep.subr.bf16.mxu1 %v3719_v33  ;;  %v53_v28 = vld [vmem:[%s5383_s0 + $0x18] sm:$0xff]  ;;  %v3807_v31 = vld [vmem:[%s5382_s1 + $0x2e4] ss:$16 sps:$4 sm:$0xff]   ;;  %v3809_v33 = vld [vmem:[%s5382_s1 + $0x2e0] ss:$16 sps:$4 sm:$0xff]  }
  0x21   :  { %v3806_v30 = vld [vmem:[%s5382_s1 + $0x2c8] ss:$16 sps:$4 sm:$0xff]   ;;  %v3810_v32 = vld [vmem:[%s5382_s1 + $0x2ec] ss:$16 sps:$4 sm:$0xff]  }
  0x22   :  { %v3830_v46 = vld [vmem:[%s5382_s1 + $0x348] ss:$16 sps:$4 sm:$0xff]  }
  0x23   :  { %2644 = vmatpush1.bf16.msra.mxu0 %v3721_v34  ;;  %2900 = vmatpush1.bf16.msra.mxu1 %v3722_v35  ;;  %v3812_v34 = vld [vmem:[%s5382_s1 + $0x2e8] ss:$16 sps:$4 sm:$0xff]   ;;  %v3813_v35 = vld [vmem:[%s5382_s1 + $0x304] ss:$16 sps:$4 sm:$0xff]  }
  0x24   :  { %2646 = vmatprep.subr.bf16.mxu0 %v3723_v36  ;;  %2902 = vmatprep.subr.bf16.mxu1 %v3725_v37  ;;  %v3816_v36 = vld [vmem:[%s5382_s1 + $0x30c] ss:$16 sps:$4 sm:$0xff]   ;;  %v3815_v37 = vld [vmem:[%s5382_s1 + $0x300] ss:$16 sps:$4 sm:$0xff]  }
  0x27   :  { %2648 = vmatpush1.bf16.msra.mxu0 %v3727_v38  ;;  %2904 = vmatpush1.bf16.msra.mxu1 %v3728_v39  ;;  %v3818_v38 = vld [vmem:[%s5382_s1 + $0x308] ss:$16 sps:$4 sm:$0xff]   ;;  %v3819_v39 = vld [vmem:[%s5382_s1 + $0x324] ss:$16 sps:$4 sm:$0xff]  }
  0x28   :  { %2650 = vmatprep.subr.bf16.mxu0 %v3729_v40  ;;  %2906 = vmatprep.subr.bf16.mxu1 %v3731_v41  ;;  %v3822_v40 = vld [vmem:[%s5382_s1 + $0x32c] ss:$16 sps:$4 sm:$0xff]   ;;  %v3821_v41 = vld [vmem:[%s5382_s1 + $0x320] ss:$16 sps:$4 sm:$0xff]  }
  0x2b   :  { %2652 = vmatpush1.bf16.msra.mxu0 %v3733_v42  ;;  %2908 = vmatpush1.bf16.msra.mxu1 %v3734_v43  ;;  %v3824_v42 = vld [vmem:[%s5382_s1 + $0x328] ss:$16 sps:$4 sm:$0xff]   ;;  %v3825_v43 = vld [vmem:[%s5382_s1 + $0x344] ss:$16 sps:$4 sm:$0xff]  }
  0x2c   :  { %2654 = vmatprep.subr.bf16.mxu0 %v3735_v44  ;;  %2910 = vmatprep.subr.bf16.mxu1 %v3737_v45  ;;  %v3828_v44 = vld [vmem:[%s5382_s1 + $0x34c] ss:$16 sps:$4 sm:$0xff]   ;;  %v3827_v45 = vld [vmem:[%s5382_s1 + $0x340] ss:$16 sps:$4 sm:$0xff]  }
  0x2f   :  { %2656 = vmatpush1.bf16.msra.mxu0 %v3739_v47  ;;  %2912 = vmatpush1.bf16.msra.mxu1 %v3740_v48  ;;  %v3831_v47 = vld [vmem:[%s5382_s1 + $0x364] ss:$16 sps:$4 sm:$0xff]   ;;  %v3834_v48 = vld [vmem:[%s5382_s1 + $0x36c] ss:$16 sps:$4 sm:$0xff]  }
  0x30   :  { %2658 = vmatprep.subr.bf16.mxu0 %v3741_v49  ;;  %2914 = vmatprep.subr.bf16.mxu1 %v3743_v50  ;;  %v3833_v49 = vld [vmem:[%s5382_s1 + $0x360] ss:$16 sps:$4 sm:$0xff]   ;;  %v3836_v50 = vld [vmem:[%s5382_s1 + $0x368] ss:$16 sps:$4 sm:$0xff]  }
  0x33   :  { %2660 = vmatpush1.bf16.msra.mxu0 %v3745_v51  ;;  %2916 = vmatpush1.bf16.msra.mxu1 %v3746_v52  ;;  %v3837_v51 = vld [vmem:[%s5382_s1 + $0x384] ss:$16 sps:$4 sm:$0xff]   ;;  %v3840_v52 = vld [vmem:[%s5382_s1 + $0x38c] ss:$16 sps:$4 sm:$0xff]  }
  0x34   :  { %2662 = vmatprep.subr.bf16.mxu0 %v3747_v53  ;;  %2918 = vmatprep.subr.bf16.mxu1 %v3749_v54  ;;  %v3839_v53 = vld [vmem:[%s5382_s1 + $0x380] ss:$16 sps:$4 sm:$0xff]   ;;  %v3842_v54 = vld [vmem:[%s5382_s1 + $0x388] ss:$16 sps:$4 sm:$0xff]  }
  0x37   :  { %2664 = vmatpush1.bf16.msra.mxu0 %v3751_v55  ;;  %2920 = vmatpush1.bf16.msra.mxu1 %v3752_v56  ;;  %v3843_v55 = vld [vmem:[%s5382_s1 + $0x3a4] ss:$16 sps:$4 sm:$0xff]   ;;  %v3846_v56 = vld [vmem:[%s5382_s1 + $0x3ac] ss:$16 sps:$4 sm:$0xff]  }
  0x38   :  { %2666 = vmatprep.subr.bf16.mxu0 %v3753_v57  ;;  %2922 = vmatprep.subr.bf16.mxu1 %v3755_v58  ;;  %v3845_v57 = vld [vmem:[%s5382_s1 + $0x3a0] ss:$16 sps:$4 sm:$0xff]   ;;  %v3848_v58 = vld [vmem:[%s5382_s1 + $0x3a8] ss:$16 sps:$4 sm:$0xff]  }
  0x3b   :  { %2668 = vmatpush1.bf16.msra.mxu0 %v3757_v59  ;;  %2924 = vmatpush1.bf16.msra.mxu1 %v3758_v60  ;;  %v3849_v59 = vld [vmem:[%s5382_s1 + $0x3c4] ss:$16 sps:$4 sm:$0xff]   ;;  %v3852_v60 = vld [vmem:[%s5382_s1 + $0x3cc] ss:$16 sps:$4 sm:$0xff]  }
  0x3c   :  { %2670 = vmatprep.subr.bf16.mxu0 %v3759_v61  ;;  %2926 = vmatprep.subr.bf16.mxu1 %v3761_v62  ;;  %v3851_v61 = vld [vmem:[%s5382_s1 + $0x3c0] ss:$16 sps:$4 sm:$0xff]   ;;  %v3854_v62 = vld [vmem:[%s5382_s1 + $0x3c8] ss:$16 sps:$4 sm:$0xff]  }
  0x3f   :  { %2672 = vmatpush1.bf16.msra.mxu0 %v3763_v63  ;;  %2928 = vmatpush1.bf16.msra.mxu1 %v3764_v0  ;;  %v3855_v63 = vld [vmem:[%s5382_s1 + $0x3e4] ss:$16 sps:$4 sm:$0xff]   ;;  %v3858_v0 = vld [vmem:[%s5382_s1 + $0x3ec] ss:$16 sps:$4 sm:$0xff]  }
  0x40   :  { %2674 = vmatprep.subr.bf16.mxu0 %v3765_v1  ;;  %2930 = vmatprep.subr.bf16.mxu1 %v3768_v2  ;;  %v3857_v1 = vld [vmem:[%s5382_s1 + $0x3e0] ss:$16 sps:$4 sm:$0xff]   ;;  %v3860_v2 = vld [vmem:[%s5382_s1 + $0x3e8] ss:$16 sps:$4 sm:$0xff]  }
  0x42   :  { %913 = vmatmul.mubr.f32.vlgmr.msra.gmra.mrb[0].mxu0 %v50_v5  ;;  %1197 = vmatmul.mubr.f32.vlgmr.msra.gmra.mrb[0].mxu1 %v50_v5  ;;  %v3863_v5 = vld [vmem:[%s5382_s1 + $0x400] ss:$16 sps:$4 sm:$0xff]  }
  0x43   :  { %2676 = vmatpush1.bf16.msra.mxu0 %v3767_v3  ;;  %2932 = vmatpush1.bf16.msra.mxu1 %v3770_v4  ;;  %v3861_v3 = vld [vmem:[%s5382_s1 + $0x404] ss:$16 sps:$4 sm:$0xff]   ;;  %v3864_v4 = vld [vmem:[%s5382_s1 + $0x40c] ss:$16 sps:$4 sm:$0xff]  }
  0x44   :  { %2678 = vmatprep.subr.bf16.mxu0 %v3771_v6  ;;  %2934 = vmatprep.subr.bf16.mxu1 %v3774_v7  ;;  %v3866_v6 = vld [vmem:[%s5382_s1 + $0x408] ss:$16 sps:$4 sm:$0xff]   ;;  %v52_v7 = vld [vmem:[%s5383_s0 + $0x10] sm:$0xff] }
  0x45   :  { %983 = vmatprep.mubr.f32.mxu0 %v53_v28  ;;  %1267 = vmatprep.mubr.f32.mxu1 %v53_v28  ;;  %v3896_v28 = vld [vmem:[%s5382_s1 + $0x4a8] ss:$16 sps:$4 sm:$0xff]  }
  0x47   :  { %2680 = vmatpush1.bf16.msra.mxu0 %v3773_v8  ;;  %2936 = vmatpush1.bf16.msra.mxu1 %v3776_v9  ;;  %v3867_v8 = vld [vmem:[%s5382_s1 + $0x424] ss:$16 sps:$4 sm:$0xff]   ;;  %v3870_v9 = vld [vmem:[%s5382_s1 + $0x42c] ss:$16 sps:$4 sm:$0xff]  }
  0x48   :  { %2682 = vmatprep.subr.bf16.mxu0 %v3777_v10  ;;  %2938 = vmatprep.subr.bf16.mxu1 %v3780_v11  ;;  %v55_v10 = vld [vmem:[%s5383_s0 + $0x28] sm:$0xff]  ;;  %v3869_v11 = vld [vmem:[%s5382_s1 + $0x420] ss:$16 sps:$4 sm:$0xff]  }
  0x4b   :  { %2684 = vmatpush1.bf16.msra.mxu0 %v3779_v12  ;;  %2940 = vmatpush1.bf16.msra.mxu1 %v3782_v13  ;;  %v3872_v12 = vld [vmem:[%s5382_s1 + $0x428] ss:$16 sps:$4 sm:$0xff]   ;;  %v3873_v13 = vld [vmem:[%s5382_s1 + $0x444] ss:$16 sps:$4 sm:$0xff]  }
  0x4c   :  { %2686 = vmatprep.subr.bf16.mxu0 %v3783_v14  ;;  %2942 = vmatprep.subr.bf16.mxu1 %v3786_v15  ;;  %v3876_v14 = vld [vmem:[%s5382_s1 + $0x44c] ss:$16 sps:$4 sm:$0xff]   ;;  %v3875_v15 = vld [vmem:[%s5382_s1 + $0x440] ss:$16 sps:$4 sm:$0xff]  }
  0x4f   :  { %2688 = vmatpush1.bf16.msra.mxu0 %v3785_v16  ;;  %2944 = vmatpush1.bf16.msra.mxu1 %v3788_v17  ;;  %v3878_v16 = vld [vmem:[%s5382_s1 + $0x448] ss:$16 sps:$4 sm:$0xff]   ;;  %v3879_v17 = vld [vmem:[%s5382_s1 + $0x464] ss:$16 sps:$4 sm:$0xff]  }
  0x50   :  { %2690 = vmatprep.subr.bf16.mxu0 %v3789_v18  ;;  %2946 = vmatprep.subr.bf16.mxu1 %v3792_v19  ;;  %v3882_v18 = vld [vmem:[%s5382_s1 + $0x46c] ss:$16 sps:$4 sm:$0xff]   ;;  %v3881_v19 = vld [vmem:[%s5382_s1 + $0x460] ss:$16 sps:$4 sm:$0xff]  }
  0x53   :  { %2692 = vmatpush1.bf16.msra.mxu0 %v3791_v20  ;;  %2948 = vmatpush1.bf16.msra.mxu1 %v3794_v21  ;;  %v3884_v20 = vld [vmem:[%s5382_s1 + $0x468] ss:$16 sps:$4 sm:$0xff]   ;;  %v3885_v21 = vld [vmem:[%s5382_s1 + $0x484] ss:$16 sps:$4 sm:$0xff]  }
  0x54   :  { %2694 = vmatprep.subr.bf16.mxu0 %v3795_v22  ;;  %2950 = vmatprep.subr.bf16.mxu1 %v3798_v23  ;;  %v3888_v22 = vld [vmem:[%s5382_s1 + $0x48c] ss:$16 sps:$4 sm:$0xff]   ;;  %v3887_v23 = vld [vmem:[%s5382_s1 + $0x480] ss:$16 sps:$4 sm:$0xff]  }
  0x57   :  { %2696 = vmatpush1.bf16.msra.mxu0 %v3797_v24  ;;  %2952 = vmatpush1.bf16.msra.mxu1 %v3800_v25  ;;  %v3890_v24 = vld [vmem:[%s5382_s1 + $0x488] ss:$16 sps:$4 sm:$0xff]   ;;  %v3891_v25 = vld [vmem:[%s5382_s1 + $0x4a4] ss:$16 sps:$4 sm:$0xff]  }
  0x58   :  { %2698 = vmatprep.subr.bf16.mxu0 %v3801_v26  ;;  %2954 = vmatprep.subr.bf16.mxu1 %v3804_v27  ;;  %v3894_v26 = vld [vmem:[%s5382_s1 + $0x4ac] ss:$16 sps:$4 sm:$0xff]   ;;  %v3893_v27 = vld [vmem:[%s5382_s1 + $0x4a0] ss:$16 sps:$4 sm:$0xff]  }
  0x5b   :  { %2700 = vmatpush1.bf16.msra.mxu0 %v3803_v29  ;;  %2956 = vmatpush1.bf16.msra.mxu1 %v3806_v30  ;;  %v3897_v29 = vld [vmem:[%s5382_s1 + $0x4c4] ss:$16 sps:$4 sm:$0xff]   ;;  %v3900_v30 = vld [vmem:[%s5382_s1 + $0x4cc] ss:$16 sps:$4 sm:$0xff]  }
  0x5c   :  { %2702 = vmatprep.subr.bf16.mxu0 %v3807_v31  ;;  %2958 = vmatprep.subr.bf16.mxu1 %v3810_v32  ;;  %v3899_v31 = vld [vmem:[%s5382_s1 + $0x4c0] ss:$16 sps:$4 sm:$0xff]   ;;  %v3902_v32 = vld [vmem:[%s5382_s1 + $0x4c8] ss:$16 sps:$4 sm:$0xff]  }
  0x5f   :  { %2704 = vmatpush1.bf16.msra.mxu0 %v3809_v33  ;;  %2960 = vmatpush1.bf16.msra.mxu1 %v3812_v34  ;;  %v3903_v33 = vld [vmem:[%s5382_s1 + $0x4e4] ss:$16 sps:$4 sm:$0xff]   ;;  %v3906_v34 = vld [vmem:[%s5382_s1 + $0x4ec] ss:$16 sps:$4 sm:$0xff]  }
  0x60   :  { %2706 = vmatprep.subr.bf16.mxu0 %v3813_v35  ;;  %2962 = vmatprep.subr.bf16.mxu1 %v3816_v36  ;;  %v3905_v35 = vld [vmem:[%s5382_s1 + $0x4e0] ss:$16 sps:$4 sm:$0xff]   ;;  %v3908_v36 = vld [vmem:[%s5382_s1 + $0x4e8] ss:$16 sps:$4 sm:$0xff]  }
  0x63   :  { %2708 = vmatpush1.bf16.msra.mxu0 %v3815_v37  ;;  %2964 = vmatpush1.bf16.msra.mxu1 %v3818_v38  ;;  %v3909_v37 = vld [vmem:[%s5382_s1 + $0x504] ss:$16 sps:$4 sm:$0xff]   ;;  %v3912_v38 = vld [vmem:[%s5382_s1 + $0x50c] ss:$16 sps:$4 sm:$0xff]  }
  0x64   :  { %2710 = vmatprep.subr.bf16.mxu0 %v3819_v39  ;;  %2966 = vmatprep.subr.bf16.mxu1 %v3822_v40  ;;  %v3911_v39 = vld [vmem:[%s5382_s1 + $0x500] ss:$16 sps:$4 sm:$0xff]   ;;  %v3914_v40 = vld [vmem:[%s5382_s1 + $0x508] ss:$16 sps:$4 sm:$0xff]  }
  0x67   :  { %2712 = vmatpush1.bf16.msra.mxu0 %v3821_v41  ;;  %2968 = vmatpush1.bf16.msra.mxu1 %v3824_v42  ;;  %v3915_v41 = vld [vmem:[%s5382_s1 + $0x524] ss:$16 sps:$4 sm:$0xff]   ;;  %v3918_v42 = vld [vmem:[%s5382_s1 + $0x52c] ss:$16 sps:$4 sm:$0xff]  }
  0x68   :  { %2714 = vmatprep.subr.bf16.mxu0 %v3825_v43  ;;  %2970 = vmatprep.subr.bf16.mxu1 %v3828_v44  ;;  %v3917_v43 = vld [vmem:[%s5382_s1 + $0x520] ss:$16 sps:$4 sm:$0xff]   ;;  %v3920_v44 = vld [vmem:[%s5382_s1 + $0x528] ss:$16 sps:$4 sm:$0xff]  }
  0x6b   :  { %2716 = vmatpush1.bf16.msra.mxu0 %v3827_v45  ;;  %2972 = vmatpush1.bf16.msra.mxu1 %v3830_v46  ;;  %v3921_v45 = vld [vmem:[%s5382_s1 + $0x544] ss:$16 sps:$4 sm:$0xff]   ;;  %v3924_v46 = vld [vmem:[%s5382_s1 + $0x54c] ss:$16 sps:$4 sm:$0xff]  }
  0x6c   :  { %2718 = vmatprep.subr.bf16.mxu0 %v3831_v47  ;;  %2974 = vmatprep.subr.bf16.mxu1 %v3834_v48  ;;  %v3923_v47 = vld [vmem:[%s5382_s1 + $0x540] ss:$16 sps:$4 sm:$0xff]   ;;  %v3926_v48 = vld [vmem:[%s5382_s1 + $0x548] ss:$16 sps:$4 sm:$0xff]  }
  0x6f   :  { %2720 = vmatpush1.bf16.msra.mxu0 %v3833_v49  ;;  %2976 = vmatpush1.bf16.msra.mxu1 %v3836_v50  ;;  %v3927_v49 = vld [vmem:[%s5382_s1 + $0x564] ss:$16 sps:$4 sm:$0xff]   ;;  %v3930_v50 = vld [vmem:[%s5382_s1 + $0x56c] ss:$16 sps:$4 sm:$0xff]  }
  0x70   :  { %2722 = vmatprep.subr.bf16.mxu0 %v3837_v51  ;;  %2978 = vmatprep.subr.bf16.mxu1 %v3840_v52  ;;  %v3929_v51 = vld [vmem:[%s5382_s1 + $0x560] ss:$16 sps:$4 sm:$0xff]   ;;  %v3932_v52 = vld [vmem:[%s5382_s1 + $0x568] ss:$16 sps:$4 sm:$0xff]  }
  0x73   :  { %2724 = vmatpush1.bf16.msra.mxu0 %v3839_v53  ;;  %2980 = vmatpush1.bf16.msra.mxu1 %v3842_v54  ;;  %v3933_v53 = vld [vmem:[%s5382_s1 + $0x584] ss:$16 sps:$4 sm:$0xff]   ;;  %v3936_v54 = vld [vmem:[%s5382_s1 + $0x58c] ss:$16 sps:$4 sm:$0xff]  }
  0x74   :  { %2726 = vmatprep.subr.bf16.mxu0 %v3843_v55  ;;  %2982 = vmatprep.subr.bf16.mxu1 %v3846_v56  ;;  %v3935_v55 = vld [vmem:[%s5382_s1 + $0x580] ss:$16 sps:$4 sm:$0xff]   ;;  %v3938_v56 = vld [vmem:[%s5382_s1 + $0x588] ss:$16 sps:$4 sm:$0xff]  }
  0x77   :  { %2728 = vmatpush1.bf16.msra.mxu0 %v3845_v57  ;;  %2984 = vmatpush1.bf16.msra.mxu1 %v3848_v58  ;;  %v3939_v57 = vld [vmem:[%s5382_s1 + $0x5a4] ss:$16 sps:$4 sm:$0xff]   ;;  %v3942_v58 = vld [vmem:[%s5382_s1 + $0x5ac] ss:$16 sps:$4 sm:$0xff]  }
  0x78   :  { %2730 = vmatprep.subr.bf16.mxu0 %v3849_v59  ;;  %2986 = vmatprep.subr.bf16.mxu1 %v3852_v60  ;;  %v3941_v59 = vld [vmem:[%s5382_s1 + $0x5a0] ss:$16 sps:$4 sm:$0xff]   ;;  %v3944_v60 = vld [vmem:[%s5382_s1 + $0x5a8] ss:$16 sps:$4 sm:$0xff]  }
  0x7b   :  { %2732 = vmatpush1.bf16.msra.mxu0 %v3851_v61  ;;  %2988 = vmatpush1.bf16.msra.mxu1 %v3854_v62  ;;  %v3945_v61 = vld [vmem:[%s5382_s1 + $0x5c4] ss:$16 sps:$4 sm:$0xff]   ;;  %v3948_v62 = vld [vmem:[%s5382_s1 + $0x5cc] ss:$16 sps:$4 sm:$0xff]  }
  0x7c   :  { %2734 = vmatprep.subr.bf16.mxu0 %v3855_v63  ;;  %2990 = vmatprep.subr.bf16.mxu1 %v3858_v0  ;;  %v3947_v63 = vld [vmem:[%s5382_s1 + $0x5c0] ss:$16 sps:$4 sm:$0xff]   ;;  %v3950_v0 = vld [vmem:[%s5382_s1 + $0x5c8] ss:$16 sps:$4 sm:$0xff]  }
  0x7f   :  { %2736 = vmatpush1.bf16.msra.mxu0 %v3857_v1  ;;  %2992 = vmatpush1.bf16.msra.mxu1 %v3860_v2  ;;  %v3951_v1 = vld [vmem:[%s5382_s1 + $0x5e4] ss:$16 sps:$4 sm:$0xff]   ;;  %v3954_v2 = vld [vmem:[%s5382_s1 + $0x5ec] ss:$16 sps:$4 sm:$0xff]  }
  0x80   :  { %2738 = vmatprep.subr.bf16.mxu0 %v3861_v3  ;;  %2994 = vmatprep.subr.bf16.mxu1 %v3864_v4  ;;  %v3953_v3 = vld [vmem:[%s5382_s1 + $0x5e0] ss:$16 sps:$4 sm:$0xff]   ;;  %v3956_v4 = vld [vmem:[%s5382_s1 + $0x5e8] ss:$16 sps:$4 sm:$0xff]  }
  0x82   :  { %984 = vmatmul.mubr.f32.vlgmr.msra.gmra.mrb[0].mxu0 %v52_v7  ;;  %1268 = vmatmul.mubr.f32.vlgmr.msra.gmra.mrb[0].mxu1 %v52_v7  ;;  %v3959_v7 = vld [vmem:[%s5382_s1 + $0x600] ss:$16 sps:$4 sm:$0xff]  }
  0x83   :  { %2740 = vmatpush1.bf16.msra.mxu0 %v3863_v5  ;;  %2996 = vmatpush1.bf16.msra.mxu1 %v3866_v6  ;;  %v3957_v5 = vld [vmem:[%s5382_s1 + $0x604] ss:$16 sps:$4 sm:$0xff]   ;;  %v3960_v6 = vld [vmem:[%s5382_s1 + $0x60c] ss:$16 sps:$4 sm:$0xff]  }
  0x84   :  { %2742 = vmatprep.subr.bf16.mxu0 %v3867_v8  ;;  %2998 = vmatprep.subr.bf16.mxu1 %v3870_v9  ;;  %v3962_v8 = vld [vmem:[%s5382_s1 + $0x608] ss:$16 sps:$4 sm:$0xff]   ;;  %v54_v9 = vld [vmem:[%s5383_s0 + $0x20] sm:$0xff] }
  0x85   :  { %1054 = vmatprep.mubr.f32.mxu0 %v55_v10  ;;  %1338 = vmatprep.mubr.f32.mxu1 %v55_v10  ;;  %v3963_v10 = vld [vmem:[%s5382_s1 + $0x624] ss:$16 sps:$4 sm:$0xff]  }
  0x87   :  { %2744 = vmatpush1.bf16.msra.mxu0 %v3869_v11  ;;  %3000 = vmatpush1.bf16.msra.mxu1 %v3872_v12  ;;  %v3966_v11 = vld [vmem:[%s5382_s1 + $0x62c] ss:$16 sps:$4 sm:$0xff]  }
  0x88   :  { %2746 = vmatprep.subr.bf16.mxu0 %v3873_v13  ;;  %3002 = vmatprep.subr.bf16.mxu1 %v3876_v14  ;;  %v57_v12 = vld [vmem:[%s5383_s0 + $0x38] sm:$0xff]  ;;  %v3965_v13 = vld [vmem:[%s5382_s1 + $0x620] ss:$16 sps:$4 sm:$0xff]  }
  0x89   :  { %v3968_v14 = vld [vmem:[%s5382_s1 + $0x628] ss:$16 sps:$4 sm:$0xff]  }
  0x8b   :  { %2748 = vmatpush1.bf16.msra.mxu0 %v3875_v15  ;;  %3004 = vmatpush1.bf16.msra.mxu1 %v3878_v16  ;;  %v3969_v15 = vld [vmem:[%s5382_s1 + $0x644] ss:$16 sps:$4 sm:$0xff]   ;;  %v3972_v16 = vld [vmem:[%s5382_s1 + $0x64c] ss:$16 sps:$4 sm:$0xff]  }
  0x8c   :  { %2750 = vmatprep.subr.bf16.mxu0 %v3879_v17  ;;  %3006 = vmatprep.subr.bf16.mxu1 %v3882_v18  ;;  %v3971_v17 = vld [vmem:[%s5382_s1 + $0x640] ss:$16 sps:$4 sm:$0xff]   ;;  %v3974_v18 = vld [vmem:[%s5382_s1 + $0x648] ss:$16 sps:$4 sm:$0xff]  }
  0x8f   :  { %2752 = vmatpush1.bf16.msra.mxu0 %v3881_v19  ;;  %3008 = vmatpush1.bf16.msra.mxu1 %v3884_v20  ;;  %v3975_v19 = vld [vmem:[%s5382_s1 + $0x664] ss:$16 sps:$4 sm:$0xff]   ;;  %v3978_v20 = vld [vmem:[%s5382_s1 + $0x66c] ss:$16 sps:$4 sm:$0xff]  }
  0x90   :  { %2754 = vmatprep.subr.bf16.mxu0 %v3885_v21  ;;  %3010 = vmatprep.subr.bf16.mxu1 %v3888_v22  ;;  %v3977_v21 = vld [vmem:[%s5382_s1 + $0x660] ss:$16 sps:$4 sm:$0xff]   ;;  %v3980_v22 = vld [vmem:[%s5382_s1 + $0x668] ss:$16 sps:$4 sm:$0xff]  }
  0x93   :  { %2756 = vmatpush1.bf16.msra.mxu0 %v3887_v23  ;;  %3012 = vmatpush1.bf16.msra.mxu1 %v3890_v24  ;;  %v3981_v23 = vld [vmem:[%s5382_s1 + $0x684] ss:$16 sps:$4 sm:$0xff]   ;;  %v3984_v24 = vld [vmem:[%s5382_s1 + $0x68c] ss:$16 sps:$4 sm:$0xff]  }
  0x94   :  { %2758 = vmatprep.subr.bf16.mxu0 %v3891_v25  ;;  %3014 = vmatprep.subr.bf16.mxu1 %v3894_v26  ;;  %v3983_v25 = vld [vmem:[%s5382_s1 + $0x680] ss:$16 sps:$4 sm:$0xff]   ;;  %v3986_v26 = vld [vmem:[%s5382_s1 + $0x688] ss:$16 sps:$4 sm:$0xff]  }
  0x97   :  { %2760 = vmatpush1.bf16.msra.mxu0 %v3893_v27  ;;  %3016 = vmatpush1.bf16.msra.mxu1 %v3896_v28  ;;  %v3987_v27 = vld [vmem:[%s5382_s1 + $0x6a4] ss:$16 sps:$4 sm:$0xff]   ;;  %v3990_v28 = vld [vmem:[%s5382_s1 + $0x6ac] ss:$16 sps:$4 sm:$0xff]  }
  0x98   :  { %2762 = vmatprep.subr.bf16.mxu0 %v3897_v29  ;;  %3018 = vmatprep.subr.bf16.mxu1 %v3900_v30  ;;  %v3989_v29 = vld [vmem:[%s5382_s1 + $0x6a0] ss:$16 sps:$4 sm:$0xff]   ;;  %v3992_v30 = vld [vmem:[%s5382_s1 + $0x6a8] ss:$16 sps:$4 sm:$0xff]  }
  0x9b   :  { %2764 = vmatpush1.bf16.msra.mxu0 %v3899_v31  ;;  %3020 = vmatpush1.bf16.msra.mxu1 %v3902_v32  ;;  %v3993_v31 = vld [vmem:[%s5382_s1 + $0x6c4] ss:$16 sps:$4 sm:$0xff]   ;;  %v3996_v32 = vld [vmem:[%s5382_s1 + $0x6cc] ss:$16 sps:$4 sm:$0xff]  }
  0x9c   :  { %2766 = vmatprep.subr.bf16.mxu0 %v3903_v33  ;;  %3022 = vmatprep.subr.bf16.mxu1 %v3906_v34  ;;  %v3995_v33 = vld [vmem:[%s5382_s1 + $0x6c0] ss:$16 sps:$4 sm:$0xff]   ;;  %v3998_v34 = vld [vmem:[%s5382_s1 + $0x6c8] ss:$16 sps:$4 sm:$0xff]  }
  0x9f   :  { %2768 = vmatpush1.bf16.msra.mxu0 %v3905_v35  ;;  %3024 = vmatpush1.bf16.msra.mxu1 %v3908_v36  ;;  %v3999_v35 = vld [vmem:[%s5382_s1 + $0x6e4] ss:$16 sps:$4 sm:$0xff]   ;;  %v4002_v36 = vld [vmem:[%s5382_s1 + $0x6ec] ss:$16 sps:$4 sm:$0xff]  }
  0xa0   :  { %2770 = vmatprep.subr.bf16.mxu0 %v3909_v37  ;;  %3026 = vmatprep.subr.bf16.mxu1 %v3912_v38  ;;  %v4001_v37 = vld [vmem:[%s5382_s1 + $0x6e0] ss:$16 sps:$4 sm:$0xff]   ;;  %v4004_v38 = vld [vmem:[%s5382_s1 + $0x6e8] ss:$16 sps:$4 sm:$0xff]  }
  0xa3   :  { %2772 = vmatpush1.bf16.msra.mxu0 %v3911_v39  ;;  %3028 = vmatpush1.bf16.msra.mxu1 %v3914_v40  ;;  %v4005_v39 = vld [vmem:[%s5382_s1 + $0x704] ss:$16 sps:$4 sm:$0xff]   ;;  %v4008_v40 = vld [vmem:[%s5382_s1 + $0x70c] ss:$16 sps:$4 sm:$0xff]  }
  0xa4   :  { %2774 = vmatprep.subr.bf16.mxu0 %v3915_v41  ;;  %3030 = vmatprep.subr.bf16.mxu1 %v3918_v42  ;;  %v4007_v41 = vld [vmem:[%s5382_s1 + $0x700] ss:$16 sps:$4 sm:$0xff]   ;;  %v4010_v42 = vld [vmem:[%s5382_s1 + $0x708] ss:$16 sps:$4 sm:$0xff]  }
  0xa7   :  { %2776 = vmatpush1.bf16.msra.mxu0 %v3917_v43  ;;  %3032 = vmatpush1.bf16.msra.mxu1 %v3920_v44  ;;  %v4011_v43 = vld [vmem:[%s5382_s1 + $0x724] ss:$16 sps:$4 sm:$0xff]   ;;  %v4014_v44 = vld [vmem:[%s5382_s1 + $0x72c] ss:$16 sps:$4 sm:$0xff]  }
  0xa8   :  { %2778 = vmatprep.subr.bf16.mxu0 %v3921_v45  ;;  %3034 = vmatprep.subr.bf16.mxu1 %v3924_v46  ;;  %v4013_v45 = vld [vmem:[%s5382_s1 + $0x720] ss:$16 sps:$4 sm:$0xff]   ;;  %v4016_v46 = vld [vmem:[%s5382_s1 + $0x728] ss:$16 sps:$4 sm:$0xff]  }
  0xab   :  { %2780 = vmatpush1.bf16.msra.mxu0 %v3923_v47  ;;  %3036 = vmatpush1.bf16.msra.mxu1 %v3926_v48  ;;  %v4017_v47 = vld [vmem:[%s5382_s1 + $0x744] ss:$16 sps:$4 sm:$0xff]   ;;  %v4020_v48 = vld [vmem:[%s5382_s1 + $0x74c] ss:$16 sps:$4 sm:$0xff]  }
  0xac   :  { %2782 = vmatprep.subr.bf16.mxu0 %v3927_v49  ;;  %3038 = vmatprep.subr.bf16.mxu1 %v3930_v50  ;;  %v4019_v49 = vld [vmem:[%s5382_s1 + $0x740] ss:$16 sps:$4 sm:$0xff]   ;;  %v4022_v50 = vld [vmem:[%s5382_s1 + $0x748] ss:$16 sps:$4 sm:$0xff]  }
  0xaf   :  { %2784 = vmatpush1.bf16.msra.mxu0 %v3929_v51  ;;  %3040 = vmatpush1.bf16.msra.mxu1 %v3932_v52  ;;  %v4023_v51 = vld [vmem:[%s5382_s1 + $0x764] ss:$16 sps:$4 sm:$0xff]   ;;  %v4026_v52 = vld [vmem:[%s5382_s1 + $0x76c] ss:$16 sps:$4 sm:$0xff]  }
  0xb0   :  { %2786 = vmatprep.subr.bf16.mxu0 %v3933_v53  ;;  %3042 = vmatprep.subr.bf16.mxu1 %v3936_v54  ;;  %v4025_v53 = vld [vmem:[%s5382_s1 + $0x760] ss:$16 sps:$4 sm:$0xff]   ;;  %v4028_v54 = vld [vmem:[%s5382_s1 + $0x768] ss:$16 sps:$4 sm:$0xff]  }
  0xb3   :  { %2788 = vmatpush1.bf16.msra.mxu0 %v3935_v55  ;;  %3044 = vmatpush1.bf16.msra.mxu1 %v3938_v56  ;;  %v4029_v55 = vld [vmem:[%s5382_s1 + $0x784] ss:$16 sps:$4 sm:$0xff]   ;;  %v4032_v56 = vld [vmem:[%s5382_s1 + $0x78c] ss:$16 sps:$4 sm:$0xff]  }
  0xb4   :  { %2790 = vmatprep.subr.bf16.mxu0 %v3939_v57  ;;  %3046 = vmatprep.subr.bf16.mxu1 %v3942_v58  ;;  %v4031_v57 = vld [vmem:[%s5382_s1 + $0x780] ss:$16 sps:$4 sm:$0xff]   ;;  %v4034_v58 = vld [vmem:[%s5382_s1 + $0x788] ss:$16 sps:$4 sm:$0xff]  }
  0xb7   :  { %2792 = vmatpush1.bf16.msra.mxu0 %v3941_v59  ;;  %3048 = vmatpush1.bf16.msra.mxu1 %v3944_v60  ;;  %v4035_v59 = vld [vmem:[%s5382_s1 + $0x7a4] ss:$16 sps:$4 sm:$0xff]   ;;  %v4038_v60 = vld [vmem:[%s5382_s1 + $0x7ac] ss:$16 sps:$4 sm:$0xff]  }
  0xb8   :  { %2794 = vmatprep.subr.bf16.mxu0 %v3945_v61  ;;  %3050 = vmatprep.subr.bf16.mxu1 %v3948_v62  ;;  %v4037_v61 = vld [vmem:[%s5382_s1 + $0x7a0] ss:$16 sps:$4 sm:$0xff]   ;;  %v4040_v62 = vld [vmem:[%s5382_s1 + $0x7a8] ss:$16 sps:$4 sm:$0xff]  }
  0xbb   :  { %2796 = vmatpush1.bf16.msra.mxu0 %v3947_v63  ;;  %3052 = vmatpush1.bf16.msra.mxu1 %v3950_v0  ;;  %v4041_v63 = vld [vmem:[%s5382_s1 + $0x7c4] ss:$16 sps:$4 sm:$0xff]   ;;  %v4044_v0 = vld [vmem:[%s5382_s1 + $0x7cc] ss:$16 sps:$4 sm:$0xff]  }
  0xbc   :  { %2798 = vmatprep.subr.bf16.mxu0 %v3951_v1  ;;  %3054 = vmatprep.subr.bf16.mxu1 %v3954_v2  ;;  %v4043_v1 = vld [vmem:[%s5382_s1 + $0x7c0] ss:$16 sps:$4 sm:$0xff]   ;;  %v4046_v2 = vld [vmem:[%s5382_s1 + $0x7c8] ss:$16 sps:$4 sm:$0xff]  }
  0xbf   :  { %2800 = vmatpush1.bf16.msra.mxu0 %v3953_v3  ;;  %3056 = vmatpush1.bf16.msra.mxu1 %v3956_v4  ;;  %v4047_v3 = vld [vmem:[%s5382_s1 + $0x7e4] ss:$16 sps:$4 sm:$0xff]   ;;  %v4050_v4 = vld [vmem:[%s5382_s1 + $0x7ec] ss:$16 sps:$4 sm:$0xff]  }
  0xc0   :  { %2802 = vmatprep.subr.bf16.mxu0 %v3957_v5  ;;  %3058 = vmatprep.subr.bf16.mxu1 %v3960_v6  ;;  %v4049_v5 = vld [vmem:[%s5382_s1 + $0x7e0] ss:$16 sps:$4 sm:$0xff]   ;;  %v4052_v6 = vld [vmem:[%s5382_s1 + $0x7e8] ss:$16 sps:$4 sm:$0xff]  }
  0xc2   :  { %1055 = vmatmul.mubr.f32.vlgmr.msra.gmra.mrb[0].mxu0 %v54_v9  ;;  %1339 = vmatmul.mubr.f32.vlgmr.msra.gmra.mrb[0].mxu1 %v54_v9  ;;  %v4055_v9 = vld [vmem:[%s5384_s3] ss:$8 sps:$4 sm:$0xff]  }
  0xc3   :  { %2804 = vmatpush1.bf16.msra.mxu0 %v3959_v7  ;;  %3060 = vmatpush1.bf16.msra.mxu1 %v3962_v8  ;;  %v4053_v7 = vld [vmem:[%s5384_s3 + $0x4] ss:$8 sps:$4 sm:$0xff]   ;;  %v56_v8 = vld [vmem:[%s5383_s0 + $0x30] sm:$0xff] }
  0xc4   :  { %2806 = vmatprep.subr.bf16.mxu0 %v3963_v10  ;;  %3062 = vmatprep.subr.bf16.mxu1 %v3966_v11  ;;  %v4056_v10 = vld [vmem:[%s5384_s3 + $0x14] ss:$8 sps:$4 sm:$0xff]   ;;  %v4058_v11 = vld [vmem:[%s5384_s3 + $0x10] ss:$8 sps:$4 sm:$0xff]  }
  0xc5   :  { %1125 = vmatprep.mubr.f32.mxu0 %v57_v12  ;;  %1409 = vmatprep.mubr.f32.mxu1 %v57_v12  ;;  %v4059_v12 = vld [vmem:[%s5384_s3 + $0x24] ss:$8 sps:$4 sm:$0xff]  }
  0xc7   :  { %2808 = vmatpush1.bf16.msra.mxu0 %v3965_v13  ;;  %3064 = vmatpush1.bf16.msra.mxu1 %v3968_v14  ;;  %v4061_v13 = vld [vmem:[%s5384_s3 + $0x20] ss:$8 sps:$4 sm:$0xff]   ;;  %v4062_v14 = vld [vmem:[%s5384_s3 + $0x34] ss:$8 sps:$4 sm:$0xff]  }
  0xc8   :  { %2810 = vmatprep.subr.bf16.mxu0 %v3969_v15  ;;  %3066 = vmatprep.subr.bf16.mxu1 %v3972_v16  ;;  %v4064_v15 = vld [vmem:[%s5384_s3 + $0x30] ss:$8 sps:$4 sm:$0xff]   ;;  %v4065_v16 = vld [vmem:[%s5384_s3 + $0x44] ss:$8 sps:$4 sm:$0xff]  }
  0xcb   :  { %2812 = vmatpush1.bf16.msra.mxu0 %v3971_v17  ;;  %3068 = vmatpush1.bf16.msra.mxu1 %v3974_v18  ;;  %v4067_v17 = vld [vmem:[%s5384_s3 + $0x40] ss:$8 sps:$4 sm:$0xff]   ;;  %v4068_v18 = vld [vmem:[%s5384_s3 + $0x54] ss:$8 sps:$4 sm:$0xff]  }
  0xcc   :  { %2814 = vmatprep.subr.bf16.mxu0 %v3975_v19  ;;  %3070 = vmatprep.subr.bf16.mxu1 %v3978_v20  ;;  %v4070_v19 = vld [vmem:[%s5384_s3 + $0x50] ss:$8 sps:$4 sm:$0xff]   ;;  %v4071_v20 = vld [vmem:[%s5384_s3 + $0x64] ss:$8 sps:$4 sm:$0xff]  }
  0xcf   :  { %2816 = vmatpush1.bf16.msra.mxu0 %v3977_v21  ;;  %3072 = vmatpush1.bf16.msra.mxu1 %v3980_v22  ;;  %v4073_v21 = vld [vmem:[%s5384_s3 + $0x60] ss:$8 sps:$4 sm:$0xff]   ;;  %v4074_v22 = vld [vmem:[%s5384_s3 + $0x74] ss:$8 sps:$4 sm:$0xff]  }
  0xd0   :  { %2818 = vmatprep.subr.bf16.mxu0 %v3981_v23  ;;  %3074 = vmatprep.subr.bf16.mxu1 %v3984_v24  ;;  %v4076_v23 = vld [vmem:[%s5384_s3 + $0x70] ss:$8 sps:$4 sm:$0xff]   ;;  %v4077_v24 = vld [vmem:[%s5384_s3 + $0x84] ss:$8 sps:$4 sm:$0xff]  }
  0xd3   :  { %2820 = vmatpush1.bf16.msra.mxu0 %v3983_v25  ;;  %3076 = vmatpush1.bf16.msra.mxu1 %v3986_v26  ;;  %v4079_v25 = vld [vmem:[%s5384_s3 + $0x80] ss:$8 sps:$4 sm:$0xff]   ;;  %v4080_v26 = vld [vmem:[%s5384_s3 + $0x94] ss:$8 sps:$4 sm:$0xff]  }
  0xd4   :  { %2822 = vmatprep.subr.bf16.mxu0 %v3987_v27  ;;  %3078 = vmatprep.subr.bf16.mxu1 %v3990_v28  ;;  %v4082_v27 = vld [vmem:[%s5384_s3 + $0x90] ss:$8 sps:$4 sm:$0xff]   ;;  %v4083_v28 = vld [vmem:[%s5384_s3 + $0xa4] ss:$8 sps:$4 sm:$0xff]  }
  0xd7   :  { %2824 = vmatpush1.bf16.msra.mxu0 %v3989_v29  ;;  %3080 = vmatpush1.bf16.msra.mxu1 %v3992_v30  ;;  %v4085_v29 = vld [vmem:[%s5384_s3 + $0xa0] ss:$8 sps:$4 sm:$0xff]   ;;  %v4086_v30 = vld [vmem:[%s5384_s3 + $0xb4] ss:$8 sps:$4 sm:$0xff]  }
  0xd8   :  { %2826 = vmatprep.subr.bf16.mxu0 %v3993_v31  ;;  %3082 = vmatprep.subr.bf16.mxu1 %v3996_v32  ;;  %v4088_v31 = vld [vmem:[%s5384_s3 + $0xb0] ss:$8 sps:$4 sm:$0xff]   ;;  %v4089_v32 = vld [vmem:[%s5384_s3 + $0xc4] ss:$8 sps:$4 sm:$0xff]  }
  0xdb   :  { %2828 = vmatpush1.bf16.msra.mxu0 %v3995_v33  ;;  %3084 = vmatpush1.bf16.msra.mxu1 %v3998_v34  ;;  %v4091_v33 = vld [vmem:[%s5384_s3 + $0xc0] ss:$8 sps:$4 sm:$0xff]   ;;  %v4092_v34 = vld [vmem:[%s5384_s3 + $0xd4] ss:$8 sps:$4 sm:$0xff]  }
  0xdc   :  { %2830 = vmatprep.subr.bf16.mxu0 %v3999_v35  ;;  %3086 = vmatprep.subr.bf16.mxu1 %v4002_v36  ;;  %v4094_v35 = vld [vmem:[%s5384_s3 + $0xd0] ss:$8 sps:$4 sm:$0xff]   ;;  %v4095_v36 = vld [vmem:[%s5384_s3 + $0xe4] ss:$8 sps:$4 sm:$0xff]  }
  0xdf   :  { %2832 = vmatpush1.bf16.msra.mxu0 %v4001_v37  ;;  %3088 = vmatpush1.bf16.msra.mxu1 %v4004_v38  ;;  %v4097_v37 = vld [vmem:[%s5384_s3 + $0xe0] ss:$8 sps:$4 sm:$0xff]   ;;  %v4098_v38 = vld [vmem:[%s5384_s3 + $0xf4] ss:$8 sps:$4 sm:$0xff]  }
  0xe0   :  { %2834 = vmatprep.subr.bf16.mxu0 %v4005_v39  ;;  %3090 = vmatprep.subr.bf16.mxu1 %v4008_v40  ;;  %v4100_v39 = vld [vmem:[%s5384_s3 + $0xf0] ss:$8 sps:$4 sm:$0xff]   ;;  %v4101_v40 = vld [vmem:[%s5384_s3 + $0x104] ss:$8 sps:$4 sm:$0xff]  }
  0xe3   :  { %2836 = vmatpush1.bf16.msra.mxu0 %v4007_v41  ;;  %3092 = vmatpush1.bf16.msra.mxu1 %v4010_v42  ;;  %v2449_v41 = vld [vmem:[%s5385_s5 + $0x40] sm:$0xff]  }
  0xe4   :  { %2838 = vmatprep.subr.bf16.mxu0 %v4011_v43  ;;  %3094 = vmatprep.subr.bf16.mxu1 %v4014_v44  ;;  %v2319_v42 = vld [vmem:[%s5385_s5] sm:$0xff]   ;;  %v2450_v43 = vld [vmem:[%s5385_s5 + $0x48] sm:$0xff]  }
  0xe5   :  { %v2442_v44 = vld [vmem:[%s5385_s5 + $0x8] sm:$0xff]  }
  0xe7   :  { %2840 = vmatpush1.bf16.msra.mxu0 %v4013_v45  ;;  %3096 = vmatpush1.bf16.msra.mxu1 %v4016_v46  ;;  %v2451_v45 = vld [vmem:[%s5385_s5 + $0x50] sm:$0xff]  }
  0xe8   :  { %2842 = vmatprep.subr.bf16.mxu0 %v4017_v47  ;;  %3098 = vmatprep.subr.bf16.mxu1 %v4020_v48  ;;  %v2443_v46 = vld [vmem:[%s5385_s5 + $0x10] sm:$0xff]   ;;  %v2452_v47 = vld [vmem:[%s5385_s5 + $0x58] sm:$0xff]  }
  0xe9   :  { %v2444_v48 = vld [vmem:[%s5385_s5 + $0x18] sm:$0xff]  }
  0xeb   :  { %2844 = vmatpush1.bf16.msra.mxu0 %v4019_v49  ;;  %3100 = vmatpush1.bf16.msra.mxu1 %v4022_v50  ;;  %v2453_v49 = vld [vmem:[%s5385_s5 + $0x60] sm:$0xff]  }
  0xec   :  { %2846 = vmatprep.subr.bf16.mxu0 %v4023_v51  ;;  %3102 = vmatprep.subr.bf16.mxu1 %v4026_v52  ;;  %v2445_v50 = vld [vmem:[%s5385_s5 + $0x20] sm:$0xff]   ;;  %v2454_v51 = vld [vmem:[%s5385_s5 + $0x68] sm:$0xff]  }
  0xed   :  { %v2446_v52 = vld [vmem:[%s5385_s5 + $0x28] sm:$0xff]  }
  0xef   :  { %2848 = vmatpush1.bf16.msra.mxu0 %v4025_v53  ;;  %3104 = vmatpush1.bf16.msra.mxu1 %v4028_v54  ;;  %v2455_v53 = vld [vmem:[%s5385_s5 + $0x70] sm:$0xff]   ;;  %v828_v54 = vlaneseq }
  0xf0   :  { %2850 = vmatprep.subr.bf16.mxu0 %v4029_v55  ;;  %3106 = vmatprep.subr.bf16.mxu1 %v4032_v56 }
  0xf1   :  { %v5166_v55 = vshrl.u32 %v828_v54, 7 }
  0xf3   :  { %2852 = vmatpush1.bf16.msra.mxu0 %v4031_v57  ;;  %3108 = vmatpush1.bf16.msra.mxu1 %v4034_v58  ;;  %v830_v56 = vsub.s32 0, %v5166_v55  ;;  %v5172_v57 = vld [vmem:[%s5386_s2] sm:$0xf]  ;;  %v834_v58 = vsub.s32 1, %v5166_v55 }
  0xf4   :  { %2854 = vmatprep.subr.bf16.mxu0 %v4035_v59  ;;  %3110 = vmatprep.subr.bf16.mxu1 %v4038_v60  ;;  %v842_v59 = vsub.s32 3, %v5166_v55 }
  0xf5   :  { %v831_v60 = vrot.slane %v5172_v57, %v830_v56 }
  0xf7   :  { %2856 = vmatpush1.bf16.msra.mxu0 %v4037_v61  ;;  %3112 = vmatpush1.bf16.msra.mxu1 %v4040_v62  ;;  %v835_v61 = vrot.slane %v5172_v57, %v834_v58  ;;  %v843_v62 = vrot.slane %v5172_v57, %v842_v59 }
  0xf8   :  { %2858 = vmatprep.subr.bf16.mxu0 %v4041_v63  ;;  %3114 = vmatprep.subr.bf16.mxu1 %v4044_v0 }
  0xfb   :  { %2860 = vmatpush1.bf16.msra.mxu0 %v4043_v1  ;;  %3116 = vmatpush1.bf16.msra.mxu1 %v4046_v2 }
  0xfc   :  { %2862 = vmatprep.subr.bf16.mxu0 %v4047_v3  ;;  %3118 = vmatprep.subr.bf16.mxu1 %v4050_v4 }
  0xff   :  { %2864 = vmatpush1.bf16.msra.mxu0 %v4049_v5  ;;  %3120 = vmatpush1.bf16.msra.mxu1 %v4052_v6 }
 0x100   :  { %3122 = vmatprep.subr.bf16.mxu0 %v4053_v7  ;;  %3250 = vmatprep.subr.bf16.mxu1 %v2449_v41  ;;  %v4103_v7 = vld [vmem:[%s5384_s3 + $0x100] ss:$8 sps:$4 sm:$0xff]   ;;  %v4148_v41 = vld [vmem:[%s5384_s3 + $0x1f0] ss:$8 sps:$4 sm:$0xff]  }
 0x102   :  { %1126 = vmatmul.mubr.f32.vlgmr.msra.gmra.mrb[0].mxu0 %v56_v8  ;;  %1410 = vmatmul.mubr.f32.vlgmr.msra.gmra.mrb[0].mxu1 %v56_v8 }
 0x103   :  { %3124 = vmatpush1.bf16.msra.mxu0 %v4055_v9  ;;  %3252 = vmatpush3.bf16.msra.mxu1 %v2319_v42  ;;  %v4104_v9 = vld [vmem:[%s5384_s3 + $0x114] ss:$8 sps:$4 sm:$0xff]  }
 0x104   :  { %3126 = vmatprep.subr.bf16.mxu0 %v4056_v10  ;;  %3254 = vmatprep.subr.bf16.mxu1 %v2450_v43 }
 0x107   :  { %3128 = vmatpush1.bf16.msra.mxu0 %v4058_v11  ;;  %3256 = vmatpush3.bf16.msra.mxu1 %v2442_v44  ;;  %v4106_v11 = vld [vmem:[%s5384_s3 + $0x110] ss:$8 sps:$4 sm:$0xff]  }
 0x108   :  { %3130 = vmatprep.subr.bf16.mxu0 %v4059_v12  ;;  %3258 = vmatprep.subr.bf16.mxu1 %v2451_v45  ;;  %v4107_v12 = vld [vmem:[%s5384_s3 + $0x124] ss:$8 sps:$4 sm:$0xff]   ;;  %v2447_v44 = vld [vmem:[%s5385_s5 + $0x30] sm:$0xff]   ;;  %v2456_v45 = vld [vmem:[%s5385_s5 + $0x78] sm:$0xff]  }
 0x10b   :  { %3132 = vmatpush1.bf16.msra.mxu0 %v4061_v13  ;;  %3260 = vmatpush3.bf16.msra.mxu1 %v2443_v46  ;;  %v4109_v13 = vld [vmem:[%s5384_s3 + $0x120] ss:$8 sps:$4 sm:$0xff]   ;;  %v2448_v46 = vld [vmem:[%s5385_s5 + $0x38] sm:$0xff]  }
 0x10c   :  { %3134 = vmatprep.subr.bf16.mxu0 %v4062_v14  ;;  %3262 = vmatprep.subr.bf16.mxu1 %v2452_v47  ;;  %v4110_v14 = vld [vmem:[%s5384_s3 + $0x134] ss:$8 sps:$4 sm:$0xff]   ;;  %v4153_v47 = vmov 0.0|0.0  }
 0x10f   :  { %3136 = vmatpush1.bf16.msra.mxu0 %v4064_v15  ;;  %3264 = vmatpush3.bf16.msra.mxu1 %v2444_v48  ;;  %v4112_v15 = vld [vmem:[%s5384_s3 + $0x130] ss:$8 sps:$4 sm:$0xff]   ;;  %v1612_v48 = vld [vmem:[%s5387_s4] sm:$0x3] }
 0x110   :  { %3138 = vmatprep.subr.bf16.mxu0 %v4065_v16  ;;  %3266 = vmatprep.subr.bf16.mxu1 %v2453_v49  ;;  %v4113_v16 = vld [vmem:[%s5384_s3 + $0x144] ss:$8 sps:$4 sm:$0xff]   ;;  %v1617_v49 = vrot.slane %v1612_v48, %v830_v56  ;;  %v2458_v56 = vld [vmem:[%s5388_s7 + $0x10] sm:$0xff]  }
 0x113   :  { %3140 = vmatpush1.bf16.msra.mxu0 %v4067_v17  ;;  %3268 = vmatpush3.bf16.msra.mxu1 %v2445_v50  ;;  %v4115_v17 = vld [vmem:[%s5384_s3 + $0x140] ss:$8 sps:$4 sm:$0xff]   ;;  %v1621_v50 = vrot.slane %v1612_v48, %v834_v58  ;;  %v2459_v58 = vld [vmem:[%s5388_s7 + $0x18] sm:$0xff]  }
 0x114   :  { %3142 = vmatprep.subr.bf16.mxu0 %v4068_v18  ;;  %3270 = vmatprep.subr.bf16.mxu1 %v2454_v51  ;;  %v4116_v18 = vld [vmem:[%s5384_s3 + $0x154] ss:$8 sps:$4 sm:$0xff]  }
 0x117   :  { %3144 = vmatpush1.bf16.msra.mxu0 %v4070_v19  ;;  %3272 = vmatpush3.bf16.msra.mxu1 %v2446_v52  ;;  %v4118_v19 = vld [vmem:[%s5384_s3 + $0x150] ss:$8 sps:$4 sm:$0xff]  }
 0x118   :  { %3146 = vmatprep.subr.bf16.mxu0 %v4071_v20  ;;  %3274 = vmatprep.subr.bf16.mxu1 %v2455_v53  ;;  %v4119_v20 = vld [vmem:[%s5384_s3 + $0x164] ss:$8 sps:$4 sm:$0xff]  }
 0x11b   :  { %3148 = vmatpush1.bf16.msra.mxu0 %v4073_v21  ;;  %v4121_v21 = vld [vmem:[%s5384_s3 + $0x160] ss:$8 sps:$4 sm:$0xff]   ;;  %3276 = vmatpush3.bf16.msra.mxu1 %v2447_v44 }
 0x11c   :  { %3150 = vmatprep.subr.bf16.mxu0 %v4074_v22  ;;  %v4122_v22 = vld [vmem:[%s5384_s3 + $0x174] ss:$8 sps:$4 sm:$0xff]   ;;  %3278 = vmatprep.subr.bf16.mxu1 %v2456_v45 }
 0x11f   :  { %3152 = vmatpush1.bf16.msra.mxu0 %v4076_v23  ;;  %v4124_v23 = vld [vmem:[%s5384_s3 + $0x170] ss:$8 sps:$4 sm:$0xff]   ;;  %3280 = vmatpush3.bf16.msra.mxu1 %v2448_v46 }
 0x120   :  { %3154 = vmatprep.subr.bf16.mxu0 %v4077_v24  ;;  %v4125_v24 = vld [vmem:[%s5384_s3 + $0x184] ss:$8 sps:$4 sm:$0xff]   ;;  %3281 = vmatprep.subr.bf16.mxu1 %v4153_v47 }
 0x123   :  { %3156 = vmatpush1.bf16.msra.mxu0 %v4079_v25  ;;  %v4127_v25 = vld [vmem:[%s5384_s3 + $0x180] ss:$8 sps:$4 sm:$0xff]  }
 0x124   :  { %3158 = vmatprep.subr.bf16.mxu0 %v4080_v26  ;;  %v4128_v26 = vld [vmem:[%s5384_s3 + $0x194] ss:$8 sps:$4 sm:$0xff]  }
 0x127   :  { %3160 = vmatpush1.bf16.msra.mxu0 %v4082_v27  ;;  %v4130_v27 = vld [vmem:[%s5384_s3 + $0x190] ss:$8 sps:$4 sm:$0xff]  }
 0x128   :  { %3162 = vmatprep.subr.bf16.mxu0 %v4083_v28  ;;  %v4131_v28 = vld [vmem:[%s5384_s3 + $0x1a4] ss:$8 sps:$4 sm:$0xff]  }
 0x12b   :  { %3164 = vmatpush1.bf16.msra.mxu0 %v4085_v29  ;;  %v4133_v29 = vld [vmem:[%s5384_s3 + $0x1a0] ss:$8 sps:$4 sm:$0xff]  }
 0x12c   :  { %3166 = vmatprep.subr.bf16.mxu0 %v4086_v30  ;;  %v4134_v30 = vld [vmem:[%s5384_s3 + $0x1b4] ss:$8 sps:$4 sm:$0xff]  }
 0x12f   :  { %3168 = vmatpush1.bf16.msra.mxu0 %v4088_v31  ;;  %v4136_v31 = vld [vmem:[%s5384_s3 + $0x1b0] ss:$8 sps:$4 sm:$0xff]  }
 0x130   :  { %3170 = vmatprep.subr.bf16.mxu0 %v4089_v32  ;;  %v4137_v32 = vld [vmem:[%s5384_s3 + $0x1c4] ss:$8 sps:$4 sm:$0xff]  }
 0x133   :  { %3172 = vmatpush1.bf16.msra.mxu0 %v4091_v33  ;;  %v4139_v33 = vld [vmem:[%s5384_s3 + $0x1c0] ss:$8 sps:$4 sm:$0xff]  }
 0x134   :  { %3174 = vmatprep.subr.bf16.mxu0 %v4092_v34  ;;  %v4140_v34 = vld [vmem:[%s5384_s3 + $0x1d4] ss:$8 sps:$4 sm:$0xff]  }
 0x137   :  { %3176 = vmatpush1.bf16.msra.mxu0 %v4094_v35  ;;  %v4142_v35 = vld [vmem:[%s5384_s3 + $0x1d0] ss:$8 sps:$4 sm:$0xff]  }
 0x138   :  { %3178 = vmatprep.subr.bf16.mxu0 %v4095_v36  ;;  %v838_v36 = vsub.s32 2, %v5166_v55  ;;  %v2457_v55 = vld [vmem:[%s5388_s7 + $0x8] sm:$0xff]  }
 0x13b   :  { %3180 = vmatpush1.bf16.msra.mxu0 %v4097_v37  ;;  %v4143_v37 = vld [vmem:[%s5384_s3 + $0x1e4] ss:$8 sps:$4 sm:$0xff]  }
 0x13c   :  { %3182 = vmatprep.subr.bf16.mxu0 %v4098_v38  ;;  %v4145_v38 = vld [vmem:[%s5384_s3 + $0x1e0] ss:$8 sps:$4 sm:$0xff]  }
 0x13f   :  { %3184 = vmatpush1.bf16.msra.mxu0 %v4100_v39  ;;  %v839_v39 = vrot.slane %v5172_v57, %v838_v36 }
 0x140   :  { %3186 = vmatprep.subr.bf16.mxu0 %v4101_v40  ;;  %v4146_v40 = vld [vmem:[%s5384_s3 + $0x1f4] ss:$8 sps:$4 sm:$0xff]  }
 0x1d5   :  { %v1127_v63 = vpop.f32.mrb[0].mxu0  ;;  %v5183_v0 = vpop.f32.mrb[0].mxu1 }
 0x1d6   :  { %v3326_v1 = vadd.f32 %v1127_v63, %v831_v60  ;;  %v1129_v2 = vpop.f32.mrb[1].mxu0  ;;  %v1413_v3 = vpop.f32.mrb[1].mxu1  ;;  %v3328_v42 = vadd.f32 %v5183_v0, %v839_v39  ;;  %v2383_v60 = vld [vmem:[%s5388_s7] sm:$0xff]   ;;  %v2462_v63 = vld [vmem:[%s5388_s7 + $0x30] sm:$0xff]   ;;  %v2463_v0 = vld [vmem:[%s5388_s7 + $0x38] sm:$0xff]  }
 0x1d7   :  { %v3327_v4 = vadd.f32 %v1129_v2, %v835_v61  ;;  %v3329_v5 = vadd.f32 %v1413_v3, %v843_v62  ;;  %v2460_v61 = vld [vmem:[%s5388_s7 + $0x20] sm:$0xff]   ;;  %v2461_v62 = vld [vmem:[%s5388_s7 + $0x28] sm:$0xff]  }
 0x1d8   :  { %v1416_v8 = vmax.f32 %v3326_v1, 0.0  ;;  %v1418_v43 = vmax.f32 %v3328_v42, 0.0  ;;  %v4155_v1 = vmov 0.0   ;;  %v2310_v3 = vld [vmem:[%s5389_s6] ss:$0 sm:$0xff] }
 0x1d9   :  { %v1417_v6 = vmax.f32 %v3327_v4, 0.0  ;;  %v1419_v10 = vmax.f32 %v3329_v5, 0.0 }
 0x1db   :  { %1688 = vmatprep.mubr.f32.mxu0 %v1417_v6 }
 0x1dc   :  { %1689 = vmatmul.mubr.f32.vlgmr.msra.gmra.mrb[2].mxu0 %v1416_v8  ;;  %v2415_v8 = vld [vmem:[%s5390_s9] sm:$0xff]  }
 0x1dd   :  { %3188 = vmatpush1.bf16.msra.mxu0 %v4103_v7  ;;  %1759 = vmatprep.mubr.f32.mxu0 %v1419_v10  ;;  %v2465_v10 = vld [vmem:[%s5390_s9 + $0x10] sm:$0xff]  }
 0x1de   :  { %3190 = vmatprep.subr.bf16.mxu0 %v4104_v9  ;;  %v2464_v9 = vld [vmem:[%s5390_s9 + $0x8] sm:$0xff]  }
 0x1e1   :  { %3192 = vmatpush1.bf16.msra.mxu0 %v4106_v11  ;;  %v2466_v11 = vld [vmem:[%s5390_s9 + $0x18] sm:$0xff]  }
 0x1e2   :  { %3194 = vmatprep.subr.bf16.mxu0 %v4107_v12  ;;  %v2311_v12 = vld [vmem:[%s5391_s8] ss:$0 sm:$0xff] }
 0x1e5   :  { %3196 = vmatpush1.bf16.msra.mxu0 %v4109_v13 }
 0x1e6   :  { %3198 = vmatprep.subr.bf16.mxu0 %v4110_v14 }
 0x1e9   :  { %3200 = vmatpush1.bf16.msra.mxu0 %v4112_v15 }
 0x1ea   :  { %3202 = vmatprep.subr.bf16.mxu0 %v4113_v16 }
 0x1ed   :  { %3204 = vmatpush1.bf16.msra.mxu0 %v4115_v17  ;;  %v2431_v17 = vld [vmem:[%s5392_s11] sm:$0xff]  }
 0x1ee   :  { %3206 = vmatprep.subr.bf16.mxu0 %v4116_v18  ;;  %v2467_v18 = vld [vmem:[%s5392_s11 + $0x8] sm:$0xff]  }
 0x1f1   :  { %3208 = vmatpush1.bf16.msra.mxu0 %v4118_v19  ;;  %v2312_v19 = vld [vmem:[%s5393_s10] ss:$0 sm:$0xff] }
 0x1f2   :  { %3210 = vmatprep.subr.bf16.mxu0 %v4119_v20 }
 0x1f5   :  { %3212 = vmatpush1.bf16.msra.mxu0 %v4121_v21 }
 0x1f6   :  { %3214 = vmatprep.subr.bf16.mxu0 %v4122_v22 }
 0x1f9   :  { %3216 = vmatpush1.bf16.msra.mxu0 %v4124_v23 }
 0x1fa   :  { %3218 = vmatprep.subr.bf16.mxu0 %v4125_v24  ;;  %v2439_v24 = vld [vmem:[%s5394_s13] sm:$0xff]  }
 0x1fd   :  { %3220 = vmatpush1.bf16.msra.mxu0 %v4127_v25  ;;  %v2314_v25 = vld [vmem:[%s5395_s12] ss:$0 sm:$0xff] }
 0x1fe   :  { %3222 = vmatprep.subr.bf16.mxu0 %v4128_v26 }
 0x201   :  { %3224 = vmatpush1.bf16.msra.mxu0 %v4130_v27 }
 0x202   :  { %3226 = vmatprep.subr.bf16.mxu0 %v4131_v28 }
 0x205   :  { %3228 = vmatpush1.bf16.msra.mxu0 %v4133_v29 }
 0x206   :  { %3230 = vmatprep.subr.bf16.mxu0 %v4134_v30  ;;  %v2316_v30 = vld [vmem:[%s5396_s14] ss:$0 sm:$0xff] }
 0x209   :  { %3232 = vmatpush1.bf16.msra.mxu0 %v4136_v31 }
 0x20a   :  { %3234 = vmatprep.subr.bf16.mxu0 %v4137_v32 }
 0x20d   :  { %3236 = vmatpush1.bf16.msra.mxu0 %v4139_v33 }
 0x20e   :  { %3238 = vmatprep.subr.bf16.mxu0 %v4140_v34 }
 0x211   :  { %3240 = vmatpush1.bf16.msra.mxu0 %v4142_v35 }
 0x212   :  { %3242 = vmatprep.subr.bf16.mxu0 %v4143_v37 }
 0x215   :  { %3244 = vmatpush1.bf16.msra.mxu0 %v4145_v38 }
 0x216   :  { %3246 = vmatprep.subr.bf16.mxu0 %v4146_v40 }
 0x219   :  { %3248 = vmatpush1.bf16.msra.mxu0 %v4148_v41 }
 0x21c   :  { %1760 = vmatmul.mubr.f32.vlgmr.msra.gmra.mrb[2].mxu0 %v1418_v43 }
 0x2ef   :  { %v1761_v51 = vpop.f32.mrb[2].mxu0 }
 0x2f0   :  { %v3330_v52 = vadd.f32 %v1761_v51, %v1617_v49  ;;  %v1763_v53 = vpop.f32.mrb[3].mxu0 }
 0x2f1   :  { %v3331_v54 = vadd.f32 %v1763_v53, %v1621_v50 }
 0x2f2   :  { %v1766_v59 = vmax.f32 %v3330_v52, 0.0 }
 0x2f3   :  { %v1767_v57 = vmax.f32 %v3331_v54, 0.0 }
 0x2f5   :  { %1903 = vmatprep.mubr.f32.mxu1 %v1767_v57 }
 0x2f6   :  { %1904 = vmatmul.mubr.f32.vlgmr.msra.gmra.mrb[2].mxu1 %v1766_v59 }
 0x2f7   :  { %3283 = vmatpush3.bf16.msra.mxu1 %v2383_v60  ;;  %2569 = vmatprep.mubr.msk.f32.mxu1 %vm4154_vm0, %v4155_v1 }
 0x2f8   :  { %3284 = vmatprep.subr.bf16.mxu1 %v4153_v47 }
 0x2fb   :  { %3286 = vmatpush3.bf16.msra.mxu1 %v2457_v55 }
 0x2fc   :  { %3287 = vmatprep.subr.bf16.mxu1 %v4153_v47 }
 0x2ff   :  { %3289 = vmatpush3.bf16.msra.mxu1 %v2458_v56 }
 0x300   :  { %3290 = vmatprep.subr.bf16.mxu1 %v4153_v47 }
 0x303   :  { %3292 = vmatpush3.bf16.msra.mxu1 %v2459_v58 }
 0x304   :  { %3293 = vmatprep.subr.bf16.mxu1 %v4153_v47 }
 0x307   :  { %3295 = vmatpush3.bf16.msra.mxu1 %v2460_v61 }
 0x308   :  { %3296 = vmatprep.subr.bf16.mxu1 %v4153_v47 }
 0x30b   :  { %3298 = vmatpush3.bf16.msra.mxu1 %v2461_v62 }
 0x30c   :  { %3299 = vmatprep.subr.bf16.mxu1 %v4153_v47 }
 0x30f   :  { %3301 = vmatpush3.bf16.msra.mxu1 %v2462_v63 }
 0x310   :  { %3302 = vmatprep.subr.bf16.mxu1 %v4153_v47 }
 0x313   :  { %3304 = vmatpush3.bf16.msra.mxu1 %v2463_v0 }
 0x314   :  { %3305 = vmatprep.subr.bf16.mxu1 %v4153_v47 }
 0x3c9   :  { %v2500_v2 = vpop.f32.mrb[2].mxu1 }
 0x3ca   :  { %v2501_v4 = vpop.f32.mrb[3].mxu1 }
 0x3cb   :  { %v2502_v5 = vadd.f32 %v2501_v4, %v2500_v2 }
 0x3cd   :  { %v1906_v6 = vadd.f32 %v2502_v5, %v2310_v3 }
 0x3cf   :  { %v1909_v7 = vmax.f32 %v1906_v6, 0.0 }
 0x3d1   :  { %2570 = vmatmul.mubr.f32.vlgmr.msra.gmra.mrb[4].mxu1 %v1909_v7 }
 0x3d2   :  { %3307 = vmatpush3.bf16.msra.mxu1 %v2415_v8  ;;  %2588 = vmatprep.mubr.msk.f32.mxu1 %vm4154_vm0, %v4155_v1 }
 0x3d3   :  { %3308 = vmatprep.subr.bf16.mxu1 %v4153_v47 }
 0x3d6   :  { %3310 = vmatpush3.bf16.msra.mxu1 %v2464_v9 }
 0x3d7   :  { %3311 = vmatprep.subr.bf16.mxu1 %v4153_v47 }
 0x3da   :  { %3313 = vmatpush3.bf16.msra.mxu1 %v2465_v10 }
 0x3db   :  { %3314 = vmatprep.subr.bf16.mxu1 %v4153_v47 }
 0x3de   :  { %3316 = vmatpush3.bf16.msra.mxu1 %v2466_v11 }
 0x3df   :  { %3317 = vmatprep.subr.bf16.mxu1 %v4153_v47 }
 0x4a4   :  { %v2015_v13 = vpop.f32.mrb[4].mxu1 }
 0x4a5   :  { %v2016_v14 = vadd.f32 %v2311_v12, %v2015_v13  ;;  %v2571_v15 = vpop.f32.mrb[5].mxu1 }
 0x4a7   :  { %v2019_v16 = vmax.f32 %v2016_v14, 0.0 }
 0x4a9   :  { %2589 = vmatmul.mubr.msk.f32.vlgmr.msra.gmra.mrb[6].mxu1 %vm2043_vm1, %v2019_v16 }
 0x4aa   :  { %3319 = vmatpush3.bf16.msra.mxu1 %v2431_v17  ;;  %2599 = vmatprep.mubr.msk.f32.mxu1 %vm4154_vm0, %v4155_v1 }
 0x4ab   :  { %3320 = vmatprep.subr.bf16.mxu1 %v4153_v47 }
 0x4ae   :  { %3322 = vmatpush3.bf16.msra.mxu1 %v2467_v18 }
 0x4af   :  { %3323 = vmatprep.subr.bf16.mxu1 %v4153_v47 }
 0x57c   :  { %v2113_v20 = vpop.f32.mrb[6].mxu1 }
 0x57d   :  { %v2114_v21 = vadd.f32 %v2312_v19, %v2113_v20  ;;  %v2590_v22 = vpop.f32.mrb[7].mxu1 }
 0x57f   :  { %v2117_v23 = vmax.f32 %v2114_v21, 0.0 }
 0x581   :  { %2600 = vmatmul.mubr.msk.f32.vlgmr.msra.gmra.mrb[8].mxu1 %vm2133_vm2, %v2117_v23 }
 0x582   :  { %2606 = vmatprep.mubr.msk.f32.mxu1 %vm4154_vm0, %v4155_v1  ;;  %3325 = vmatpush3.bf16.msra.mxu1 %v2439_v24 }
 0x654   :  { %v2203_v26 = vpop.f32.mrb[8].mxu1 }
 0x655   :  { %v2204_v27 = vadd.f32 %v2314_v25, %v2203_v26  ;;  %v2601_v28 = vpop.f32.mrb[9].mxu1 }
 0x657   :  { %v2207_v29 = vmax.f32 %v2204_v27, 0.0 }
 0x659   :  { %2607 = vmatmul.mubr.msk.f32.vlgmr.msra.gmra.mrb[10].mxu1 %vm2219_vm3, %v2207_v29 }
 0x72c   :  { %v2289_v31 = vpop.f32.mrb[10].mxu1 }
 0x72d   :  { %v2290_v32 = vadd.f32 %v2316_v30, %v2289_v31  ;;  %v2608_v33 = vpop.f32.mrb[11].mxu1 }
 0x72f   :  { %v2294_v34 = vsel %vm2293_vm4, %v2290_v32, -inf }
 0x730   :  { %2295 = vmax.xlane.f32.xlu0 %v2294_v34 }
 0x7bd   :  { %v2296_v35 = vpop.xlane.xlu0 %2295 }
 0x7be   :  { %v2297_v36 = vsub.f32 %v2290_v32, %v2296_v35 }
 0x7c0   :  { %v2298_v37 = vmul.f32 1.442695, %v2297_v36 }
 0x7c2   :  { %4149 = vpow2.f32 %v2298_v37 }
 0x7cc   :  { %v4150_v38 = vpop.eup %4149 }
 0x7cd   :  { %v2300_v39 = vsel %vm2293_vm4, %v4150_v38, 0.0 }
 0x7ce   :  { %2301 = vadd.xlane.f32.xlu0 %v2300_v39 }
 0x85b   :  { %v2302_v40 = vpop.xlane.xlu0 %2301 }
 0x85c   :  { %4151 = vrcp.f32 %v2302_v40 }
 0x866   :  { %v4152_v41 = vpop.eup %4151 }
 0x867   :  { %v2304_v42 = vmul.f32 %v4152_v41, %v4150_v38 }
 0x869   :  { %2305 = vst.msk [vmem:[%s5397_s15] sm:$0xff] %vm2293_vm4, %v2304_v42 }

// kernel: net_forward.2
= control target key start
LH: loop header
LB: loop body
LE: loop exit
PB: predicated region body
PF: predicated region fallthrough
CT: control target
= control target key end

     0   :  { %s12574_s0 = inlined_call_operand.vmem [shape: bf16[8,8192], index: 0, kind: input, shape index: {}]   ;;  %s12575_s1 = inlined_call_operand.hbm [shape: bf16[8192,1024], index: 1, kind: input, shape index: {}]   ;;  %s12576_s2 = inlined_call_operand.hbm [shape: f32[1,1024], index: 2, kind: input, shape index: {}]   ;;  %s12577_s3 = inlined_call_operand.vmem [shape: f32[8,1024], index: 3, kind: output, shape index: {}]  }
   0x1   :  { %12583 = sst [smem:[#allocation10_spill]] %s12575_s1 }
   0x2   :  { %8 = vsyncpa [#allocation4], 0 }
   0x3   :  { %10 = vsyncpa [#allocation4 + $0x1], 0 }
   0x4   :  { %11 = vsyncpa [#allocation6], 0 }
   0x5   :  { %13 = vsyncpa [#allocation6 + $0x1], 0  ;;  %s10970_s12 = smov 0   ;;  %s10972_s13 = smov 0  }
   0x6   :  { %s10974_s14 = smov 0   ;;  %s10976_s15 = smov 0  }
   0x7   :  { %s10978_s16 = smov 0   ;;  %s10980_s17 = smov 0  }
   0x8   :  { %s10982_s18 = smov 0   ;;  %s10984_s19 = smov 0  }
   0x9   :  { %s10986_s20 = smov 0   ;;  %s10988_s21 = smov 0  }
   0xa   :  { %s10990_s22 = smov 0  }
   0xb LB: > { %s28_s23 = sadd.s32 1, %s10934_s20  ;;  %s66_s24 = sadd.s32 1, %s10922_s17  ;;  %s10942_s22 = sphi %s10990_s22, %s19_s22   ;;  %s10938_s21 = sphi %s10988_s21, %s12609_s21   ;;  %s10934_s20 = sphi %s10986_s20, %s12608_s20   ;;  %s10930_s19 = sphi %s10984_s19, %s12607_s19   ;;  %s10926_s18 = sphi %s10982_s18, %s12606_s18   ;;  %s10922_s17 = sphi %s10980_s17, %s12605_s17   ;;  %s10918_s16 = sphi %s10978_s16, %s12604_s16   ;;  %s10914_s15 = sphi %s10976_s15, %s12603_s15   ;;  %s10910_s14 = sphi %s10974_s14, %s12602_s14   ;;  %s10906_s13 = sphi %s10972_s13, %s12601_s13   ;;  %s10902_s12 = sphi %s10970_s12, %s12600_s12  }
   0xc   : > { %p11027_p0 = scmp.ge.s32.totalorder %s28_s23, 2  ;;  %p73_p1 = scmp.ne.s32.totalorder %s10922_s17, %s10918_s16 }
   0xd   : > { %p12579_p2 = scmp.eq.s32.totalorder %s10942_s22, 0  ;;  %p12578_p4 = scmp.lt.s32.totalorder %s10942_s22, 4 }
   0xe   : > { %s12611_s23 = smov (%p11027_p0, %s28_s23), 0  ;;  %s164_s27 = sand.u32 1, %s10922_s17  }
   0xf   : > { %p75_p3 = por %p12579_p2, %p73_p1  ;;  %s61_s26 = ssub.s32 %s10934_s20, %s12611_s23 }
  0x10   : > { %s8039_s28 = sshll.u32 %s164_s27, 13  ;;  %s8041_s29 = sshll.u32 %s10938_s21, 2 }
  0x11   : > { %s9114_s30 = sshll.u32 %s10934_s20, 12  ;;  %s168_s4 = scalar_lea.vmem [#allocation3], %s8039_s28 }
  0x12   : > { %s178_s5 = sshll.u32 %s168_s4, 4  ;;  %s175_s6 = sadd.s32 %s9114_s30, %s8041_s29  ;;  %s11046_s5 = int_to_ptr.vmem [resolvable:$true] %s178_s5 }
  0x13   : > { %s8043_s7 = sshll.u32 %s175_s6, 6  ;;  %p11050_p5 = pnand %p12578_p4, %p75_p3 }
  0x14   : > { %s12586_s1 = sld [smem:[#allocation10_spill]]  ;;  %s11060_s28 = scalar_lea.sflag [#allocation4], %s164_s27 }
  0x15   : > { %p10790_p8 = pneg %p11050_p5 }
  0x1a   : > { %s11057_s11 = scalar_lea.hbm %s12586_s1, %s8043_s7  ;;  %s10793_s6 = scalar_lea.hbm %s12586_s1, 524288 }
  0x1b   : > { %s10788_s29 = scalar_lea.hbm %s11057_s11, 131072  ;;  %p10794_p11 = scmp.lt.u32.totalorder %s11057_s11, %s12586_s1 }
  0x1c   : > { %p10789_p7 = scmp.ne.s32.totalorder %s11057_s11, %s10788_s29  ;;  %p10795_p12 = scmp.lt.u32.totalorder %s10793_s6, %s10788_s29 }
  0x1d   : > { %p10797_p1 = scmp.lt.u32.totalorder %s10788_s29, %s11057_s11 }
  0x1e   : > { %p10791_p9 = pnand %p10790_p8, %p10789_p7  ;;  %p10796_p13 = por %p10795_p12, %p10794_p11 }
  0x20   : > { %p10792_p10 = pneg %p10791_p9  ;;  %p10798_p3 = por %p10797_p1, %p10796_p13 }
  0x22   : > { %p10799_p4 = pnand %p10798_p3, %p10792_p10 }
  0x24   : > { %10802 = shalt.err (!%p10799_p4)
}
  0x25   : > { %s10803_s27 = scalar_lea.vmem %s11046_s5, 131072  ;;  %s10944_s10 = smov [#allocation3]  }
  0x26   : > { %p10804_p7 = scmp.ne.s32.totalorder %s11046_s5, %s10803_s27  ;;  %s10808_s30 = sshll.u32 %s10944_s10, 4  ;;  %s10809_s30 = int_to_ptr.vmem [resolvable:$false] %s10808_s30 }
  0x27   : > { %s10810_s4 = scalar_lea.vmem %s10809_s30, 262144  ;;  %p10811_p6 = scmp.lt.s32.totalorder %s11046_s5, %s10809_s30 }
  0x28   : > { %p10806_p9 = pnand %p10804_p7, %p10790_p8  ;;  %p10812_p11 = scmp.lt.s32.totalorder %s10810_s4, %s10803_s27 }
  0x2a   : > { %p10807_p2 = pneg %p10806_p9  ;;  %p10813_p12 = por %p10812_p11, %p10811_p6 }
  0x2c   : > { %p10814_p13 = pnand %p10813_p12, %p10807_p2 }
  0x2e   : > { %10817 = shalt.err (!%p10814_p13)
}
  0x2f   : > { %s10945_s29 = smov 512   ;;  %s10946_s6 = smov 256  }
  0x30   : > { %s10947_s7 = smov 16   ;;  %p205_p2 = scmp.lt.s32.totalorder %s10942_s22, 5 }
  0x31   : > { %9123 = dma.hbm_to_vmem [thread:$0]  (!%p11050_p5), %s11057_s11, 131072, %s11046_s5, %s11060_s28, %s10945_s29, %s10946_s6, %s10947_s7  }
  0x32   : > { %p12587_p4 = scmp.ge.s32.totalorder %s10942_s22, 1  ;;  %s8035_s27 = sadd.s32 4294967295, %s10942_s22  }
  0x33   : > { %s31_s10 = sadd.s32 1, %s10938_s21  ;;  %p79_p8 = scmp.ne.s32.totalorder %s10918_s16, %s10914_s15 }
  0x34   : > { %p11091_p6 = pnand %p12587_p4, %p205_p2  ;;  %s12613_s10 = smov (!%p11027_p0, %s31_s10), %s10938_s21 }
  0x35   : > { %p11102_p10 = scmp.eq.s32.totalorder %s8035_s27, 0  ;;  %p33_p5 = scmp.ge.s32.totalorder %s12613_s10, 2 }
  0x36   : > { %s92_s5 = sadd.s32 1, %s10910_s14  ;;  %p99_p3 = scmp.ne.s32.totalorder %s10910_s14, %s10906_s13 }
  0x37   : > { %p11109_p1 = por %p11102_p10, %p79_p8  ;;  %s12615_s10 = smov (%p33_p5, %s12613_s10), 0 }
  0x38   : > { %12591 = sst [smem:[#allocation9_spill]] %s12615_s10  ;;  %p12592_p0 = scmp.eq.s32.totalorder %s10942_s22, 0 }
  0x39   : > { %s12590_s11 = scalar_select %p11109_p1, 1, 0 }
  0x3a   : > { %p11119_p7 = por %p99_p3, %p12592_p0  ;;  %p105_p9 = scmp.ne.s32.totalorder %s10906_s13, %s10902_s12 }
  0x3b   : > { %s62_s25 = ssub.s32 %s10938_s21, %s12615_s10  ;;  %s188_s28 = sand.u32 1, %s10910_s14  }
  0x3c   : > { %s63_s30 = sor.u32 %s62_s25, %s61_s26  ;;  %p90_p11 = scmp.eq.s32.totalorder %s62_s25, 0 }
  0x3d   : > { %p64_p12 = scmp.eq.s32.totalorder %s63_s30, 0  ;;  %p11133_p13 = por %p105_p9, %p11102_p10 }
  0x3e   : > { %s11138_s29 = scalar_select %p90_p11, %s10910_s14, %s92_s5  }
  0x3f   : > { %s12594_s4 = scalar_select %p11133_p13, 1, 0 }
  0x40   : > { %s11143_s6 = scalar_select %p64_p12, %s10922_s17, %s66_s24  }
  0x41   : > { %s8044_s7 = sshll.u32 %s188_s28, 2  ;;  %s9115_s27 = sshll.u32 %s10938_s21, 6 }
  0x42   : > { %s11149_s10 = scalar_lea.hbm %s12576_s2, %s9115_s27  ;;  %s192_s26 = scalar_lea.vmem [#allocation5], %s8044_s7 }
  0x43   : > { %s200_s8 = sshll.u32 %s192_s26, 4  ;;  %p12595_p2 = scmp.lt.s32.totalorder %s10942_s22, 4  ;;  %s11151_s8 = int_to_ptr.vmem [resolvable:$true] %s200_s8 }
  0x44   : > { %s189_s5 = scalar_lea.sflag [#allocation6], %s188_s28  ;;  %s10818_s1 = scalar_lea.hbm %s11149_s10, 64 }
  0x45   : > { %p11157_p4 = pnand %p12595_p2, %p11119_p7  ;;  %p10819_p8 = scmp.ne.s32.totalorder %s11149_s10, %s10818_s1 }
  0x46   : > { %s10823_s15 = scalar_lea.hbm %s12576_s2, 128  ;;  %p10824_p0 = scmp.lt.u32.totalorder %s11149_s10, %s12576_s2 }
  0x47   : > { %p10820_p10 = pneg %p11157_p4  ;;  %p10825_p7 = scmp.lt.u32.totalorder %s10823_s15, %s10818_s1 }
  0x48   : > { %p10827_p11 = scmp.lt.u32.totalorder %s10818_s1, %s11149_s10 }
  0x49   : > { %p10821_p5 = pnand %p10820_p10, %p10819_p8  ;;  %p10826_p9 = por %p10825_p7, %p10824_p0 }
  0x4b   : > { %p10822_p3 = pneg %p10821_p5  ;;  %p10828_p12 = por %p10827_p11, %p10826_p9 }
  0x4d   : > { %p10829_p2 = pnand %p10828_p12, %p10822_p3 }
  0x4f   : > { %10832 = shalt.err (!%p10829_p2)
}
  0x50   : > { %s10833_s28 = scalar_lea.vmem %s11151_s8, 64  ;;  %s10948_s12 = smov [#allocation5]  }
  0x51   : > { %p10834_p8 = scmp.ne.s32.totalorder %s11151_s8, %s10833_s28  ;;  %s10838_s26 = sshll.u32 %s10948_s12, 4  ;;  %s10839_s26 = int_to_ptr.vmem [resolvable:$false] %s10838_s26 }
  0x52   : > { %s10840_s25 = scalar_lea.vmem %s10839_s26, 128  ;;  %p10841_p1 = scmp.lt.s32.totalorder %s11151_s8, %s10839_s26 }
  0x53   : > { %p10836_p5 = pnand %p10834_p8, %p10820_p10  ;;  %p10842_p0 = scmp.lt.s32.totalorder %s10840_s25, %s10833_s28 }
  0x55   : > { %p10837_p13 = pneg %p10836_p5  ;;  %p10843_p7 = por %p10842_p0, %p10841_p1 }
  0x57   : > { %p10844_p9 = pnand %p10843_p7, %p10837_p13 }
  0x59   : > { %10847 = shalt.err (!%p10844_p9)
}
  0x5a   : > { %9126 = dma.hbm_to_vmem [thread:$0]  (!%p11157_p4), %s11149_s10, 64, %s11151_s8, %s189_s5  }
  0x5b   : > { %209 = sbr.rel (%p11091_p6) target bundleno = 1373 (0x55d), region = 32  ;;  %s211_s1 = sand.u32 (!%p11091_p6), 1, %s10918_s16  }
  0x5c   : > { %s8048_s30 = sshll.u32 (!%p11091_p6), %s211_s1, 13  ;;  %s212_s15 = scalar_lea.sflag (!%p11091_p6), [#allocation4], %s211_s1 }
  0x5d   : > { %s11189_s7 = scalar_lea.vmem (!%p11091_p6), [#allocation3], %s8048_s30  ;;  %p12597_p10 = scmp.ne.s32.totalorder (!%p11091_p6), %s12590_s11, 0 }
  0x62   : > { %10893 = dma.done.wait (%p12597_p10), %s212_s15, 131072  }
  0x63   : > { %10895 = vsyncadd (%p12597_p10), %s212_s15, 4294836224  ;;  %s220_s24 = sand.u32 1, %s10906_s13   ;;  %p12598_p6 = scmp.ne.s32.totalorder %s12594_s4, 0 }
  0x64   : > { %s11196_s27 = sshll.u32 %s220_s24, 2  ;;  %s221_s9 = scalar_lea.sflag [#allocation6], %s220_s24 }
  0x65   : > { %s224_s10 = scalar_lea.vmem [#allocation5], %s11196_s27 }
  0x66   : > { %10897 = dma.done.wait (%p12598_p6), %s221_s9, 64  }
  0x67   : > { %10899 = vsyncadd (%p12598_p6), %s221_s9, 4294967232  ;;  %s8050_s8 = sshll.u32 %s10926_s18, 5  ;;  %s8052_s5 = sshll.u32 %s10930_s19, 2 }
  0x68   : > { %p258_p1 = scmp.lt.s32.totalorder %s8050_s8, 63  ;;  %p267_p13 = scmp.lt.s32.totalorder %s8052_s5, 7 }
  0x69   : > { %p8054_p4 = scmp.ne.s32.totalorder %s10926_s18, 0 }
  0x6a   : > { %s12617_s8 = smov (!%p258_p1, %s8050_s8), 63  ;;  %s12619_s5 = smov (!%p267_p13, %s8052_s5), 7 }
  0x6b   : > { %s8051_s11 = sshll.u32 %s12617_s8, 2  ;;  %s8053_s25 = sshll.u32 %s12619_s5, 3  ;;  %v10949_v0 = vmov (!%p8054_p4), 0.0  }
  0x6c   : > { %s11208_s26 = scalar_lea.vmem %s12574_s0, %s8051_s11  ;;  %s11213_s4 = scalar_lea.vmem %s12577_s3, %s8053_s25  ;;  %276 = vst [vmem:[#allocation2] sm:$0xff] (!%p8054_p4), %v10949_v0  ;;  %277 = vst [vmem:[#allocation2 + $0x8] sm:$0xff] (!%p8054_p4), %v10949_v0 }
  0x6d   : > { %275 = sbr.rel (%p8054_p4) target bundleno = 116 (0x74), region = 44  ;;  %278 = vst [vmem:[#allocation2 + $0x10] sm:$0xff] (!%p8054_p4), %v10949_v0  ;;  %279 = vst [vmem:[#allocation2 + $0x18] sm:$0xff] (!%p8054_p4), %v10949_v0 }
  0x74 PF: > { %v9220_v1 = vld [vmem:[%s11189_s7 + $0x4] ss:$16 sps:$4 sm:$0xff]   ;;  %v9224_v3 = vld [vmem:[%s11189_s7] ss:$16 sps:$4 sm:$0xff]   ;;  %v285_v49 = vld [vmem:[%s11208_s26 + $0x8] sm:$0xff]  ;;  %p9111_p3 = scmp.ne.s32.totalorder %s10926_s18, 1 }
  0x75   : > { %v9222_v2 = vld [vmem:[%s11189_s7 + $0x204] ss:$16 sps:$4 sm:$0xff]   ;;  %6556 = vmatprep.subr.bf16.mxu0 %v9220_v1  ;;  %v9225_v4 = vld [vmem:[%s11189_s7 + $0x200] ss:$16 sps:$4 sm:$0xff]   ;;  %v11268_v52 = vcombine.high %v285_v49, %v285_v49 }
  0x76   : > { %6597 = vmatprep.subr.bf16.mxu1 %v9222_v2  ;;  %v9226_v5 = vld [vmem:[%s11189_s7 + $0x24] ss:$16 sps:$4 sm:$0xff]   ;;  %6557 = vmatpush1.bf16.msra.mxu0 %v9224_v3  ;;  %v9230_v7 = vld [vmem:[%s11189_s7 + $0x20] ss:$16 sps:$4 sm:$0xff]  }
  0x77   : > { %6598 = vmatpush1.bf16.msra.mxu1 %v9225_v4  ;;  %v9228_v6 = vld [vmem:[%s11189_s7 + $0x224] ss:$16 sps:$4 sm:$0xff]   ;;  %6558 = vmatprep.subr.bf16.mxu0 %v9226_v5  ;;  %v9231_v8 = vld [vmem:[%s11189_s7 + $0x220] ss:$16 sps:$4 sm:$0xff]  }
  0x78   : > { %6599 = vmatprep.subr.bf16.mxu1 %v9228_v6  ;;  %v9232_v9 = vld [vmem:[%s11189_s7 + $0x44] ss:$16 sps:$4 sm:$0xff]   ;;  %v9236_v11 = vld [vmem:[%s11189_s7 + $0x40] ss:$16 sps:$4 sm:$0xff]   ;;  %6629 = vmatprep.mubr.bf16.mxu1 %v11268_v52 }
  0x79   : > { %v9234_v10 = vld [vmem:[%s11189_s7 + $0x244] ss:$16 sps:$4 sm:$0xff]   ;;  %v9237_v12 = vld [vmem:[%s11189_s7 + $0x240] ss:$16 sps:$4 sm:$0xff]  }
  0x7a   : > { %6559 = vmatpush1.bf16.msra.mxu0 %v9230_v7  ;;  %v9238_v13 = vld [vmem:[%s11189_s7 + $0x64] ss:$16 sps:$4 sm:$0xff]   ;;  %v9242_v15 = vld [vmem:[%s11189_s7 + $0x60] ss:$16 sps:$4 sm:$0xff]  }
  0x7b   : > { %6600 = vmatpush1.bf16.msra.mxu1 %v9231_v8  ;;  %6560 = vmatprep.subr.bf16.mxu0 %v9232_v9  ;;  %v9240_v14 = vld [vmem:[%s11189_s7 + $0x264] ss:$16 sps:$4 sm:$0xff]   ;;  %v9243_v16 = vld [vmem:[%s11189_s7 + $0x260] ss:$16 sps:$4 sm:$0xff]   ;;  %v11292_v8 = vcombine.low %v285_v49, %v285_v49 }
  0x7c   : > { %6601 = vmatprep.subr.bf16.mxu1 %v9234_v10  ;;  %v9244_v17 = vld [vmem:[%s11189_s7 + $0x84] ss:$16 sps:$4 sm:$0xff]   ;;  %v9248_v19 = vld [vmem:[%s11189_s7 + $0x80] ss:$16 sps:$4 sm:$0xff]  }
  0x7d   : > { %v9246_v18 = vld [vmem:[%s11189_s7 + $0x284] ss:$16 sps:$4 sm:$0xff]   ;;  %v9249_v20 = vld [vmem:[%s11189_s7 + $0x280] ss:$16 sps:$4 sm:$0xff]  }
  0x7e   : > { %6561 = vmatpush1.bf16.msra.mxu0 %v9236_v11  ;;  %v9250_v21 = vld [vmem:[%s11189_s7 + $0xa4] ss:$16 sps:$4 sm:$0xff]   ;;  %v9254_v23 = vld [vmem:[%s11189_s7 + $0xa0] ss:$16 sps:$4 sm:$0xff]  }
  0x7f   : > { %6602 = vmatpush1.bf16.msra.mxu1 %v9237_v12  ;;  %6562 = vmatprep.subr.bf16.mxu0 %v9238_v13  ;;  %v9252_v22 = vld [vmem:[%s11189_s7 + $0x2a4] ss:$16 sps:$4 sm:$0xff]   ;;  %v9255_v24 = vld [vmem:[%s11189_s7 + $0x2a0] ss:$16 sps:$4 sm:$0xff]  }
  0x80   : > { %6603 = vmatprep.subr.bf16.mxu1 %v9240_v14  ;;  %v9256_v25 = vld [vmem:[%s11189_s7 + $0xc4] ss:$16 sps:$4 sm:$0xff]   ;;  %v9260_v27 = vld [vmem:[%s11189_s7 + $0xc0] ss:$16 sps:$4 sm:$0xff]  }
  0x81   : > { %v9258_v26 = vld [vmem:[%s11189_s7 + $0x2c4] ss:$16 sps:$4 sm:$0xff]   ;;  %v9261_v28 = vld [vmem:[%s11189_s7 + $0x2c0] ss:$16 sps:$4 sm:$0xff]  }
  0x82   : > { %6563 = vmatpush1.bf16.msra.mxu0 %v9242_v15  ;;  %v9262_v29 = vld [vmem:[%s11189_s7 + $0xe4] ss:$16 sps:$4 sm:$0xff]   ;;  %v9266_v31 = vld [vmem:[%s11189_s7 + $0xe0] ss:$16 sps:$4 sm:$0xff]  }
  0x83   : > { %6604 = vmatpush1.bf16.msra.mxu1 %v9243_v16  ;;  %6564 = vmatprep.subr.bf16.mxu0 %v9244_v17  ;;  %v9264_v30 = vld [vmem:[%s11189_s7 + $0x2e4] ss:$16 sps:$4 sm:$0xff]   ;;  %v9267_v32 = vld [vmem:[%s11189_s7 + $0x2e0] ss:$16 sps:$4 sm:$0xff]  }
  0x84   : > { %6605 = vmatprep.subr.bf16.mxu1 %v9246_v18  ;;  %v9268_v33 = vld [vmem:[%s11189_s7 + $0x104] ss:$16 sps:$4 sm:$0xff]   ;;  %v9272_v35 = vld [vmem:[%s11189_s7 + $0x100] ss:$16 sps:$4 sm:$0xff]  }
  0x85   : > { %v9270_v34 = vld [vmem:[%s11189_s7 + $0x304] ss:$16 sps:$4 sm:$0xff]   ;;  %v9273_v36 = vld [vmem:[%s11189_s7 + $0x300] ss:$16 sps:$4 sm:$0xff]  }
  0x86   : > { %6565 = vmatpush1.bf16.msra.mxu0 %v9248_v19  ;;  %v9274_v37 = vld [vmem:[%s11189_s7 + $0x124] ss:$16 sps:$4 sm:$0xff]   ;;  %v9278_v39 = vld [vmem:[%s11189_s7 + $0x120] ss:$16 sps:$4 sm:$0xff]  }
  0x87   : > { %6606 = vmatpush1.bf16.msra.mxu1 %v9249_v20  ;;  %6566 = vmatprep.subr.bf16.mxu0 %v9250_v21  ;;  %v9276_v38 = vld [vmem:[%s11189_s7 + $0x324] ss:$16 sps:$4 sm:$0xff]   ;;  %v9279_v40 = vld [vmem:[%s11189_s7 + $0x320] ss:$16 sps:$4 sm:$0xff]  }
  0x88   : > { %6607 = vmatprep.subr.bf16.mxu1 %v9252_v22  ;;  %v9280_v41 = vld [vmem:[%s11189_s7 + $0x144] ss:$16 sps:$4 sm:$0xff]   ;;  %v9284_v43 = vld [vmem:[%s11189_s7 + $0x140] ss:$16 sps:$4 sm:$0xff]  }
  0x89   : > { %v9282_v42 = vld [vmem:[%s11189_s7 + $0x344] ss:$16 sps:$4 sm:$0xff]   ;;  %v9285_v44 = vld [vmem:[%s11189_s7 + $0x340] ss:$16 sps:$4 sm:$0xff]  }
  0x8a   : > { %6567 = vmatpush1.bf16.msra.mxu0 %v9254_v23  ;;  %v9286_v45 = vld [vmem:[%s11189_s7 + $0x164] ss:$16 sps:$4 sm:$0xff]   ;;  %v9290_v50 = vld [vmem:[%s11189_s7 + $0x160] ss:$16 sps:$4 sm:$0xff]  }
  0x8b   : > { %6608 = vmatpush1.bf16.msra.mxu1 %v9255_v24  ;;  %6568 = vmatprep.subr.bf16.mxu0 %v9256_v25  ;;  %v9288_v46 = vld [vmem:[%s11189_s7 + $0x364] ss:$16 sps:$4 sm:$0xff]   ;;  %v9291_v51 = vld [vmem:[%s11189_s7 + $0x360] ss:$16 sps:$4 sm:$0xff]  }
  0x8c   : > { %6609 = vmatprep.subr.bf16.mxu1 %v9258_v26  ;;  %v284_v47 = vld [vmem:[%s11208_s26] sm:$0xff] }
  0x8d   : > { %v11263_v48 = vcombine.high %v284_v47, %v284_v47  ;;  %v9292_v53 = vld [vmem:[%s11189_s7 + $0x184] ss:$16 sps:$4 sm:$0xff]   ;;  %v9296_v55 = vld [vmem:[%s11189_s7 + $0x180] ss:$16 sps:$4 sm:$0xff]   ;;  %v11290_v7 = vcombine.low %v284_v47, %v284_v47 }
  0x8e   : > { %6569 = vmatpush1.bf16.msra.mxu0 %v9260_v27  ;;  %v9294_v54 = vld [vmem:[%s11189_s7 + $0x384] ss:$16 sps:$4 sm:$0xff]   ;;  %v9297_v56 = vld [vmem:[%s11189_s7 + $0x380] ss:$16 sps:$4 sm:$0xff]  }
  0x8f   : > { %6610 = vmatpush1.bf16.msra.mxu1 %v9261_v28  ;;  %6570 = vmatprep.subr.bf16.mxu0 %v9262_v29  ;;  %v9298_v57 = vld [vmem:[%s11189_s7 + $0x1a4] ss:$16 sps:$4 sm:$0xff]   ;;  %v9302_v59 = vld [vmem:[%s11189_s7 + $0x1a0] ss:$16 sps:$4 sm:$0xff]  }
  0x90   : > { %6611 = vmatprep.subr.bf16.mxu1 %v9264_v30  ;;  %6588 = vmatprep.mubr.bf16.mxu0 %v11263_v48  ;;  %v9300_v58 = vld [vmem:[%s11189_s7 + $0x3a4] ss:$16 sps:$4 sm:$0xff]   ;;  %v9303_v60 = vld [vmem:[%s11189_s7 + $0x3a0] ss:$16 sps:$4 sm:$0xff]  }
  0x91   : > { %v9304_v61 = vld [vmem:[%s11189_s7 + $0x1c4] ss:$16 sps:$4 sm:$0xff]   ;;  %v9308_v63 = vld [vmem:[%s11189_s7 + $0x1c0] ss:$16 sps:$4 sm:$0xff]  }
  0x92   : > { %6571 = vmatpush1.bf16.msra.mxu0 %v9266_v31  ;;  %v9306_v62 = vld [vmem:[%s11189_s7 + $0x3c4] ss:$16 sps:$4 sm:$0xff]   ;;  %v9309_v0 = vld [vmem:[%s11189_s7 + $0x3c0] ss:$16 sps:$4 sm:$0xff]  }
  0x93   : > { %6612 = vmatpush1.bf16.msra.mxu1 %v9267_v32  ;;  %6572 = vmatprep.subr.bf16.mxu0 %v9268_v33  ;;  %v9310_v1 = vld [vmem:[%s11189_s7 + $0x1e4] ss:$16 sps:$4 sm:$0xff]   ;;  %v9314_v3 = vld [vmem:[%s11189_s7 + $0x1e0] ss:$16 sps:$4 sm:$0xff]  }
  0x94   : > { %6613 = vmatprep.subr.bf16.mxu1 %v9270_v34  ;;  %v9312_v2 = vld [vmem:[%s11189_s7 + $0x3e4] ss:$16 sps:$4 sm:$0xff]   ;;  %v9315_v4 = vld [vmem:[%s11189_s7 + $0x3e0] ss:$16 sps:$4 sm:$0xff]   ;;  %v11324_v34 = vld [vmem:[%s11208_s26 + $0x18] sm:$0xff] }
  0x95   : > { %v9322_v5 = vld [vmem:[%s11189_s7 + $0x404] ss:$16 sps:$4 sm:$0xff]   ;;  %v9320_v9 = vld [vmem:[%s11189_s7 + $0x400] ss:$16 sps:$4 sm:$0xff]  }
  0x96   : > { %6573 = vmatpush1.bf16.msra.mxu0 %v9272_v35  ;;  %v9325_v6 = vld [vmem:[%s11189_s7 + $0x604] ss:$16 sps:$4 sm:$0xff]   ;;  %v9323_v10 = vld [vmem:[%s11189_s7 + $0x600] ss:$16 sps:$4 sm:$0xff]  }
  0x97   : > { %6614 = vmatpush1.bf16.msra.mxu1 %v9273_v36  ;;  %6574 = vmatprep.subr.bf16.mxu0 %v9274_v37  ;;  %v9328_v11 = vld [vmem:[%s11189_s7 + $0x424] ss:$16 sps:$4 sm:$0xff]   ;;  %v9326_v13 = vld [vmem:[%s11189_s7 + $0x420] ss:$16 sps:$4 sm:$0xff]  }
  0x98   : > { %6615 = vmatprep.subr.bf16.mxu1 %v9276_v38  ;;  %v9331_v12 = vld [vmem:[%s11189_s7 + $0x624] ss:$16 sps:$4 sm:$0xff]   ;;  %v9329_v14 = vld [vmem:[%s11189_s7 + $0x620] ss:$16 sps:$4 sm:$0xff]   ;;  %v11334_v38 = vcombine.high %v11324_v34, %v11324_v34 }
  0x99   : > { %v9334_v15 = vld [vmem:[%s11189_s7 + $0x444] ss:$16 sps:$4 sm:$0xff]   ;;  %v9332_v17 = vld [vmem:[%s11189_s7 + $0x440] ss:$16 sps:$4 sm:$0xff]  }
  0x9a   : > { %6575 = vmatpush1.bf16.msra.mxu0 %v9278_v39  ;;  %v9337_v16 = vld [vmem:[%s11189_s7 + $0x644] ss:$16 sps:$4 sm:$0xff]   ;;  %v9335_v18 = vld [vmem:[%s11189_s7 + $0x640] ss:$16 sps:$4 sm:$0xff]  }
  0x9b   : > { %6616 = vmatpush1.bf16.msra.mxu1 %v9279_v40  ;;  %6576 = vmatprep.subr.bf16.mxu0 %v9280_v41  ;;  %v9340_v19 = vld [vmem:[%s11189_s7 + $0x464] ss:$16 sps:$4 sm:$0xff]   ;;  %v9338_v21 = vld [vmem:[%s11189_s7 + $0x460] ss:$16 sps:$4 sm:$0xff]  }
  0x9c   : > { %6617 = vmatprep.subr.bf16.mxu1 %v9282_v42  ;;  %v9343_v20 = vld [vmem:[%s11189_s7 + $0x664] ss:$16 sps:$4 sm:$0xff]   ;;  %v9341_v22 = vld [vmem:[%s11189_s7 + $0x660] ss:$16 sps:$4 sm:$0xff]  }
  0x9d   : > { %v9346_v23 = vld [vmem:[%s11189_s7 + $0x484] ss:$16 sps:$4 sm:$0xff]   ;;  %v9344_v25 = vld [vmem:[%s11189_s7 + $0x480] ss:$16 sps:$4 sm:$0xff]  }
  0x9e   : > { %6577 = vmatpush1.bf16.msra.mxu0 %v9284_v43  ;;  %v9349_v24 = vld [vmem:[%s11189_s7 + $0x684] ss:$16 sps:$4 sm:$0xff]   ;;  %v9347_v26 = vld [vmem:[%s11189_s7 + $0x680] ss:$16 sps:$4 sm:$0xff]  }
  0x9f   : > { %6618 = vmatpush1.bf16.msra.mxu1 %v9285_v44  ;;  %6578 = vmatprep.subr.bf16.mxu0 %v9286_v45  ;;  %v9352_v27 = vld [vmem:[%s11189_s7 + $0x4a4] ss:$16 sps:$4 sm:$0xff]   ;;  %v9350_v29 = vld [vmem:[%s11189_s7 + $0x4a0] ss:$16 sps:$4 sm:$0xff]  }
  0xa0   : > { %6619 = vmatprep.subr.bf16.mxu1 %v9288_v46  ;;  %v9355_v28 = vld [vmem:[%s11189_s7 + $0x6a4] ss:$16 sps:$4 sm:$0xff]   ;;  %v9353_v30 = vld [vmem:[%s11189_s7 + $0x6a0] ss:$16 sps:$4 sm:$0xff]  }
  0xa1   : > { %v9358_v31 = vld [vmem:[%s11189_s7 + $0x4c4] ss:$16 sps:$4 sm:$0xff]   ;;  %v9356_v35 = vld [vmem:[%s11189_s7 + $0x4c0] ss:$16 sps:$4 sm:$0xff]  }
  0xa2   : > { %6579 = vmatpush1.bf16.msra.mxu0 %v9290_v50  ;;  %v9361_v32 = vld [vmem:[%s11189_s7 + $0x6c4] ss:$16 sps:$4 sm:$0xff]   ;;  %v9359_v36 = vld [vmem:[%s11189_s7 + $0x6c0] ss:$16 sps:$4 sm:$0xff]  }
  0xa3   : > { %6620 = vmatpush1.bf16.msra.mxu1 %v9291_v51  ;;  %6580 = vmatprep.subr.bf16.mxu0 %v9292_v53  ;;  %v11321_v33 = vld [vmem:[%s11208_s26 + $0x10] sm:$0xff] }
  0xa4   : > { %6621 = vmatprep.subr.bf16.mxu1 %v9294_v54  ;;  %v11330_v37 = vcombine.high %v11321_v33, %v11321_v33  ;;  %v9364_v39 = vld [vmem:[%s11189_s7 + $0x4e4] ss:$16 sps:$4 sm:$0xff]   ;;  %v9362_v41 = vld [vmem:[%s11189_s7 + $0x4e0] ss:$16 sps:$4 sm:$0xff]  }
  0xa5   : > { %v9367_v40 = vld [vmem:[%s11189_s7 + $0x6e4] ss:$16 sps:$4 sm:$0xff]   ;;  %v9365_v42 = vld [vmem:[%s11189_s7 + $0x6e0] ss:$16 sps:$4 sm:$0xff]  }
  0xa6   : > { %6581 = vmatpush1.bf16.msra.mxu0 %v9296_v55  ;;  %v9370_v43 = vld [vmem:[%s11189_s7 + $0x504] ss:$16 sps:$4 sm:$0xff]   ;;  %v9368_v45 = vld [vmem:[%s11189_s7 + $0x500] ss:$16 sps:$4 sm:$0xff]  }
  0xa7   : > { %6622 = vmatpush1.bf16.msra.mxu1 %v9297_v56  ;;  %6582 = vmatprep.subr.bf16.mxu0 %v9298_v57  ;;  %v9373_v44 = vld [vmem:[%s11189_s7 + $0x704] ss:$16 sps:$4 sm:$0xff]   ;;  %v9371_v46 = vld [vmem:[%s11189_s7 + $0x700] ss:$16 sps:$4 sm:$0xff]  }
  0xa8   : > { %6623 = vmatprep.subr.bf16.mxu1 %v9300_v58  ;;  %v9376_v47 = vld [vmem:[%s11189_s7 + $0x524] ss:$16 sps:$4 sm:$0xff]   ;;  %v9374_v50 = vld [vmem:[%s11189_s7 + $0x520] ss:$16 sps:$4 sm:$0xff]  }
  0xa9   : > { %v9379_v49 = vld [vmem:[%s11189_s7 + $0x724] ss:$16 sps:$4 sm:$0xff]   ;;  %v9377_v51 = vld [vmem:[%s11189_s7 + $0x720] ss:$16 sps:$4 sm:$0xff]  }
  0xaa   : > { %6583 = vmatpush1.bf16.msra.mxu0 %v9302_v59  ;;  %v9382_v53 = vld [vmem:[%s11189_s7 + $0x544] ss:$16 sps:$4 sm:$0xff]   ;;  %v9380_v55 = vld [vmem:[%s11189_s7 + $0x540] ss:$16 sps:$4 sm:$0xff]  }
  0xab   : > { %6624 = vmatpush1.bf16.msra.mxu1 %v9303_v60  ;;  %6584 = vmatprep.subr.bf16.mxu0 %v9304_v61  ;;  %v9385_v54 = vld [vmem:[%s11189_s7 + $0x744] ss:$16 sps:$4 sm:$0xff]   ;;  %v9383_v56 = vld [vmem:[%s11189_s7 + $0x740] ss:$16 sps:$4 sm:$0xff]  }
  0xac   : > { %6625 = vmatprep.subr.bf16.mxu1 %v9306_v62  ;;  %v9388_v57 = vld [vmem:[%s11189_s7 + $0x564] ss:$16 sps:$4 sm:$0xff]   ;;  %v9386_v59 = vld [vmem:[%s11189_s7 + $0x560] ss:$16 sps:$4 sm:$0xff]  }
  0xad   : > { %v9391_v58 = vld [vmem:[%s11189_s7 + $0x764] ss:$16 sps:$4 sm:$0xff]   ;;  %v9389_v60 = vld [vmem:[%s11189_s7 + $0x760] ss:$16 sps:$4 sm:$0xff]  }
  0xae   : > { %6585 = vmatpush1.bf16.msra.mxu0 %v9308_v63  ;;  %v9394_v61 = vld [vmem:[%s11189_s7 + $0x584] ss:$16 sps:$4 sm:$0xff]   ;;  %v9392_v63 = vld [vmem:[%s11189_s7 + $0x580] ss:$16 sps:$4 sm:$0xff]  }
  0xaf   : > { %6626 = vmatpush1.bf16.msra.mxu1 %v9309_v0  ;;  %6586 = vmatprep.subr.bf16.mxu0 %v9310_v1  ;;  %v9397_v62 = vld [vmem:[%s11189_s7 + $0x784] ss:$16 sps:$4 sm:$0xff]   ;;  %v9395_v0 = vld [vmem:[%s11189_s7 + $0x780] ss:$16 sps:$4 sm:$0xff]  }
  0xb0   : > { %6627 = vmatprep.subr.bf16.mxu1 %v9312_v2  ;;  %v9400_v1 = vld [vmem:[%s11189_s7 + $0x5a4] ss:$16 sps:$4 sm:$0xff]  }
  0xb1   : > { %v9403_v2 = vld [vmem:[%s11189_s7 + $0x7a4] ss:$16 sps:$4 sm:$0xff]  }
  0xb2   : > { %6587 = vmatpush1.bf16.msra.mxu0 %v9314_v3  ;;  %v9398_v3 = vld [vmem:[%s11189_s7 + $0x5a0] ss:$16 sps:$4 sm:$0xff]  }
  0xb3   : > { %6628 = vmatpush1.bf16.msra.mxu1 %v9315_v4  ;;  %6638 = vmatprep.subr.bf16.mxu0 %v9322_v5  ;;  %v9401_v4 = vld [vmem:[%s11189_s7 + $0x7a0] ss:$16 sps:$4 sm:$0xff]   ;;  %v9406_v5 = vld [vmem:[%s11189_s7 + $0x5c4] ss:$16 sps:$4 sm:$0xff]  }
  0xb4   : > { %6679 = vmatprep.subr.bf16.mxu1 %v9325_v6  ;;  %v9409_v6 = vld [vmem:[%s11189_s7 + $0x7c4] ss:$16 sps:$4 sm:$0xff]  }
  0xb5   : > { %6589 = vmatmul.mubr.bf16.vlgmr.msra.gmra.mrb[0].mxu0 %v11290_v7 }
  0xb6   : > { %6630 = vmatmul.mubr.bf16.vlgmr.msra.gmra.mrb[0].mxu1 %v11292_v8  ;;  %6639 = vmatpush1.bf16.msra.mxu0 %v9320_v9  ;;  %v9404_v9 = vld [vmem:[%s11189_s7 + $0x5c0] ss:$16 sps:$4 sm:$0xff]  }
  0xb7   : > { %6680 = vmatpush1.bf16.msra.mxu1 %v9323_v10  ;;  %6640 = vmatprep.subr.bf16.mxu0 %v9328_v11  ;;  %v9407_v10 = vld [vmem:[%s11189_s7 + $0x7c0] ss:$16 sps:$4 sm:$0xff]   ;;  %v9412_v11 = vld [vmem:[%s11189_s7 + $0x5e4] ss:$16 sps:$4 sm:$0xff]  }
  0xb8   : > { %6681 = vmatprep.subr.bf16.mxu1 %v9331_v12  ;;  %6670 = vmatprep.mubr.bf16.mxu0 %v11330_v37  ;;  %v9415_v12 = vld [vmem:[%s11189_s7 + $0x7e4] ss:$16 sps:$4 sm:$0xff]  }
  0xb9   : > { %6711 = vmatprep.mubr.bf16.mxu1 %v11334_v38 }
  0xba   : > { %6641 = vmatpush1.bf16.msra.mxu0 %v9326_v13  ;;  %v9410_v13 = vld [vmem:[%s11189_s7 + $0x5e0] ss:$16 sps:$4 sm:$0xff]  }
  0xbb   : > { %6682 = vmatpush1.bf16.msra.mxu1 %v9329_v14  ;;  %6642 = vmatprep.subr.bf16.mxu0 %v9334_v15  ;;  %v9413_v14 = vld [vmem:[%s11189_s7 + $0x7e0] ss:$16 sps:$4 sm:$0xff]   ;;  %v9422_v15 = vld [vmem:[%s11189_s7 + $0x804] ss:$16 sps:$4 sm:$0xff]  }
  0xbc   : > { %6683 = vmatprep.subr.bf16.mxu1 %v9337_v16  ;;  %v9425_v16 = vld [vmem:[%s11189_s7 + $0xa04] ss:$16 sps:$4 sm:$0xff]  }
  0xbe   : > { %6643 = vmatpush1.bf16.msra.mxu0 %v9332_v17  ;;  %v11378_v17 = vcombine.low %v11321_v33, %v11321_v33  ;;  %v9440_v33 = vld [vmem:[%s11189_s7 + $0x864] ss:$16 sps:$4 sm:$0xff]  }
  0xbf   : > { %6684 = vmatpush1.bf16.msra.mxu1 %v9335_v18  ;;  %6644 = vmatprep.subr.bf16.mxu0 %v9340_v19  ;;  %v11382_v18 = vcombine.low %v11324_v34, %v11324_v34  ;;  %v9420_v19 = vld [vmem:[%s11189_s7 + $0x800] ss:$16 sps:$4 sm:$0xff]   ;;  %v9443_v34 = vld [vmem:[%s11189_s7 + $0xa64] ss:$16 sps:$4 sm:$0xff]  }
  0xc0   : > { %6685 = vmatprep.subr.bf16.mxu1 %v9343_v20  ;;  %v9423_v20 = vld [vmem:[%s11189_s7 + $0xa00] ss:$16 sps:$4 sm:$0xff]  }
  0xc2   : > { %6645 = vmatpush1.bf16.msra.mxu0 %v9338_v21  ;;  %v9428_v21 = vld [vmem:[%s11189_s7 + $0x824] ss:$16 sps:$4 sm:$0xff]  }
  0xc3   : > { %6686 = vmatpush1.bf16.msra.mxu1 %v9341_v22  ;;  %6646 = vmatprep.subr.bf16.mxu0 %v9346_v23  ;;  %v9431_v22 = vld [vmem:[%s11189_s7 + $0xa24] ss:$16 sps:$4 sm:$0xff]  }
  0xc4   : > { %6687 = vmatprep.subr.bf16.mxu1 %v9349_v24  ;;  %v11389_v23 = vld [vmem:[%s11208_s26 + $0x20] sm:$0xff]  ;;  %v11392_v24 = vld [vmem:[%s11208_s26 + $0x28] sm:$0xff] }
  0xc6   : > { %6647 = vmatpush1.bf16.msra.mxu0 %v9344_v25  ;;  %v11396_v25 = vcombine.high %v11389_v23, %v11389_v23 }
  0xc7   : > { %6688 = vmatpush1.bf16.msra.mxu1 %v9347_v26  ;;  %6648 = vmatprep.subr.bf16.mxu0 %v9352_v27  ;;  %v11400_v26 = vcombine.high %v11392_v24, %v11392_v24  ;;  %v9426_v27 = vld [vmem:[%s11189_s7 + $0x820] ss:$16 sps:$4 sm:$0xff]  }
  0xc8   : > { %6689 = vmatprep.subr.bf16.mxu1 %v9355_v28  ;;  %v9429_v28 = vld [vmem:[%s11189_s7 + $0xa20] ss:$16 sps:$4 sm:$0xff]  }
  0xca   : > { %6649 = vmatpush1.bf16.msra.mxu0 %v9350_v29  ;;  %v9434_v29 = vld [vmem:[%s11189_s7 + $0x844] ss:$16 sps:$4 sm:$0xff]  }
  0xcb   : > { %6690 = vmatpush1.bf16.msra.mxu1 %v9353_v30  ;;  %6650 = vmatprep.subr.bf16.mxu0 %v9358_v31  ;;  %v9437_v30 = vld [vmem:[%s11189_s7 + $0xa44] ss:$16 sps:$4 sm:$0xff]   ;;  %v9432_v31 = vld [vmem:[%s11189_s7 + $0x840] ss:$16 sps:$4 sm:$0xff]  }
  0xcc   : > { %6691 = vmatprep.subr.bf16.mxu1 %v9361_v32  ;;  %v9435_v32 = vld [vmem:[%s11189_s7 + $0xa40] ss:$16 sps:$4 sm:$0xff]  }
  0xce   : > { %6651 = vmatpush1.bf16.msra.mxu0 %v9356_v35  ;;  %v9438_v35 = vld [vmem:[%s11189_s7 + $0x860] ss:$16 sps:$4 sm:$0xff]  }
  0xcf   : > { %6692 = vmatpush1.bf16.msra.mxu1 %v9359_v36  ;;  %6652 = vmatprep.subr.bf16.mxu0 %v9364_v39  ;;  %v9441_v36 = vld [vmem:[%s11189_s7 + $0xa60] ss:$16 sps:$4 sm:$0xff]   ;;  %v9446_v39 = vld [vmem:[%s11189_s7 + $0x884] ss:$16 sps:$4 sm:$0xff]  }
  0xd0   : > { %6693 = vmatprep.subr.bf16.mxu1 %v9367_v40  ;;  %v9449_v40 = vld [vmem:[%s11189_s7 + $0xa84] ss:$16 sps:$4 sm:$0xff]  }
  0xd2   : > { %6653 = vmatpush1.bf16.msra.mxu0 %v9362_v41  ;;  %v9444_v41 = vld [vmem:[%s11189_s7 + $0x880] ss:$16 sps:$4 sm:$0xff]  }
  0xd3   : > { %6694 = vmatpush1.bf16.msra.mxu1 %v9365_v42  ;;  %6654 = vmatprep.subr.bf16.mxu0 %v9370_v43  ;;  %v9447_v42 = vld [vmem:[%s11189_s7 + $0xa80] ss:$16 sps:$4 sm:$0xff]   ;;  %v9452_v43 = vld [vmem:[%s11189_s7 + $0x8a4] ss:$16 sps:$4 sm:$0xff]  }
  0xd4   : > { %6695 = vmatprep.subr.bf16.mxu1 %v9373_v44  ;;  %v9455_v44 = vld [vmem:[%s11189_s7 + $0xaa4] ss:$16 sps:$4 sm:$0xff]  }
  0xd6   : > { %6655 = vmatpush1.bf16.msra.mxu0 %v9368_v45  ;;  %v9450_v45 = vld [vmem:[%s11189_s7 + $0x8a0] ss:$16 sps:$4 sm:$0xff]  }
  0xd7   : > { %6696 = vmatpush1.bf16.msra.mxu1 %v9371_v46  ;;  %6656 = vmatprep.subr.bf16.mxu0 %v9376_v47  ;;  %v9453_v46 = vld [vmem:[%s11189_s7 + $0xaa0] ss:$16 sps:$4 sm:$0xff]   ;;  %v9458_v47 = vld [vmem:[%s11189_s7 + $0x8c4] ss:$16 sps:$4 sm:$0xff]  }
  0xd8   : > { %6697 = vmatprep.subr.bf16.mxu1 %v9379_v49  ;;  %v9461_v49 = vld [vmem:[%s11189_s7 + $0xac4] ss:$16 sps:$4 sm:$0xff]  }
  0xda   : > { %6657 = vmatpush1.bf16.msra.mxu0 %v9374_v50  ;;  %v9456_v50 = vld [vmem:[%s11189_s7 + $0x8c0] ss:$16 sps:$4 sm:$0xff]  }
  0xdb   : > { %6698 = vmatpush1.bf16.msra.mxu1 %v9377_v51  ;;  %6658 = vmatprep.subr.bf16.mxu0 %v9382_v53  ;;  %v9459_v51 = vld [vmem:[%s11189_s7 + $0xac0] ss:$16 sps:$4 sm:$0xff]   ;;  %v9464_v53 = vld [vmem:[%s11189_s7 + $0x8e4] ss:$16 sps:$4 sm:$0xff]  }
  0xdc   : > { %6699 = vmatprep.subr.bf16.mxu1 %v9385_v54  ;;  %v9467_v54 = vld [vmem:[%s11189_s7 + $0xae4] ss:$16 sps:$4 sm:$0xff]  }
  0xde   : > { %6659 = vmatpush1.bf16.msra.mxu0 %v9380_v55  ;;  %v9462_v55 = vld [vmem:[%s11189_s7 + $0x8e0] ss:$16 sps:$4 sm:$0xff]  }
  0xdf   : > { %6700 = vmatpush1.bf16.msra.mxu1 %v9383_v56  ;;  %6660 = vmatprep.subr.bf16.mxu0 %v9388_v57  ;;  %v9465_v56 = vld [vmem:[%s11189_s7 + $0xae0] ss:$16 sps:$4 sm:$0xff]   ;;  %v9470_v57 = vld [vmem:[%s11189_s7 + $0x904] ss:$16 sps:$4 sm:$0xff]  }
  0xe0   : > { %6701 = vmatprep.subr.bf16.mxu1 %v9391_v58  ;;  %v9473_v58 = vld [vmem:[%s11189_s7 + $0xb04] ss:$16 sps:$4 sm:$0xff]  }
  0xe2   : > { %6661 = vmatpush1.bf16.msra.mxu0 %v9386_v59  ;;  %v9468_v59 = vld [vmem:[%s11189_s7 + $0x900] ss:$16 sps:$4 sm:$0xff]  }
  0xe3   : > { %6702 = vmatpush1.bf16.msra.mxu1 %v9389_v60  ;;  %6662 = vmatprep.subr.bf16.mxu0 %v9394_v61  ;;  %v9471_v60 = vld [vmem:[%s11189_s7 + $0xb00] ss:$16 sps:$4 sm:$0xff]   ;;  %v9476_v61 = vld [vmem:[%s11189_s7 + $0x924] ss:$16 sps:$4 sm:$0xff]  }
  0xe4   : > { %6703 = vmatprep.subr.bf16.mxu1 %v9397_v62  ;;  %v9479_v62 = vld [vmem:[%s11189_s7 + $0xb24] ss:$16 sps:$4 sm:$0xff]  }
  0xe6   : > { %6663 = vmatpush1.bf16.msra.mxu0 %v9392_v63  ;;  %v9474_v63 = vld [vmem:[%s11189_s7 + $0x920] ss:$16 sps:$4 sm:$0xff]  }
  0xe7   : > { %6704 = vmatpush1.bf16.msra.mxu1 %v9395_v0  ;;  %6664 = vmatprep.subr.bf16.mxu0 %v9400_v1  ;;  %v9477_v0 = vld [vmem:[%s11189_s7 + $0xb20] ss:$16 sps:$4 sm:$0xff]   ;;  %v9482_v1 = vld [vmem:[%s11189_s7 + $0x944] ss:$16 sps:$4 sm:$0xff]  }
  0xe8   : > { %6705 = vmatprep.subr.bf16.mxu1 %v9403_v2  ;;  %v9485_v2 = vld [vmem:[%s11189_s7 + $0xb44] ss:$16 sps:$4 sm:$0xff]  }
  0xea   : > { %6665 = vmatpush1.bf16.msra.mxu0 %v9398_v3  ;;  %v9480_v3 = vld [vmem:[%s11189_s7 + $0x940] ss:$16 sps:$4 sm:$0xff]  }
  0xeb   : > { %6706 = vmatpush1.bf16.msra.mxu1 %v9401_v4  ;;  %6666 = vmatprep.subr.bf16.mxu0 %v9406_v5  ;;  %v9483_v4 = vld [vmem:[%s11189_s7 + $0xb40] ss:$16 sps:$4 sm:$0xff]   ;;  %v9488_v5 = vld [vmem:[%s11189_s7 + $0x964] ss:$16 sps:$4 sm:$0xff]  }
  0xec   : > { %6707 = vmatprep.subr.bf16.mxu1 %v9409_v6  ;;  %v9491_v6 = vld [vmem:[%s11189_s7 + $0xb64] ss:$16 sps:$4 sm:$0xff]  }
  0xee   : > { %6667 = vmatpush1.bf16.msra.mxu0 %v9404_v9  ;;  %v9486_v9 = vld [vmem:[%s11189_s7 + $0x960] ss:$16 sps:$4 sm:$0xff]  }
  0xef   : > { %6708 = vmatpush1.bf16.msra.mxu1 %v9407_v10  ;;  %6668 = vmatprep.subr.bf16.mxu0 %v9412_v11  ;;  %v9489_v10 = vld [vmem:[%s11189_s7 + $0xb60] ss:$16 sps:$4 sm:$0xff]   ;;  %v9494_v11 = vld [vmem:[%s11189_s7 + $0x984] ss:$16 sps:$4 sm:$0xff]  }
  0xf0   : > { %6709 = vmatprep.subr.bf16.mxu1 %v9415_v12  ;;  %v9497_v12 = vld [vmem:[%s11189_s7 + $0xb84] ss:$16 sps:$4 sm:$0xff]  }
  0xf2   : > { %6669 = vmatpush1.bf16.msra.mxu0 %v9410_v13  ;;  %v9492_v13 = vld [vmem:[%s11189_s7 + $0x980] ss:$16 sps:$4 sm:$0xff]  }
  0xf3   : > { %6710 = vmatpush1.bf16.msra.mxu1 %v9413_v14  ;;  %6720 = vmatprep.subr.bf16.mxu0 %v9422_v15  ;;  %v9495_v14 = vld [vmem:[%s11189_s7 + $0xb80] ss:$16 sps:$4 sm:$0xff]   ;;  %v9500_v15 = vld [vmem:[%s11189_s7 + $0x9a4] ss:$16 sps:$4 sm:$0xff]  }
  0xf4   : > { %6761 = vmatprep.subr.bf16.mxu1 %v9425_v16  ;;  %v9503_v16 = vld [vmem:[%s11189_s7 + $0xba4] ss:$16 sps:$4 sm:$0xff]  }
  0xf5   : > { %6671 = vmatmul.mubr.bf16.vlgmr.msra.gmra.mrb[4].mxu0 %v11378_v17 }
  0xf6   : > { %6712 = vmatmul.mubr.bf16.vlgmr.msra.gmra.mrb[4].mxu1 %v11382_v18  ;;  %6721 = vmatpush1.bf16.msra.mxu0 %v9420_v19  ;;  %v9498_v19 = vld [vmem:[%s11189_s7 + $0x9a0] ss:$16 sps:$4 sm:$0xff]  }
  0xf7   : > { %6762 = vmatpush1.bf16.msra.mxu1 %v9423_v20  ;;  %6722 = vmatprep.subr.bf16.mxu0 %v9428_v21  ;;  %v9501_v20 = vld [vmem:[%s11189_s7 + $0xba0] ss:$16 sps:$4 sm:$0xff]   ;;  %v9506_v21 = vld [vmem:[%s11189_s7 + $0x9c4] ss:$16 sps:$4 sm:$0xff]  }
  0xf8   : > { %6763 = vmatprep.subr.bf16.mxu1 %v9431_v22  ;;  %6752 = vmatprep.mubr.bf16.mxu0 %v11396_v25  ;;  %v9509_v22 = vld [vmem:[%s11189_s7 + $0xbc4] ss:$16 sps:$4 sm:$0xff]  }
  0xf9   : > { %6793 = vmatprep.mubr.bf16.mxu1 %v11400_v26 }
  0xfa   : > { %6723 = vmatpush1.bf16.msra.mxu0 %v9426_v27  ;;  %v9504_v27 = vld [vmem:[%s11189_s7 + $0x9c0] ss:$16 sps:$4 sm:$0xff]  }
  0xfb   : > { %6764 = vmatpush1.bf16.msra.mxu1 %v9429_v28  ;;  %6724 = vmatprep.subr.bf16.mxu0 %v9434_v29  ;;  %v9507_v28 = vld [vmem:[%s11189_s7 + $0xbc0] ss:$16 sps:$4 sm:$0xff]   ;;  %v9512_v29 = vld [vmem:[%s11189_s7 + $0x9e4] ss:$16 sps:$4 sm:$0xff]  }
  0xfc   : > { %6765 = vmatprep.subr.bf16.mxu1 %v9437_v30  ;;  %v9515_v30 = vld [vmem:[%s11189_s7 + $0xbe4] ss:$16 sps:$4 sm:$0xff]  }
  0xfe   : > { %6725 = vmatpush1.bf16.msra.mxu0 %v9432_v31  ;;  %v9510_v31 = vld [vmem:[%s11189_s7 + $0x9e0] ss:$16 sps:$4 sm:$0xff]  }
  0xff   : > { %6766 = vmatpush1.bf16.msra.mxu1 %v9435_v32  ;;  %6726 = vmatprep.subr.bf16.mxu0 %v9440_v33  ;;  %v9513_v32 = vld [vmem:[%s11189_s7 + $0xbe0] ss:$16 sps:$4 sm:$0xff]   ;;  %v9522_v33 = vld [vmem:[%s11189_s7 + $0xc04] ss:$16 sps:$4 sm:$0xff]  }
 0x100   : > { %6767 = vmatprep.subr.bf16.mxu1 %v9443_v34  ;;  %v9525_v34 = vld [vmem:[%s11189_s7 + $0xe04] ss:$16 sps:$4 sm:$0xff]  }
 0x102   : > { %6727 = vmatpush1.bf16.msra.mxu0 %v9438_v35  ;;  %v9520_v35 = vld [vmem:[%s11189_s7 + $0xc00] ss:$16 sps:$4 sm:$0xff]  }
 0x103   : > { %6768 = vmatpush1.bf16.msra.mxu1 %v9441_v36  ;;  %6728 = vmatprep.subr.bf16.mxu0 %v9446_v39  ;;  %v9523_v36 = vld [vmem:[%s11189_s7 + $0xe00] ss:$16 sps:$4 sm:$0xff]   ;;  %v11470_v39 = vcombine.low %v11389_v23, %v11389_v23 }
 0x104   : > { %6769 = vmatprep.subr.bf16.mxu1 %v9449_v40  ;;  %v11474_v40 = vcombine.low %v11392_v24, %v11392_v24 }
 0x106   : > { %6729 = vmatpush1.bf16.msra.mxu0 %v9444_v41  ;;  %v11477_v41 = vld [vmem:[%s11208_s26 + $0x30] sm:$0xff] }
 0x107   : > { %6770 = vmatpush1.bf16.msra.mxu1 %v9447_v42  ;;  %6730 = vmatprep.subr.bf16.mxu0 %v9452_v43  ;;  %v11480_v42 = vld [vmem:[%s11208_s26 + $0x38] sm:$0xff]  ;;  %v9528_v43 = vld [vmem:[%s11189_s7 + $0xc24] ss:$16 sps:$4 sm:$0xff]   ;;  %v11486_v23 = vcombine.high %v11477_v41, %v11477_v41 }
 0x108   : > { %6771 = vmatprep.subr.bf16.mxu1 %v9455_v44  ;;  %v9531_v44 = vld [vmem:[%s11189_s7 + $0xe24] ss:$16 sps:$4 sm:$0xff]   ;;  %v11490_v24 = vcombine.high %v11480_v42, %v11480_v42 }
 0x10a   : > { %6731 = vmatpush1.bf16.msra.mxu0 %v9450_v45  ;;  %v9526_v45 = vld [vmem:[%s11189_s7 + $0xc20] ss:$16 sps:$4 sm:$0xff]  }
 0x10b   : > { %6772 = vmatpush1.bf16.msra.mxu1 %v9453_v46  ;;  %6732 = vmatprep.subr.bf16.mxu0 %v9458_v47  ;;  %v9529_v46 = vld [vmem:[%s11189_s7 + $0xe20] ss:$16 sps:$4 sm:$0xff]   ;;  %v9534_v47 = vld [vmem:[%s11189_s7 + $0xc44] ss:$16 sps:$4 sm:$0xff]  }
 0x10c   : > { %6773 = vmatprep.subr.bf16.mxu1 %v9461_v49  ;;  %v9537_v49 = vld [vmem:[%s11189_s7 + $0xe44] ss:$16 sps:$4 sm:$0xff]  }
 0x10e   : > { %6733 = vmatpush1.bf16.msra.mxu0 %v9456_v50  ;;  %v9532_v50 = vld [vmem:[%s11189_s7 + $0xc40] ss:$16 sps:$4 sm:$0xff]  }
 0x10f   : > { %6774 = vmatpush1.bf16.msra.mxu1 %v9459_v51  ;;  %6734 = vmatprep.subr.bf16.mxu0 %v9464_v53  ;;  %v9535_v51 = vld [vmem:[%s11189_s7 + $0xe40] ss:$16 sps:$4 sm:$0xff]   ;;  %v9540_v53 = vld [vmem:[%s11189_s7 + $0xc64] ss:$16 sps:$4 sm:$0xff]  }
 0x110   : > { %6775 = vmatprep.subr.bf16.mxu1 %v9467_v54  ;;  %v9543_v54 = vld [vmem:[%s11189_s7 + $0xe64] ss:$16 sps:$4 sm:$0xff]  }
 0x112   : > { %6735 = vmatpush1.bf16.msra.mxu0 %v9462_v55  ;;  %v9538_v55 = vld [vmem:[%s11189_s7 + $0xc60] ss:$16 sps:$4 sm:$0xff]  }
 0x113   : > { %6776 = vmatpush1.bf16.msra.mxu1 %v9465_v56  ;;  %6736 = vmatprep.subr.bf16.mxu0 %v9470_v57  ;;  %v9541_v56 = vld [vmem:[%s11189_s7 + $0xe60] ss:$16 sps:$4 sm:$0xff]   ;;  %v9546_v57 = vld [vmem:[%s11189_s7 + $0xc84] ss:$16 sps:$4 sm:$0xff]  }
 0x114   : > { %6777 = vmatprep.subr.bf16.mxu1 %v9473_v58  ;;  %v9549_v58 = vld [vmem:[%s11189_s7 + $0xe84] ss:$16 sps:$4 sm:$0xff]  }
 0x116   : > { %6737 = vmatpush1.bf16.msra.mxu0 %v9468_v59  ;;  %v9544_v59 = vld [vmem:[%s11189_s7 + $0xc80] ss:$16 sps:$4 sm:$0xff]  }
 0x117   : > { %6778 = vmatpush1.bf16.msra.mxu1 %v9471_v60  ;;  %6738 = vmatprep.subr.bf16.mxu0 %v9476_v61  ;;  %v9547_v60 = vld [vmem:[%s11189_s7 + $0xe80] ss:$16 sps:$4 sm:$0xff]   ;;  %v9552_v61 = vld [vmem:[%s11189_s7 + $0xca4] ss:$16 sps:$4 sm:$0xff]  }
 0x118   : > { %6779 = vmatprep.subr.bf16.mxu1 %v9479_v62  ;;  %v9555_v62 = vld [vmem:[%s11189_s7 + $0xea4] ss:$16 sps:$4 sm:$0xff]  }
 0x11a   : > { %6739 = vmatpush1.bf16.msra.mxu0 %v9474_v63  ;;  %v9550_v63 = vld [vmem:[%s11189_s7 + $0xca0] ss:$16 sps:$4 sm:$0xff]  }
 0x11b   : > { %6780 = vmatpush1.bf16.msra.mxu1 %v9477_v0  ;;  %6740 = vmatprep.subr.bf16.mxu0 %v9482_v1  ;;  %v9553_v0 = vld [vmem:[%s11189_s7 + $0xea0] ss:$16 sps:$4 sm:$0xff]   ;;  %v9558_v1 = vld [vmem:[%s11189_s7 + $0xcc4] ss:$16 sps:$4 sm:$0xff]  }
 0x11c   : > { %6781 = vmatprep.subr.bf16.mxu1 %v9485_v2  ;;  %v9561_v2 = vld [vmem:[%s11189_s7 + $0xec4] ss:$16 sps:$4 sm:$0xff]  }
 0x11e   : > { %6741 = vmatpush1.bf16.msra.mxu0 %v9480_v3  ;;  %v9556_v3 = vld [vmem:[%s11189_s7 + $0xcc0] ss:$16 sps:$4 sm:$0xff]  }
 0x11f   : > { %6782 = vmatpush1.bf16.msra.mxu1 %v9483_v4  ;;  %6742 = vmatprep.subr.bf16.mxu0 %v9488_v5  ;;  %v9559_v4 = vld [vmem:[%s11189_s7 + $0xec0] ss:$16 sps:$4 sm:$0xff]   ;;  %v9564_v5 = vld [vmem:[%s11189_s7 + $0xce4] ss:$16 sps:$4 sm:$0xff]  }
 0x120   : > { %6783 = vmatprep.subr.bf16.mxu1 %v9491_v6  ;;  %v9567_v6 = vld [vmem:[%s11189_s7 + $0xee4] ss:$16 sps:$4 sm:$0xff]  }
 0x122   : > { %6743 = vmatpush1.bf16.msra.mxu0 %v9486_v9  ;;  %v9562_v9 = vld [vmem:[%s11189_s7 + $0xce0] ss:$16 sps:$4 sm:$0xff]  }
 0x123   : > { %6784 = vmatpush1.bf16.msra.mxu1 %v9489_v10  ;;  %6744 = vmatprep.subr.bf16.mxu0 %v9494_v11  ;;  %v9565_v10 = vld [vmem:[%s11189_s7 + $0xee0] ss:$16 sps:$4 sm:$0xff]   ;;  %v9570_v11 = vld [vmem:[%s11189_s7 + $0xd04] ss:$16 sps:$4 sm:$0xff]  }
 0x124   : > { %6785 = vmatprep.subr.bf16.mxu1 %v9497_v12  ;;  %v9573_v12 = vld [vmem:[%s11189_s7 + $0xf04] ss:$16 sps:$4 sm:$0xff]  }
 0x126   : > { %6745 = vmatpush1.bf16.msra.mxu0 %v9492_v13  ;;  %v9568_v13 = vld [vmem:[%s11189_s7 + $0xd00] ss:$16 sps:$4 sm:$0xff]  }
 0x127   : > { %6786 = vmatpush1.bf16.msra.mxu1 %v9495_v14  ;;  %6746 = vmatprep.subr.bf16.mxu0 %v9500_v15  ;;  %v9571_v14 = vld [vmem:[%s11189_s7 + $0xf00] ss:$16 sps:$4 sm:$0xff]   ;;  %v9576_v15 = vld [vmem:[%s11189_s7 + $0xd24] ss:$16 sps:$4 sm:$0xff]  }
 0x128   : > { %6787 = vmatprep.subr.bf16.mxu1 %v9503_v16  ;;  %v9579_v16 = vld [vmem:[%s11189_s7 + $0xf24] ss:$16 sps:$4 sm:$0xff]  }
 0x12a   : > { %6747 = vmatpush1.bf16.msra.mxu0 %v9498_v19  ;;  %v9574_v19 = vld [vmem:[%s11189_s7 + $0xd20] ss:$16 sps:$4 sm:$0xff]  }
 0x12b   : > { %6788 = vmatpush1.bf16.msra.mxu1 %v9501_v20  ;;  %6748 = vmatprep.subr.bf16.mxu0 %v9506_v21  ;;  %v9577_v20 = vld [vmem:[%s11189_s7 + $0xf20] ss:$16 sps:$4 sm:$0xff]   ;;  %v9582_v21 = vld [vmem:[%s11189_s7 + $0xd44] ss:$16 sps:$4 sm:$0xff]  }
 0x12c   : > { %6789 = vmatprep.subr.bf16.mxu1 %v9509_v22  ;;  %v9585_v22 = vld [vmem:[%s11189_s7 + $0xf44] ss:$16 sps:$4 sm:$0xff]  }
 0x12e   : > { %6749 = vmatpush1.bf16.msra.mxu0 %v9504_v27  ;;  %v9580_v27 = vld [vmem:[%s11189_s7 + $0xd40] ss:$16 sps:$4 sm:$0xff]  }
 0x12f   : > { %6790 = vmatpush1.bf16.msra.mxu1 %v9507_v28  ;;  %6750 = vmatprep.subr.bf16.mxu0 %v9512_v29  ;;  %v9583_v28 = vld [vmem:[%s11189_s7 + $0xf40] ss:$16 sps:$4 sm:$0xff]   ;;  %v9588_v29 = vld [vmem:[%s11189_s7 + $0xd64] ss:$16 sps:$4 sm:$0xff]  }
 0x130   : > { %6791 = vmatprep.subr.bf16.mxu1 %v9515_v30  ;;  %v9591_v30 = vld [vmem:[%s11189_s7 + $0xf64] ss:$16 sps:$4 sm:$0xff]  }
 0x132   : > { %6751 = vmatpush1.bf16.msra.mxu0 %v9510_v31  ;;  %v9586_v31 = vld [vmem:[%s11189_s7 + $0xd60] ss:$16 sps:$4 sm:$0xff]  }
 0x133   : > { %6792 = vmatpush1.bf16.msra.mxu1 %v9513_v32  ;;  %6802 = vmatprep.subr.bf16.mxu0 %v9522_v33  ;;  %v9589_v32 = vld [vmem:[%s11189_s7 + $0xf60] ss:$16 sps:$4 sm:$0xff]   ;;  %v9594_v33 = vld [vmem:[%s11189_s7 + $0xd84] ss:$16 sps:$4 sm:$0xff]  }
 0x134   : > { %6843 = vmatprep.subr.bf16.mxu1 %v9525_v34  ;;  %v9597_v34 = vld [vmem:[%s11189_s7 + $0xf84] ss:$16 sps:$4 sm:$0xff]  }
 0x135   : > { %6753 = vmatmul.mubr.bf16.vlgmr.msra.gmra.mrb[8].mxu0 %v11470_v39 }
 0x136   : > { %6794 = vmatmul.mubr.bf16.vlgmr.msra.gmra.mrb[8].mxu1 %v11474_v40  ;;  %6803 = vmatpush1.bf16.msra.mxu0 %v9520_v35  ;;  %v9592_v35 = vld [vmem:[%s11189_s7 + $0xd80] ss:$16 sps:$4 sm:$0xff]  }
 0x137   : > { %6844 = vmatpush1.bf16.msra.mxu1 %v9523_v36  ;;  %6804 = vmatprep.subr.bf16.mxu0 %v9528_v43  ;;  %v9595_v36 = vld [vmem:[%s11189_s7 + $0xf80] ss:$16 sps:$4 sm:$0xff]   ;;  %v9600_v43 = vld [vmem:[%s11189_s7 + $0xda4] ss:$16 sps:$4 sm:$0xff]  }
 0x138   : > { %6845 = vmatprep.subr.bf16.mxu1 %v9531_v44  ;;  %6834 = vmatprep.mubr.bf16.mxu0 %v11486_v23  ;;  %v9603_v44 = vld [vmem:[%s11189_s7 + $0xfa4] ss:$16 sps:$4 sm:$0xff]  }
 0x139   : > { %6875 = vmatprep.mubr.bf16.mxu1 %v11490_v24 }
 0x13a   : > { %6805 = vmatpush1.bf16.msra.mxu0 %v9526_v45  ;;  %v9598_v45 = vld [vmem:[%s11189_s7 + $0xda0] ss:$16 sps:$4 sm:$0xff]  }
 0x13b   : > { %6846 = vmatpush1.bf16.msra.mxu1 %v9529_v46  ;;  %6806 = vmatprep.subr.bf16.mxu0 %v9534_v47  ;;  %v9601_v46 = vld [vmem:[%s11189_s7 + $0xfa0] ss:$16 sps:$4 sm:$0xff]   ;;  %v9606_v47 = vld [vmem:[%s11189_s7 + $0xdc4] ss:$16 sps:$4 sm:$0xff]  }
 0x13c   : > { %6847 = vmatprep.subr.bf16.mxu1 %v9537_v49  ;;  %v9609_v49 = vld [vmem:[%s11189_s7 + $0xfc4] ss:$16 sps:$4 sm:$0xff]  }
 0x13e   : > { %6807 = vmatpush1.bf16.msra.mxu0 %v9532_v50  ;;  %v9604_v50 = vld [vmem:[%s11189_s7 + $0xdc0] ss:$16 sps:$4 sm:$0xff]  }
 0x13f   : > { %6848 = vmatpush1.bf16.msra.mxu1 %v9535_v51  ;;  %6808 = vmatprep.subr.bf16.mxu0 %v9540_v53  ;;  %v9607_v51 = vld [vmem:[%s11189_s7 + $0xfc0] ss:$16 sps:$4 sm:$0xff]   ;;  %v9612_v53 = vld [vmem:[%s11189_s7 + $0xde4] ss:$16 sps:$4 sm:$0xff]  }
 0x140   : > { %6849 = vmatprep.subr.bf16.mxu1 %v9543_v54  ;;  %v9615_v54 = vld [vmem:[%s11189_s7 + $0xfe4] ss:$16 sps:$4 sm:$0xff]  }
 0x142   : > { %6809 = vmatpush1.bf16.msra.mxu0 %v9538_v55  ;;  %v9610_v55 = vld [vmem:[%s11189_s7 + $0xde0] ss:$16 sps:$4 sm:$0xff]  }
 0x143   : > { %6850 = vmatpush1.bf16.msra.mxu1 %v9541_v56  ;;  %6810 = vmatprep.subr.bf16.mxu0 %v9546_v57  ;;  %v9613_v56 = vld [vmem:[%s11189_s7 + $0xfe0] ss:$16 sps:$4 sm:$0xff]   ;;  %v9622_v57 = vld [vmem:[%s11189_s7 + $0x1004] ss:$16 sps:$4 sm:$0xff]  }
 0x144   : > { %6851 = vmatprep.subr.bf16.mxu1 %v9549_v58  ;;  %v9625_v58 = vld [vmem:[%s11189_s7 + $0x1204] ss:$16 sps:$4 sm:$0xff]  }
 0x146   : > { %6811 = vmatpush1.bf16.msra.mxu0 %v9544_v59  ;;  %v11557_v59 = vld [vmem:[%s11208_s26 + $0x40] sm:$0xff] }
 0x147   : > { %6852 = vmatpush1.bf16.msra.mxu1 %v9547_v60  ;;  %6812 = vmatprep.subr.bf16.mxu0 %v9552_v61  ;;  %v11561_v60 = vcombine.low %v11477_v41, %v11477_v41  ;;  %v11565_v61 = vcombine.low %v11480_v42, %v11480_v42  ;;  %v11576_v41 = vcombine.high %v11557_v59, %v11557_v59 }
 0x148   : > { %6853 = vmatprep.subr.bf16.mxu1 %v9555_v62  ;;  %v11568_v62 = vld [vmem:[%s11208_s26 + $0x48] sm:$0xff] }
 0x149   : > { %v11580_v42 = vcombine.high %v11568_v62, %v11568_v62 }
 0x14a   : > { %6813 = vmatpush1.bf16.msra.mxu0 %v9550_v63  ;;  %v9620_v63 = vld [vmem:[%s11189_s7 + $0x1000] ss:$16 sps:$4 sm:$0xff]  }
 0x14b   : > { %6854 = vmatpush1.bf16.msra.mxu1 %v9553_v0  ;;  %6814 = vmatprep.subr.bf16.mxu0 %v9558_v1  ;;  %v9623_v0 = vld [vmem:[%s11189_s7 + $0x1200] ss:$16 sps:$4 sm:$0xff]   ;;  %v9628_v1 = vld [vmem:[%s11189_s7 + $0x1024] ss:$16 sps:$4 sm:$0xff]  }
 0x14c   : > { %6855 = vmatprep.subr.bf16.mxu1 %v9561_v2  ;;  %v9631_v2 = vld [vmem:[%s11189_s7 + $0x1224] ss:$16 sps:$4 sm:$0xff]  }
 0x14e   : > { %6815 = vmatpush1.bf16.msra.mxu0 %v9556_v3  ;;  %v9626_v3 = vld [vmem:[%s11189_s7 + $0x1020] ss:$16 sps:$4 sm:$0xff]  }
 0x14f   : > { %6856 = vmatpush1.bf16.msra.mxu1 %v9559_v4  ;;  %6816 = vmatprep.subr.bf16.mxu0 %v9564_v5  ;;  %v9629_v4 = vld [vmem:[%s11189_s7 + $0x1220] ss:$16 sps:$4 sm:$0xff]   ;;  %v9634_v5 = vld [vmem:[%s11189_s7 + $0x1044] ss:$16 sps:$4 sm:$0xff]  }
 0x150   : > { %6857 = vmatprep.subr.bf16.mxu1 %v9567_v6  ;;  %v9637_v6 = vld [vmem:[%s11189_s7 + $0x1244] ss:$16 sps:$4 sm:$0xff]  }
 0x152   : > { %6817 = vmatpush1.bf16.msra.mxu0 %v9562_v9  ;;  %v9632_v9 = vld [vmem:[%s11189_s7 + $0x1040] ss:$16 sps:$4 sm:$0xff]  }
 0x153   : > { %6858 = vmatpush1.bf16.msra.mxu1 %v9565_v10  ;;  %6818 = vmatprep.subr.bf16.mxu0 %v9570_v11  ;;  %v9635_v10 = vld [vmem:[%s11189_s7 + $0x1240] ss:$16 sps:$4 sm:$0xff]   ;;  %v9640_v11 = vld [vmem:[%s11189_s7 + $0x1064] ss:$16 sps:$4 sm:$0xff]  }
 0x154   : > { %6859 = vmatprep.subr.bf16.mxu1 %v9573_v12  ;;  %v9643_v12 = vld [vmem:[%s11189_s7 + $0x1264] ss:$16 sps:$4 sm:$0xff]  }
 0x156   : > { %6819 = vmatpush1.bf16.msra.mxu0 %v9568_v13  ;;  %v9638_v13 = vld [vmem:[%s11189_s7 + $0x1060] ss:$16 sps:$4 sm:$0xff]  }
 0x157   : > { %6860 = vmatpush1.bf16.msra.mxu1 %v9571_v14  ;;  %6820 = vmatprep.subr.bf16.mxu0 %v9576_v15  ;;  %v9641_v14 = vld [vmem:[%s11189_s7 + $0x1260] ss:$16 sps:$4 sm:$0xff]   ;;  %v9646_v15 = vld [vmem:[%s11189_s7 + $0x1084] ss:$16 sps:$4 sm:$0xff]  }
 0x158   : > { %6861 = vmatprep.subr.bf16.mxu1 %v9579_v16  ;;  %v9649_v16 = vld [vmem:[%s11189_s7 + $0x1284] ss:$16 sps:$4 sm:$0xff]  }
 0x15a   : > { %6821 = vmatpush1.bf16.msra.mxu0 %v9574_v19  ;;  %v9644_v19 = vld [vmem:[%s11189_s7 + $0x1080] ss:$16 sps:$4 sm:$0xff]  }
 0x15b   : > { %6862 = vmatpush1.bf16.msra.mxu1 %v9577_v20  ;;  %6822 = vmatprep.subr.bf16.mxu0 %v9582_v21  ;;  %v9647_v20 = vld [vmem:[%s11189_s7 + $0x1280] ss:$16 sps:$4 sm:$0xff]   ;;  %v9652_v21 = vld [vmem:[%s11189_s7 + $0x10a4] ss:$16 sps:$4 sm:$0xff]  }
 0x15c   : > { %6863 = vmatprep.subr.bf16.mxu1 %v9585_v22  ;;  %v9655_v22 = vld [vmem:[%s11189_s7 + $0x12a4] ss:$16 sps:$4 sm:$0xff]  }
 0x15e   : > { %6823 = vmatpush1.bf16.msra.mxu0 %v9580_v27  ;;  %v9650_v27 = vld [vmem:[%s11189_s7 + $0x10a0] ss:$16 sps:$4 sm:$0xff]  }
 0x15f   : > { %6864 = vmatpush1.bf16.msra.mxu1 %v9583_v28  ;;  %6824 = vmatprep.subr.bf16.mxu0 %v9588_v29  ;;  %v9653_v28 = vld [vmem:[%s11189_s7 + $0x12a0] ss:$16 sps:$4 sm:$0xff]   ;;  %v9658_v29 = vld [vmem:[%s11189_s7 + $0x10c4] ss:$16 sps:$4 sm:$0xff]  }
 0x160   : > { %6865 = vmatprep.subr.bf16.mxu1 %v9591_v30  ;;  %v9661_v30 = vld [vmem:[%s11189_s7 + $0x12c4] ss:$16 sps:$4 sm:$0xff]  }
 0x162   : > { %6825 = vmatpush1.bf16.msra.mxu0 %v9586_v31 }
 0x163   : > { %6866 = vmatpush1.bf16.msra.mxu1 %v9589_v32  ;;  %6826 = vmatprep.subr.bf16.mxu0 %v9594_v33  ;;  %v9656_v33 = vld [vmem:[%s11189_s7 + $0x10c0] ss:$16 sps:$4 sm:$0xff]  }
 0x164   : > { %6867 = vmatprep.subr.bf16.mxu1 %v9597_v34  ;;  %v9659_v34 = vld [vmem:[%s11189_s7 + $0x12c0] ss:$16 sps:$4 sm:$0xff]  }
 0x166   : > { %6827 = vmatpush1.bf16.msra.mxu0 %v9592_v35 }
 0x167   : > { %6868 = vmatpush1.bf16.msra.mxu1 %v9595_v36  ;;  %6828 = vmatprep.subr.bf16.mxu0 %v9600_v43 }
 0x168   : > { %6869 = vmatprep.subr.bf16.mxu1 %v9603_v44 }
 0x16a   : > { %6829 = vmatpush1.bf16.msra.mxu0 %v9598_v45 }
 0x16b   : > { %6870 = vmatpush1.bf16.msra.mxu1 %v9601_v46  ;;  %6830 = vmatprep.subr.bf16.mxu0 %v9606_v47 }
 0x16c   : > { %6871 = vmatprep.subr.bf16.mxu1 %v9609_v49 }
 0x16e   : > { %6831 = vmatpush1.bf16.msra.mxu0 %v9604_v50  ;;  %v9664_v50 = vld [vmem:[%s11189_s7 + $0x10e4] ss:$16 sps:$4 sm:$0xff]  }
 0x16f   : > { %6872 = vmatpush1.bf16.msra.mxu1 %v9607_v51  ;;  %6832 = vmatprep.subr.bf16.mxu0 %v9612_v53  ;;  %v9667_v51 = vld [vmem:[%s11189_s7 + $0x12e4] ss:$16 sps:$4 sm:$0xff]   ;;  %v9662_v53 = vld [vmem:[%s11189_s7 + $0x10e0] ss:$16 sps:$4 sm:$0xff]  }
 0x170   : > { %6873 = vmatprep.subr.bf16.mxu1 %v9615_v54  ;;  %v9665_v54 = vld [vmem:[%s11189_s7 + $0x12e0] ss:$16 sps:$4 sm:$0xff]  }
 0x172   : > { %6833 = vmatpush1.bf16.msra.mxu0 %v9610_v55  ;;  %v9670_v55 = vld [vmem:[%s11189_s7 + $0x1104] ss:$16 sps:$4 sm:$0xff]  }
 0x173   : > { %6874 = vmatpush1.bf16.msra.mxu1 %v9613_v56  ;;  %6884 = vmatprep.subr.bf16.mxu0 %v9622_v57  ;;  %v9673_v56 = vld [vmem:[%s11189_s7 + $0x1304] ss:$16 sps:$4 sm:$0xff]   ;;  %v9668_v57 = vld [vmem:[%s11189_s7 + $0x1100] ss:$16 sps:$4 sm:$0xff]  }
 0x174   : > { %6925 = vmatprep.subr.bf16.mxu1 %v9625_v58  ;;  %v9671_v58 = vld [vmem:[%s11189_s7 + $0x1300] ss:$16 sps:$4 sm:$0xff]  }
 0x175   : > { %6835 = vmatmul.mubr.bf16.vlgmr.msra.gmra.mrb[12].mxu0 %v11561_v60 }
 0x176   : > { %6876 = vmatmul.mubr.bf16.vlgmr.msra.gmra.mrb[12].mxu1 %v11565_v61  ;;  %6885 = vmatpush1.bf16.msra.mxu0 %v9620_v63  ;;  %v9676_v63 = vld [vmem:[%s11189_s7 + $0x1124] ss:$16 sps:$4 sm:$0xff]  }
 0x177   : > { %6926 = vmatpush1.bf16.msra.mxu1 %v9623_v0  ;;  %6886 = vmatprep.subr.bf16.mxu0 %v9628_v1  ;;  %v9679_v0 = vld [vmem:[%s11189_s7 + $0x1324] ss:$16 sps:$4 sm:$0xff]   ;;  %v9674_v1 = vld [vmem:[%s11189_s7 + $0x1120] ss:$16 sps:$4 sm:$0xff]  }
 0x178   : > { %6927 = vmatprep.subr.bf16.mxu1 %v9631_v2  ;;  %6916 = vmatprep.mubr.bf16.mxu0 %v11576_v41  ;;  %v9677_v2 = vld [vmem:[%s11189_s7 + $0x1320] ss:$16 sps:$4 sm:$0xff]  }
 0x179   : > { %6957 = vmatprep.mubr.bf16.mxu1 %v11580_v42 }
 0x17a   : > { %6887 = vmatpush1.bf16.msra.mxu0 %v9626_v3  ;;  %v9682_v3 = vld [vmem:[%s11189_s7 + $0x1144] ss:$16 sps:$4 sm:$0xff]  }
 0x17b   : > { %6928 = vmatpush1.bf16.msra.mxu1 %v9629_v4  ;;  %6888 = vmatprep.subr.bf16.mxu0 %v9634_v5  ;;  %v9685_v4 = vld [vmem:[%s11189_s7 + $0x1344] ss:$16 sps:$4 sm:$0xff]   ;;  %v9680_v5 = vld [vmem:[%s11189_s7 + $0x1140] ss:$16 sps:$4 sm:$0xff]  }
 0x17c   : > { %6929 = vmatprep.subr.bf16.mxu1 %v9637_v6  ;;  %v9683_v6 = vld [vmem:[%s11189_s7 + $0x1340] ss:$16 sps:$4 sm:$0xff]  }
 0x17e   : > { %6889 = vmatpush1.bf16.msra.mxu0 %v9632_v9  ;;  %v9688_v9 = vld [vmem:[%s11189_s7 + $0x1164] ss:$16 sps:$4 sm:$0xff]  }
 0x17f   : > { %6930 = vmatpush1.bf16.msra.mxu1 %v9635_v10  ;;  %6890 = vmatprep.subr.bf16.mxu0 %v9640_v11  ;;  %v9691_v10 = vld [vmem:[%s11189_s7 + $0x1364] ss:$16 sps:$4 sm:$0xff]   ;;  %v9686_v11 = vld [vmem:[%s11189_s7 + $0x1160] ss:$16 sps:$4 sm:$0xff]  }
 0x180   : > { %6931 = vmatprep.subr.bf16.mxu1 %v9643_v12  ;;  %v9689_v12 = vld [vmem:[%s11189_s7 + $0x1360] ss:$16 sps:$4 sm:$0xff]  }
 0x182   : > { %6891 = vmatpush1.bf16.msra.mxu0 %v9638_v13  ;;  %v9694_v13 = vld [vmem:[%s11189_s7 + $0x1184] ss:$16 sps:$4 sm:$0xff]  }
 0x183   : > { %6932 = vmatpush1.bf16.msra.mxu1 %v9641_v14  ;;  %6892 = vmatprep.subr.bf16.mxu0 %v9646_v15  ;;  %v9697_v14 = vld [vmem:[%s11189_s7 + $0x1384] ss:$16 sps:$4 sm:$0xff]   ;;  %v9692_v15 = vld [vmem:[%s11189_s7 + $0x1180] ss:$16 sps:$4 sm:$0xff]  }
 0x184   : > { %6933 = vmatprep.subr.bf16.mxu1 %v9649_v16  ;;  %v9695_v16 = vld [vmem:[%s11189_s7 + $0x1380] ss:$16 sps:$4 sm:$0xff]  }
 0x186   : > { %6893 = vmatpush1.bf16.msra.mxu0 %v9644_v19  ;;  %v9700_v19 = vld [vmem:[%s11189_s7 + $0x11a4] ss:$16 sps:$4 sm:$0xff]  }
 0x187   : > { %6934 = vmatpush1.bf16.msra.mxu1 %v9647_v20  ;;  %6894 = vmatprep.subr.bf16.mxu0 %v9652_v21  ;;  %v9703_v20 = vld [vmem:[%s11189_s7 + $0x13a4] ss:$16 sps:$4 sm:$0xff]   ;;  %v9698_v21 = vld [vmem:[%s11189_s7 + $0x11a0] ss:$16 sps:$4 sm:$0xff]  }
 0x188   : > { %6935 = vmatprep.subr.bf16.mxu1 %v9655_v22  ;;  %v6590_v31 = vpop.f32.mrb[0].mxu0  ;;  %v9701_v22 = vld [vmem:[%s11189_s7 + $0x13a0] ss:$16 sps:$4 sm:$0xff]  }
 0x189   : > { %v6631_v32 = vpop.f32.mrb[0].mxu1  ;;  %v6592_v36 = vpop.f32.mrb[1].mxu0 }
 0x18a   : > { %v11608_v35 = vadd.f32 %v6631_v32, %v6590_v31  ;;  %v6633_v43 = vpop.f32.mrb[1].mxu1  ;;  %v6594_v45 = vpop.f32.mrb[2].mxu0  ;;  %6895 = vmatpush1.bf16.msra.mxu0 %v9650_v27  ;;  %v9706_v27 = vld [vmem:[%s11189_s7 + $0x11c4] ss:$16 sps:$4 sm:$0xff]  }
 0x18b   : > { %v11610_v44 = vadd.f32 %v6633_v43, %v6592_v36  ;;  %v6635_v46 = vpop.f32.mrb[2].mxu1  ;;  %6936 = vmatpush1.bf16.msra.mxu1 %v9653_v28  ;;  %v6595_v47 = vpop.f32.mrb[3].mxu0  ;;  %6896 = vmatprep.subr.bf16.mxu0 %v9658_v29  ;;  %v9709_v28 = vld [vmem:[%s11189_s7 + $0x13c4] ss:$16 sps:$4 sm:$0xff]   ;;  %v9704_v29 = vld [vmem:[%s11189_s7 + $0x11c0] ss:$16 sps:$4 sm:$0xff]  }
 0x18c   : > { %v6636_v49 = vpop.f32.mrb[3].mxu1  ;;  %6937 = vmatprep.subr.bf16.mxu1 %v9661_v30  ;;  %v9707_v30 = vld [vmem:[%s11189_s7 + $0x13c0] ss:$16 sps:$4 sm:$0xff]   ;;  %v9712_v31 = vld [vmem:[%s11189_s7 + $0x11e4] ss:$16 sps:$4 sm:$0xff]   ;;  %v11654_v47 = vcombine.low %v11557_v59, %v11557_v59 }
 0x18d   : > { %v9715_v32 = vld [vmem:[%s11189_s7 + $0x13e4] ss:$16 sps:$4 sm:$0xff]   ;;  %v9720_v45 = vld [vmem:[%s11189_s7 + $0x1400] ss:$16 sps:$4 sm:$0xff]   ;;  %v11658_v49 = vcombine.low %v11568_v62, %v11568_v62 }
 0x18e   : > { %6897 = vmatpush1.bf16.msra.mxu0 %v9656_v33  ;;  %v9710_v33 = vld [vmem:[%s11189_s7 + $0x11e0] ss:$16 sps:$4 sm:$0xff]   ;;  %v9722_v36 = vld [vmem:[%s11189_s7 + $0x1404] ss:$16 sps:$4 sm:$0xff]  }
 0x18f   : > { %6938 = vmatpush1.bf16.msra.mxu1 %v9659_v34  ;;  %6898 = vmatprep.subr.bf16.mxu0 %v9664_v50  ;;  %v9713_v34 = vld [vmem:[%s11189_s7 + $0x13e0] ss:$16 sps:$4 sm:$0xff]   ;;  %v9725_v43 = vld [vmem:[%s11189_s7 + $0x1604] ss:$16 sps:$4 sm:$0xff]  }
 0x190   : > { %6939 = vmatprep.subr.bf16.mxu1 %v9667_v51  ;;  %v9723_v46 = vld [vmem:[%s11189_s7 + $0x1600] ss:$16 sps:$4 sm:$0xff]   ;;  %v11664_v51 = vld [vmem:[%s11208_s26 + $0x58] sm:$0xff] }
 0x191   : > { %v11661_v50 = vld [vmem:[%s11208_s26 + $0x50] sm:$0xff]  ;;  %v11674_v62 = vcombine.high %v11664_v51, %v11664_v51 }
 0x192   : > { %6899 = vmatpush1.bf16.msra.mxu0 %v9662_v53  ;;  %v9728_v53 = vld [vmem:[%s11189_s7 + $0x1424] ss:$16 sps:$4 sm:$0xff]   ;;  %v11670_v59 = vcombine.high %v11661_v50, %v11661_v50 }
 0x193   : > { %6940 = vmatpush1.bf16.msra.mxu1 %v9665_v54  ;;  %6900 = vmatprep.subr.bf16.mxu0 %v9670_v55  ;;  %v9731_v54 = vld [vmem:[%s11189_s7 + $0x1624] ss:$16 sps:$4 sm:$0xff]   ;;  %v9726_v55 = vld [vmem:[%s11189_s7 + $0x1420] ss:$16 sps:$4 sm:$0xff]  }
 0x194   : > { %6941 = vmatprep.subr.bf16.mxu1 %v9673_v56  ;;  %v9729_v56 = vld [vmem:[%s11189_s7 + $0x1620] ss:$16 sps:$4 sm:$0xff]  }
 0x196   : > { %6901 = vmatpush1.bf16.msra.mxu0 %v9668_v57  ;;  %v9734_v57 = vld [vmem:[%s11189_s7 + $0x1444] ss:$16 sps:$4 sm:$0xff]  }
 0x197   : > { %6942 = vmatpush1.bf16.msra.mxu1 %v9671_v58  ;;  %6902 = vmatprep.subr.bf16.mxu0 %v9676_v63  ;;  %v9737_v58 = vld [vmem:[%s11189_s7 + $0x1644] ss:$16 sps:$4 sm:$0xff]   ;;  %v9732_v63 = vld [vmem:[%s11189_s7 + $0x1440] ss:$16 sps:$4 sm:$0xff]  }
 0x198   : > { %6943 = vmatprep.subr.bf16.mxu1 %v9679_v0  ;;  %v9735_v0 = vld [vmem:[%s11189_s7 + $0x1640] ss:$16 sps:$4 sm:$0xff]  }
 0x19a   : > { %6903 = vmatpush1.bf16.msra.mxu0 %v9674_v1  ;;  %v9740_v1 = vld [vmem:[%s11189_s7 + $0x1464] ss:$16 sps:$4 sm:$0xff]  }
 0x19b   : > { %6944 = vmatpush1.bf16.msra.mxu1 %v9677_v2  ;;  %6904 = vmatprep.subr.bf16.mxu0 %v9682_v3  ;;  %v9743_v2 = vld [vmem:[%s11189_s7 + $0x1664] ss:$16 sps:$4 sm:$0xff]   ;;  %v9738_v3 = vld [vmem:[%s11189_s7 + $0x1460] ss:$16 sps:$4 sm:$0xff]  }
 0x19c   : > { %6945 = vmatprep.subr.bf16.mxu1 %v9685_v4  ;;  %v9741_v4 = vld [vmem:[%s11189_s7 + $0x1660] ss:$16 sps:$4 sm:$0xff]  }
 0x19e   : > { %6905 = vmatpush1.bf16.msra.mxu0 %v9680_v5  ;;  %v9746_v5 = vld [vmem:[%s11189_s7 + $0x1484] ss:$16 sps:$4 sm:$0xff]  }
 0x19f   : > { %6946 = vmatpush1.bf16.msra.mxu1 %v9683_v6  ;;  %6906 = vmatprep.subr.bf16.mxu0 %v9688_v9  ;;  %v9749_v6 = vld [vmem:[%s11189_s7 + $0x1684] ss:$16 sps:$4 sm:$0xff]   ;;  %v9744_v9 = vld [vmem:[%s11189_s7 + $0x1480] ss:$16 sps:$4 sm:$0xff]  }
 0x1a0   : > { %6947 = vmatprep.subr.bf16.mxu1 %v9691_v10  ;;  %v9747_v10 = vld [vmem:[%s11189_s7 + $0x1680] ss:$16 sps:$4 sm:$0xff]  }
 0x1a2   : > { %6907 = vmatpush1.bf16.msra.mxu0 %v9686_v11  ;;  %v9752_v11 = vld [vmem:[%s11189_s7 + $0x14a4] ss:$16 sps:$4 sm:$0xff]  }
 0x1a3   : > { %6948 = vmatpush1.bf16.msra.mxu1 %v9689_v12  ;;  %6908 = vmatprep.subr.bf16.mxu0 %v9694_v13  ;;  %v9755_v12 = vld [vmem:[%s11189_s7 + $0x16a4] ss:$16 sps:$4 sm:$0xff]   ;;  %v9750_v13 = vld [vmem:[%s11189_s7 + $0x14a0] ss:$16 sps:$4 sm:$0xff]  }
 0x1a4   : > { %6949 = vmatprep.subr.bf16.mxu1 %v9697_v14  ;;  %v9753_v14 = vld [vmem:[%s11189_s7 + $0x16a0] ss:$16 sps:$4 sm:$0xff]  }
 0x1a6   : > { %6909 = vmatpush1.bf16.msra.mxu0 %v9692_v15  ;;  %v9758_v15 = vld [vmem:[%s11189_s7 + $0x14c4] ss:$16 sps:$4 sm:$0xff]  }
 0x1a7   : > { %6950 = vmatpush1.bf16.msra.mxu1 %v9695_v16  ;;  %6910 = vmatprep.subr.bf16.mxu0 %v9700_v19  ;;  %v9761_v16 = vld [vmem:[%s11189_s7 + $0x16c4] ss:$16 sps:$4 sm:$0xff]  }
 0x1a8   : > { %6951 = vmatprep.subr.bf16.mxu1 %v9703_v20 }
 0x1aa   : > { %6911 = vmatpush1.bf16.msra.mxu0 %v9698_v21  ;;  %v9756_v21 = vld [vmem:[%s11189_s7 + $0x14c0] ss:$16 sps:$4 sm:$0xff]  }
 0x1ab   : > { %6952 = vmatpush1.bf16.msra.mxu1 %v9701_v22  ;;  %6912 = vmatprep.subr.bf16.mxu0 %v9706_v27  ;;  %v9759_v22 = vld [vmem:[%s11189_s7 + $0x16c0] ss:$16 sps:$4 sm:$0xff]  }
 0x1ac   : > { %6953 = vmatprep.subr.bf16.mxu1 %v9709_v28 }
 0x1ae   : > { %6913 = vmatpush1.bf16.msra.mxu0 %v9704_v29 }
 0x1af   : > { %6954 = vmatpush1.bf16.msra.mxu1 %v9707_v30  ;;  %6914 = vmatprep.subr.bf16.mxu0 %v9712_v31 }
 0x1b0   : > { %6955 = vmatprep.subr.bf16.mxu1 %v9715_v32 }
 0x1b2   : > { %6915 = vmatpush1.bf16.msra.mxu0 %v9710_v33 }
 0x1b3   : > { %6956 = vmatpush1.bf16.msra.mxu1 %v9713_v34  ;;  %6966 = vmatprep.subr.bf16.mxu0 %v9722_v36 }
 0x1b4   : > { %7007 = vmatprep.subr.bf16.mxu1 %v9725_v43  ;;  %v9767_v43 = vld [vmem:[%s11189_s7 + $0x16e4] ss:$16 sps:$4 sm:$0xff]  }
 0x1b5   : > { %6917 = vmatmul.mubr.bf16.vlgmr.msra.gmra.mrb[16].mxu0 %v11654_v47 }
 0x1b6   : > { %6958 = vmatmul.mubr.bf16.vlgmr.msra.gmra.mrb[16].mxu1 %v11658_v49  ;;  %6967 = vmatpush1.bf16.msra.mxu0 %v9720_v45 }
 0x1b7   : > { %7008 = vmatpush1.bf16.msra.mxu1 %v9723_v46  ;;  %6968 = vmatprep.subr.bf16.mxu0 %v9728_v53  ;;  %v9765_v46 = vld [vmem:[%s11189_s7 + $0x16e0] ss:$16 sps:$4 sm:$0xff]   ;;  %v9770_v53 = vld [vmem:[%s11189_s7 + $0x1504] ss:$16 sps:$4 sm:$0xff]  }
 0x1b8   : > { %7009 = vmatprep.subr.bf16.mxu1 %v9731_v54  ;;  %6998 = vmatprep.mubr.bf16.mxu0 %v11670_v59  ;;  %v9773_v54 = vld [vmem:[%s11189_s7 + $0x1704] ss:$16 sps:$4 sm:$0xff]  }
 0x1b9   : > { %7039 = vmatprep.mubr.bf16.mxu1 %v11674_v62 }
 0x1ba   : > { %6969 = vmatpush1.bf16.msra.mxu0 %v9726_v55  ;;  %v9768_v55 = vld [vmem:[%s11189_s7 + $0x1500] ss:$16 sps:$4 sm:$0xff]  }
 0x1bb   : > { %7010 = vmatpush1.bf16.msra.mxu1 %v9729_v56  ;;  %6970 = vmatprep.subr.bf16.mxu0 %v9734_v57  ;;  %v9771_v56 = vld [vmem:[%s11189_s7 + $0x1700] ss:$16 sps:$4 sm:$0xff]   ;;  %v9776_v57 = vld [vmem:[%s11189_s7 + $0x1524] ss:$16 sps:$4 sm:$0xff]  }
 0x1bc   : > { %7011 = vmatprep.subr.bf16.mxu1 %v9737_v58  ;;  %v9779_v58 = vld [vmem:[%s11189_s7 + $0x1724] ss:$16 sps:$4 sm:$0xff]  }
 0x1be   : > { %6971 = vmatpush1.bf16.msra.mxu0 %v9732_v63  ;;  %v9774_v63 = vld [vmem:[%s11189_s7 + $0x1520] ss:$16 sps:$4 sm:$0xff]  }
 0x1bf   : > { %7012 = vmatpush1.bf16.msra.mxu1 %v9735_v0  ;;  %6972 = vmatprep.subr.bf16.mxu0 %v9740_v1  ;;  %v9777_v0 = vld [vmem:[%s11189_s7 + $0x1720] ss:$16 sps:$4 sm:$0xff]   ;;  %v9782_v1 = vld [vmem:[%s11189_s7 + $0x1544] ss:$16 sps:$4 sm:$0xff]  }
 0x1c0   : > { %7013 = vmatprep.subr.bf16.mxu1 %v9743_v2  ;;  %v9785_v2 = vld [vmem:[%s11189_s7 + $0x1744] ss:$16 sps:$4 sm:$0xff]  }
 0x1c2   : > { %6973 = vmatpush1.bf16.msra.mxu0 %v9738_v3  ;;  %v9780_v3 = vld [vmem:[%s11189_s7 + $0x1540] ss:$16 sps:$4 sm:$0xff]  }
 0x1c3   : > { %7014 = vmatpush1.bf16.msra.mxu1 %v9741_v4  ;;  %6974 = vmatprep.subr.bf16.mxu0 %v9746_v5  ;;  %v9783_v4 = vld [vmem:[%s11189_s7 + $0x1740] ss:$16 sps:$4 sm:$0xff]   ;;  %v9788_v5 = vld [vmem:[%s11189_s7 + $0x1564] ss:$16 sps:$4 sm:$0xff]  }
 0x1c4   : > { %7015 = vmatprep.subr.bf16.mxu1 %v9749_v6  ;;  %v9791_v6 = vld [vmem:[%s11189_s7 + $0x1764] ss:$16 sps:$4 sm:$0xff]  }
 0x1c6   : > { %6975 = vmatpush1.bf16.msra.mxu0 %v9744_v9  ;;  %v9786_v9 = vld [vmem:[%s11189_s7 + $0x1560] ss:$16 sps:$4 sm:$0xff]  }
 0x1c7   : > { %7016 = vmatpush1.bf16.msra.mxu1 %v9747_v10  ;;  %6976 = vmatprep.subr.bf16.mxu0 %v9752_v11  ;;  %v9789_v10 = vld [vmem:[%s11189_s7 + $0x1760] ss:$16 sps:$4 sm:$0xff]   ;;  %v9794_v11 = vld [vmem:[%s11189_s7 + $0x1584] ss:$16 sps:$4 sm:$0xff]  }
 0x1c8   : > { %7017 = vmatprep.subr.bf16.mxu1 %v9755_v12  ;;  %v6672_v19 = vpop.f32.mrb[4].mxu0  ;;  %v9797_v12 = vld [vmem:[%s11189_s7 + $0x1784] ss:$16 sps:$4 sm:$0xff]  }
 0x1c9   : > { %v6713_v20 = vpop.f32.mrb[4].mxu1  ;;  %v6673_v27 = vadd.f32 %v6672_v19, %v11608_v35  ;;  %v6674_v28 = vpop.f32.mrb[5].mxu0  ;;  %v9764_v35 = vld [vmem:[%s11189_s7 + $0x14e4] ss:$16 sps:$4 sm:$0xff]   ;;  %v9798_v19 = vld [vmem:[%s11189_s7 + $0x15a0] ss:$16 sps:$4 sm:$0xff]  }
 0x1ca   : > { %v6715_v29 = vpop.f32.mrb[5].mxu1  ;;  %v6675_v30 = vadd.f32 %v6674_v28, %v11610_v44  ;;  %v6676_v31 = vpop.f32.mrb[6].mxu0  ;;  %6977 = vmatpush1.bf16.msra.mxu0 %v9750_v13  ;;  %v9762_v44 = vld [vmem:[%s11189_s7 + $0x14e0] ss:$16 sps:$4 sm:$0xff]  }
 0x1cb   : > { %v6717_v32 = vpop.f32.mrb[6].mxu1  ;;  %7018 = vmatpush1.bf16.msra.mxu1 %v9753_v14  ;;  %v11704_v33 = vadd.f32 %v6713_v20, %v6673_v27  ;;  %v6677_v34 = vpop.f32.mrb[7].mxu0  ;;  %6978 = vmatprep.subr.bf16.mxu0 %v9758_v15  ;;  %v9792_v13 = vld [vmem:[%s11189_s7 + $0x1580] ss:$16 sps:$4 sm:$0xff]   ;;  %v9800_v15 = vld [vmem:[%s11189_s7 + $0x15a4] ss:$16 sps:$4 sm:$0xff]  }
 0x1cc   : > { %v6718_v36 = vpop.f32.mrb[7].mxu1  ;;  %7019 = vmatprep.subr.bf16.mxu1 %v9761_v16  ;;  %v11708_v45 = vadd.f32 %v6715_v29, %v6675_v30  ;;  %v9795_v14 = vld [vmem:[%s11189_s7 + $0x1780] ss:$16 sps:$4 sm:$0xff]   ;;  %v9803_v16 = vld [vmem:[%s11189_s7 + $0x17a4] ss:$16 sps:$4 sm:$0xff]  }
 0x1cd   : > { %v9801_v20 = vld [vmem:[%s11189_s7 + $0x17a0] ss:$16 sps:$4 sm:$0xff]   ;;  %v9812_v29 = vld [vmem:[%s11189_s7 + $0x15e4] ss:$16 sps:$4 sm:$0xff]  }
 0x1ce   : > { %6979 = vmatpush1.bf16.msra.mxu0 %v9756_v21  ;;  %v9806_v21 = vld [vmem:[%s11189_s7 + $0x15c4] ss:$16 sps:$4 sm:$0xff]   ;;  %v9804_v27 = vld [vmem:[%s11189_s7 + $0x15c0] ss:$16 sps:$4 sm:$0xff]  }
 0x1cf   : > { %7020 = vmatpush1.bf16.msra.mxu1 %v9759_v22  ;;  %6980 = vmatprep.subr.bf16.mxu0 %v9764_v35  ;;  %v9809_v22 = vld [vmem:[%s11189_s7 + $0x17c4] ss:$16 sps:$4 sm:$0xff]   ;;  %v9807_v28 = vld [vmem:[%s11189_s7 + $0x17c0] ss:$16 sps:$4 sm:$0xff]  }
 0x1d0   : > { %7021 = vmatprep.subr.bf16.mxu1 %v9767_v43  ;;  %v9815_v30 = vld [vmem:[%s11189_s7 + $0x17e4] ss:$16 sps:$4 sm:$0xff]   ;;  %v9810_v31 = vld [vmem:[%s11189_s7 + $0x15e0] ss:$16 sps:$4 sm:$0xff]  }
 0x1d1   : > { %v9813_v32 = vld [vmem:[%s11189_s7 + $0x17e0] ss:$16 sps:$4 sm:$0xff]   ;;  %v9822_v34 = vld [vmem:[%s11189_s7 + $0x1804] ss:$16 sps:$4 sm:$0xff]  }
 0x1d2   : > { %6981 = vmatpush1.bf16.msra.mxu0 %v9762_v44  ;;  %v9825_v36 = vld [vmem:[%s11189_s7 + $0x1a04] ss:$16 sps:$4 sm:$0xff]   ;;  %v9820_v35 = vld [vmem:[%s11189_s7 + $0x1800] ss:$16 sps:$4 sm:$0xff]   ;;  %v11750_v44 = vcombine.low %v11661_v50, %v11661_v50 }
 0x1d3   : > { %7022 = vmatpush1.bf16.msra.mxu1 %v9765_v46  ;;  %6982 = vmatprep.subr.bf16.mxu0 %v9770_v53  ;;  %v9823_v43 = vld [vmem:[%s11189_s7 + $0x1a00] ss:$16 sps:$4 sm:$0xff]   ;;  %v11754_v46 = vcombine.low %v11664_v51, %v11664_v51 }
 0x1d4   : > { %7023 = vmatprep.subr.bf16.mxu1 %v9773_v54  ;;  %v11757_v53 = vld [vmem:[%s11208_s26 + $0x60] sm:$0xff]  ;;  %v11760_v54 = vld [vmem:[%s11208_s26 + $0x68] sm:$0xff] }
 0x1d5   : > { %v11766_v50 = vcombine.high %v11757_v53, %v11757_v53  ;;  %v11770_v51 = vcombine.high %v11760_v54, %v11760_v54 }
 0x1d6   : > { %6983 = vmatpush1.bf16.msra.mxu0 %v9768_v55  ;;  %v9828_v55 = vld [vmem:[%s11189_s7 + $0x1824] ss:$16 sps:$4 sm:$0xff]  }
 0x1d7   : > { %7024 = vmatpush1.bf16.msra.mxu1 %v9771_v56  ;;  %6984 = vmatprep.subr.bf16.mxu0 %v9776_v57  ;;  %v9831_v56 = vld [vmem:[%s11189_s7 + $0x1a24] ss:$16 sps:$4 sm:$0xff]   ;;  %v9826_v57 = vld [vmem:[%s11189_s7 + $0x1820] ss:$16 sps:$4 sm:$0xff]  }
 0x1d8   : > { %7025 = vmatprep.subr.bf16.mxu1 %v9779_v58  ;;  %v9829_v58 = vld [vmem:[%s11189_s7 + $0x1a20] ss:$16 sps:$4 sm:$0xff]  }
 0x1da   : > { %6985 = vmatpush1.bf16.msra.mxu0 %v9774_v63  ;;  %v9834_v63 = vld [vmem:[%s11189_s7 + $0x1844] ss:$16 sps:$4 sm:$0xff]  }
 0x1db   : > { %7026 = vmatpush1.bf16.msra.mxu1 %v9777_v0  ;;  %6986 = vmatprep.subr.bf16.mxu0 %v9782_v1  ;;  %v9837_v0 = vld [vmem:[%s11189_s7 + $0x1a44] ss:$16 sps:$4 sm:$0xff]   ;;  %v9832_v1 = vld [vmem:[%s11189_s7 + $0x1840] ss:$16 sps:$4 sm:$0xff]  }
 0x1dc   : > { %7027 = vmatprep.subr.bf16.mxu1 %v9785_v2  ;;  %v9835_v2 = vld [vmem:[%s11189_s7 + $0x1a40] ss:$16 sps:$4 sm:$0xff]  }
 0x1de   : > { %6987 = vmatpush1.bf16.msra.mxu0 %v9780_v3  ;;  %v9840_v3 = vld [vmem:[%s11189_s7 + $0x1864] ss:$16 sps:$4 sm:$0xff]  }
 0x1df   : > { %7028 = vmatpush1.bf16.msra.mxu1 %v9783_v4  ;;  %6988 = vmatprep.subr.bf16.mxu0 %v9788_v5  ;;  %v9843_v4 = vld [vmem:[%s11189_s7 + $0x1a64] ss:$16 sps:$4 sm:$0xff]   ;;  %v9838_v5 = vld [vmem:[%s11189_s7 + $0x1860] ss:$16 sps:$4 sm:$0xff]  }
 0x1e0   : > { %7029 = vmatprep.subr.bf16.mxu1 %v9791_v6  ;;  %v9841_v6 = vld [vmem:[%s11189_s7 + $0x1a60] ss:$16 sps:$4 sm:$0xff]  }
 0x1e2   : > { %6989 = vmatpush1.bf16.msra.mxu0 %v9786_v9  ;;  %v9846_v9 = vld [vmem:[%s11189_s7 + $0x1884] ss:$16 sps:$4 sm:$0xff]  }
 0x1e3   : > { %7030 = vmatpush1.bf16.msra.mxu1 %v9789_v10  ;;  %6990 = vmatprep.subr.bf16.mxu0 %v9794_v11  ;;  %v9849_v10 = vld [vmem:[%s11189_s7 + $0x1a84] ss:$16 sps:$4 sm:$0xff]   ;;  %v9844_v11 = vld [vmem:[%s11189_s7 + $0x1880] ss:$16 sps:$4 sm:$0xff]  }
 0x1e4   : > { %7031 = vmatprep.subr.bf16.mxu1 %v9797_v12  ;;  %v9847_v12 = vld [vmem:[%s11189_s7 + $0x1a80] ss:$16 sps:$4 sm:$0xff]  }
 0x1e6   : > { %6991 = vmatpush1.bf16.msra.mxu0 %v9792_v13  ;;  %v9852_v13 = vld [vmem:[%s11189_s7 + $0x18a4] ss:$16 sps:$4 sm:$0xff]  }
 0x1e7   : > { %7032 = vmatpush1.bf16.msra.mxu1 %v9795_v14  ;;  %6992 = vmatprep.subr.bf16.mxu0 %v9800_v15  ;;  %v9855_v14 = vld [vmem:[%s11189_s7 + $0x1aa4] ss:$16 sps:$4 sm:$0xff]   ;;  %v9850_v15 = vld [vmem:[%s11189_s7 + $0x18a0] ss:$16 sps:$4 sm:$0xff]  }
 0x1e8   : > { %7033 = vmatprep.subr.bf16.mxu1 %v9803_v16  ;;  %v9853_v16 = vld [vmem:[%s11189_s7 + $0x1aa0] ss:$16 sps:$4 sm:$0xff]  }
 0x1ea   : > { %6993 = vmatpush1.bf16.msra.mxu0 %v9798_v19  ;;  %v9858_v19 = vld [vmem:[%s11189_s7 + $0x18c4] ss:$16 sps:$4 sm:$0xff]  }
 0x1eb   : > { %7034 = vmatpush1.bf16.msra.mxu1 %v9801_v20  ;;  %6994 = vmatprep.subr.bf16.mxu0 %v9806_v21  ;;  %v9861_v20 = vld [vmem:[%s11189_s7 + $0x1ac4] ss:$16 sps:$4 sm:$0xff]  }
 0x1ec   : > { %7035 = vmatprep.subr.bf16.mxu1 %v9809_v22 }
 0x1ee   : > { %6995 = vmatpush1.bf16.msra.mxu0 %v9804_v27  ;;  %v9856_v27 = vld [vmem:[%s11189_s7 + $0x18c0] ss:$16 sps:$4 sm:$0xff]  }
 0x1ef   : > { %7036 = vmatpush1.bf16.msra.mxu1 %v9807_v28  ;;  %6996 = vmatprep.subr.bf16.mxu0 %v9812_v29  ;;  %v9859_v28 = vld [vmem:[%s11189_s7 + $0x1ac0] ss:$16 sps:$4 sm:$0xff]  }
 0x1f0   : > { %7037 = vmatprep.subr.bf16.mxu1 %v9815_v30 }
 0x1f2   : > { %6997 = vmatpush1.bf16.msra.mxu0 %v9810_v31 }
 0x1f3   : > { %7038 = vmatpush1.bf16.msra.mxu1 %v9813_v32  ;;  %7048 = vmatprep.subr.bf16.mxu0 %v9822_v34 }
 0x1f4   : > { %7089 = vmatprep.subr.bf16.mxu1 %v9825_v36 }
 0x1f5   : > { %6999 = vmatmul.mubr.bf16.vlgmr.msra.gmra.mrb[20].mxu0 %v11750_v44 }
 0x1f6   : > { %7040 = vmatmul.mubr.bf16.vlgmr.msra.gmra.mrb[20].mxu1 %v11754_v46  ;;  %7049 = vmatpush1.bf16.msra.mxu0 %v9820_v35 }
 0x1f7   : > { %7090 = vmatpush1.bf16.msra.mxu1 %v9823_v43  ;;  %7050 = vmatprep.subr.bf16.mxu0 %v9828_v55 }
 0x1f8   : > { %7091 = vmatprep.subr.bf16.mxu1 %v9831_v56  ;;  %7080 = vmatprep.mubr.bf16.mxu0 %v11766_v50  ;;  %v9867_v56 = vld [vmem:[%s11189_s7 + $0x1ae4] ss:$16 sps:$4 sm:$0xff]  }
 0x1f9   : > { %7121 = vmatprep.mubr.bf16.mxu1 %v11770_v51 }
 0x1fa   : > { %7051 = vmatpush1.bf16.msra.mxu0 %v9826_v57 }
 0x1fb   : > { %7092 = vmatpush1.bf16.msra.mxu1 %v9829_v58  ;;  %7052 = vmatprep.subr.bf16.mxu0 %v9834_v63  ;;  %v9865_v58 = vld [vmem:[%s11189_s7 + $0x1ae0] ss:$16 sps:$4 sm:$0xff]   ;;  %v9870_v63 = vld [vmem:[%s11189_s7 + $0x1904] ss:$16 sps:$4 sm:$0xff]  }
 0x1fc   : > { %7093 = vmatprep.subr.bf16.mxu1 %v9837_v0  ;;  %v9873_v0 = vld [vmem:[%s11189_s7 + $0x1b04] ss:$16 sps:$4 sm:$0xff]  }
 0x1fe   : > { %7053 = vmatpush1.bf16.msra.mxu0 %v9832_v1  ;;  %v9868_v1 = vld [vmem:[%s11189_s7 + $0x1900] ss:$16 sps:$4 sm:$0xff]  }
 0x1ff   : > { %7094 = vmatpush1.bf16.msra.mxu1 %v9835_v2  ;;  %7054 = vmatprep.subr.bf16.mxu0 %v9840_v3  ;;  %v9871_v2 = vld [vmem:[%s11189_s7 + $0x1b00] ss:$16 sps:$4 sm:$0xff]   ;;  %v9876_v3 = vld [vmem:[%s11189_s7 + $0x1924] ss:$16 sps:$4 sm:$0xff]  }
 0x200   : > { %7095 = vmatprep.subr.bf16.mxu1 %v9843_v4  ;;  %v9879_v4 = vld [vmem:[%s11189_s7 + $0x1b24] ss:$16 sps:$4 sm:$0xff]  }
 0x202   : > { %7055 = vmatpush1.bf16.msra.mxu0 %v9838_v5  ;;  %v9874_v5 = vld [vmem:[%s11189_s7 + $0x1920] ss:$16 sps:$4 sm:$0xff]  }
 0x203   : > { %7096 = vmatpush1.bf16.msra.mxu1 %v9841_v6  ;;  %7056 = vmatprep.subr.bf16.mxu0 %v9846_v9  ;;  %v9877_v6 = vld [vmem:[%s11189_s7 + $0x1b20] ss:$16 sps:$4 sm:$0xff]   ;;  %v9882_v9 = vld [vmem:[%s11189_s7 + $0x1944] ss:$16 sps:$4 sm:$0xff]  }
 0x204   : > { %7097 = vmatprep.subr.bf16.mxu1 %v9849_v10  ;;  %v9885_v10 = vld [vmem:[%s11189_s7 + $0x1b44] ss:$16 sps:$4 sm:$0xff]  }
 0x206   : > { %7057 = vmatpush1.bf16.msra.mxu0 %v9844_v11  ;;  %v9880_v11 = vld [vmem:[%s11189_s7 + $0x1940] ss:$16 sps:$4 sm:$0xff]  }
 0x207   : > { %7098 = vmatpush1.bf16.msra.mxu1 %v9847_v12  ;;  %7058 = vmatprep.subr.bf16.mxu0 %v9852_v13  ;;  %v9883_v12 = vld [vmem:[%s11189_s7 + $0x1b40] ss:$16 sps:$4 sm:$0xff]   ;;  %v9888_v13 = vld [vmem:[%s11189_s7 + $0x1964] ss:$16 sps:$4 sm:$0xff]  }
 0x208   : > { %7099 = vmatprep.subr.bf16.mxu1 %v9855_v14  ;;  %v6754_v21 = vpop.f32.mrb[8].mxu0  ;;  %v9891_v14 = vld [vmem:[%s11189_s7 + $0x1b64] ss:$16 sps:$4 sm:$0xff]  }
 0x209   : > { %v6795_v22 = vpop.f32.mrb[8].mxu1  ;;  %v6755_v29 = vadd.f32 %v6754_v21, %v11704_v33  ;;  %v6756_v30 = vpop.f32.mrb[9].mxu0  ;;  %v9864_v33 = vld [vmem:[%s11189_s7 + $0x18e4] ss:$16 sps:$4 sm:$0xff]   ;;  %v9892_v21 = vld [vmem:[%s11189_s7 + $0x1980] ss:$16 sps:$4 sm:$0xff]  }
 0x20a   : > { %v6797_v31 = vpop.f32.mrb[9].mxu1  ;;  %v6757_v32 = vadd.f32 %v6756_v30, %v11708_v45  ;;  %v6758_v34 = vpop.f32.mrb[10].mxu0  ;;  %7059 = vmatpush1.bf16.msra.mxu0 %v9850_v15  ;;  %v9862_v45 = vld [vmem:[%s11189_s7 + $0x18e0] ss:$16 sps:$4 sm:$0xff]  }
 0x20b   : > { %v6799_v36 = vpop.f32.mrb[10].mxu1  ;;  %7100 = vmatpush1.bf16.msra.mxu1 %v9853_v16  ;;  %v11800_v35 = vadd.f32 %v6795_v22, %v6755_v29  ;;  %v6759_v43 = vpop.f32.mrb[11].mxu0  ;;  %7060 = vmatprep.subr.bf16.mxu0 %v9858_v19  ;;  %v9886_v15 = vld [vmem:[%s11189_s7 + $0x1960] ss:$16 sps:$4 sm:$0xff]   ;;  %v9894_v19 = vld [vmem:[%s11189_s7 + $0x1984] ss:$16 sps:$4 sm:$0xff]  }
 0x20c   : > { %v6800_v55 = vpop.f32.mrb[11].mxu1  ;;  %7101 = vmatprep.subr.bf16.mxu1 %v9861_v20  ;;  %v11804_v57 = vadd.f32 %v6797_v31, %v6757_v32  ;;  %v9889_v16 = vld [vmem:[%s11189_s7 + $0x1b60] ss:$16 sps:$4 sm:$0xff]   ;;  %v9897_v20 = vld [vmem:[%s11189_s7 + $0x1b84] ss:$16 sps:$4 sm:$0xff]  }
 0x20d   : > { %v9895_v22 = vld [vmem:[%s11189_s7 + $0x1b80] ss:$16 sps:$4 sm:$0xff]   ;;  %v9906_v31 = vld [vmem:[%s11189_s7 + $0x19c4] ss:$16 sps:$4 sm:$0xff]  }
 0x20e   : > { %7061 = vmatpush1.bf16.msra.mxu0 %v9856_v27  ;;  %v9900_v27 = vld [vmem:[%s11189_s7 + $0x19a4] ss:$16 sps:$4 sm:$0xff]   ;;  %v9898_v29 = vld [vmem:[%s11189_s7 + $0x19a0] ss:$16 sps:$4 sm:$0xff]  }
 0x20f   : > { %7102 = vmatpush1.bf16.msra.mxu1 %v9859_v28  ;;  %7062 = vmatprep.subr.bf16.mxu0 %v9864_v33  ;;  %v9903_v28 = vld [vmem:[%s11189_s7 + $0x1ba4] ss:$16 sps:$4 sm:$0xff]   ;;  %v9901_v30 = vld [vmem:[%s11189_s7 + $0x1ba0] ss:$16 sps:$4 sm:$0xff]  }
 0x210   : > { %7103 = vmatprep.subr.bf16.mxu1 %v9867_v56  ;;  %v9909_v32 = vld [vmem:[%s11189_s7 + $0x1bc4] ss:$16 sps:$4 sm:$0xff]   ;;  %v9904_v34 = vld [vmem:[%s11189_s7 + $0x19c0] ss:$16 sps:$4 sm:$0xff]  }
 0x211   : > { %v9907_v36 = vld [vmem:[%s11189_s7 + $0x1bc0] ss:$16 sps:$4 sm:$0xff]   ;;  %v9912_v43 = vld [vmem:[%s11189_s7 + $0x19e4] ss:$16 sps:$4 sm:$0xff]  }
 0x212   : > { %7063 = vmatpush1.bf16.msra.mxu0 %v9862_v45  ;;  %v9915_v55 = vld [vmem:[%s11189_s7 + $0x1be4] ss:$16 sps:$4 sm:$0xff]   ;;  %v9910_v33 = vld [vmem:[%s11189_s7 + $0x19e0] ss:$16 sps:$4 sm:$0xff]  }
 0x213   : > { %7104 = vmatpush1.bf16.msra.mxu1 %v9865_v58  ;;  %7064 = vmatprep.subr.bf16.mxu0 %v9870_v63  ;;  %v9913_v56 = vld [vmem:[%s11189_s7 + $0x1be0] ss:$16 sps:$4 sm:$0xff]   ;;  %v9922_v45 = vld [vmem:[%s11189_s7 + $0x1c04] ss:$16 sps:$4 sm:$0xff]  }
 0x214   : > { %7105 = vmatprep.subr.bf16.mxu1 %v9873_v0  ;;  %v9925_v58 = vld [vmem:[%s11189_s7 + $0x1e04] ss:$16 sps:$4 sm:$0xff]   ;;  %v11846_v0 = vld [vmem:[%s11208_s26 + $0x78] sm:$0xff] }
 0x215   : > { %v11843_v63 = vld [vmem:[%s11208_s26 + $0x70] sm:$0xff] }
 0x216   : > { %7065 = vmatpush1.bf16.msra.mxu0 %v9868_v1  ;;  %v9920_v1 = vld [vmem:[%s11189_s7 + $0x1c00] ss:$16 sps:$4 sm:$0xff]  }
 0x217   : > { %7106 = vmatpush1.bf16.msra.mxu1 %v9871_v2  ;;  %7066 = vmatprep.subr.bf16.mxu0 %v9876_v3  ;;  %v9923_v2 = vld [vmem:[%s11189_s7 + $0x1e00] ss:$16 sps:$4 sm:$0xff]   ;;  %v11852_v3 = vcombine.low %v11757_v53, %v11757_v53  ;;  %v11866_v53 = vcombine.high %v11846_v0, %v11846_v0 }
 0x218   : > { %7107 = vmatprep.subr.bf16.mxu1 %v9879_v4  ;;  %v11856_v4 = vcombine.low %v11760_v54, %v11760_v54  ;;  %v9926_v54 = vld [vmem:[%s11189_s7 + $0x1c20] ss:$16 sps:$4 sm:$0xff]  }
 0x21a   : > { %7067 = vmatpush1.bf16.msra.mxu0 %v9874_v5  ;;  %v9928_v5 = vld [vmem:[%s11189_s7 + $0x1c24] ss:$16 sps:$4 sm:$0xff]  }
 0x21b   : > { %7108 = vmatpush1.bf16.msra.mxu1 %v9877_v6  ;;  %7068 = vmatprep.subr.bf16.mxu0 %v9882_v9  ;;  %v9931_v6 = vld [vmem:[%s11189_s7 + $0x1e24] ss:$16 sps:$4 sm:$0xff]   ;;  %v11862_v9 = vcombine.high %v11843_v63, %v11843_v63 }
 0x21c   : > { %7109 = vmatprep.subr.bf16.mxu1 %v9885_v10  ;;  %v9929_v10 = vld [vmem:[%s11189_s7 + $0x1e20] ss:$16 sps:$4 sm:$0xff]  }
 0x21e   : > { %7069 = vmatpush1.bf16.msra.mxu0 %v9880_v11  ;;  %v9934_v11 = vld [vmem:[%s11189_s7 + $0x1c44] ss:$16 sps:$4 sm:$0xff]  }
 0x21f   : > { %7110 = vmatpush1.bf16.msra.mxu1 %v9883_v12  ;;  %7070 = vmatprep.subr.bf16.mxu0 %v9888_v13  ;;  %v9937_v12 = vld [vmem:[%s11189_s7 + $0x1e44] ss:$16 sps:$4 sm:$0xff]   ;;  %v9932_v13 = vld [vmem:[%s11189_s7 + $0x1c40] ss:$16 sps:$4 sm:$0xff]  }
 0x220   : > { %7111 = vmatprep.subr.bf16.mxu1 %v9891_v14  ;;  %v9935_v14 = vld [vmem:[%s11189_s7 + $0x1e40] ss:$16 sps:$4 sm:$0xff]  }
 0x222   : > { %7071 = vmatpush1.bf16.msra.mxu0 %v9886_v15  ;;  %v9940_v15 = vld [vmem:[%s11189_s7 + $0x1c64] ss:$16 sps:$4 sm:$0xff]  }
 0x223   : > { %7112 = vmatpush1.bf16.msra.mxu1 %v9889_v16  ;;  %7072 = vmatprep.subr.bf16.mxu0 %v9894_v19  ;;  %v9943_v16 = vld [vmem:[%s11189_s7 + $0x1e64] ss:$16 sps:$4 sm:$0xff]   ;;  %v9938_v19 = vld [vmem:[%s11189_s7 + $0x1c60] ss:$16 sps:$4 sm:$0xff]  }
 0x224   : > { %7113 = vmatprep.subr.bf16.mxu1 %v9897_v20  ;;  %v9941_v20 = vld [vmem:[%s11189_s7 + $0x1e60] ss:$16 sps:$4 sm:$0xff]  }
 0x226   : > { %7073 = vmatpush1.bf16.msra.mxu0 %v9892_v21  ;;  %v9946_v21 = vld [vmem:[%s11189_s7 + $0x1c84] ss:$16 sps:$4 sm:$0xff]  }
 0x227   : > { %7114 = vmatpush1.bf16.msra.mxu1 %v9895_v22  ;;  %7074 = vmatprep.subr.bf16.mxu0 %v9900_v27  ;;  %v9949_v22 = vld [vmem:[%s11189_s7 + $0x1e84] ss:$16 sps:$4 sm:$0xff]   ;;  %v9944_v27 = vld [vmem:[%s11189_s7 + $0x1c80] ss:$16 sps:$4 sm:$0xff]  }
 0x228   : > { %7115 = vmatprep.subr.bf16.mxu1 %v9903_v28  ;;  %v9947_v28 = vld [vmem:[%s11189_s7 + $0x1e80] ss:$16 sps:$4 sm:$0xff]  }
 0x22a   : > { %7075 = vmatpush1.bf16.msra.mxu0 %v9898_v29  ;;  %v9952_v29 = vld [vmem:[%s11189_s7 + $0x1ca4] ss:$16 sps:$4 sm:$0xff]  }
 0x22b   : > { %7116 = vmatpush1.bf16.msra.mxu1 %v9901_v30  ;;  %7076 = vmatprep.subr.bf16.mxu0 %v9906_v31  ;;  %v9955_v30 = vld [vmem:[%s11189_s7 + $0x1ea4] ss:$16 sps:$4 sm:$0xff]   ;;  %v9950_v31 = vld [vmem:[%s11189_s7 + $0x1ca0] ss:$16 sps:$4 sm:$0xff]  }
 0x22c   : > { %7117 = vmatprep.subr.bf16.mxu1 %v9909_v32  ;;  %v9953_v32 = vld [vmem:[%s11189_s7 + $0x1ea0] ss:$16 sps:$4 sm:$0xff]  }
 0x22e   : > { %7077 = vmatpush1.bf16.msra.mxu0 %v9904_v34  ;;  %v9958_v34 = vld [vmem:[%s11189_s7 + $0x1cc4] ss:$16 sps:$4 sm:$0xff]  }
 0x22f   : > { %7118 = vmatpush1.bf16.msra.mxu1 %v9907_v36  ;;  %7078 = vmatprep.subr.bf16.mxu0 %v9912_v43  ;;  %v9961_v36 = vld [vmem:[%s11189_s7 + $0x1ec4] ss:$16 sps:$4 sm:$0xff]  }
 0x230   : > { %7119 = vmatprep.subr.bf16.mxu1 %v9915_v55 }
 0x232   : > { %7079 = vmatpush1.bf16.msra.mxu0 %v9910_v33  ;;  %v9956_v33 = vld [vmem:[%s11189_s7 + $0x1cc0] ss:$16 sps:$4 sm:$0xff]  }
 0x233   : > { %7120 = vmatpush1.bf16.msra.mxu1 %v9913_v56  ;;  %7130 = vmatprep.subr.bf16.mxu0 %v9922_v45  ;;  %v9959_v56 = vld [vmem:[%s11189_s7 + $0x1ec0] ss:$16 sps:$4 sm:$0xff]  }
 0x234   : > { %7171 = vmatprep.subr.bf16.mxu1 %v9925_v58 }
 0x235   : > { %7081 = vmatmul.mubr.bf16.vlgmr.msra.gmra.mrb[24].mxu0 %v11852_v3 }
 0x236   : > { %7122 = vmatmul.mubr.bf16.vlgmr.msra.gmra.mrb[24].mxu1 %v11856_v4  ;;  %7131 = vmatpush1.bf16.msra.mxu0 %v9920_v1 }
 0x237   : > { %7172 = vmatpush1.bf16.msra.mxu1 %v9923_v2  ;;  %7132 = vmatprep.subr.bf16.mxu0 %v9928_v5 }
 0x238   : > { %7173 = vmatprep.subr.bf16.mxu1 %v9931_v6  ;;  %7162 = vmatprep.mubr.bf16.mxu0 %v11862_v9 }
 0x239   : > { %7203 = vmatprep.mubr.bf16.mxu1 %v11866_v53 }
 0x23a   : > { %7133 = vmatpush1.bf16.msra.mxu0 %v9926_v54 }
 0x23b   : > { %7174 = vmatpush1.bf16.msra.mxu1 %v9929_v10  ;;  %7134 = vmatprep.subr.bf16.mxu0 %v9934_v11 }
 0x23c   : > { %7175 = vmatprep.subr.bf16.mxu1 %v9937_v12  ;;  %v9967_v12 = vld [vmem:[%s11189_s7 + $0x1ee4] ss:$16 sps:$4 sm:$0xff]  }
 0x23e   : > { %7135 = vmatpush1.bf16.msra.mxu0 %v9932_v13 }
 0x23f   : > { %7176 = vmatpush1.bf16.msra.mxu1 %v9935_v14  ;;  %7136 = vmatprep.subr.bf16.mxu0 %v9940_v15  ;;  %v9965_v14 = vld [vmem:[%s11189_s7 + $0x1ee0] ss:$16 sps:$4 sm:$0xff]   ;;  %v9970_v15 = vld [vmem:[%s11189_s7 + $0x1d04] ss:$16 sps:$4 sm:$0xff]  }
 0x240   : > { %7177 = vmatprep.subr.bf16.mxu1 %v9943_v16  ;;  %v9973_v16 = vld [vmem:[%s11189_s7 + $0x1f04] ss:$16 sps:$4 sm:$0xff]  }
 0x242   : > { %7137 = vmatpush1.bf16.msra.mxu0 %v9938_v19  ;;  %v9968_v19 = vld [vmem:[%s11189_s7 + $0x1d00] ss:$16 sps:$4 sm:$0xff]  }
 0x243   : > { %7178 = vmatpush1.bf16.msra.mxu1 %v9941_v20  ;;  %7138 = vmatprep.subr.bf16.mxu0 %v9946_v21  ;;  %v9971_v20 = vld [vmem:[%s11189_s7 + $0x1f00] ss:$16 sps:$4 sm:$0xff]   ;;  %v9976_v21 = vld [vmem:[%s11189_s7 + $0x1d24] ss:$16 sps:$4 sm:$0xff]  }
 0x244   : > { %7179 = vmatprep.subr.bf16.mxu1 %v9949_v22  ;;  %v9979_v22 = vld [vmem:[%s11189_s7 + $0x1f24] ss:$16 sps:$4 sm:$0xff]  }
 0x246   : > { %7139 = vmatpush1.bf16.msra.mxu0 %v9944_v27  ;;  %v9974_v27 = vld [vmem:[%s11189_s7 + $0x1d20] ss:$16 sps:$4 sm:$0xff]  }
 0x247   : > { %7180 = vmatpush1.bf16.msra.mxu1 %v9947_v28  ;;  %7140 = vmatprep.subr.bf16.mxu0 %v9952_v29  ;;  %v9977_v28 = vld [vmem:[%s11189_s7 + $0x1f20] ss:$16 sps:$4 sm:$0xff]   ;;  %v9982_v29 = vld [vmem:[%s11189_s7 + $0x1d44] ss:$16 sps:$4 sm:$0xff]  }
 0x248   : > { %7181 = vmatprep.subr.bf16.mxu1 %v9955_v30  ;;  %v6836_v43 = vpop.f32.mrb[12].mxu0  ;;  %v9985_v30 = vld [vmem:[%s11189_s7 + $0x1f44] ss:$16 sps:$4 sm:$0xff]  }
 0x249   : > { %v6877_v55 = vpop.f32.mrb[12].mxu1  ;;  %v6837_v45 = vadd.f32 %v6836_v43, %v11800_v35  ;;  %v6838_v58 = vpop.f32.mrb[13].mxu0  ;;  %v9964_v35 = vld [vmem:[%s11189_s7 + $0x1ce4] ss:$16 sps:$4 sm:$0xff]   ;;  %v9986_v43 = vld [vmem:[%s11189_s7 + $0x1d60] ss:$16 sps:$4 sm:$0xff]  }
 0x24a   : > { %v6879_v1 = vpop.f32.mrb[13].mxu1  ;;  %v6839_v2 = vadd.f32 %v6838_v58, %v11804_v57  ;;  %v6840_v5 = vpop.f32.mrb[14].mxu0  ;;  %7141 = vmatpush1.bf16.msra.mxu0 %v9950_v31  ;;  %v9962_v57 = vld [vmem:[%s11189_s7 + $0x1ce0] ss:$16 sps:$4 sm:$0xff]  }
 0x24b   : > { %v6881_v6 = vpop.f32.mrb[14].mxu1  ;;  %7182 = vmatpush1.bf16.msra.mxu1 %v9953_v32  ;;  %v11896_v54 = vadd.f32 %v6877_v55, %v6837_v45  ;;  %v6841_v10 = vpop.f32.mrb[15].mxu0  ;;  %7142 = vmatprep.subr.bf16.mxu0 %v9958_v34  ;;  %v9980_v31 = vld [vmem:[%s11189_s7 + $0x1d40] ss:$16 sps:$4 sm:$0xff]   ;;  %v9988_v34 = vld [vmem:[%s11189_s7 + $0x1d64] ss:$16 sps:$4 sm:$0xff]  }
 0x24c   : > { %v6882_v11 = vpop.f32.mrb[15].mxu1  ;;  %7183 = vmatprep.subr.bf16.mxu1 %v9961_v36  ;;  %v11900_v13 = vadd.f32 %v6879_v1, %v6839_v2  ;;  %v9983_v32 = vld [vmem:[%s11189_s7 + $0x1f40] ss:$16 sps:$4 sm:$0xff]   ;;  %v9991_v36 = vld [vmem:[%s11189_s7 + $0x1f64] ss:$16 sps:$4 sm:$0xff]  }
 0x24d   : > { %v9989_v55 = vld [vmem:[%s11189_s7 + $0x1f60] ss:$16 sps:$4 sm:$0xff]   ;;  %v10000_v1 = vld [vmem:[%s11189_s7 + $0x1da4] ss:$16 sps:$4 sm:$0xff]  }
 0x24e   : > { %7143 = vmatpush1.bf16.msra.mxu0 %v9956_v33  ;;  %v9994_v33 = vld [vmem:[%s11189_s7 + $0x1d84] ss:$16 sps:$4 sm:$0xff]   ;;  %v9992_v45 = vld [vmem:[%s11189_s7 + $0x1d80] ss:$16 sps:$4 sm:$0xff]  }
 0x24f   : > { %7184 = vmatpush1.bf16.msra.mxu1 %v9959_v56  ;;  %7144 = vmatprep.subr.bf16.mxu0 %v9964_v35  ;;  %v9997_v56 = vld [vmem:[%s11189_s7 + $0x1f84] ss:$16 sps:$4 sm:$0xff]   ;;  %v9995_v58 = vld [vmem:[%s11189_s7 + $0x1f80] ss:$16 sps:$4 sm:$0xff]  }
 0x250   : > { %7185 = vmatprep.subr.bf16.mxu1 %v9967_v12  ;;  %v10003_v2 = vld [vmem:[%s11189_s7 + $0x1fa4] ss:$16 sps:$4 sm:$0xff]   ;;  %v9998_v5 = vld [vmem:[%s11189_s7 + $0x1da0] ss:$16 sps:$4 sm:$0xff]  }
 0x251   : > { %v10001_v6 = vld [vmem:[%s11189_s7 + $0x1fa0] ss:$16 sps:$4 sm:$0xff]   ;;  %v10006_v10 = vld [vmem:[%s11189_s7 + $0x1dc4] ss:$16 sps:$4 sm:$0xff]  }
 0x252   : > { %7145 = vmatpush1.bf16.msra.mxu0 %v9962_v57  ;;  %v10009_v11 = vld [vmem:[%s11189_s7 + $0x1fc4] ss:$16 sps:$4 sm:$0xff]   ;;  %v10004_v35 = vld [vmem:[%s11189_s7 + $0x1dc0] ss:$16 sps:$4 sm:$0xff]  }
 0x253   : > { %7186 = vmatpush1.bf16.msra.mxu1 %v9965_v14  ;;  %7146 = vmatprep.subr.bf16.mxu0 %v9970_v15  ;;  %v10007_v12 = vld [vmem:[%s11189_s7 + $0x1fc0] ss:$16 sps:$4 sm:$0xff]   ;;  %v10012_v57 = vld [vmem:[%s11189_s7 + $0x1de4] ss:$16 sps:$4 sm:$0xff]  }
 0x254   : > { %7187 = vmatprep.subr.bf16.mxu1 %v9973_v16  ;;  %v10015_v14 = vld [vmem:[%s11189_s7 + $0x1fe4] ss:$16 sps:$4 sm:$0xff]   ;;  %v10010_v15 = vld [vmem:[%s11189_s7 + $0x1de0] ss:$16 sps:$4 sm:$0xff]  }
 0x255   : > { %v10013_v16 = vld [vmem:[%s11189_s7 + $0x1fe0] ss:$16 sps:$4 sm:$0xff]  }
 0x256   : > { %7147 = vmatpush1.bf16.msra.mxu0 %v9968_v19  ;;  %v10022_v19 = vld [vmem:[%s11189_s7 + $0xc] ss:$16 sps:$4 sm:$0xff]  }
 0x257   : > { %7188 = vmatpush1.bf16.msra.mxu1 %v9971_v20  ;;  %7148 = vmatprep.subr.bf16.mxu0 %v9976_v21  ;;  %v10025_v20 = vld [vmem:[%s11189_s7 + $0x20c] ss:$16 sps:$4 sm:$0xff]   ;;  %v10020_v21 = vld [vmem:[%s11189_s7 + $0x8] ss:$16 sps:$4 sm:$0xff]  }
 0x258   : > { %7189 = vmatprep.subr.bf16.mxu1 %v9979_v22  ;;  %v10023_v22 = vld [vmem:[%s11189_s7 + $0x208] ss:$16 sps:$4 sm:$0xff]  }
 0x25a   : > { %7149 = vmatpush1.bf16.msra.mxu0 %v9974_v27  ;;  %v11942_v27 = vcombine.low %v11843_v63, %v11843_v63  ;;  %v10026_v63 = vld [vmem:[%s11189_s7 + $0x28] ss:$16 sps:$4 sm:$0xff]  }
 0x25b   : > { %7190 = vmatpush1.bf16.msra.mxu1 %v9977_v28  ;;  %7150 = vmatprep.subr.bf16.mxu0 %v9982_v29  ;;  %v11946_v28 = vcombine.low %v11846_v0, %v11846_v0  ;;  %v10028_v29 = vld [vmem:[%s11189_s7 + $0x2c] ss:$16 sps:$4 sm:$0xff]   ;;  %v10029_v0 = vld [vmem:[%s11189_s7 + $0x228] ss:$16 sps:$4 sm:$0xff]  }
 0x25c   : > { %7191 = vmatprep.subr.bf16.mxu1 %v9985_v30  ;;  %v10031_v30 = vld [vmem:[%s11189_s7 + $0x22c] ss:$16 sps:$4 sm:$0xff]  }
 0x25e   : > { %7151 = vmatpush1.bf16.msra.mxu0 %v9980_v31  ;;  %v10034_v31 = vld [vmem:[%s11189_s7 + $0x4c] ss:$16 sps:$4 sm:$0xff]  }
 0x25f   : > { %7192 = vmatpush1.bf16.msra.mxu1 %v9983_v32  ;;  %7152 = vmatprep.subr.bf16.mxu0 %v9988_v34  ;;  %v10037_v32 = vld [vmem:[%s11189_s7 + $0x24c] ss:$16 sps:$4 sm:$0xff]   ;;  %v10032_v34 = vld [vmem:[%s11189_s7 + $0x48] ss:$16 sps:$4 sm:$0xff]  }
 0x260   : > { %7193 = vmatprep.subr.bf16.mxu1 %v9991_v36  ;;  %v10035_v36 = vld [vmem:[%s11189_s7 + $0x248] ss:$16 sps:$4 sm:$0xff]  }
 0x262   : > { %7153 = vmatpush1.bf16.msra.mxu0 %v9986_v43  ;;  %v10040_v43 = vld [vmem:[%s11189_s7 + $0x6c] ss:$16 sps:$4 sm:$0xff]  }
 0x263   : > { %7194 = vmatpush1.bf16.msra.mxu1 %v9989_v55  ;;  %7154 = vmatprep.subr.bf16.mxu0 %v9994_v33  ;;  %v10043_v55 = vld [vmem:[%s11189_s7 + $0x26c] ss:$16 sps:$4 sm:$0xff]   ;;  %v10041_v33 = vld [vmem:[%s11189_s7 + $0x268] ss:$16 sps:$4 sm:$0xff]  }
 0x264   : > { %7195 = vmatprep.subr.bf16.mxu1 %v9997_v56  ;;  %v10049_v56 = vld [vmem:[%s11189_s7 + $0x28c] ss:$16 sps:$4 sm:$0xff]  }
 0x266   : > { %7155 = vmatpush1.bf16.msra.mxu0 %v9992_v45  ;;  %v10044_v45 = vld [vmem:[%s11189_s7 + $0x88] ss:$16 sps:$4 sm:$0xff]  }
 0x267   : > { %7196 = vmatpush1.bf16.msra.mxu1 %v9995_v58  ;;  %7156 = vmatprep.subr.bf16.mxu0 %v10000_v1  ;;  %v10047_v58 = vld [vmem:[%s11189_s7 + $0x288] ss:$16 sps:$4 sm:$0xff]   ;;  %v10052_v1 = vld [vmem:[%s11189_s7 + $0xac] ss:$16 sps:$4 sm:$0xff]  }
 0x268   : > { %7197 = vmatprep.subr.bf16.mxu1 %v10003_v2  ;;  %v10055_v2 = vld [vmem:[%s11189_s7 + $0x2ac] ss:$16 sps:$4 sm:$0xff]  }
 0x26a   : > { %7157 = vmatpush1.bf16.msra.mxu0 %v9998_v5  ;;  %v10050_v5 = vld [vmem:[%s11189_s7 + $0xa8] ss:$16 sps:$4 sm:$0xff]  }
 0x26b   : > { %7198 = vmatpush1.bf16.msra.mxu1 %v10001_v6  ;;  %7158 = vmatprep.subr.bf16.mxu0 %v10006_v10  ;;  %v10053_v6 = vld [vmem:[%s11189_s7 + $0x2a8] ss:$16 sps:$4 sm:$0xff]   ;;  %v10058_v10 = vld [vmem:[%s11189_s7 + $0xcc] ss:$16 sps:$4 sm:$0xff]  }
 0x26c   : > { %7199 = vmatprep.subr.bf16.mxu1 %v10009_v11  ;;  %v10061_v11 = vld [vmem:[%s11189_s7 + $0x2cc] ss:$16 sps:$4 sm:$0xff]  }
 0x26e   : > { %7159 = vmatpush1.bf16.msra.mxu0 %v10004_v35 }
 0x26f   : > { %7200 = vmatpush1.bf16.msra.mxu1 %v10007_v12  ;;  %7160 = vmatprep.subr.bf16.mxu0 %v10012_v57  ;;  %v10056_v57 = vld [vmem:[%s11189_s7 + $0xc8] ss:$16 sps:$4 sm:$0xff]  }
 0x270   : > { %7201 = vmatprep.subr.bf16.mxu1 %v10015_v14  ;;  %v10059_v14 = vld [vmem:[%s11189_s7 + $0x2c8] ss:$16 sps:$4 sm:$0xff]  }
 0x272   : > { %7161 = vmatpush1.bf16.msra.mxu0 %v10010_v15 }
 0x273   : > { %7202 = vmatpush1.bf16.msra.mxu1 %v10013_v16  ;;  %7212 = vmatprep.subr.bf16.mxu0 %v10022_v19 }
 0x274   : > { %7253 = vmatprep.subr.bf16.mxu1 %v10025_v20 }
 0x275   : > { %7163 = vmatmul.mubr.bf16.vlgmr.msra.gmra.mrb[28].mxu0 %v11942_v27 }
 0x276   : > { %7204 = vmatmul.mubr.bf16.vlgmr.msra.gmra.mrb[28].mxu1 %v11946_v28  ;;  %7213 = vmatpush1.bf16.msra.mxu0 %v10020_v21 }
 0x277   : > { %7254 = vmatpush1.bf16.msra.mxu1 %v10023_v22  ;;  %7214 = vmatprep.subr.bf16.mxu0 %v10028_v29 }
 0x278   : > { %7255 = vmatprep.subr.bf16.mxu1 %v10031_v30  ;;  %7244 = vmatprep.mubr.bf16.mxu0 %v11263_v48  ;;  %v10038_v48 = vld [vmem:[%s11189_s7 + $0x68] ss:$16 sps:$4 sm:$0xff]  }
 0x279   : > { %7285 = vmatprep.mubr.bf16.mxu1 %v11268_v52  ;;  %v10046_v52 = vld [vmem:[%s11189_s7 + $0x8c] ss:$16 sps:$4 sm:$0xff]  }
 0x27a   : > { %7215 = vmatpush1.bf16.msra.mxu0 %v10026_v63 }
 0x27b   : > { %7256 = vmatpush1.bf16.msra.mxu1 %v10029_v0  ;;  %7216 = vmatprep.subr.bf16.mxu0 %v10034_v31  ;;  %v10067_v0 = vld [vmem:[%s11189_s7 + $0x2ec] ss:$16 sps:$4 sm:$0xff]  }
 0x27c   : > { %7257 = vmatprep.subr.bf16.mxu1 %v10037_v32  ;;  %v10065_v32 = vld [vmem:[%s11189_s7 + $0x2e8] ss:$16 sps:$4 sm:$0xff]  }
 0x27e   : > { %7217 = vmatpush1.bf16.msra.mxu0 %v10032_v34  ;;  %v10070_v34 = vld [vmem:[%s11189_s7 + $0x10c] ss:$16 sps:$4 sm:$0xff]  }
 0x27f   : > { %7258 = vmatpush1.bf16.msra.mxu1 %v10035_v36  ;;  %7218 = vmatprep.subr.bf16.mxu0 %v10040_v43  ;;  %v10073_v36 = vld [vmem:[%s11189_s7 + $0x30c] ss:$16 sps:$4 sm:$0xff]   ;;  %v10068_v43 = vld [vmem:[%s11189_s7 + $0x108] ss:$16 sps:$4 sm:$0xff]  }
 0x280   : > { %7259 = vmatprep.subr.bf16.mxu1 %v10043_v55  ;;  %v10071_v55 = vld [vmem:[%s11189_s7 + $0x308] ss:$16 sps:$4 sm:$0xff]  }
 0x282   : > { %7219 = vmatpush1.bf16.msra.mxu0 %v10038_v48  ;;  %v10076_v48 = vld [vmem:[%s11189_s7 + $0x12c] ss:$16 sps:$4 sm:$0xff]  }
 0x283   : > { %7260 = vmatpush1.bf16.msra.mxu1 %v10041_v33  ;;  %7220 = vmatprep.subr.bf16.mxu0 %v10046_v52  ;;  %v10079_v33 = vld [vmem:[%s11189_s7 + $0x32c] ss:$16 sps:$4 sm:$0xff]   ;;  %v10074_v52 = vld [vmem:[%s11189_s7 + $0x128] ss:$16 sps:$4 sm:$0xff]  }
 0x284   : > { %7261 = vmatprep.subr.bf16.mxu1 %v10049_v56  ;;  %v10077_v56 = vld [vmem:[%s11189_s7 + $0x328] ss:$16 sps:$4 sm:$0xff]  }
 0x286   : > { %7221 = vmatpush1.bf16.msra.mxu0 %v10044_v45  ;;  %v10082_v45 = vld [vmem:[%s11189_s7 + $0x14c] ss:$16 sps:$4 sm:$0xff]  }
 0x287   : > { %7262 = vmatpush1.bf16.msra.mxu1 %v10047_v58  ;;  %7222 = vmatprep.subr.bf16.mxu0 %v10052_v1  ;;  %v10085_v58 = vld [vmem:[%s11189_s7 + $0x34c] ss:$16 sps:$4 sm:$0xff]   ;;  %v10080_v1 = vld [vmem:[%s11189_s7 + $0x148] ss:$16 sps:$4 sm:$0xff]  }
 0x288   : > { %7263 = vmatprep.subr.bf16.mxu1 %v10055_v2  ;;  %v6918_v35 = vpop.f32.mrb[16].mxu0  ;;  %v10083_v2 = vld [vmem:[%s11189_s7 + $0x348] ss:$16 sps:$4 sm:$0xff]  }
 0x289   : > { %v6959_v12 = vpop.f32.mrb[16].mxu1  ;;  %v6919_v15 = vadd.f32 %v6918_v35, %v11896_v54  ;;  %v6920_v16 = vpop.f32.mrb[17].mxu0  ;;  %v10064_v54 = vld [vmem:[%s11189_s7 + $0xec] ss:$16 sps:$4 sm:$0xff]  }
 0x28a   : > { %v6961_v19 = vpop.f32.mrb[17].mxu1  ;;  %v6921_v20 = vadd.f32 %v6920_v16, %v11900_v13  ;;  %v6922_v21 = vpop.f32.mrb[18].mxu0  ;;  %7223 = vmatpush1.bf16.msra.mxu0 %v10050_v5  ;;  %v10062_v13 = vld [vmem:[%s11189_s7 + $0xe8] ss:$16 sps:$4 sm:$0xff]   ;;  %v10088_v5 = vld [vmem:[%s11189_s7 + $0x16c] ss:$16 sps:$4 sm:$0xff]  }
 0x28b   : > { %v6963_v22 = vpop.f32.mrb[18].mxu1  ;;  %7264 = vmatpush1.bf16.msra.mxu1 %v10053_v6  ;;  %v11978_v29 = vadd.f32 %v6959_v12, %v6919_v15  ;;  %v6923_v30 = vpop.f32.mrb[19].mxu0  ;;  %7224 = vmatprep.subr.bf16.mxu0 %v10058_v10  ;;  %v10091_v6 = vld [vmem:[%s11189_s7 + $0x36c] ss:$16 sps:$4 sm:$0xff]   ;;  %v10086_v10 = vld [vmem:[%s11189_s7 + $0x168] ss:$16 sps:$4 sm:$0xff]  }
 0x28c   : > { %v6964_v63 = vpop.f32.mrb[19].mxu1  ;;  %7265 = vmatprep.subr.bf16.mxu1 %v10061_v11  ;;  %v11982_v31 = vadd.f32 %v6961_v19, %v6921_v20  ;;  %v10089_v11 = vld [vmem:[%s11189_s7 + $0x368] ss:$16 sps:$4 sm:$0xff]   ;;  %v10094_v35 = vld [vmem:[%s11189_s7 + $0x18c] ss:$16 sps:$4 sm:$0xff]  }
 0x28d   : > { %v10097_v12 = vld [vmem:[%s11189_s7 + $0x38c] ss:$16 sps:$4 sm:$0xff]   ;;  %v10098_v19 = vld [vmem:[%s11189_s7 + $0x1a8] ss:$16 sps:$4 sm:$0xff]  }
 0x28e   : > { %7225 = vmatpush1.bf16.msra.mxu0 %v10056_v57  ;;  %v10092_v57 = vld [vmem:[%s11189_s7 + $0x188] ss:$16 sps:$4 sm:$0xff]   ;;  %v10100_v15 = vld [vmem:[%s11189_s7 + $0x1ac] ss:$16 sps:$4 sm:$0xff]  }
 0x28f   : > { %7266 = vmatpush1.bf16.msra.mxu1 %v10059_v14  ;;  %7226 = vmatprep.subr.bf16.mxu0 %v10064_v54  ;;  %v10095_v14 = vld [vmem:[%s11189_s7 + $0x388] ss:$16 sps:$4 sm:$0xff]   ;;  %v10103_v16 = vld [vmem:[%s11189_s7 + $0x3ac] ss:$16 sps:$4 sm:$0xff]  }
 0x290   : > { %7267 = vmatprep.subr.bf16.mxu1 %v10067_v0  ;;  %v10101_v20 = vld [vmem:[%s11189_s7 + $0x3a8] ss:$16 sps:$4 sm:$0xff]   ;;  %v10106_v21 = vld [vmem:[%s11189_s7 + $0x1cc] ss:$16 sps:$4 sm:$0xff]  }
 0x291   : > { %v10109_v22 = vld [vmem:[%s11189_s7 + $0x3cc] ss:$16 sps:$4 sm:$0xff]   ;;  %v10104_v30 = vld [vmem:[%s11189_s7 + $0x1c8] ss:$16 sps:$4 sm:$0xff]  }
 0x292   : > { %7227 = vmatpush1.bf16.msra.mxu0 %v10062_v13  ;;  %v10107_v63 = vld [vmem:[%s11189_s7 + $0x3c8] ss:$16 sps:$4 sm:$0xff]   ;;  %v10112_v54 = vld [vmem:[%s11189_s7 + $0x1ec] ss:$16 sps:$4 sm:$0xff]  }
 0x293   : > { %7268 = vmatpush1.bf16.msra.mxu1 %v10065_v32  ;;  %7228 = vmatprep.subr.bf16.mxu0 %v10070_v34  ;;  %v10115_v0 = vld [vmem:[%s11189_s7 + $0x3ec] ss:$16 sps:$4 sm:$0xff]   ;;  %v10110_v13 = vld [vmem:[%s11189_s7 + $0x1e8] ss:$16 sps:$4 sm:$0xff]  }
 0x294   : > { %7269 = vmatprep.subr.bf16.mxu1 %v10073_v36  ;;  %v10113_v32 = vld [vmem:[%s11189_s7 + $0x3e8] ss:$16 sps:$4 sm:$0xff]   ;;  %v10118_v34 = vld [vmem:[%s11189_s7 + $0x40c] ss:$16 sps:$4 sm:$0xff]  }
 0x295   : > { %v10121_v36 = vld [vmem:[%s11189_s7 + $0x60c] ss:$16 sps:$4 sm:$0xff]  }
 0x296   : > { %7229 = vmatpush1.bf16.msra.mxu0 %v10068_v43  ;;  %v10116_v43 = vld [vmem:[%s11189_s7 + $0x408] ss:$16 sps:$4 sm:$0xff]  }
 0x297   : > { %7270 = vmatpush1.bf16.msra.mxu1 %v10071_v55  ;;  %7230 = vmatprep.subr.bf16.mxu0 %v10076_v48  ;;  %v10119_v55 = vld [vmem:[%s11189_s7 + $0x608] ss:$16 sps:$4 sm:$0xff]   ;;  %v10124_v48 = vld [vmem:[%s11189_s7 + $0x42c] ss:$16 sps:$4 sm:$0xff]  }
 0x298   : > { %7271 = vmatprep.subr.bf16.mxu1 %v10079_v33  ;;  %v10127_v33 = vld [vmem:[%s11189_s7 + $0x62c] ss:$16 sps:$4 sm:$0xff]  }
 0x29a   : > { %7231 = vmatpush1.bf16.msra.mxu0 %v10074_v52  ;;  %v10122_v52 = vld [vmem:[%s11189_s7 + $0x428] ss:$16 sps:$4 sm:$0xff]  }
 0x29b   : > { %7272 = vmatpush1.bf16.msra.mxu1 %v10077_v56  ;;  %7232 = vmatprep.subr.bf16.mxu0 %v10082_v45  ;;  %v10125_v56 = vld [vmem:[%s11189_s7 + $0x628] ss:$16 sps:$4 sm:$0xff]   ;;  %v10130_v45 = vld [vmem:[%s11189_s7 + $0x44c] ss:$16 sps:$4 sm:$0xff]  }
 0x29c   : > { %7273 = vmatprep.subr.bf16.mxu1 %v10085_v58  ;;  %v10133_v58 = vld [vmem:[%s11189_s7 + $0x64c] ss:$16 sps:$4 sm:$0xff]  }
 0x29e   : > { %7233 = vmatpush1.bf16.msra.mxu0 %v10080_v1  ;;  %v10136_v1 = vld [vmem:[%s11189_s7 + $0x46c] ss:$16 sps:$4 sm:$0xff]  }
 0x29f   : > { %7274 = vmatpush1.bf16.msra.mxu1 %v10083_v2  ;;  %7234 = vmatprep.subr.bf16.mxu0 %v10088_v5  ;;  %v10139_v2 = vld [vmem:[%s11189_s7 + $0x66c] ss:$16 sps:$4 sm:$0xff]   ;;  %v10134_v5 = vld [vmem:[%s11189_s7 + $0x468] ss:$16 sps:$4 sm:$0xff]  }
 0x2a0   : > { %7275 = vmatprep.subr.bf16.mxu1 %v10091_v6  ;;  %v10145_v6 = vld [vmem:[%s11189_s7 + $0x68c] ss:$16 sps:$4 sm:$0xff]  }
 0x2a2   : > { %7235 = vmatpush1.bf16.msra.mxu0 %v10086_v10  ;;  %v10140_v10 = vld [vmem:[%s11189_s7 + $0x488] ss:$16 sps:$4 sm:$0xff]  }
 0x2a3   : > { %7276 = vmatpush1.bf16.msra.mxu1 %v10089_v11  ;;  %7236 = vmatprep.subr.bf16.mxu0 %v10094_v35  ;;  %v10143_v11 = vld [vmem:[%s11189_s7 + $0x688] ss:$16 sps:$4 sm:$0xff]   ;;  %v10148_v35 = vld [vmem:[%s11189_s7 + $0x4ac] ss:$16 sps:$4 sm:$0xff]  }
 0x2a4   : > { %7277 = vmatprep.subr.bf16.mxu1 %v10097_v12  ;;  %v10151_v12 = vld [vmem:[%s11189_s7 + $0x6ac] ss:$16 sps:$4 sm:$0xff]  }
 0x2a6   : > { %7237 = vmatpush1.bf16.msra.mxu0 %v10092_v57  ;;  %v10146_v57 = vld [vmem:[%s11189_s7 + $0x4a8] ss:$16 sps:$4 sm:$0xff]  }
 0x2a7   : > { %7278 = vmatpush1.bf16.msra.mxu1 %v10095_v14  ;;  %7238 = vmatprep.subr.bf16.mxu0 %v10100_v15  ;;  %v10149_v14 = vld [vmem:[%s11189_s7 + $0x6a8] ss:$16 sps:$4 sm:$0xff]   ;;  %v10154_v15 = vld [vmem:[%s11189_s7 + $0x4cc] ss:$16 sps:$4 sm:$0xff]  }
 0x2a8   : > { %7279 = vmatprep.subr.bf16.mxu1 %v10103_v16  ;;  %v10157_v16 = vld [vmem:[%s11189_s7 + $0x6cc] ss:$16 sps:$4 sm:$0xff]  }
 0x2aa   : > { %7239 = vmatpush1.bf16.msra.mxu0 %v10098_v19 }
 0x2ab   : > { %7280 = vmatpush1.bf16.msra.mxu1 %v10101_v20  ;;  %7240 = vmatprep.subr.bf16.mxu0 %v10106_v21 }
 0x2ac   : > { %7281 = vmatprep.subr.bf16.mxu1 %v10109_v22 }
 0x2ae   : > { %7241 = vmatpush1.bf16.msra.mxu0 %v10104_v30 }
 0x2af   : > { %7282 = vmatpush1.bf16.msra.mxu1 %v10107_v63  ;;  %7242 = vmatprep.subr.bf16.mxu0 %v10112_v54 }
 0x2b0   : > { %7283 = vmatprep.subr.bf16.mxu1 %v10115_v0 }
 0x2b2   : > { %7243 = vmatpush1.bf16.msra.mxu0 %v10110_v13  ;;  %v10152_v13 = vld [vmem:[%s11189_s7 + $0x4c8] ss:$16 sps:$4 sm:$0xff]  }
 0x2b3   : > { %7284 = vmatpush1.bf16.msra.mxu1 %v10113_v32  ;;  %7294 = vmatprep.subr.bf16.mxu0 %v10118_v34  ;;  %v10155_v32 = vld [vmem:[%s11189_s7 + $0x6c8] ss:$16 sps:$4 sm:$0xff]  }
 0x2b4   : > { %7335 = vmatprep.subr.bf16.mxu1 %v10121_v36 }
 0x2b5   : > { %7245 = vmatmul.mubr.bf16.vlgmr.msra.gmra.mrb[32].mxu0 %v11290_v7  ;;  %v10128_v7 = vld [vmem:[%s11189_s7 + $0x448] ss:$16 sps:$4 sm:$0xff]  }
 0x2b6   : > { %7286 = vmatmul.mubr.bf16.vlgmr.msra.gmra.mrb[32].mxu1 %v11292_v8  ;;  %7295 = vmatpush1.bf16.msra.mxu0 %v10116_v43  ;;  %v10131_v8 = vld [vmem:[%s11189_s7 + $0x648] ss:$16 sps:$4 sm:$0xff]  }
 0x2b7   : > { %7336 = vmatpush1.bf16.msra.mxu1 %v10119_v55  ;;  %7296 = vmatprep.subr.bf16.mxu0 %v10124_v48  ;;  %v10158_v48 = vld [vmem:[%s11189_s7 + $0x4e8] ss:$16 sps:$4 sm:$0xff]  }
 0x2b8   : > { %7337 = vmatprep.subr.bf16.mxu1 %v10127_v33  ;;  %7326 = vmatprep.mubr.bf16.mxu0 %v11330_v37  ;;  %v10137_v37 = vld [vmem:[%s11189_s7 + $0x668] ss:$16 sps:$4 sm:$0xff]  }
 0x2b9   : > { %7367 = vmatprep.mubr.bf16.mxu1 %v11334_v38  ;;  %v10142_v38 = vld [vmem:[%s11189_s7 + $0x48c] ss:$16 sps:$4 sm:$0xff]   ;;  %v10161_v33 = vld [vmem:[%s11189_s7 + $0x6e8] ss:$16 sps:$4 sm:$0xff]  }
 0x2ba   : > { %7297 = vmatpush1.bf16.msra.mxu0 %v10122_v52  ;;  %v10166_v52 = vld [vmem:[%s11189_s7 + $0x50c] ss:$16 sps:$4 sm:$0xff]  }
 0x2bb   : > { %7338 = vmatpush1.bf16.msra.mxu1 %v10125_v56  ;;  %7298 = vmatprep.subr.bf16.mxu0 %v10130_v45  ;;  %v10169_v56 = vld [vmem:[%s11189_s7 + $0x70c] ss:$16 sps:$4 sm:$0xff]   ;;  %v10164_v45 = vld [vmem:[%s11189_s7 + $0x508] ss:$16 sps:$4 sm:$0xff]  }
 0x2bc   : > { %7339 = vmatprep.subr.bf16.mxu1 %v10133_v58  ;;  %v10167_v58 = vld [vmem:[%s11189_s7 + $0x708] ss:$16 sps:$4 sm:$0xff]  }
 0x2be   : > { %7299 = vmatpush1.bf16.msra.mxu0 %v10128_v7  ;;  %v10172_v7 = vld [vmem:[%s11189_s7 + $0x52c] ss:$16 sps:$4 sm:$0xff]  }
 0x2bf   : > { %7340 = vmatpush1.bf16.msra.mxu1 %v10131_v8  ;;  %7300 = vmatprep.subr.bf16.mxu0 %v10136_v1  ;;  %v10175_v8 = vld [vmem:[%s11189_s7 + $0x72c] ss:$16 sps:$4 sm:$0xff]   ;;  %v10170_v1 = vld [vmem:[%s11189_s7 + $0x528] ss:$16 sps:$4 sm:$0xff]  }
 0x2c0   : > { %7341 = vmatprep.subr.bf16.mxu1 %v10139_v2  ;;  %v10173_v2 = vld [vmem:[%s11189_s7 + $0x728] ss:$16 sps:$4 sm:$0xff]  }
 0x2c2   : > { %7301 = vmatpush1.bf16.msra.mxu0 %v10134_v5  ;;  %v10178_v5 = vld [vmem:[%s11189_s7 + $0x54c] ss:$16 sps:$4 sm:$0xff]  }
 0x2c3   : > { %7342 = vmatpush1.bf16.msra.mxu1 %v10137_v37  ;;  %7302 = vmatprep.subr.bf16.mxu0 %v10142_v38  ;;  %v10181_v37 = vld [vmem:[%s11189_s7 + $0x74c] ss:$16 sps:$4 sm:$0xff]   ;;  %v10176_v38 = vld [vmem:[%s11189_s7 + $0x548] ss:$16 sps:$4 sm:$0xff]  }
 0x2c4   : > { %7343 = vmatprep.subr.bf16.mxu1 %v10145_v6  ;;  %v10179_v6 = vld [vmem:[%s11189_s7 + $0x748] ss:$16 sps:$4 sm:$0xff]  }
 0x2c6   : > { %7303 = vmatpush1.bf16.msra.mxu0 %v10140_v10  ;;  %v10184_v10 = vld [vmem:[%s11189_s7 + $0x56c] ss:$16 sps:$4 sm:$0xff]  }
 0x2c7   : > { %7344 = vmatpush1.bf16.msra.mxu1 %v10143_v11  ;;  %7304 = vmatprep.subr.bf16.mxu0 %v10148_v35  ;;  %v10187_v11 = vld [vmem:[%s11189_s7 + $0x76c] ss:$16 sps:$4 sm:$0xff]   ;;  %v10182_v35 = vld [vmem:[%s11189_s7 + $0x568] ss:$16 sps:$4 sm:$0xff]  }
 0x2c8   : > { %7345 = vmatprep.subr.bf16.mxu1 %v10151_v12  ;;  %v7000_v19 = vpop.f32.mrb[20].mxu0  ;;  %v10185_v12 = vld [vmem:[%s11189_s7 + $0x768] ss:$16 sps:$4 sm:$0xff]  }
 0x2c9   : > { %v7041_v20 = vpop.f32.mrb[20].mxu1  ;;  %v7001_v21 = vadd.f32 %v7000_v19, %v11978_v29  ;;  %v7002_v22 = vpop.f32.mrb[21].mxu0  ;;  %v10160_v29 = vld [vmem:[%s11189_s7 + $0x4ec] ss:$16 sps:$4 sm:$0xff]  }
 0x2ca   : > { %v7043_v30 = vpop.f32.mrb[21].mxu1  ;;  %v7003_v63 = vadd.f32 %v7002_v22, %v11982_v31  ;;  %v7004_v54 = vpop.f32.mrb[22].mxu0  ;;  %7305 = vmatpush1.bf16.msra.mxu0 %v10146_v57  ;;  %v10163_v31 = vld [vmem:[%s11189_s7 + $0x6ec] ss:$16 sps:$4 sm:$0xff]   ;;  %v10197_v22 = vld [vmem:[%s11189_s7 + $0x7a8] ss:$16 sps:$4 sm:$0xff]  }
 0x2cb   : > { %v7045_v0 = vpop.f32.mrb[22].mxu1  ;;  %7346 = vmatpush1.bf16.msra.mxu1 %v10149_v14  ;;  %v12052_v34 = vadd.f32 %v7041_v20, %v7001_v21  ;;  %v7005_v36 = vpop.f32.mrb[23].mxu0  ;;  %7306 = vmatprep.subr.bf16.mxu0 %v10154_v15  ;;  %v10190_v57 = vld [vmem:[%s11189_s7 + $0x58c] ss:$16 sps:$4 sm:$0xff]   ;;  %v10188_v15 = vld [vmem:[%s11189_s7 + $0x588] ss:$16 sps:$4 sm:$0xff]  }
 0x2cc   : > { %v7046_v43 = vpop.f32.mrb[23].mxu1  ;;  %7347 = vmatprep.subr.bf16.mxu1 %v10157_v16  ;;  %v12056_v55 = vadd.f32 %v7043_v30, %v7003_v63  ;;  %v10193_v14 = vld [vmem:[%s11189_s7 + $0x78c] ss:$16 sps:$4 sm:$0xff]   ;;  %v10191_v16 = vld [vmem:[%s11189_s7 + $0x788] ss:$16 sps:$4 sm:$0xff]  }
 0x2cd   : > { %v10196_v19 = vld [vmem:[%s11189_s7 + $0x5ac] ss:$16 sps:$4 sm:$0xff]   ;;  %v10194_v21 = vld [vmem:[%s11189_s7 + $0x5a8] ss:$16 sps:$4 sm:$0xff]  }
 0x2ce   : > { %7307 = vmatpush1.bf16.msra.mxu0 %v10152_v13  ;;  %v10199_v20 = vld [vmem:[%s11189_s7 + $0x7ac] ss:$16 sps:$4 sm:$0xff]   ;;  %v10200_v54 = vld [vmem:[%s11189_s7 + $0x5c8] ss:$16 sps:$4 sm:$0xff]  }
 0x2cf   : > { %7348 = vmatpush1.bf16.msra.mxu1 %v10155_v32  ;;  %7308 = vmatprep.subr.bf16.mxu0 %v10160_v29  ;;  %v10202_v30 = vld [vmem:[%s11189_s7 + $0x5cc] ss:$16 sps:$4 sm:$0xff]   ;;  %v10203_v0 = vld [vmem:[%s11189_s7 + $0x7c8] ss:$16 sps:$4 sm:$0xff]  }
 0x2d0   : > { %7349 = vmatprep.subr.bf16.mxu1 %v10163_v31  ;;  %v10205_v63 = vld [vmem:[%s11189_s7 + $0x7cc] ss:$16 sps:$4 sm:$0xff]   ;;  %v10206_v36 = vld [vmem:[%s11189_s7 + $0x5e8] ss:$16 sps:$4 sm:$0xff]  }
 0x2d1   : > { %v10208_v13 = vld [vmem:[%s11189_s7 + $0x5ec] ss:$16 sps:$4 sm:$0xff]   ;;  %v10209_v43 = vld [vmem:[%s11189_s7 + $0x7e8] ss:$16 sps:$4 sm:$0xff]  }
 0x2d2   : > { %7309 = vmatpush1.bf16.msra.mxu0 %v10158_v48  ;;  %v10211_v32 = vld [vmem:[%s11189_s7 + $0x7ec] ss:$16 sps:$4 sm:$0xff]   ;;  %v10212_v48 = vld [vmem:[%s11189_s7 + $0x808] ss:$16 sps:$4 sm:$0xff]  }
 0x2d3   : > { %7350 = vmatpush1.bf16.msra.mxu1 %v10161_v33  ;;  %7310 = vmatprep.subr.bf16.mxu0 %v10166_v52  ;;  %v10214_v29 = vld [vmem:[%s11189_s7 + $0x80c] ss:$16 sps:$4 sm:$0xff]   ;;  %v10215_v33 = vld [vmem:[%s11189_s7 + $0xa08] ss:$16 sps:$4 sm:$0xff]  }
 0x2d4   : > { %7351 = vmatprep.subr.bf16.mxu1 %v10169_v56  ;;  %v10217_v31 = vld [vmem:[%s11189_s7 + $0xa0c] ss:$16 sps:$4 sm:$0xff]  }
 0x2d5   : > { %v10220_v52 = vld [vmem:[%s11189_s7 + $0x82c] ss:$16 sps:$4 sm:$0xff]  }
 0x2d6   : > { %7311 = vmatpush1.bf16.msra.mxu0 %v10164_v45  ;;  %v10223_v56 = vld [vmem:[%s11189_s7 + $0xa2c] ss:$16 sps:$4 sm:$0xff]   ;;  %v10218_v45 = vld [vmem:[%s11189_s7 + $0x828] ss:$16 sps:$4 sm:$0xff]  }
 0x2d7   : > { %7352 = vmatpush1.bf16.msra.mxu1 %v10167_v58  ;;  %7312 = vmatprep.subr.bf16.mxu0 %v10172_v7  ;;  %v10221_v58 = vld [vmem:[%s11189_s7 + $0xa28] ss:$16 sps:$4 sm:$0xff]   ;;  %v10226_v7 = vld [vmem:[%s11189_s7 + $0x84c] ss:$16 sps:$4 sm:$0xff]  }
 0x2d8   : > { %7353 = vmatprep.subr.bf16.mxu1 %v10175_v8  ;;  %v10229_v8 = vld [vmem:[%s11189_s7 + $0xa4c] ss:$16 sps:$4 sm:$0xff]  }
 0x2da   : > { %7313 = vmatpush1.bf16.msra.mxu0 %v10170_v1  ;;  %v10232_v1 = vld [vmem:[%s11189_s7 + $0x86c] ss:$16 sps:$4 sm:$0xff]  }
 0x2db   : > { %7354 = vmatpush1.bf16.msra.mxu1 %v10173_v2  ;;  %7314 = vmatprep.subr.bf16.mxu0 %v10178_v5  ;;  %v10235_v2 = vld [vmem:[%s11189_s7 + $0xa6c] ss:$16 sps:$4 sm:$0xff]   ;;  %v10230_v5 = vld [vmem:[%s11189_s7 + $0x868] ss:$16 sps:$4 sm:$0xff]  }
 0x2dc   : > { %7355 = vmatprep.subr.bf16.mxu1 %v10181_v37  ;;  %v10241_v37 = vld [vmem:[%s11189_s7 + $0xa8c] ss:$16 sps:$4 sm:$0xff]  }
 0x2de   : > { %7315 = vmatpush1.bf16.msra.mxu0 %v10176_v38  ;;  %v10236_v38 = vld [vmem:[%s11189_s7 + $0x888] ss:$16 sps:$4 sm:$0xff]  }
 0x2df   : > { %7356 = vmatpush1.bf16.msra.mxu1 %v10179_v6  ;;  %7316 = vmatprep.subr.bf16.mxu0 %v10184_v10  ;;  %v10239_v6 = vld [vmem:[%s11189_s7 + $0xa88] ss:$16 sps:$4 sm:$0xff]   ;;  %v10244_v10 = vld [vmem:[%s11189_s7 + $0x8ac] ss:$16 sps:$4 sm:$0xff]  }
 0x2e0   : > { %7357 = vmatprep.subr.bf16.mxu1 %v10187_v11  ;;  %v10247_v11 = vld [vmem:[%s11189_s7 + $0xaac] ss:$16 sps:$4 sm:$0xff]  }
 0x2e2   : > { %7317 = vmatpush1.bf16.msra.mxu0 %v10182_v35  ;;  %v10242_v35 = vld [vmem:[%s11189_s7 + $0x8a8] ss:$16 sps:$4 sm:$0xff]  }
 0x2e3   : > { %7358 = vmatpush1.bf16.msra.mxu1 %v10185_v12  ;;  %7318 = vmatprep.subr.bf16.mxu0 %v10190_v57  ;;  %v10245_v12 = vld [vmem:[%s11189_s7 + $0xaa8] ss:$16 sps:$4 sm:$0xff]   ;;  %v10250_v57 = vld [vmem:[%s11189_s7 + $0x8cc] ss:$16 sps:$4 sm:$0xff]  }
 0x2e4   : > { %7359 = vmatprep.subr.bf16.mxu1 %v10193_v14  ;;  %v10253_v14 = vld [vmem:[%s11189_s7 + $0xacc] ss:$16 sps:$4 sm:$0xff]  }
 0x2e6   : > { %7319 = vmatpush1.bf16.msra.mxu0 %v10188_v15 }
 0x2e7   : > { %7360 = vmatpush1.bf16.msra.mxu1 %v10191_v16  ;;  %7320 = vmatprep.subr.bf16.mxu0 %v10196_v19 }
 0x2e8   : > { %7361 = vmatprep.subr.bf16.mxu1 %v10199_v20 }
 0x2ea   : > { %7321 = vmatpush1.bf16.msra.mxu0 %v10194_v21 }
 0x2eb   : > { %7362 = vmatpush1.bf16.msra.mxu1 %v10197_v22  ;;  %7322 = vmatprep.subr.bf16.mxu0 %v10202_v30 }
 0x2ec   : > { %7363 = vmatprep.subr.bf16.mxu1 %v10205_v63 }
 0x2ee   : > { %7323 = vmatpush1.bf16.msra.mxu0 %v10200_v54  ;;  %v10248_v54 = vld [vmem:[%s11189_s7 + $0x8c8] ss:$16 sps:$4 sm:$0xff]  }
 0x2ef   : > { %7364 = vmatpush1.bf16.msra.mxu1 %v10203_v0  ;;  %7324 = vmatprep.subr.bf16.mxu0 %v10208_v13  ;;  %v10251_v0 = vld [vmem:[%s11189_s7 + $0xac8] ss:$16 sps:$4 sm:$0xff]  }
 0x2f0   : > { %7365 = vmatprep.subr.bf16.mxu1 %v10211_v32 }
 0x2f2   : > { %7325 = vmatpush1.bf16.msra.mxu0 %v10206_v36 }
 0x2f3   : > { %7366 = vmatpush1.bf16.msra.mxu1 %v10209_v43  ;;  %7376 = vmatprep.subr.bf16.mxu0 %v10214_v29  ;;  %v10254_v29 = vld [vmem:[%s11189_s7 + $0x8e8] ss:$16 sps:$4 sm:$0xff]  }
 0x2f4   : > { %7417 = vmatprep.subr.bf16.mxu1 %v10217_v31  ;;  %v10257_v31 = vld [vmem:[%s11189_s7 + $0xae8] ss:$16 sps:$4 sm:$0xff]  }
 0x2f5   : > { %7327 = vmatmul.mubr.bf16.vlgmr.msra.gmra.mrb[36].mxu0 %v11378_v17  ;;  %v10224_v17 = vld [vmem:[%s11189_s7 + $0x848] ss:$16 sps:$4 sm:$0xff]  }
 0x2f6   : > { %7368 = vmatmul.mubr.bf16.vlgmr.msra.gmra.mrb[36].mxu1 %v11382_v18  ;;  %7377 = vmatpush1.bf16.msra.mxu0 %v10212_v48  ;;  %v10227_v18 = vld [vmem:[%s11189_s7 + $0xa48] ss:$16 sps:$4 sm:$0xff]   ;;  %v10262_v48 = vld [vmem:[%s11189_s7 + $0x90c] ss:$16 sps:$4 sm:$0xff]  }
 0x2f7   : > { %7418 = vmatpush1.bf16.msra.mxu1 %v10215_v33  ;;  %7378 = vmatprep.subr.bf16.mxu0 %v10220_v52  ;;  %v10265_v33 = vld [vmem:[%s11189_s7 + $0xb0c] ss:$16 sps:$4 sm:$0xff]   ;;  %v10260_v52 = vld [vmem:[%s11189_s7 + $0x908] ss:$16 sps:$4 sm:$0xff]  }
 0x2f8   : > { %7419 = vmatprep.subr.bf16.mxu1 %v10223_v56  ;;  %7408 = vmatprep.mubr.bf16.mxu0 %v11396_v25  ;;  %v10233_v25 = vld [vmem:[%s11189_s7 + $0xa68] ss:$16 sps:$4 sm:$0xff]  }
 0x2f9   : > { %7449 = vmatprep.mubr.bf16.mxu1 %v11400_v26  ;;  %v10238_v26 = vld [vmem:[%s11189_s7 + $0x88c] ss:$16 sps:$4 sm:$0xff]   ;;  %v10263_v56 = vld [vmem:[%s11189_s7 + $0xb08] ss:$16 sps:$4 sm:$0xff]  }
 0x2fa   : > { %7379 = vmatpush1.bf16.msra.mxu0 %v10218_v45  ;;  %v10268_v45 = vld [vmem:[%s11189_s7 + $0x92c] ss:$16 sps:$4 sm:$0xff]  }
 0x2fb   : > { %7420 = vmatpush1.bf16.msra.mxu1 %v10221_v58  ;;  %7380 = vmatprep.subr.bf16.mxu0 %v10226_v7  ;;  %v10271_v58 = vld [vmem:[%s11189_s7 + $0xb2c] ss:$16 sps:$4 sm:$0xff]   ;;  %v10266_v7 = vld [vmem:[%s11189_s7 + $0x928] ss:$16 sps:$4 sm:$0xff]  }
 0x2fc   : > { %7421 = vmatprep.subr.bf16.mxu1 %v10229_v8  ;;  %v10269_v8 = vld [vmem:[%s11189_s7 + $0xb28] ss:$16 sps:$4 sm:$0xff]  }
 0x2fe   : > { %7381 = vmatpush1.bf16.msra.mxu0 %v10224_v17  ;;  %v10274_v17 = vld [vmem:[%s11189_s7 + $0x94c] ss:$16 sps:$4 sm:$0xff]  }
 0x2ff   : > { %7422 = vmatpush1.bf16.msra.mxu1 %v10227_v18  ;;  %7382 = vmatprep.subr.bf16.mxu0 %v10232_v1  ;;  %v10277_v18 = vld [vmem:[%s11189_s7 + $0xb4c] ss:$16 sps:$4 sm:$0xff]   ;;  %v10272_v1 = vld [vmem:[%s11189_s7 + $0x948] ss:$16 sps:$4 sm:$0xff]  }
 0x300   : > { %7423 = vmatprep.subr.bf16.mxu1 %v10235_v2  ;;  %v10275_v2 = vld [vmem:[%s11189_s7 + $0xb48] ss:$16 sps:$4 sm:$0xff]  }
 0x302   : > { %7383 = vmatpush1.bf16.msra.mxu0 %v10230_v5  ;;  %v10280_v5 = vld [vmem:[%s11189_s7 + $0x96c] ss:$16 sps:$4 sm:$0xff]  }
 0x303   : > { %7424 = vmatpush1.bf16.msra.mxu1 %v10233_v25  ;;  %7384 = vmatprep.subr.bf16.mxu0 %v10238_v26  ;;  %v10283_v25 = vld [vmem:[%s11189_s7 + $0xb6c] ss:$16 sps:$4 sm:$0xff]   ;;  %v10278_v26 = vld [vmem:[%s11189_s7 + $0x968] ss:$16 sps:$4 sm:$0xff]  }
 0x304   : > { %7425 = vmatprep.subr.bf16.mxu1 %v10241_v37  ;;  %v10281_v37 = vld [vmem:[%s11189_s7 + $0xb68] ss:$16 sps:$4 sm:$0xff]  }
 0x306   : > { %7385 = vmatpush1.bf16.msra.mxu0 %v10236_v38  ;;  %v10286_v38 = vld [vmem:[%s11189_s7 + $0x98c] ss:$16 sps:$4 sm:$0xff]  }
 0x307   : > { %7426 = vmatpush1.bf16.msra.mxu1 %v10239_v6  ;;  %7386 = vmatprep.subr.bf16.mxu0 %v10244_v10  ;;  %v10289_v6 = vld [vmem:[%s11189_s7 + $0xb8c] ss:$16 sps:$4 sm:$0xff]   ;;  %v10284_v10 = vld [vmem:[%s11189_s7 + $0x988] ss:$16 sps:$4 sm:$0xff]  }
 0x308   : > { %7427 = vmatprep.subr.bf16.mxu1 %v10247_v11  ;;  %v7082_v15 = vpop.f32.mrb[24].mxu0  ;;  %v10287_v11 = vld [vmem:[%s11189_s7 + $0xb88] ss:$16 sps:$4 sm:$0xff]  }
 0x309   : > { %v7123_v16 = vpop.f32.mrb[24].mxu1  ;;  %v7083_v19 = vadd.f32 %v7082_v15, %v12052_v34  ;;  %v7084_v20 = vpop.f32.mrb[25].mxu0  ;;  %v10256_v34 = vld [vmem:[%s11189_s7 + $0x8ec] ss:$16 sps:$4 sm:$0xff]  }
 0x30a   : > { %v7125_v21 = vpop.f32.mrb[25].mxu1  ;;  %v7085_v22 = vadd.f32 %v7084_v20, %v12056_v55  ;;  %v7086_v30 = vpop.f32.mrb[26].mxu0  ;;  %7387 = vmatpush1.bf16.msra.mxu0 %v10242_v35  ;;  %v10259_v55 = vld [vmem:[%s11189_s7 + $0xaec] ss:$16 sps:$4 sm:$0xff]   ;;  %v10299_v20 = vld [vmem:[%s11189_s7 + $0xbc8] ss:$16 sps:$4 sm:$0xff]  }
 0x30b   : > { %v7127_v63 = vpop.f32.mrb[26].mxu1  ;;  %7428 = vmatpush1.bf16.msra.mxu1 %v10245_v12  ;;  %v12126_v13 = vadd.f32 %v7123_v16, %v7083_v19  ;;  %v7087_v32 = vpop.f32.mrb[27].mxu0  ;;  %7388 = vmatprep.subr.bf16.mxu0 %v10250_v57  ;;  %v10292_v35 = vld [vmem:[%s11189_s7 + $0x9ac] ss:$16 sps:$4 sm:$0xff]   ;;  %v10290_v57 = vld [vmem:[%s11189_s7 + $0x9a8] ss:$16 sps:$4 sm:$0xff]  }
 0x30c   : > { %v7128_v36 = vpop.f32.mrb[27].mxu1  ;;  %7429 = vmatprep.subr.bf16.mxu1 %v10253_v14  ;;  %v12130_v43 = vadd.f32 %v7125_v21, %v7085_v22  ;;  %v10295_v12 = vld [vmem:[%s11189_s7 + $0xbac] ss:$16 sps:$4 sm:$0xff]   ;;  %v10293_v14 = vld [vmem:[%s11189_s7 + $0xba8] ss:$16 sps:$4 sm:$0xff]  }
 0x30d   : > { %v10298_v15 = vld [vmem:[%s11189_s7 + $0x9cc] ss:$16 sps:$4 sm:$0xff]   ;;  %v10296_v19 = vld [vmem:[%s11189_s7 + $0x9c8] ss:$16 sps:$4 sm:$0xff]  }
 0x30e   : > { %7389 = vmatpush1.bf16.msra.mxu0 %v10248_v54  ;;  %v10301_v16 = vld [vmem:[%s11189_s7 + $0xbcc] ss:$16 sps:$4 sm:$0xff]   ;;  %v10302_v30 = vld [vmem:[%s11189_s7 + $0x9e8] ss:$16 sps:$4 sm:$0xff]  }
 0x30f   : > { %7430 = vmatpush1.bf16.msra.mxu1 %v10251_v0  ;;  %7390 = vmatprep.subr.bf16.mxu0 %v10256_v34  ;;  %v10304_v21 = vld [vmem:[%s11189_s7 + $0x9ec] ss:$16 sps:$4 sm:$0xff]   ;;  %v10305_v63 = vld [vmem:[%s11189_s7 + $0xbe8] ss:$16 sps:$4 sm:$0xff]  }
 0x310   : > { %7431 = vmatprep.subr.bf16.mxu1 %v10259_v55  ;;  %v10307_v22 = vld [vmem:[%s11189_s7 + $0xbec] ss:$16 sps:$4 sm:$0xff]   ;;  %v10308_v32 = vld [vmem:[%s11189_s7 + $0xc08] ss:$16 sps:$4 sm:$0xff]  }
 0x311   : > { %v10310_v54 = vld [vmem:[%s11189_s7 + $0xc0c] ss:$16 sps:$4 sm:$0xff]   ;;  %v10311_v36 = vld [vmem:[%s11189_s7 + $0xe08] ss:$16 sps:$4 sm:$0xff]  }
 0x312   : > { %7391 = vmatpush1.bf16.msra.mxu0 %v10254_v29  ;;  %v10313_v0 = vld [vmem:[%s11189_s7 + $0xe0c] ss:$16 sps:$4 sm:$0xff]   ;;  %v10314_v29 = vld [vmem:[%s11189_s7 + $0xc28] ss:$16 sps:$4 sm:$0xff]  }
 0x313   : > { %7432 = vmatpush1.bf16.msra.mxu1 %v10257_v31  ;;  %7392 = vmatprep.subr.bf16.mxu0 %v10262_v48  ;;  %v10316_v34 = vld [vmem:[%s11189_s7 + $0xc2c] ss:$16 sps:$4 sm:$0xff]   ;;  %v10317_v31 = vld [vmem:[%s11189_s7 + $0xe28] ss:$16 sps:$4 sm:$0xff]  }
 0x314   : > { %7433 = vmatprep.subr.bf16.mxu1 %v10265_v33  ;;  %v10319_v55 = vld [vmem:[%s11189_s7 + $0xe2c] ss:$16 sps:$4 sm:$0xff]  }
 0x315   : > { %v10322_v48 = vld [vmem:[%s11189_s7 + $0xc4c] ss:$16 sps:$4 sm:$0xff]  }
 0x316   : > { %7393 = vmatpush1.bf16.msra.mxu0 %v10260_v52  ;;  %v10325_v33 = vld [vmem:[%s11189_s7 + $0xe4c] ss:$16 sps:$4 sm:$0xff]  }
 0x317   : > { %7434 = vmatpush1.bf16.msra.mxu1 %v10263_v56  ;;  %7394 = vmatprep.subr.bf16.mxu0 %v10268_v45  ;;  %v10328_v52 = vld [vmem:[%s11189_s7 + $0xc6c] ss:$16 sps:$4 sm:$0xff]   ;;  %v10326_v45 = vld [vmem:[%s11189_s7 + $0xc68] ss:$16 sps:$4 sm:$0xff]  }
 0x318   : > { %7435 = vmatprep.subr.bf16.mxu1 %v10271_v58  ;;  %v10331_v56 = vld [vmem:[%s11189_s7 + $0xe6c] ss:$16 sps:$4 sm:$0xff]  }
 0x319   : > { %v10337_v58 = vld [vmem:[%s11189_s7 + $0xe8c] ss:$16 sps:$4 sm:$0xff]  }
 0x31a   : > { %7395 = vmatpush1.bf16.msra.mxu0 %v10266_v7  ;;  %v10332_v7 = vld [vmem:[%s11189_s7 + $0xc88] ss:$16 sps:$4 sm:$0xff]  }
 0x31b   : > { %7436 = vmatpush1.bf16.msra.mxu1 %v10269_v8  ;;  %7396 = vmatprep.subr.bf16.mxu0 %v10274_v17  ;;  %v10335_v8 = vld [vmem:[%s11189_s7 + $0xe88] ss:$16 sps:$4 sm:$0xff]   ;;  %v10340_v17 = vld [vmem:[%s11189_s7 + $0xcac] ss:$16 sps:$4 sm:$0xff]  }
 0x31c   : > { %7437 = vmatprep.subr.bf16.mxu1 %v10277_v18  ;;  %v10343_v18 = vld [vmem:[%s11189_s7 + $0xeac] ss:$16 sps:$4 sm:$0xff]  }
 0x31e   : > { %7397 = vmatpush1.bf16.msra.mxu0 %v10272_v1  ;;  %v10338_v1 = vld [vmem:[%s11189_s7 + $0xca8] ss:$16 sps:$4 sm:$0xff]  }
 0x31f   : > { %7438 = vmatpush1.bf16.msra.mxu1 %v10275_v2  ;;  %7398 = vmatprep.subr.bf16.mxu0 %v10280_v5  ;;  %v10341_v2 = vld [vmem:[%s11189_s7 + $0xea8] ss:$16 sps:$4 sm:$0xff]   ;;  %v10346_v5 = vld [vmem:[%s11189_s7 + $0xccc] ss:$16 sps:$4 sm:$0xff]  }
 0x320   : > { %7439 = vmatprep.subr.bf16.mxu1 %v10283_v25  ;;  %v10349_v25 = vld [vmem:[%s11189_s7 + $0xecc] ss:$16 sps:$4 sm:$0xff]  }
 0x322   : > { %7399 = vmatpush1.bf16.msra.mxu0 %v10278_v26 }
 0x323   : > { %7440 = vmatpush1.bf16.msra.mxu1 %v10281_v37  ;;  %7400 = vmatprep.subr.bf16.mxu0 %v10286_v38 }
 0x324   : > { %7441 = vmatprep.subr.bf16.mxu1 %v10289_v6 }
 0x326   : > { %7401 = vmatpush1.bf16.msra.mxu0 %v10284_v10 }
 0x327   : > { %7442 = vmatpush1.bf16.msra.mxu1 %v10287_v11  ;;  %7402 = vmatprep.subr.bf16.mxu0 %v10292_v35  ;;  %v10344_v11 = vld [vmem:[%s11189_s7 + $0xcc8] ss:$16 sps:$4 sm:$0xff]   ;;  %v280_v35 = vld [vmem:[#allocation2] sm:$0xff] }
 0x328   : > { %7443 = vmatprep.subr.bf16.mxu1 %v10295_v12 }
 0x32a   : > { %7403 = vmatpush1.bf16.msra.mxu0 %v10290_v57  ;;  %v281_v57 = vld [vmem:[#allocation2 + $0x8] sm:$0xff] }
 0x32b   : > { %7444 = vmatpush1.bf16.msra.mxu1 %v10293_v14  ;;  %7404 = vmatprep.subr.bf16.mxu0 %v10298_v15 }
 0x32c   : > { %7445 = vmatprep.subr.bf16.mxu1 %v10301_v16  ;;  %v10347_v16 = vld [vmem:[%s11189_s7 + $0xec8] ss:$16 sps:$4 sm:$0xff]  }
 0x32e   : > { %7405 = vmatpush1.bf16.msra.mxu0 %v10296_v19 }
 0x32f   : > { %7446 = vmatpush1.bf16.msra.mxu1 %v10299_v20  ;;  %7406 = vmatprep.subr.bf16.mxu0 %v10304_v21  ;;  %v10352_v21 = vld [vmem:[%s11189_s7 + $0xcec] ss:$16 sps:$4 sm:$0xff]  }
 0x330   : > { %7447 = vmatprep.subr.bf16.mxu1 %v10307_v22  ;;  %v10355_v22 = vld [vmem:[%s11189_s7 + $0xeec] ss:$16 sps:$4 sm:$0xff]  }
 0x332   : > { %7407 = vmatpush1.bf16.msra.mxu0 %v10302_v30 }
 0x333   : > { %7448 = vmatpush1.bf16.msra.mxu1 %v10305_v63  ;;  %7458 = vmatprep.subr.bf16.mxu0 %v10310_v54  ;;  %v10350_v54 = vld [vmem:[%s11189_s7 + $0xce8] ss:$16 sps:$4 sm:$0xff]  }
 0x334   : > { %7499 = vmatprep.subr.bf16.mxu1 %v10313_v0  ;;  %v10353_v0 = vld [vmem:[%s11189_s7 + $0xee8] ss:$16 sps:$4 sm:$0xff]  }
 0x335   : > { %7409 = vmatmul.mubr.bf16.vlgmr.msra.gmra.mrb[40].mxu0 %v11470_v39  ;;  %v10320_v39 = vld [vmem:[%s11189_s7 + $0xc48] ss:$16 sps:$4 sm:$0xff]  }
 0x336   : > { %7450 = vmatmul.mubr.bf16.vlgmr.msra.gmra.mrb[40].mxu1 %v11474_v40  ;;  %7459 = vmatpush1.bf16.msra.mxu0 %v10308_v32  ;;  %v10323_v40 = vld [vmem:[%s11189_s7 + $0xe48] ss:$16 sps:$4 sm:$0xff]   ;;  %v10358_v32 = vld [vmem:[%s11189_s7 + $0xd0c] ss:$16 sps:$4 sm:$0xff]  }
 0x337   : > { %7500 = vmatpush1.bf16.msra.mxu1 %v10311_v36  ;;  %7460 = vmatprep.subr.bf16.mxu0 %v10316_v34  ;;  %v10361_v36 = vld [vmem:[%s11189_s7 + $0xf0c] ss:$16 sps:$4 sm:$0xff]   ;;  %v10356_v34 = vld [vmem:[%s11189_s7 + $0xd08] ss:$16 sps:$4 sm:$0xff]  }
 0x338   : > { %7501 = vmatprep.subr.bf16.mxu1 %v10319_v55  ;;  %7490 = vmatprep.mubr.bf16.mxu0 %v11486_v23  ;;  %v10329_v23 = vld [vmem:[%s11189_s7 + $0xe68] ss:$16 sps:$4 sm:$0xff]  }
 0x339   : > { %7531 = vmatprep.mubr.bf16.mxu1 %v11490_v24  ;;  %v10334_v24 = vld [vmem:[%s11189_s7 + $0xc8c] ss:$16 sps:$4 sm:$0xff]   ;;  %v10359_v55 = vld [vmem:[%s11189_s7 + $0xf08] ss:$16 sps:$4 sm:$0xff]  }
 0x33a   : > { %7461 = vmatpush1.bf16.msra.mxu0 %v10314_v29  ;;  %v10364_v29 = vld [vmem:[%s11189_s7 + $0xd2c] ss:$16 sps:$4 sm:$0xff]  }
 0x33b   : > { %7502 = vmatpush1.bf16.msra.mxu1 %v10317_v31  ;;  %7462 = vmatprep.subr.bf16.mxu0 %v10322_v48  ;;  %v10367_v31 = vld [vmem:[%s11189_s7 + $0xf2c] ss:$16 sps:$4 sm:$0xff]   ;;  %v10362_v48 = vld [vmem:[%s11189_s7 + $0xd28] ss:$16 sps:$4 sm:$0xff]  }
 0x33c   : > { %7503 = vmatprep.subr.bf16.mxu1 %v10325_v33  ;;  %v10365_v33 = vld [vmem:[%s11189_s7 + $0xf28] ss:$16 sps:$4 sm:$0xff]  }
 0x33e   : > { %7463 = vmatpush1.bf16.msra.mxu0 %v10320_v39  ;;  %v10370_v39 = vld [vmem:[%s11189_s7 + $0xd4c] ss:$16 sps:$4 sm:$0xff]  }
 0x33f   : > { %7504 = vmatpush1.bf16.msra.mxu1 %v10323_v40  ;;  %7464 = vmatprep.subr.bf16.mxu0 %v10328_v52  ;;  %v10373_v40 = vld [vmem:[%s11189_s7 + $0xf4c] ss:$16 sps:$4 sm:$0xff]   ;;  %v10368_v52 = vld [vmem:[%s11189_s7 + $0xd48] ss:$16 sps:$4 sm:$0xff]  }
 0x340   : > { %7505 = vmatprep.subr.bf16.mxu1 %v10331_v56  ;;  %v10371_v56 = vld [vmem:[%s11189_s7 + $0xf48] ss:$16 sps:$4 sm:$0xff]  }
 0x342   : > { %7465 = vmatpush1.bf16.msra.mxu0 %v10326_v45  ;;  %v10376_v45 = vld [vmem:[%s11189_s7 + $0xd6c] ss:$16 sps:$4 sm:$0xff]  }
 0x343   : > { %7506 = vmatpush1.bf16.msra.mxu1 %v10329_v23  ;;  %7466 = vmatprep.subr.bf16.mxu0 %v10334_v24  ;;  %v10379_v23 = vld [vmem:[%s11189_s7 + $0xf6c] ss:$16 sps:$4 sm:$0xff]   ;;  %v10374_v24 = vld [vmem:[%s11189_s7 + $0xd68] ss:$16 sps:$4 sm:$0xff]  }
 0x344   : > { %7507 = vmatprep.subr.bf16.mxu1 %v10337_v58  ;;  %v10377_v58 = vld [vmem:[%s11189_s7 + $0xf68] ss:$16 sps:$4 sm:$0xff]  }
 0x346   : > { %7467 = vmatpush1.bf16.msra.mxu0 %v10332_v7  ;;  %v10382_v7 = vld [vmem:[%s11189_s7 + $0xd8c] ss:$16 sps:$4 sm:$0xff]  }
 0x347   : > { %7508 = vmatpush1.bf16.msra.mxu1 %v10335_v8  ;;  %7468 = vmatprep.subr.bf16.mxu0 %v10340_v17  ;;  %v10385_v8 = vld [vmem:[%s11189_s7 + $0xf8c] ss:$16 sps:$4 sm:$0xff]   ;;  %v10380_v17 = vld [vmem:[%s11189_s7 + $0xd88] ss:$16 sps:$4 sm:$0xff]  }
 0x348   : > { %7509 = vmatprep.subr.bf16.mxu1 %v10343_v18  ;;  %v7164_v26 = vpop.f32.mrb[28].mxu0  ;;  %v10383_v18 = vld [vmem:[%s11189_s7 + $0xf88] ss:$16 sps:$4 sm:$0xff]  }
 0x349   : > { %v7205_v37 = vpop.f32.mrb[28].mxu1  ;;  %v7165_v38 = vadd.f32 %v7164_v26, %v12126_v13  ;;  %v7166_v6 = vpop.f32.mrb[29].mxu0  ;;  %v10394_v26 = vld [vmem:[%s11189_s7 + $0xdcc] ss:$16 sps:$4 sm:$0xff]  }
 0x34a   : > { %v7207_v10 = vpop.f32.mrb[29].mxu1  ;;  %v7167_v12 = vadd.f32 %v7166_v6, %v12130_v43  ;;  %v7168_v14 = vpop.f32.mrb[30].mxu0  ;;  %7469 = vmatpush1.bf16.msra.mxu0 %v10338_v1  ;;  %v10388_v1 = vld [vmem:[%s11189_s7 + $0xdac] ss:$16 sps:$4 sm:$0xff]   ;;  %v10395_v6 = vld [vmem:[%s11189_s7 + $0xfc8] ss:$16 sps:$4 sm:$0xff]  }
 0x34b   : > { %v7209_v15 = vpop.f32.mrb[30].mxu1  ;;  %7510 = vmatpush1.bf16.msra.mxu1 %v10341_v2  ;;  %v7206_v19 = vadd.f32 %v7205_v37, %v7165_v38  ;;  %v7169_v20 = vpop.f32.mrb[31].mxu0  ;;  %7470 = vmatprep.subr.bf16.mxu0 %v10346_v5  ;;  %v10391_v2 = vld [vmem:[%s11189_s7 + $0xfac] ss:$16 sps:$4 sm:$0xff]   ;;  %v10386_v5 = vld [vmem:[%s11189_s7 + $0xda8] ss:$16 sps:$4 sm:$0xff]  }
 0x34c   : > { %v7210_v13 = vpop.f32.mrb[31].mxu1  ;;  %7511 = vmatprep.subr.bf16.mxu1 %v10349_v25  ;;  %v7208_v30 = vadd.f32 %v7207_v10, %v7167_v12  ;;  %v10389_v25 = vld [vmem:[%s11189_s7 + $0xfa8] ss:$16 sps:$4 sm:$0xff]   ;;  %v10397_v37 = vld [vmem:[%s11189_s7 + $0xfcc] ss:$16 sps:$4 sm:$0xff]  }
 0x34d   : > { %v7868_v43 = vadd.f32 %v7206_v19, %v280_v35  ;;  %v10392_v38 = vld [vmem:[%s11189_s7 + $0xdc8] ss:$16 sps:$4 sm:$0xff]   ;;  %v10400_v10 = vld [vmem:[%s11189_s7 + $0xdec] ss:$16 sps:$4 sm:$0xff]  }
 0x34e   : > { %v7869_v63 = vadd.f32 %v7208_v30, %v281_v57  ;;  %7471 = vmatpush1.bf16.msra.mxu0 %v10344_v11  ;;  %v10403_v11 = vld [vmem:[%s11189_s7 + $0xfec] ss:$16 sps:$4 sm:$0xff]   ;;  %v10398_v35 = vld [vmem:[%s11189_s7 + $0xde8] ss:$16 sps:$4 sm:$0xff]  }
 0x34f   : > { %7512 = vmatpush1.bf16.msra.mxu1 %v10347_v16  ;;  %7872 = vst [vmem:[#allocation2] sm:$0xff] %v7868_v43  ;;  %7472 = vmatprep.subr.bf16.mxu0 %v10352_v21  ;;  %v10401_v12 = vld [vmem:[%s11189_s7 + $0xfe8] ss:$16 sps:$4 sm:$0xff]   ;;  %v10406_v57 = vld [vmem:[%s11189_s7 + $0x100c] ss:$16 sps:$4 sm:$0xff]  }
 0x350   : > { %7513 = vmatprep.subr.bf16.mxu1 %v10355_v22  ;;  %7873 = vst [vmem:[#allocation2 + $0x8] sm:$0xff] %v7869_v63  ;;  %v10409_v14 = vld [vmem:[%s11189_s7 + $0x120c] ss:$16 sps:$4 sm:$0xff]   ;;  %v10404_v15 = vld [vmem:[%s11189_s7 + $0x1008] ss:$16 sps:$4 sm:$0xff]  }
 0x351   : > { %v10407_v16 = vld [vmem:[%s11189_s7 + $0x1208] ss:$16 sps:$4 sm:$0xff]   ;;  %v10412_v19 = vld [vmem:[%s11189_s7 + $0x102c] ss:$16 sps:$4 sm:$0xff]  }
 0x352   : > { %7473 = vmatpush1.bf16.msra.mxu0 %v10350_v54  ;;  %v10415_v20 = vld [vmem:[%s11189_s7 + $0x122c] ss:$16 sps:$4 sm:$0xff]   ;;  %v10410_v13 = vld [vmem:[%s11189_s7 + $0x1028] ss:$16 sps:$4 sm:$0xff]  }
 0x353   : > { %7514 = vmatpush1.bf16.msra.mxu1 %v10353_v0  ;;  %7474 = vmatprep.subr.bf16.mxu0 %v10358_v32  ;;  %v10413_v21 = vld [vmem:[%s11189_s7 + $0x1228] ss:$16 sps:$4 sm:$0xff]   ;;  %v10418_v22 = vld [vmem:[%s11189_s7 + $0x104c] ss:$16 sps:$4 sm:$0xff]  }
 0x354   : > { %7515 = vmatprep.subr.bf16.mxu1 %v10361_v36  ;;  %v10421_v30 = vld [vmem:[%s11189_s7 + $0x124c] ss:$16 sps:$4 sm:$0xff]   ;;  %v10422_v54 = vld [vmem:[%s11189_s7 + $0x1068] ss:$16 sps:$4 sm:$0xff]  }
 0x355   : > { %v10424_v43 = vld [vmem:[%s11189_s7 + $0x106c] ss:$16 sps:$4 sm:$0xff]   ;;  %v10428_v32 = vld [vmem:[%s11189_s7 + $0x1088] ss:$16 sps:$4 sm:$0xff]  }
 0x356   : > { %7475 = vmatpush1.bf16.msra.mxu0 %v10356_v34  ;;  %v10427_v63 = vld [vmem:[%s11189_s7 + $0x126c] ss:$16 sps:$4 sm:$0xff]   ;;  %v10431_v36 = vld [vmem:[%s11189_s7 + $0x1288] ss:$16 sps:$4 sm:$0xff]  }
 0x357   : > { %7516 = vmatpush1.bf16.msra.mxu1 %v10359_v55  ;;  %7476 = vmatprep.subr.bf16.mxu0 %v10364_v29  ;;  %v10433_v0 = vld [vmem:[%s11189_s7 + $0x128c] ss:$16 sps:$4 sm:$0xff]   ;;  %v10434_v29 = vld [vmem:[%s11189_s7 + $0x10a8] ss:$16 sps:$4 sm:$0xff]  }
 0x358   : > { %7517 = vmatprep.subr.bf16.mxu1 %v10367_v31  ;;  %v10436_v34 = vld [vmem:[%s11189_s7 + $0x10ac] ss:$16 sps:$4 sm:$0xff]   ;;  %v10437_v31 = vld [vmem:[%s11189_s7 + $0x12a8] ss:$16 sps:$4 sm:$0xff]  }
 0x359   : > { %v10439_v55 = vld [vmem:[%s11189_s7 + $0x12ac] ss:$16 sps:$4 sm:$0xff]  }
 0x35a   : > { %7477 = vmatpush1.bf16.msra.mxu0 %v10362_v48  ;;  %v10442_v48 = vld [vmem:[%s11189_s7 + $0x10cc] ss:$16 sps:$4 sm:$0xff]  }
 0x35b   : > { %7518 = vmatpush1.bf16.msra.mxu1 %v10365_v33  ;;  %7478 = vmatprep.subr.bf16.mxu0 %v10370_v39  ;;  %v10445_v33 = vld [vmem:[%s11189_s7 + $0x12cc] ss:$16 sps:$4 sm:$0xff]  }
 0x35c   : > { %7519 = vmatprep.subr.bf16.mxu1 %v10373_v40 }
 0x35e   : > { %7479 = vmatpush1.bf16.msra.mxu0 %v10368_v52 }
 0x35f   : > { %7520 = vmatpush1.bf16.msra.mxu1 %v10371_v56  ;;  %7480 = vmatprep.subr.bf16.mxu0 %v10376_v45 }
 0x360   : > { %7521 = vmatprep.subr.bf16.mxu1 %v10379_v23 }
 0x362   : > { %7481 = vmatpush1.bf16.msra.mxu0 %v10374_v24 }
 0x363   : > { %7522 = vmatpush1.bf16.msra.mxu1 %v10377_v58  ;;  %7482 = vmatprep.subr.bf16.mxu0 %v10382_v7  ;;  %v10440_v7 = vld [vmem:[%s11189_s7 + $0x10c8] ss:$16 sps:$4 sm:$0xff]  }
 0x364   : > { %7523 = vmatprep.subr.bf16.mxu1 %v10385_v8  ;;  %v10443_v8 = vld [vmem:[%s11189_s7 + $0x12c8] ss:$16 sps:$4 sm:$0xff]  }
 0x366   : > { %7483 = vmatpush1.bf16.msra.mxu0 %v10380_v17 }
 0x367   : > { %7524 = vmatpush1.bf16.msra.mxu1 %v10383_v18  ;;  %7484 = vmatprep.subr.bf16.mxu0 %v10388_v1  ;;  %v10448_v1 = vld [vmem:[%s11189_s7 + $0x10ec] ss:$16 sps:$4 sm:$0xff]  }
 0x368   : > { %7525 = vmatprep.subr.bf16.mxu1 %v10391_v2  ;;  %v10451_v2 = vld [vmem:[%s11189_s7 + $0x12ec] ss:$16 sps:$4 sm:$0xff]  }
 0x36a   : > { %7485 = vmatpush1.bf16.msra.mxu0 %v10386_v5  ;;  %v10446_v5 = vld [vmem:[%s11189_s7 + $0x10e8] ss:$16 sps:$4 sm:$0xff]  }
 0x36b   : > { %7526 = vmatpush1.bf16.msra.mxu1 %v10389_v25  ;;  %7486 = vmatprep.subr.bf16.mxu0 %v10394_v26  ;;  %v10449_v25 = vld [vmem:[%s11189_s7 + $0x12e8] ss:$16 sps:$4 sm:$0xff]   ;;  %v10454_v26 = vld [vmem:[%s11189_s7 + $0x110c] ss:$16 sps:$4 sm:$0xff]  }
 0x36c   : > { %7527 = vmatprep.subr.bf16.mxu1 %v10397_v37  ;;  %v10457_v37 = vld [vmem:[%s11189_s7 + $0x130c] ss:$16 sps:$4 sm:$0xff]  }
 0x36e   : > { %7487 = vmatpush1.bf16.msra.mxu0 %v10392_v38  ;;  %v10452_v38 = vld [vmem:[%s11189_s7 + $0x1108] ss:$16 sps:$4 sm:$0xff]  }
 0x36f   : > { %7528 = vmatpush1.bf16.msra.mxu1 %v10395_v6  ;;  %7488 = vmatprep.subr.bf16.mxu0 %v10400_v10  ;;  %v10455_v6 = vld [vmem:[%s11189_s7 + $0x1308] ss:$16 sps:$4 sm:$0xff]   ;;  %v10460_v10 = vld [vmem:[%s11189_s7 + $0x112c] ss:$16 sps:$4 sm:$0xff]  }
 0x370   : > { %7529 = vmatprep.subr.bf16.mxu1 %v10403_v11  ;;  %v10463_v11 = vld [vmem:[%s11189_s7 + $0x132c] ss:$16 sps:$4 sm:$0xff]  }
 0x372   : > { %7489 = vmatpush1.bf16.msra.mxu0 %v10398_v35  ;;  %v10458_v35 = vld [vmem:[%s11189_s7 + $0x1128] ss:$16 sps:$4 sm:$0xff]  }
 0x373   : > { %7530 = vmatpush1.bf16.msra.mxu1 %v10401_v12  ;;  %7540 = vmatprep.subr.bf16.mxu0 %v10406_v57  ;;  %v10461_v12 = vld [vmem:[%s11189_s7 + $0x1328] ss:$16 sps:$4 sm:$0xff]   ;;  %v10466_v57 = vld [vmem:[%s11189_s7 + $0x114c] ss:$16 sps:$4 sm:$0xff]  }
 0x374   : > { %7581 = vmatprep.subr.bf16.mxu1 %v10409_v14  ;;  %v10469_v14 = vld [vmem:[%s11189_s7 + $0x134c] ss:$16 sps:$4 sm:$0xff]  }
 0x375   : > { %7491 = vmatmul.mubr.bf16.vlgmr.msra.gmra.mrb[44].mxu0 %v11561_v60  ;;  %v10416_v60 = vld [vmem:[%s11189_s7 + $0x1048] ss:$16 sps:$4 sm:$0xff]  }
 0x376   : > { %7532 = vmatmul.mubr.bf16.vlgmr.msra.gmra.mrb[44].mxu1 %v11565_v61  ;;  %7541 = vmatpush1.bf16.msra.mxu0 %v10404_v15  ;;  %v10419_v61 = vld [vmem:[%s11189_s7 + $0x1248] ss:$16 sps:$4 sm:$0xff]  }
 0x377   : > { %7582 = vmatpush1.bf16.msra.mxu1 %v10407_v16  ;;  %7542 = vmatprep.subr.bf16.mxu0 %v10412_v19  ;;  %v10464_v15 = vld [vmem:[%s11189_s7 + $0x1148] ss:$16 sps:$4 sm:$0xff]   ;;  %v10472_v19 = vld [vmem:[%s11189_s7 + $0x116c] ss:$16 sps:$4 sm:$0xff]  }
 0x378   : > { %7583 = vmatprep.subr.bf16.mxu1 %v10415_v20  ;;  %7572 = vmatprep.mubr.bf16.mxu0 %v11576_v41  ;;  %v10425_v41 = vld [vmem:[%s11189_s7 + $0x1268] ss:$16 sps:$4 sm:$0xff]   ;;  %v10475_v20 = vld [vmem:[%s11189_s7 + $0x136c] ss:$16 sps:$4 sm:$0xff]  }
 0x379   : > { %7613 = vmatprep.mubr.bf16.mxu1 %v11580_v42  ;;  %v10430_v42 = vld [vmem:[%s11189_s7 + $0x108c] ss:$16 sps:$4 sm:$0xff]   ;;  %v10467_v16 = vld [vmem:[%s11189_s7 + $0x1348] ss:$16 sps:$4 sm:$0xff]  }
 0x37a   : > { %7543 = vmatpush1.bf16.msra.mxu0 %v10410_v13  ;;  %v10470_v13 = vld [vmem:[%s11189_s7 + $0x1168] ss:$16 sps:$4 sm:$0xff]  }
 0x37b   : > { %7584 = vmatpush1.bf16.msra.mxu1 %v10413_v21  ;;  %7544 = vmatprep.subr.bf16.mxu0 %v10418_v22  ;;  %v10473_v21 = vld [vmem:[%s11189_s7 + $0x1368] ss:$16 sps:$4 sm:$0xff]   ;;  %v10478_v22 = vld [vmem:[%s11189_s7 + $0x118c] ss:$16 sps:$4 sm:$0xff]  }
 0x37c   : > { %7585 = vmatprep.subr.bf16.mxu1 %v10421_v30  ;;  %v10481_v30 = vld [vmem:[%s11189_s7 + $0x138c] ss:$16 sps:$4 sm:$0xff]  }
 0x37e   : > { %7545 = vmatpush1.bf16.msra.mxu0 %v10416_v60  ;;  %v10476_v60 = vld [vmem:[%s11189_s7 + $0x1188] ss:$16 sps:$4 sm:$0xff]  }
 0x37f   : > { %7586 = vmatpush1.bf16.msra.mxu1 %v10419_v61  ;;  %7546 = vmatprep.subr.bf16.mxu0 %v10424_v43  ;;  %v10479_v61 = vld [vmem:[%s11189_s7 + $0x1388] ss:$16 sps:$4 sm:$0xff]   ;;  %v10484_v43 = vld [vmem:[%s11189_s7 + $0x11ac] ss:$16 sps:$4 sm:$0xff]  }
 0x380   : > { %7587 = vmatprep.subr.bf16.mxu1 %v10427_v63  ;;  %v10487_v63 = vld [vmem:[%s11189_s7 + $0x13ac] ss:$16 sps:$4 sm:$0xff]  }
 0x382   : > { %7547 = vmatpush1.bf16.msra.mxu0 %v10422_v54  ;;  %v10482_v54 = vld [vmem:[%s11189_s7 + $0x11a8] ss:$16 sps:$4 sm:$0xff]  }
 0x383   : > { %7588 = vmatpush1.bf16.msra.mxu1 %v10425_v41  ;;  %7548 = vmatprep.subr.bf16.mxu0 %v10430_v42  ;;  %v10485_v41 = vld [vmem:[%s11189_s7 + $0x13a8] ss:$16 sps:$4 sm:$0xff]   ;;  %v10490_v42 = vld [vmem:[%s11189_s7 + $0x11cc] ss:$16 sps:$4 sm:$0xff]  }
 0x384   : > { %7589 = vmatprep.subr.bf16.mxu1 %v10433_v0  ;;  %v10493_v0 = vld [vmem:[%s11189_s7 + $0x13cc] ss:$16 sps:$4 sm:$0xff]  }
 0x386   : > { %7549 = vmatpush1.bf16.msra.mxu0 %v10428_v32  ;;  %v10488_v32 = vld [vmem:[%s11189_s7 + $0x11c8] ss:$16 sps:$4 sm:$0xff]  }
 0x387   : > { %7590 = vmatpush1.bf16.msra.mxu1 %v10431_v36  ;;  %7550 = vmatprep.subr.bf16.mxu0 %v10436_v34  ;;  %v10491_v36 = vld [vmem:[%s11189_s7 + $0x13c8] ss:$16 sps:$4 sm:$0xff]   ;;  %v10496_v34 = vld [vmem:[%s11189_s7 + $0x11ec] ss:$16 sps:$4 sm:$0xff]  }
 0x388   : > { %7591 = vmatprep.subr.bf16.mxu1 %v10439_v55  ;;  %v7246_v39 = vpop.f32.mrb[32].mxu0  ;;  %v10499_v55 = vld [vmem:[%s11189_s7 + $0x13ec] ss:$16 sps:$4 sm:$0xff]  }
 0x389   : > { %v7287_v40 = vpop.f32.mrb[32].mxu1  ;;  %v7248_v56 = vpop.f32.mrb[33].mxu0 }
 0x38a   : > { %v12266_v52 = vadd.f32 %v7287_v40, %v7246_v39  ;;  %v7289_v45 = vpop.f32.mrb[33].mxu1  ;;  %v7250_v24 = vpop.f32.mrb[34].mxu0  ;;  %7551 = vmatpush1.bf16.msra.mxu0 %v10434_v29  ;;  %v10494_v29 = vld [vmem:[%s11189_s7 + $0x11e8] ss:$16 sps:$4 sm:$0xff]  }
 0x38b   : > { %v12268_v23 = vadd.f32 %v7289_v45, %v7248_v56  ;;  %v7291_v58 = vpop.f32.mrb[34].mxu1  ;;  %7592 = vmatpush1.bf16.msra.mxu1 %v10437_v31  ;;  %v7251_v17 = vpop.f32.mrb[35].mxu0  ;;  %7552 = vmatprep.subr.bf16.mxu0 %v10442_v48  ;;  %v10497_v31 = vld [vmem:[%s11189_s7 + $0x13e8] ss:$16 sps:$4 sm:$0xff]   ;;  %v10502_v48 = vld [vmem:[%s11189_s7 + $0x140c] ss:$16 sps:$4 sm:$0xff]  }
 0x38c   : > { %v7292_v18 = vpop.f32.mrb[35].mxu1  ;;  %7593 = vmatprep.subr.bf16.mxu1 %v10445_v33  ;;  %v10505_v33 = vld [vmem:[%s11189_s7 + $0x160c] ss:$16 sps:$4 sm:$0xff]   ;;  %v10500_v39 = vld [vmem:[%s11189_s7 + $0x1408] ss:$16 sps:$4 sm:$0xff]  }
 0x38d   : > { %v10503_v40 = vld [vmem:[%s11189_s7 + $0x1608] ss:$16 sps:$4 sm:$0xff]   ;;  %v10508_v56 = vld [vmem:[%s11189_s7 + $0x142c] ss:$16 sps:$4 sm:$0xff]  }
 0x38e   : > { %7553 = vmatpush1.bf16.msra.mxu0 %v10440_v7  ;;  %v10511_v45 = vld [vmem:[%s11189_s7 + $0x162c] ss:$16 sps:$4 sm:$0xff]   ;;  %v10506_v24 = vld [vmem:[%s11189_s7 + $0x1428] ss:$16 sps:$4 sm:$0xff]  }
 0x38f   : > { %7594 = vmatpush1.bf16.msra.mxu1 %v10443_v8  ;;  %7554 = vmatprep.subr.bf16.mxu0 %v10448_v1  ;;  %v10509_v58 = vld [vmem:[%s11189_s7 + $0x1628] ss:$16 sps:$4 sm:$0xff]   ;;  %v10514_v7 = vld [vmem:[%s11189_s7 + $0x144c] ss:$16 sps:$4 sm:$0xff]  }
 0x390   : > { %7595 = vmatprep.subr.bf16.mxu1 %v10451_v2  ;;  %v10517_v8 = vld [vmem:[%s11189_s7 + $0x164c] ss:$16 sps:$4 sm:$0xff]   ;;  %v10518_v1 = vld [vmem:[%s11189_s7 + $0x1468] ss:$16 sps:$4 sm:$0xff]  }
 0x391   : > { %v10520_v17 = vld [vmem:[%s11189_s7 + $0x146c] ss:$16 sps:$4 sm:$0xff]  }
 0x392   : > { %7555 = vmatpush1.bf16.msra.mxu0 %v10446_v5  ;;  %v10523_v18 = vld [vmem:[%s11189_s7 + $0x166c] ss:$16 sps:$4 sm:$0xff]   ;;  %v10524_v5 = vld [vmem:[%s11189_s7 + $0x1488] ss:$16 sps:$4 sm:$0xff]  }
 0x393   : > { %7596 = vmatpush1.bf16.msra.mxu1 %v10449_v25  ;;  %7556 = vmatprep.subr.bf16.mxu0 %v10454_v26  ;;  %v10529_v2 = vld [vmem:[%s11189_s7 + $0x168c] ss:$16 sps:$4 sm:$0xff]   ;;  %v10527_v25 = vld [vmem:[%s11189_s7 + $0x1688] ss:$16 sps:$4 sm:$0xff]  }
 0x394   : > { %7597 = vmatprep.subr.bf16.mxu1 %v10457_v37  ;;  %v10532_v26 = vld [vmem:[%s11189_s7 + $0x14ac] ss:$16 sps:$4 sm:$0xff]  }
 0x395   : > { %v10535_v37 = vld [vmem:[%s11189_s7 + $0x16ac] ss:$16 sps:$4 sm:$0xff]  }
 0x396   : > { %7557 = vmatpush1.bf16.msra.mxu0 %v10452_v38  ;;  %v10530_v38 = vld [vmem:[%s11189_s7 + $0x14a8] ss:$16 sps:$4 sm:$0xff]  }
 0x397   : > { %7598 = vmatpush1.bf16.msra.mxu1 %v10455_v6  ;;  %7558 = vmatprep.subr.bf16.mxu0 %v10460_v10  ;;  %v10533_v6 = vld [vmem:[%s11189_s7 + $0x16a8] ss:$16 sps:$4 sm:$0xff]   ;;  %v10538_v10 = vld [vmem:[%s11189_s7 + $0x14cc] ss:$16 sps:$4 sm:$0xff]  }
 0x398   : > { %7599 = vmatprep.subr.bf16.mxu1 %v10463_v11  ;;  %v10541_v11 = vld [vmem:[%s11189_s7 + $0x16cc] ss:$16 sps:$4 sm:$0xff]  }
 0x39a   : > { %7559 = vmatpush1.bf16.msra.mxu0 %v10458_v35 }
 0x39b   : > { %7600 = vmatpush1.bf16.msra.mxu1 %v10461_v12  ;;  %7560 = vmatprep.subr.bf16.mxu0 %v10466_v57 }
 0x39c   : > { %7601 = vmatprep.subr.bf16.mxu1 %v10469_v14 }
 0x39e   : > { %7561 = vmatpush1.bf16.msra.mxu0 %v10464_v15 }
 0x39f   : > { %7602 = vmatpush1.bf16.msra.mxu1 %v10467_v16  ;;  %7562 = vmatprep.subr.bf16.mxu0 %v10472_v19 }
 0x3a0   : > { %7603 = vmatprep.subr.bf16.mxu1 %v10475_v20 }
 0x3a2   : > { %7563 = vmatpush1.bf16.msra.mxu0 %v10470_v13  ;;  %v10536_v13 = vld [vmem:[%s11189_s7 + $0x14c8] ss:$16 sps:$4 sm:$0xff]  }
 0x3a3   : > { %7604 = vmatpush1.bf16.msra.mxu1 %v10473_v21  ;;  %7564 = vmatprep.subr.bf16.mxu0 %v10478_v22  ;;  %v10539_v21 = vld [vmem:[%s11189_s7 + $0x16c8] ss:$16 sps:$4 sm:$0xff]  }
 0x3a4   : > { %7605 = vmatprep.subr.bf16.mxu1 %v10481_v30 }
 0x3a6   : > { %7565 = vmatpush1.bf16.msra.mxu0 %v10476_v60 }
 0x3a7   : > { %7606 = vmatpush1.bf16.msra.mxu1 %v10479_v61  ;;  %7566 = vmatprep.subr.bf16.mxu0 %v10484_v43  ;;  %v10542_v43 = vld [vmem:[%s11189_s7 + $0x14e8] ss:$16 sps:$4 sm:$0xff]  }
 0x3a8   : > { %7607 = vmatprep.subr.bf16.mxu1 %v10487_v63  ;;  %v10545_v63 = vld [vmem:[%s11189_s7 + $0x16e8] ss:$16 sps:$4 sm:$0xff]  }
 0x3aa   : > { %7567 = vmatpush1.bf16.msra.mxu0 %v10482_v54  ;;  %v10550_v54 = vld [vmem:[%s11189_s7 + $0x150c] ss:$16 sps:$4 sm:$0xff]  }
 0x3ab   : > { %7608 = vmatpush1.bf16.msra.mxu1 %v10485_v41  ;;  %7568 = vmatprep.subr.bf16.mxu0 %v10490_v42  ;;  %v10553_v41 = vld [vmem:[%s11189_s7 + $0x170c] ss:$16 sps:$4 sm:$0xff]   ;;  %v10548_v42 = vld [vmem:[%s11189_s7 + $0x1508] ss:$16 sps:$4 sm:$0xff]  }
 0x3ac   : > { %7609 = vmatprep.subr.bf16.mxu1 %v10493_v0  ;;  %v10551_v0 = vld [vmem:[%s11189_s7 + $0x1708] ss:$16 sps:$4 sm:$0xff]  }
 0x3ae   : > { %7569 = vmatpush1.bf16.msra.mxu0 %v10488_v32  ;;  %v10556_v32 = vld [vmem:[%s11189_s7 + $0x152c] ss:$16 sps:$4 sm:$0xff]  }
 0x3af   : > { %7610 = vmatpush1.bf16.msra.mxu1 %v10491_v36  ;;  %7570 = vmatprep.subr.bf16.mxu0 %v10496_v34  ;;  %v10559_v36 = vld [vmem:[%s11189_s7 + $0x172c] ss:$16 sps:$4 sm:$0xff]   ;;  %v10554_v34 = vld [vmem:[%s11189_s7 + $0x1528] ss:$16 sps:$4 sm:$0xff]  }
 0x3b0   : > { %7611 = vmatprep.subr.bf16.mxu1 %v10499_v55  ;;  %v10557_v55 = vld [vmem:[%s11189_s7 + $0x1728] ss:$16 sps:$4 sm:$0xff]  }
 0x3b2   : > { %7571 = vmatpush1.bf16.msra.mxu0 %v10494_v29  ;;  %v10562_v29 = vld [vmem:[%s11189_s7 + $0x154c] ss:$16 sps:$4 sm:$0xff]  }
 0x3b3   : > { %7612 = vmatpush1.bf16.msra.mxu1 %v10497_v31  ;;  %7622 = vmatprep.subr.bf16.mxu0 %v10502_v48  ;;  %v10565_v31 = vld [vmem:[%s11189_s7 + $0x174c] ss:$16 sps:$4 sm:$0xff]   ;;  %v10560_v48 = vld [vmem:[%s11189_s7 + $0x1548] ss:$16 sps:$4 sm:$0xff]  }
 0x3b4   : > { %7663 = vmatprep.subr.bf16.mxu1 %v10505_v33  ;;  %v10563_v33 = vld [vmem:[%s11189_s7 + $0x1748] ss:$16 sps:$4 sm:$0xff]  }
 0x3b5   : > { %7573 = vmatmul.mubr.bf16.vlgmr.msra.gmra.mrb[48].mxu0 %v11654_v47  ;;  %v10512_v47 = vld [vmem:[%s11189_s7 + $0x1448] ss:$16 sps:$4 sm:$0xff]  }
 0x3b6   : > { %7614 = vmatmul.mubr.bf16.vlgmr.msra.gmra.mrb[48].mxu1 %v11658_v49  ;;  %7623 = vmatpush1.bf16.msra.mxu0 %v10500_v39  ;;  %v10515_v49 = vld [vmem:[%s11189_s7 + $0x1648] ss:$16 sps:$4 sm:$0xff]   ;;  %v10568_v39 = vld [vmem:[%s11189_s7 + $0x156c] ss:$16 sps:$4 sm:$0xff]  }
 0x3b7   : > { %7664 = vmatpush1.bf16.msra.mxu1 %v10503_v40  ;;  %7624 = vmatprep.subr.bf16.mxu0 %v10508_v56  ;;  %v10571_v40 = vld [vmem:[%s11189_s7 + $0x176c] ss:$16 sps:$4 sm:$0xff]   ;;  %v10566_v56 = vld [vmem:[%s11189_s7 + $0x1568] ss:$16 sps:$4 sm:$0xff]  }
 0x3b8   : > { %7665 = vmatprep.subr.bf16.mxu1 %v10511_v45  ;;  %7654 = vmatprep.mubr.bf16.mxu0 %v11670_v59  ;;  %v10521_v59 = vld [vmem:[%s11189_s7 + $0x1668] ss:$16 sps:$4 sm:$0xff]  }
 0x3b9   : > { %7695 = vmatprep.mubr.bf16.mxu1 %v11674_v62  ;;  %v10526_v62 = vld [vmem:[%s11189_s7 + $0x148c] ss:$16 sps:$4 sm:$0xff]   ;;  %v10569_v45 = vld [vmem:[%s11189_s7 + $0x1768] ss:$16 sps:$4 sm:$0xff]  }
 0x3ba   : > { %7625 = vmatpush1.bf16.msra.mxu0 %v10506_v24  ;;  %v10574_v24 = vld [vmem:[%s11189_s7 + $0x158c] ss:$16 sps:$4 sm:$0xff]  }
 0x3bb   : > { %7666 = vmatpush1.bf16.msra.mxu1 %v10509_v58  ;;  %7626 = vmatprep.subr.bf16.mxu0 %v10514_v7  ;;  %v10577_v58 = vld [vmem:[%s11189_s7 + $0x178c] ss:$16 sps:$4 sm:$0xff]   ;;  %v10572_v7 = vld [vmem:[%s11189_s7 + $0x1588] ss:$16 sps:$4 sm:$0xff]  }
 0x3bc   : > { %7667 = vmatprep.subr.bf16.mxu1 %v10517_v8  ;;  %v10575_v8 = vld [vmem:[%s11189_s7 + $0x1788] ss:$16 sps:$4 sm:$0xff]  }
 0x3be   : > { %7627 = vmatpush1.bf16.msra.mxu0 %v10512_v47  ;;  %v10580_v47 = vld [vmem:[%s11189_s7 + $0x15ac] ss:$16 sps:$4 sm:$0xff]  }
 0x3bf   : > { %7668 = vmatpush1.bf16.msra.mxu1 %v10515_v49  ;;  %7628 = vmatprep.subr.bf16.mxu0 %v10520_v17  ;;  %v10583_v49 = vld [vmem:[%s11189_s7 + $0x17ac] ss:$16 sps:$4 sm:$0xff]   ;;  %v10578_v17 = vld [vmem:[%s11189_s7 + $0x15a8] ss:$16 sps:$4 sm:$0xff]  }
 0x3c0   : > { %7669 = vmatprep.subr.bf16.mxu1 %v10523_v18  ;;  %v10581_v18 = vld [vmem:[%s11189_s7 + $0x17a8] ss:$16 sps:$4 sm:$0xff]  }
 0x3c2   : > { %7629 = vmatpush1.bf16.msra.mxu0 %v10518_v1  ;;  %v10586_v1 = vld [vmem:[%s11189_s7 + $0x15cc] ss:$16 sps:$4 sm:$0xff]  }
 0x3c3   : > { %7670 = vmatpush1.bf16.msra.mxu1 %v10521_v59  ;;  %7630 = vmatprep.subr.bf16.mxu0 %v10526_v62  ;;  %v10589_v59 = vld [vmem:[%s11189_s7 + $0x17cc] ss:$16 sps:$4 sm:$0xff]   ;;  %v10584_v62 = vld [vmem:[%s11189_s7 + $0x15c8] ss:$16 sps:$4 sm:$0xff]  }
 0x3c4   : > { %7671 = vmatprep.subr.bf16.mxu1 %v10529_v2  ;;  %v10587_v2 = vld [vmem:[%s11189_s7 + $0x17c8] ss:$16 sps:$4 sm:$0xff]  }
 0x3c6   : > { %7631 = vmatpush1.bf16.msra.mxu0 %v10524_v5  ;;  %v10592_v5 = vld [vmem:[%s11189_s7 + $0x15ec] ss:$16 sps:$4 sm:$0xff]  }
 0x3c7   : > { %7672 = vmatpush1.bf16.msra.mxu1 %v10527_v25  ;;  %7632 = vmatprep.subr.bf16.mxu0 %v10532_v26  ;;  %v10595_v25 = vld [vmem:[%s11189_s7 + $0x17ec] ss:$16 sps:$4 sm:$0xff]   ;;  %v10590_v26 = vld [vmem:[%s11189_s7 + $0x15e8] ss:$16 sps:$4 sm:$0xff]  }
 0x3c8   : > { %7673 = vmatprep.subr.bf16.mxu1 %v10535_v37  ;;  %v7328_v35 = vpop.f32.mrb[36].mxu0  ;;  %v10593_v37 = vld [vmem:[%s11189_s7 + $0x17e8] ss:$16 sps:$4 sm:$0xff]  }
 0x3c9   : > { %v7369_v12 = vpop.f32.mrb[36].mxu1  ;;  %v7329_v57 = vadd.f32 %v7328_v35, %v12266_v52  ;;  %v7330_v14 = vpop.f32.mrb[37].mxu0  ;;  %v10544_v52 = vld [vmem:[%s11189_s7 + $0x14ec] ss:$16 sps:$4 sm:$0xff]  }
 0x3ca   : > { %v7371_v15 = vpop.f32.mrb[37].mxu1  ;;  %v7331_v16 = vadd.f32 %v7330_v14, %v12268_v23  ;;  %v7332_v19 = vpop.f32.mrb[38].mxu0  ;;  %7633 = vmatpush1.bf16.msra.mxu0 %v10530_v38  ;;  %v10547_v23 = vld [vmem:[%s11189_s7 + $0x16ec] ss:$16 sps:$4 sm:$0xff]   ;;  %v10605_v14 = vld [vmem:[%s11189_s7 + $0x1a28] ss:$16 sps:$4 sm:$0xff]  }
 0x3cb   : > { %v7373_v20 = vpop.f32.mrb[38].mxu1  ;;  %7674 = vmatpush1.bf16.msra.mxu1 %v10533_v6  ;;  %v12342_v22 = vadd.f32 %v7369_v12, %v7329_v57  ;;  %v7333_v30 = vpop.f32.mrb[39].mxu0  ;;  %7634 = vmatprep.subr.bf16.mxu0 %v10538_v10  ;;  %v10598_v38 = vld [vmem:[%s11189_s7 + $0x180c] ss:$16 sps:$4 sm:$0xff]   ;;  %v10596_v10 = vld [vmem:[%s11189_s7 + $0x1808] ss:$16 sps:$4 sm:$0xff]  }
 0x3cc   : > { %v7374_v60 = vpop.f32.mrb[39].mxu1  ;;  %7675 = vmatprep.subr.bf16.mxu1 %v10541_v11  ;;  %v12346_v61 = vadd.f32 %v7371_v15, %v7331_v16  ;;  %v10601_v6 = vld [vmem:[%s11189_s7 + $0x1a0c] ss:$16 sps:$4 sm:$0xff]   ;;  %v10599_v11 = vld [vmem:[%s11189_s7 + $0x1a08] ss:$16 sps:$4 sm:$0xff]  }
 0x3cd   : > { %v10604_v35 = vld [vmem:[%s11189_s7 + $0x182c] ss:$16 sps:$4 sm:$0xff]   ;;  %v10602_v57 = vld [vmem:[%s11189_s7 + $0x1828] ss:$16 sps:$4 sm:$0xff]  }
 0x3ce   : > { %7635 = vmatpush1.bf16.msra.mxu0 %v10536_v13  ;;  %v10607_v12 = vld [vmem:[%s11189_s7 + $0x1a2c] ss:$16 sps:$4 sm:$0xff]   ;;  %v10614_v13 = vld [vmem:[%s11189_s7 + $0x1868] ss:$16 sps:$4 sm:$0xff]  }
 0x3cf   : > { %7676 = vmatpush1.bf16.msra.mxu1 %v10539_v21  ;;  %7636 = vmatprep.subr.bf16.mxu0 %v10544_v52  ;;  %v10610_v15 = vld [vmem:[%s11189_s7 + $0x184c] ss:$16 sps:$4 sm:$0xff]   ;;  %v10620_v30 = vld [vmem:[%s11189_s7 + $0x1888] ss:$16 sps:$4 sm:$0xff]  }
 0x3d0   : > { %7677 = vmatprep.subr.bf16.mxu1 %v10547_v23  ;;  %v10613_v16 = vld [vmem:[%s11189_s7 + $0x1a4c] ss:$16 sps:$4 sm:$0xff]   ;;  %v10623_v60 = vld [vmem:[%s11189_s7 + $0x1a88] ss:$16 sps:$4 sm:$0xff]  }
 0x3d1   : > { %v10616_v19 = vld [vmem:[%s11189_s7 + $0x186c] ss:$16 sps:$4 sm:$0xff]  }
 0x3d2   : > { %7637 = vmatpush1.bf16.msra.mxu0 %v10542_v43  ;;  %v10619_v20 = vld [vmem:[%s11189_s7 + $0x1a6c] ss:$16 sps:$4 sm:$0xff]   ;;  %v10626_v43 = vld [vmem:[%s11189_s7 + $0x18a8] ss:$16 sps:$4 sm:$0xff]  }
 0x3d3   : > { %7678 = vmatpush1.bf16.msra.mxu1 %v10545_v63  ;;  %7638 = vmatprep.subr.bf16.mxu0 %v10550_v54  ;;  %v10625_v21 = vld [vmem:[%s11189_s7 + $0x1a8c] ss:$16 sps:$4 sm:$0xff]   ;;  %v10629_v63 = vld [vmem:[%s11189_s7 + $0x1aa8] ss:$16 sps:$4 sm:$0xff]  }
 0x3d4   : > { %7679 = vmatprep.subr.bf16.mxu1 %v10553_v41  ;;  %v10628_v52 = vld [vmem:[%s11189_s7 + $0x18ac] ss:$16 sps:$4 sm:$0xff]  }
 0x3d5   : > { %v10631_v23 = vld [vmem:[%s11189_s7 + $0x1aac] ss:$16 sps:$4 sm:$0xff]  }
 0x3d6   : > { %7639 = vmatpush1.bf16.msra.mxu0 %v10548_v42  ;;  %v10634_v54 = vld [vmem:[%s11189_s7 + $0x18cc] ss:$16 sps:$4 sm:$0xff]  }
 0x3d7   : > { %7680 = vmatpush1.bf16.msra.mxu1 %v10551_v0  ;;  %7640 = vmatprep.subr.bf16.mxu0 %v10556_v32  ;;  %v10637_v41 = vld [vmem:[%s11189_s7 + $0x1acc] ss:$16 sps:$4 sm:$0xff]  }
 0x3d8   : > { %7681 = vmatprep.subr.bf16.mxu1 %v10559_v36 }
 0x3da   : > { %7641 = vmatpush1.bf16.msra.mxu0 %v10554_v34 }
 0x3db   : > { %7682 = vmatpush1.bf16.msra.mxu1 %v10557_v55  ;;  %7642 = vmatprep.subr.bf16.mxu0 %v10562_v29 }
 0x3dc   : > { %7683 = vmatprep.subr.bf16.mxu1 %v10565_v31 }
 0x3de   : > { %7643 = vmatpush1.bf16.msra.mxu0 %v10560_v48  ;;  %v10632_v48 = vld [vmem:[%s11189_s7 + $0x18c8] ss:$16 sps:$4 sm:$0xff]  }
 0x3df   : > { %7684 = vmatpush1.bf16.msra.mxu1 %v10563_v33  ;;  %7644 = vmatprep.subr.bf16.mxu0 %v10568_v39  ;;  %v10635_v33 = vld [vmem:[%s11189_s7 + $0x1ac8] ss:$16 sps:$4 sm:$0xff]  }
 0x3e0   : > { %7685 = vmatprep.subr.bf16.mxu1 %v10571_v40 }
 0x3e2   : > { %7645 = vmatpush1.bf16.msra.mxu0 %v10566_v56 }
 0x3e3   : > { %7686 = vmatpush1.bf16.msra.mxu1 %v10569_v45  ;;  %7646 = vmatprep.subr.bf16.mxu0 %v10574_v24  ;;  %v10638_v24 = vld [vmem:[%s11189_s7 + $0x18e8] ss:$16 sps:$4 sm:$0xff]  }
 0x3e4   : > { %7687 = vmatprep.subr.bf16.mxu1 %v10577_v58  ;;  %v10641_v58 = vld [vmem:[%s11189_s7 + $0x1ae8] ss:$16 sps:$4 sm:$0xff]  }
 0x3e6   : > { %7647 = vmatpush1.bf16.msra.mxu0 %v10572_v7  ;;  %v10646_v7 = vld [vmem:[%s11189_s7 + $0x190c] ss:$16 sps:$4 sm:$0xff]  }
 0x3e7   : > { %7688 = vmatpush1.bf16.msra.mxu1 %v10575_v8  ;;  %7648 = vmatprep.subr.bf16.mxu0 %v10580_v47  ;;  %v10649_v8 = vld [vmem:[%s11189_s7 + $0x1b0c] ss:$16 sps:$4 sm:$0xff]   ;;  %v10644_v47 = vld [vmem:[%s11189_s7 + $0x1908] ss:$16 sps:$4 sm:$0xff]  }
 0x3e8   : > { %7689 = vmatprep.subr.bf16.mxu1 %v10583_v49  ;;  %v10647_v49 = vld [vmem:[%s11189_s7 + $0x1b08] ss:$16 sps:$4 sm:$0xff]  }
 0x3ea   : > { %7649 = vmatpush1.bf16.msra.mxu0 %v10578_v17  ;;  %v10652_v17 = vld [vmem:[%s11189_s7 + $0x192c] ss:$16 sps:$4 sm:$0xff]  }
 0x3eb   : > { %7690 = vmatpush1.bf16.msra.mxu1 %v10581_v18  ;;  %7650 = vmatprep.subr.bf16.mxu0 %v10586_v1  ;;  %v10655_v18 = vld [vmem:[%s11189_s7 + $0x1b2c] ss:$16 sps:$4 sm:$0xff]   ;;  %v10650_v1 = vld [vmem:[%s11189_s7 + $0x1928] ss:$16 sps:$4 sm:$0xff]  }
 0x3ec   : > { %7691 = vmatprep.subr.bf16.mxu1 %v10589_v59  ;;  %v10653_v59 = vld [vmem:[%s11189_s7 + $0x1b28] ss:$16 sps:$4 sm:$0xff]  }
 0x3ee   : > { %7651 = vmatpush1.bf16.msra.mxu0 %v10584_v62  ;;  %v10658_v62 = vld [vmem:[%s11189_s7 + $0x194c] ss:$16 sps:$4 sm:$0xff]  }
 0x3ef   : > { %7692 = vmatpush1.bf16.msra.mxu1 %v10587_v2  ;;  %7652 = vmatprep.subr.bf16.mxu0 %v10592_v5  ;;  %v10661_v2 = vld [vmem:[%s11189_s7 + $0x1b4c] ss:$16 sps:$4 sm:$0xff]   ;;  %v10656_v5 = vld [vmem:[%s11189_s7 + $0x1948] ss:$16 sps:$4 sm:$0xff]  }
 0x3f0   : > { %7693 = vmatprep.subr.bf16.mxu1 %v10595_v25  ;;  %v10659_v25 = vld [vmem:[%s11189_s7 + $0x1b48] ss:$16 sps:$4 sm:$0xff]  }
 0x3f2   : > { %7653 = vmatpush1.bf16.msra.mxu0 %v10590_v26  ;;  %v10664_v26 = vld [vmem:[%s11189_s7 + $0x196c] ss:$16 sps:$4 sm:$0xff]  }
 0x3f3   : > { %7694 = vmatpush1.bf16.msra.mxu1 %v10593_v37  ;;  %7704 = vmatprep.subr.bf16.mxu0 %v10598_v38  ;;  %v10667_v37 = vld [vmem:[%s11189_s7 + $0x1b6c] ss:$16 sps:$4 sm:$0xff]   ;;  %v10662_v38 = vld [vmem:[%s11189_s7 + $0x1968] ss:$16 sps:$4 sm:$0xff]  }
 0x3f4   : > { %7745 = vmatprep.subr.bf16.mxu1 %v10601_v6  ;;  %v10665_v6 = vld [vmem:[%s11189_s7 + $0x1b68] ss:$16 sps:$4 sm:$0xff]  }
 0x3f5   : > { %7655 = vmatmul.mubr.bf16.vlgmr.msra.gmra.mrb[52].mxu0 %v11750_v44  ;;  %v10608_v44 = vld [vmem:[%s11189_s7 + $0x1848] ss:$16 sps:$4 sm:$0xff]  }
 0x3f6   : > { %7696 = vmatmul.mubr.bf16.vlgmr.msra.gmra.mrb[52].mxu1 %v11754_v46  ;;  %7705 = vmatpush1.bf16.msra.mxu0 %v10596_v10  ;;  %v10611_v46 = vld [vmem:[%s11189_s7 + $0x1a48] ss:$16 sps:$4 sm:$0xff]   ;;  %v10670_v10 = vld [vmem:[%s11189_s7 + $0x198c] ss:$16 sps:$4 sm:$0xff]  }
 0x3f7   : > { %7746 = vmatpush1.bf16.msra.mxu1 %v10599_v11  ;;  %7706 = vmatprep.subr.bf16.mxu0 %v10604_v35  ;;  %v10673_v11 = vld [vmem:[%s11189_s7 + $0x1b8c] ss:$16 sps:$4 sm:$0xff]   ;;  %v10668_v35 = vld [vmem:[%s11189_s7 + $0x1988] ss:$16 sps:$4 sm:$0xff]  }
 0x3f8   : > { %7747 = vmatprep.subr.bf16.mxu1 %v10607_v12  ;;  %7736 = vmatprep.mubr.bf16.mxu0 %v11766_v50  ;;  %v10617_v50 = vld [vmem:[%s11189_s7 + $0x1a68] ss:$16 sps:$4 sm:$0xff]  }
 0x3f9   : > { %7777 = vmatprep.mubr.bf16.mxu1 %v11770_v51  ;;  %v10622_v51 = vld [vmem:[%s11189_s7 + $0x188c] ss:$16 sps:$4 sm:$0xff]   ;;  %v10671_v12 = vld [vmem:[%s11189_s7 + $0x1b88] ss:$16 sps:$4 sm:$0xff]  }
 0x3fa   : > { %7707 = vmatpush1.bf16.msra.mxu0 %v10602_v57  ;;  %v10676_v57 = vld [vmem:[%s11189_s7 + $0x19ac] ss:$16 sps:$4 sm:$0xff]  }
 0x3fb   : > { %7748 = vmatpush1.bf16.msra.mxu1 %v10605_v14  ;;  %7708 = vmatprep.subr.bf16.mxu0 %v10610_v15  ;;  %v10679_v14 = vld [vmem:[%s11189_s7 + $0x1bac] ss:$16 sps:$4 sm:$0xff]   ;;  %v10674_v15 = vld [vmem:[%s11189_s7 + $0x19a8] ss:$16 sps:$4 sm:$0xff]  }
 0x3fc   : > { %7749 = vmatprep.subr.bf16.mxu1 %v10613_v16  ;;  %v10677_v16 = vld [vmem:[%s11189_s7 + $0x1ba8] ss:$16 sps:$4 sm:$0xff]  }
 0x3fe   : > { %7709 = vmatpush1.bf16.msra.mxu0 %v10608_v44  ;;  %v10682_v44 = vld [vmem:[%s11189_s7 + $0x19cc] ss:$16 sps:$4 sm:$0xff]  }
 0x3ff   : > { %7750 = vmatpush1.bf16.msra.mxu1 %v10611_v46  ;;  %7710 = vmatprep.subr.bf16.mxu0 %v10616_v19  ;;  %v10685_v46 = vld [vmem:[%s11189_s7 + $0x1bcc] ss:$16 sps:$4 sm:$0xff]   ;;  %v10680_v19 = vld [vmem:[%s11189_s7 + $0x19c8] ss:$16 sps:$4 sm:$0xff]  }
 0x400   : > { %7751 = vmatprep.subr.bf16.mxu1 %v10619_v20  ;;  %v10683_v20 = vld [vmem:[%s11189_s7 + $0x1bc8] ss:$16 sps:$4 sm:$0xff]  }
 0x402   : > { %7711 = vmatpush1.bf16.msra.mxu0 %v10614_v13  ;;  %v10688_v13 = vld [vmem:[%s11189_s7 + $0x19ec] ss:$16 sps:$4 sm:$0xff]  }
 0x403   : > { %7752 = vmatpush1.bf16.msra.mxu1 %v10617_v50  ;;  %7712 = vmatprep.subr.bf16.mxu0 %v10622_v51  ;;  %v10691_v50 = vld [vmem:[%s11189_s7 + $0x1bec] ss:$16 sps:$4 sm:$0xff]   ;;  %v10686_v51 = vld [vmem:[%s11189_s7 + $0x19e8] ss:$16 sps:$4 sm:$0xff]  }
 0x404   : > { %7753 = vmatprep.subr.bf16.mxu1 %v10625_v21  ;;  %v10689_v21 = vld [vmem:[%s11189_s7 + $0x1be8] ss:$16 sps:$4 sm:$0xff]  }
 0x406   : > { %7713 = vmatpush1.bf16.msra.mxu0 %v10620_v30  ;;  %v10694_v30 = vld [vmem:[%s11189_s7 + $0x1c0c] ss:$16 sps:$4 sm:$0xff]  }
 0x407   : > { %7754 = vmatpush1.bf16.msra.mxu1 %v10623_v60  ;;  %7714 = vmatprep.subr.bf16.mxu0 %v10628_v52  ;;  %v10697_v60 = vld [vmem:[%s11189_s7 + $0x1e0c] ss:$16 sps:$4 sm:$0xff]   ;;  %v10692_v52 = vld [vmem:[%s11189_s7 + $0x1c08] ss:$16 sps:$4 sm:$0xff]  }
 0x408   : > { %7755 = vmatprep.subr.bf16.mxu1 %v10631_v23  ;;  %v7410_v42 = vpop.f32.mrb[40].mxu0  ;;  %v10695_v23 = vld [vmem:[%s11189_s7 + $0x1e08] ss:$16 sps:$4 sm:$0xff]  }
 0x409   : > { %v7451_v0 = vpop.f32.mrb[40].mxu1  ;;  %v7411_v32 = vadd.f32 %v7410_v42, %v12342_v22  ;;  %v7412_v36 = vpop.f32.mrb[41].mxu0  ;;  %v10640_v22 = vld [vmem:[%s11189_s7 + $0x18ec] ss:$16 sps:$4 sm:$0xff]  }
 0x40a   : > { %v7453_v34 = vpop.f32.mrb[41].mxu1  ;;  %v7413_v55 = vadd.f32 %v7412_v36, %v12346_v61  ;;  %v7414_v29 = vpop.f32.mrb[42].mxu0  ;;  %7715 = vmatpush1.bf16.msra.mxu0 %v10626_v43  ;;  %v10643_v61 = vld [vmem:[%s11189_s7 + $0x1aec] ss:$16 sps:$4 sm:$0xff]  }
 0x40b   : > { %v7455_v31 = vpop.f32.mrb[42].mxu1  ;;  %7756 = vmatpush1.bf16.msra.mxu1 %v10629_v63  ;;  %v12416_v39 = vadd.f32 %v7451_v0, %v7411_v32  ;;  %v7415_v40 = vpop.f32.mrb[43].mxu0  ;;  %7716 = vmatprep.subr.bf16.mxu0 %v10634_v54  ;;  %v10700_v43 = vld [vmem:[%s11189_s7 + $0x1c2c] ss:$16 sps:$4 sm:$0xff]   ;;  %v10698_v54 = vld [vmem:[%s11189_s7 + $0x1c28] ss:$16 sps:$4 sm:$0xff]  }
 0x40c   : > { %v7456_v56 = vpop.f32.mrb[43].mxu1  ;;  %7757 = vmatprep.subr.bf16.mxu1 %v10637_v41  ;;  %v12420_v45 = vadd.f32 %v7453_v34, %v7413_v55  ;;  %v10703_v63 = vld [vmem:[%s11189_s7 + $0x1e2c] ss:$16 sps:$4 sm:$0xff]   ;;  %v10701_v41 = vld [vmem:[%s11189_s7 + $0x1e28] ss:$16 sps:$4 sm:$0xff]  }
 0x40d   : > { %v10706_v42 = vld [vmem:[%s11189_s7 + $0x1c4c] ss:$16 sps:$4 sm:$0xff]   ;;  %v10710_v34 = vld [vmem:[%s11189_s7 + $0x1c68] ss:$16 sps:$4 sm:$0xff]  }
 0x40e   : > { %7717 = vmatpush1.bf16.msra.mxu0 %v10632_v48  ;;  %v10709_v0 = vld [vmem:[%s11189_s7 + $0x1e4c] ss:$16 sps:$4 sm:$0xff]   ;;  %v10716_v29 = vld [vmem:[%s11189_s7 + $0x1c88] ss:$16 sps:$4 sm:$0xff]  }
 0x40f   : > { %7758 = vmatpush1.bf16.msra.mxu1 %v10635_v33  ;;  %7718 = vmatprep.subr.bf16.mxu0 %v10640_v22  ;;  %v10712_v32 = vld [vmem:[%s11189_s7 + $0x1c6c] ss:$16 sps:$4 sm:$0xff]   ;;  %v10719_v31 = vld [vmem:[%s11189_s7 + $0x1e88] ss:$16 sps:$4 sm:$0xff]  }
 0x410   : > { %7759 = vmatprep.subr.bf16.mxu1 %v10643_v61  ;;  %v10715_v36 = vld [vmem:[%s11189_s7 + $0x1e6c] ss:$16 sps:$4 sm:$0xff]   ;;  %v10722_v40 = vld [vmem:[%s11189_s7 + $0x1ca8] ss:$16 sps:$4 sm:$0xff]  }
 0x411   : > { %v10721_v55 = vld [vmem:[%s11189_s7 + $0x1e8c] ss:$16 sps:$4 sm:$0xff]   ;;  %v10725_v56 = vld [vmem:[%s11189_s7 + $0x1ea8] ss:$16 sps:$4 sm:$0xff]  }
 0x412   : > { %7719 = vmatpush1.bf16.msra.mxu0 %v10638_v24  ;;  %v10724_v48 = vld [vmem:[%s11189_s7 + $0x1cac] ss:$16 sps:$4 sm:$0xff]  }
 0x413   : > { %7760 = vmatpush1.bf16.msra.mxu1 %v10641_v58  ;;  %7720 = vmatprep.subr.bf16.mxu0 %v10646_v7  ;;  %v10727_v33 = vld [vmem:[%s11189_s7 + $0x1eac] ss:$16 sps:$4 sm:$0xff]  }
 0x414   : > { %7761 = vmatprep.subr.bf16.mxu1 %v10649_v8  ;;  %v10730_v22 = vld [vmem:[%s11189_s7 + $0x1ccc] ss:$16 sps:$4 sm:$0xff]  }
 0x415   : > { %v10733_v61 = vld [vmem:[%s11189_s7 + $0x1ecc] ss:$16 sps:$4 sm:$0xff]  }
 0x416   : > { %7721 = vmatpush1.bf16.msra.mxu0 %v10644_v47 }
 0x417   : > { %7762 = vmatpush1.bf16.msra.mxu1 %v10647_v49  ;;  %7722 = vmatprep.subr.bf16.mxu0 %v10652_v17 }
 0x418   : > { %7763 = vmatprep.subr.bf16.mxu1 %v10655_v18 }
 0x41a   : > { %7723 = vmatpush1.bf16.msra.mxu0 %v10650_v1  ;;  %v10728_v1 = vld [vmem:[%s11189_s7 + $0x1cc8] ss:$16 sps:$4 sm:$0xff]  }
 0x41b   : > { %7764 = vmatpush1.bf16.msra.mxu1 %v10653_v59  ;;  %7724 = vmatprep.subr.bf16.mxu0 %v10658_v62  ;;  %v10731_v59 = vld [vmem:[%s11189_s7 + $0x1ec8] ss:$16 sps:$4 sm:$0xff]  }
 0x41c   : > { %7765 = vmatprep.subr.bf16.mxu1 %v10661_v2 }
 0x41e   : > { %7725 = vmatpush1.bf16.msra.mxu0 %v10656_v5 }
 0x41f   : > { %7766 = vmatpush1.bf16.msra.mxu1 %v10659_v25  ;;  %7726 = vmatprep.subr.bf16.mxu0 %v10664_v26  ;;  %v10734_v26 = vld [vmem:[%s11189_s7 + $0x1ce8] ss:$16 sps:$4 sm:$0xff]  }
 0x420   : > { %7767 = vmatprep.subr.bf16.mxu1 %v10667_v37  ;;  %v10737_v37 = vld [vmem:[%s11189_s7 + $0x1ee8] ss:$16 sps:$4 sm:$0xff]  }
 0x422   : > { %7727 = vmatpush1.bf16.msra.mxu0 %v10662_v38  ;;  %v10742_v38 = vld [vmem:[%s11189_s7 + $0x1d0c] ss:$16 sps:$4 sm:$0xff]  }
 0x423   : > { %7768 = vmatpush1.bf16.msra.mxu1 %v10665_v6  ;;  %7728 = vmatprep.subr.bf16.mxu0 %v10670_v10  ;;  %v10745_v6 = vld [vmem:[%s11189_s7 + $0x1f0c] ss:$16 sps:$4 sm:$0xff]   ;;  %v10740_v10 = vld [vmem:[%s11189_s7 + $0x1d08] ss:$16 sps:$4 sm:$0xff]  }
 0x424   : > { %7769 = vmatprep.subr.bf16.mxu1 %v10673_v11  ;;  %v10743_v11 = vld [vmem:[%s11189_s7 + $0x1f08] ss:$16 sps:$4 sm:$0xff]  }
 0x426   : > { %7729 = vmatpush1.bf16.msra.mxu0 %v10668_v35  ;;  %v10748_v35 = vld [vmem:[%s11189_s7 + $0x1d2c] ss:$16 sps:$4 sm:$0xff]  }
 0x427   : > { %7770 = vmatpush1.bf16.msra.mxu1 %v10671_v12  ;;  %7730 = vmatprep.subr.bf16.mxu0 %v10676_v57  ;;  %v10751_v12 = vld [vmem:[%s11189_s7 + $0x1f2c] ss:$16 sps:$4 sm:$0xff]   ;;  %v10746_v57 = vld [vmem:[%s11189_s7 + $0x1d28] ss:$16 sps:$4 sm:$0xff]  }
 0x428   : > { %7771 = vmatprep.subr.bf16.mxu1 %v10679_v14  ;;  %v10749_v14 = vld [vmem:[%s11189_s7 + $0x1f28] ss:$16 sps:$4 sm:$0xff]  }
 0x42a   : > { %7731 = vmatpush1.bf16.msra.mxu0 %v10674_v15  ;;  %v10754_v15 = vld [vmem:[%s11189_s7 + $0x1d4c] ss:$16 sps:$4 sm:$0xff]  }
 0x42b   : > { %7772 = vmatpush1.bf16.msra.mxu1 %v10677_v16  ;;  %7732 = vmatprep.subr.bf16.mxu0 %v10682_v44  ;;  %v10757_v16 = vld [vmem:[%s11189_s7 + $0x1f4c] ss:$16 sps:$4 sm:$0xff]   ;;  %v10752_v44 = vld [vmem:[%s11189_s7 + $0x1d48] ss:$16 sps:$4 sm:$0xff]  }
 0x42c   : > { %7773 = vmatprep.subr.bf16.mxu1 %v10685_v46  ;;  %v10755_v46 = vld [vmem:[%s11189_s7 + $0x1f48] ss:$16 sps:$4 sm:$0xff]  }
 0x42e   : > { %7733 = vmatpush1.bf16.msra.mxu0 %v10680_v19  ;;  %v10760_v19 = vld [vmem:[%s11189_s7 + $0x1d6c] ss:$16 sps:$4 sm:$0xff]  }
 0x42f   : > { %7774 = vmatpush1.bf16.msra.mxu1 %v10683_v20  ;;  %7734 = vmatprep.subr.bf16.mxu0 %v10688_v13  ;;  %v10763_v20 = vld [vmem:[%s11189_s7 + $0x1f6c] ss:$16 sps:$4 sm:$0xff]   ;;  %v10758_v13 = vld [vmem:[%s11189_s7 + $0x1d68] ss:$16 sps:$4 sm:$0xff]  }
 0x430   : > { %7775 = vmatprep.subr.bf16.mxu1 %v10691_v50  ;;  %v10761_v50 = vld [vmem:[%s11189_s7 + $0x1f68] ss:$16 sps:$4 sm:$0xff]  }
 0x432   : > { %7735 = vmatpush1.bf16.msra.mxu0 %v10686_v51  ;;  %v10766_v51 = vld [vmem:[%s11189_s7 + $0x1d8c] ss:$16 sps:$4 sm:$0xff]  }
 0x433   : > { %7776 = vmatpush1.bf16.msra.mxu1 %v10689_v21  ;;  %7786 = vmatprep.subr.bf16.mxu0 %v10694_v30  ;;  %v10769_v21 = vld [vmem:[%s11189_s7 + $0x1f8c] ss:$16 sps:$4 sm:$0xff]   ;;  %v10764_v30 = vld [vmem:[%s11189_s7 + $0x1d88] ss:$16 sps:$4 sm:$0xff]  }
 0x434   : > { %7827 = vmatprep.subr.bf16.mxu1 %v10697_v60  ;;  %v10767_v60 = vld [vmem:[%s11189_s7 + $0x1f88] ss:$16 sps:$4 sm:$0xff]  }
 0x435   : > { %7737 = vmatmul.mubr.bf16.vlgmr.msra.gmra.mrb[56].mxu0 %v11852_v3  ;;  %v10704_v3 = vld [vmem:[%s11189_s7 + $0x1c48] ss:$16 sps:$4 sm:$0xff]  }
 0x436   : > { %7778 = vmatmul.mubr.bf16.vlgmr.msra.gmra.mrb[56].mxu1 %v11856_v4  ;;  %7787 = vmatpush1.bf16.msra.mxu0 %v10692_v52  ;;  %v10707_v4 = vld [vmem:[%s11189_s7 + $0x1e48] ss:$16 sps:$4 sm:$0xff]   ;;  %v10772_v52 = vld [vmem:[%s11189_s7 + $0x1dac] ss:$16 sps:$4 sm:$0xff]  }
 0x437   : > { %7828 = vmatpush1.bf16.msra.mxu1 %v10695_v23  ;;  %7788 = vmatprep.subr.bf16.mxu0 %v10700_v43  ;;  %v10775_v23 = vld [vmem:[%s11189_s7 + $0x1fac] ss:$16 sps:$4 sm:$0xff]   ;;  %v10770_v43 = vld [vmem:[%s11189_s7 + $0x1da8] ss:$16 sps:$4 sm:$0xff]  }
 0x438   : > { %7829 = vmatprep.subr.bf16.mxu1 %v10703_v63  ;;  %7818 = vmatprep.mubr.bf16.mxu0 %v11862_v9  ;;  %v10713_v9 = vld [vmem:[%s11189_s7 + $0x1e68] ss:$16 sps:$4 sm:$0xff]  }
 0x439   : > { %7859 = vmatprep.mubr.bf16.mxu1 %v11866_v53  ;;  %v10718_v53 = vld [vmem:[%s11189_s7 + $0x1c8c] ss:$16 sps:$4 sm:$0xff]   ;;  %v10773_v63 = vld [vmem:[%s11189_s7 + $0x1fa8] ss:$16 sps:$4 sm:$0xff]  }
 0x43a   : > { %7789 = vmatpush1.bf16.msra.mxu0 %v10698_v54  ;;  %v10778_v54 = vld [vmem:[%s11189_s7 + $0x1dcc] ss:$16 sps:$4 sm:$0xff]  }
 0x43b   : > { %7830 = vmatpush1.bf16.msra.mxu1 %v10701_v41  ;;  %7790 = vmatprep.subr.bf16.mxu0 %v10706_v42  ;;  %v10781_v41 = vld [vmem:[%s11189_s7 + $0x1fcc] ss:$16 sps:$4 sm:$0xff]   ;;  %v10776_v42 = vld [vmem:[%s11189_s7 + $0x1dc8] ss:$16 sps:$4 sm:$0xff]  }
 0x43c   : > { %7831 = vmatprep.subr.bf16.mxu1 %v10709_v0  ;;  %v10779_v0 = vld [vmem:[%s11189_s7 + $0x1fc8] ss:$16 sps:$4 sm:$0xff]  }
 0x43e   : > { %7791 = vmatpush1.bf16.msra.mxu0 %v10704_v3  ;;  %v10784_v3 = vld [vmem:[%s11189_s7 + $0x1dec] ss:$16 sps:$4 sm:$0xff]  }
 0x43f   : > { %7832 = vmatpush1.bf16.msra.mxu1 %v10707_v4  ;;  %7792 = vmatprep.subr.bf16.mxu0 %v10712_v32  ;;  %v10787_v4 = vld [vmem:[%s11189_s7 + $0x1fec] ss:$16 sps:$4 sm:$0xff]   ;;  %v10782_v32 = vld [vmem:[%s11189_s7 + $0x1de8] ss:$16 sps:$4 sm:$0xff]  }
 0x440   : > { %7833 = vmatprep.subr.bf16.mxu1 %v10715_v36  ;;  %v10785_v36 = vld [vmem:[%s11189_s7 + $0x1fe8] ss:$16 sps:$4 sm:$0xff]  }
 0x442   : > { %7793 = vmatpush1.bf16.msra.mxu0 %v10710_v34 }
 0x443   : > { %7834 = vmatpush1.bf16.msra.mxu1 %v10713_v9  ;;  %7794 = vmatprep.subr.bf16.mxu0 %v10718_v53 }
 0x444   : > { %7835 = vmatprep.subr.bf16.mxu1 %v10721_v55 }
 0x446   : > { %7795 = vmatpush1.bf16.msra.mxu0 %v10716_v29 }
 0x447   : > { %7836 = vmatpush1.bf16.msra.mxu1 %v10719_v31  ;;  %7796 = vmatprep.subr.bf16.mxu0 %v10724_v48 }
 0x448   : > { %7837 = vmatprep.subr.bf16.mxu1 %v10727_v33  ;;  %v7492_v24 = vpop.f32.mrb[44].mxu0 }
 0x449   : > { %v7533_v58 = vpop.f32.mrb[44].mxu1  ;;  %v7493_v7 = vadd.f32 %v7492_v24, %v12416_v39  ;;  %v7494_v8 = vpop.f32.mrb[45].mxu0  ;;  %v10736_v39 = vld [vmem:[%s11189_s7 + $0x1cec] ss:$16 sps:$4 sm:$0xff]  }
 0x44a   : > { %v7535_v47 = vpop.f32.mrb[45].mxu1  ;;  %v7495_v49 = vadd.f32 %v7494_v8, %v12420_v45  ;;  %v7496_v17 = vpop.f32.mrb[46].mxu0  ;;  %7797 = vmatpush1.bf16.msra.mxu0 %v10722_v40  ;;  %v10739_v45 = vld [vmem:[%s11189_s7 + $0x1eec] ss:$16 sps:$4 sm:$0xff]  }
 0x44b   : > { %v7537_v18 = vpop.f32.mrb[46].mxu1  ;;  %7838 = vmatpush1.bf16.msra.mxu1 %v10725_v56  ;;  %v12490_v62 = vadd.f32 %v7533_v58, %v7493_v7  ;;  %v7497_v2 = vpop.f32.mrb[47].mxu0  ;;  %7798 = vmatprep.subr.bf16.mxu0 %v10730_v22 }
 0x44c   : > { %v7538_v5 = vpop.f32.mrb[47].mxu1  ;;  %7839 = vmatprep.subr.bf16.mxu1 %v10733_v61  ;;  %v12494_v25 = vadd.f32 %v7535_v47, %v7495_v49 }
 0x44e   : > { %7799 = vmatpush1.bf16.msra.mxu0 %v10728_v1 }
 0x44f   : > { %7840 = vmatpush1.bf16.msra.mxu1 %v10731_v59  ;;  %7800 = vmatprep.subr.bf16.mxu0 %v10736_v39 }
 0x450   : > { %7841 = vmatprep.subr.bf16.mxu1 %v10739_v45 }
 0x452   : > { %7801 = vmatpush1.bf16.msra.mxu0 %v10734_v26 }
 0x453   : > { %7842 = vmatpush1.bf16.msra.mxu1 %v10737_v37  ;;  %7802 = vmatprep.subr.bf16.mxu0 %v10742_v38 }
 0x454   : > { %7843 = vmatprep.subr.bf16.mxu1 %v10745_v6 }
 0x456   : > { %7803 = vmatpush1.bf16.msra.mxu0 %v10740_v10 }
 0x457   : > { %7844 = vmatpush1.bf16.msra.mxu1 %v10743_v11  ;;  %7804 = vmatprep.subr.bf16.mxu0 %v10748_v35 }
 0x458   : > { %7845 = vmatprep.subr.bf16.mxu1 %v10751_v12 }
 0x45a   : > { %7805 = vmatpush1.bf16.msra.mxu0 %v10746_v57 }
 0x45b   : > { %7846 = vmatpush1.bf16.msra.mxu1 %v10749_v14  ;;  %7806 = vmatprep.subr.bf16.mxu0 %v10754_v15 }
 0x45c   : > { %7847 = vmatprep.subr.bf16.mxu1 %v10757_v16  ;;  %v282_v16 = vld [vmem:[#allocation2 + $0x10] sm:$0xff] }
 0x45e   : > { %7807 = vmatpush1.bf16.msra.mxu0 %v10752_v44 }
 0x45f   : > { %7848 = vmatpush1.bf16.msra.mxu1 %v10755_v46  ;;  %7808 = vmatprep.subr.bf16.mxu0 %v10760_v19 }
 0x460   : > { %7849 = vmatprep.subr.bf16.mxu1 %v10763_v20 }
 0x462   : > { %7809 = vmatpush1.bf16.msra.mxu0 %v10758_v13  ;;  %v283_v13 = vld [vmem:[#allocation2 + $0x18] sm:$0xff] }
 0x463   : > { %7850 = vmatpush1.bf16.msra.mxu1 %v10761_v50  ;;  %7810 = vmatprep.subr.bf16.mxu0 %v10766_v51 }
 0x464   : > { %7851 = vmatprep.subr.bf16.mxu1 %v10769_v21 }
 0x466   : > { %7811 = vmatpush1.bf16.msra.mxu0 %v10764_v30 }
 0x467   : > { %7852 = vmatpush1.bf16.msra.mxu1 %v10767_v60  ;;  %7812 = vmatprep.subr.bf16.mxu0 %v10772_v52  ;;  %v7886_v52 = vlaneseq (!%p9111_p3) }
 0x468   : > { %7853 = vmatprep.subr.bf16.mxu1 %v10775_v23 }
 0x469   : > { %v7887_v23 = vshrl.u32 (!%p9111_p3), %v7886_v52, 7 }
 0x46a   : > { %7813 = vmatpush1.bf16.msra.mxu0 %v10770_v43  ;;  %v7884_v43 = vld [vmem:[%s224_s10] sm:$0xf] (!%p9111_p3) }
 0x46b   : > { %7854 = vmatpush1.bf16.msra.mxu1 %v10773_v63  ;;  %7814 = vmatprep.subr.bf16.mxu0 %v10778_v54  ;;  %v7880_v63 = vld [vmem:[#allocation2] sm:$0xff] (!%p9111_p3)  ;;  %v7888_v54 = vsub.s32 (!%p9111_p3), 0, %v7887_v23 }
 0x46c   : > { %7855 = vmatprep.subr.bf16.mxu1 %v10781_v41  ;;  %v7892_v41 = vsub.s32 (!%p9111_p3), 1, %v7887_v23 }
 0x46e   : > { %7815 = vmatpush1.bf16.msra.mxu0 %v10776_v42  ;;  %v7896_v42 = vsub.s32 (!%p9111_p3), 2, %v7887_v23 }
 0x46f   : > { %7856 = vmatpush1.bf16.msra.mxu1 %v10779_v0  ;;  %7816 = vmatprep.subr.bf16.mxu0 %v10784_v3  ;;  %v7900_v0 = vsub.s32 (!%p9111_p3), 3, %v7887_v23  ;;  %v7881_v3 = vld [vmem:[#allocation2 + $0x8] sm:$0xff] (!%p9111_p3) }
 0x470   : > { %7857 = vmatprep.subr.bf16.mxu1 %v10787_v4 }
 0x472   : > { %7817 = vmatpush1.bf16.msra.mxu0 %v10782_v32 }
 0x473   : > { %7858 = vmatpush1.bf16.msra.mxu1 %v10785_v36  ;;  %v7889_v36 = vrot.slane (!%p9111_p3), %v7884_v43, %v7888_v54 }
 0x475   : > { %7819 = vmatmul.mubr.bf16.vlgmr.msra.gmra.mrb[60].mxu0 %v11942_v27 }
 0x476   : > { %7860 = vmatmul.mubr.bf16.vlgmr.msra.gmra.mrb[60].mxu1 %v11946_v28 }
 0x488   : > { %v7574_v34 = vpop.f32.mrb[48].mxu0 }
 0x489   : > { %v7615_v9 = vpop.f32.mrb[48].mxu1  ;;  %v7575_v53 = vadd.f32 %v7574_v34, %v12490_v62  ;;  %v7576_v55 = vpop.f32.mrb[49].mxu0  ;;  %v7893_v34 = vrot.slane (!%p9111_p3), %v7884_v43, %v7892_v41 }
 0x48a   : > { %v7617_v29 = vpop.f32.mrb[49].mxu1  ;;  %v7577_v31 = vadd.f32 %v7576_v55, %v12494_v25  ;;  %v7578_v48 = vpop.f32.mrb[50].mxu0  ;;  %v7906_v55 = vadd.f32 (!%p9111_p3), %v7889_v36, %v7880_v63 }
 0x48b   : > { %v7619_v33 = vpop.f32.mrb[50].mxu1  ;;  %v7616_v40 = vadd.f32 %v7615_v9, %v7575_v53  ;;  %v7579_v56 = vpop.f32.mrb[51].mxu0  ;;  %v7897_v9 = vrot.slane (!%p9111_p3), %v7884_v43, %v7896_v42  ;;  %v7901_v53 = vrot.slane (!%p9111_p3), %v7884_v43, %v7900_v0 }
 0x48c   : > { %v7620_v22 = vpop.f32.mrb[51].mxu1  ;;  %v7618_v61 = vadd.f32 %v7617_v29, %v7577_v31  ;;  %v7907_v29 = vadd.f32 (!%p9111_p3), %v7893_v34, %v7881_v3  ;;  %v7910_v33 = vmax.f32 (!%p9111_p3), %v7906_v55, 0.0 }
 0x48e   : > { %7914 = vst [vmem:[%s11213_s4] sm:$0xff] (!%p9111_p3), %v7910_v33 }
 0x4c8   : > { %v7656_v24 = vpop.f32.mrb[52].mxu0 }
 0x4c9   : > { %v7697_v58 = vpop.f32.mrb[52].mxu1  ;;  %v7657_v7 = vadd.f32 %v7656_v24, %v7616_v40  ;;  %v7658_v27 = vpop.f32.mrb[53].mxu0  ;;  %v7911_v40 = vmax.f32 (!%p9111_p3), %v7907_v29, 0.0 }
 0x4ca   : > { %v7699_v8 = vpop.f32.mrb[53].mxu1  ;;  %v7659_v28 = vadd.f32 %v7658_v27, %v7618_v61  ;;  %v7660_v47 = vpop.f32.mrb[54].mxu0 }
 0x4cb   : > { %v7701_v49 = vpop.f32.mrb[54].mxu1  ;;  %v7698_v17 = vadd.f32 %v7697_v58, %v7657_v7  ;;  %v7661_v18 = vpop.f32.mrb[55].mxu0  ;;  %7915 = vst [vmem:[%s11213_s4 + $0x8] sm:$0xff] (!%p9111_p3), %v7911_v40 }
 0x4cc   : > { %v7702_v1 = vpop.f32.mrb[55].mxu1  ;;  %v7700_v59 = vadd.f32 %v7699_v8, %v7659_v28 }
 0x508   : > { %v7738_v62 = vpop.f32.mrb[56].mxu0 }
 0x509   : > { %v7779_v2 = vpop.f32.mrb[56].mxu1  ;;  %v7739_v5 = vadd.f32 %v7738_v62, %v7698_v17  ;;  %v7740_v39 = vpop.f32.mrb[57].mxu0 }
 0x50a   : > { %v7781_v45 = vpop.f32.mrb[57].mxu1  ;;  %v7741_v25 = vadd.f32 %v7740_v39, %v7700_v59  ;;  %v7742_v26 = vpop.f32.mrb[58].mxu0 }
 0x50b   : > { %v7783_v37 = vpop.f32.mrb[58].mxu1  ;;  %v7780_v38 = vadd.f32 %v7779_v2, %v7739_v5  ;;  %v7743_v6 = vpop.f32.mrb[59].mxu0 }
 0x50c   : > { %v7784_v10 = vpop.f32.mrb[59].mxu1  ;;  %v7782_v11 = vadd.f32 %v7781_v45, %v7741_v25 }
 0x548   : > { %v7820_v35 = vpop.f32.mrb[60].mxu0 }
 0x549   : > { %v7861_v12 = vpop.f32.mrb[60].mxu1  ;;  %v7821_v57 = vadd.f32 %v7820_v35, %v7780_v38  ;;  %v7822_v14 = vpop.f32.mrb[61].mxu0 }
 0x54a   : > { %v7863_v15 = vpop.f32.mrb[61].mxu1  ;;  %v7823_v44 = vadd.f32 %v7822_v14, %v7782_v11  ;;  %v7824_v46 = vpop.f32.mrb[62].mxu0  ;;  %7879 = sbr.rel (%p9111_p3) target bundleno = 1373 (0x55d), region = 48 }
 0x54b   : > { %v7865_v19 = vpop.f32.mrb[62].mxu1  ;;  %v7862_v20 = vadd.f32 %v7861_v12, %v7821_v57  ;;  %v7825_v50 = vpop.f32.mrb[63].mxu0 }
 0x54c   : > { %v7866_v51 = vpop.f32.mrb[63].mxu1  ;;  %v7864_v21 = vadd.f32 %v7863_v15, %v7823_v44 }
 0x54d   : > { %v7870_v30 = vadd.f32 %v7862_v20, %v282_v16 }
 0x54e   : > { %v7871_v60 = vadd.f32 %v7864_v21, %v283_v13 }
 0x54f   : > { %7874 = vst [vmem:[#allocation2 + $0x10] sm:$0xff] %v7870_v30 }
 0x550   : > { %7875 = vst [vmem:[#allocation2 + $0x18] sm:$0xff] %v7871_v60 }
 0x556   : > { %v7882_v4 = vld [vmem:[#allocation2 + $0x10] sm:$0xff] }
 0x557   : > { %v7883_v32 = vld [vmem:[#allocation2 + $0x18] sm:$0xff]  ;;  %v7908_v31 = vadd.f32 %v7897_v9, %v7882_v4 }
 0x558   : > { %v7909_v48 = vadd.f32 %v7901_v53, %v7883_v32 }
 0x559   : > { %v7912_v56 = vmax.f32 %v7908_v31, 0.0 }
 0x55a   : > { %v7913_v22 = vmax.f32 %v7909_v48, 0.0 }
 0x55b   : > { %7916 = vst [vmem:[%s11213_s4 + $0x10] sm:$0xff] %v7912_v56 }
 0x55c   : > { %7917 = vst [vmem:[%s11213_s4 + $0x18] sm:$0xff] %v7913_v22 }
 0x55d PF: > { %s19_s22 = sadd.s32 1, %s10942_s22   ;;  %s12599_s7 = sld [smem:[#allocation9_spill]] }
 0x55e   : > { %p16_p11 = scmp.ge.s32.totalorder %s19_s22, 6   ;;  %s12600_s12 = smov %s10906_s13 }
 0x55f   : > { %s12601_s13 = smov %s10910_s14  ;;  %s12602_s14 = smov %s11138_s29 }
 0x560   : > { %s12603_s15 = smov %s10918_s16  ;;  %s12604_s16 = smov %s10922_s17 }
 0x561   : > { %s12605_s17 = smov %s11143_s6  ;;  %s12606_s18 = smov %s10934_s20 }
 0x562   : > { %s12607_s19 = smov %s10938_s21  ;;  %s12608_s20 = smov %s12611_s23 }
 0x563   : > { %s12609_s21 = smov %s12599_s7  ;;  %18 = sbr.rel (!%p16_p11) target bundleno = 11 (0xb), region = 96 }
 0x56a   :  { %7940 = vsyncpa [#allocation4], 1 }
 0x56b   :  { %7942 = vsyncpa [#allocation4 + $0x1], 1 }
 0x56c   :  { %7943 = vsyncpa [#allocation6], 1 }
 0x56d   :  { %7945 = vsyncpa [#allocation6 + $0x1], 1 }

</bundles_post_ra>
